<compile_context>
chip_gen: v7x
topology: tpu7x:2x2x1
jax: 0.10.0
libtpu: 0.0.40
codegen_flags: <defaults>
</compile_context>

<pallas_src>
import functools

import jax
import jax.numpy as jnp
from jax.experimental import pallas as pl
from jax.experimental.pallas import tpu as pltpu


_MAX_BATCH_TILE = 8                      # cap on in-kernel static unroll over the batch tile
_ACT_VMEM_BUDGET = 8 * 1024 * 1024       # rough per-step activation budget (bytes)
_VMEM_LIMIT_BYTES = 48 * 1024 * 1024     # below v7x's 64 MiB/TC physical VMEM


# ------------------------- in-kernel helpers -------------------------

def _layernorm(x, gamma, beta, eps=1e-5):
    mean = jnp.mean(x, axis=-1, keepdims=True)
    xc = x - mean
    var = jnp.mean(xc * xc, axis=-1, keepdims=True)
    return xc * jax.lax.rsqrt(var + eps) * gamma + beta


def _gelu_tanh(x):
    # GELU(approximate='tanh')
    c = jnp.float32(0.7978845608028654)  # sqrt(2/pi)
    return 0.5 * x * (1.0 + jnp.tanh(c * (x + 0.044715 * x * x * x)))


def _softmax_lastdim(logits):
    # Stable softmax; reciprocal goes to the (otherwise idle) EUP slot.
    m = jnp.max(logits, axis=-1, keepdims=True)
    e = jnp.exp(logits - m)
    return e * pl.reciprocal(jnp.sum(e, axis=-1, keepdims=True), approx=True)


# ------------------------- fused decoder-block kernel -------------------------

def _decoder_block_kernel(
    q_ref, x1_ref, x2_ref,
    wq1_ref, wk1_ref, wv1_ref, wo1_ref, bo1_ref,        # self-attention (timm Attention)
    wq2_ref, wk2_ref, wv2_ref, wo2_ref,                 # cross-attention (no biases)
    wf1_ref, bf1_ref, wf2_ref, bf2_ref,                 # Mlp
    g1_ref, b1_ref, g2_ref, b2_ref, g3_ref, b3_ref,     # LayerNorms 1..3
    out_ref,
    *, num_heads, head_dim,
):
    bt, n_q, C = q_ref.shape
    n_kv = x2_ref.shape[1]
    rows_q = bt * n_q
    rows_kv = bt * n_kv
    scale = jnp.float32(head_dim) ** -0.5

    # Residual stream in f32, flattened to (rows, C) so dense layers run as single large
    # MXU matmuls over the whole batch tile.
    q = (q_ref[...].astype(jnp.float32) + x1_ref[...].astype(jnp.float32)).reshape(rows_q, C)
    x2 = x2_ref[...].astype(jnp.float32).reshape(rows_kv, C)

    def attention(q_src, kv_src, n_k, wq, wk, wv):
        # Projections: bf16 operands, f32 accumulation, one big (rows, C)@(C, C) matmul each.
        qs = jnp.dot(q_src.astype(jnp.bfloat16), wq, preferred_element_type=jnp.float32)
        ks = jnp.dot(kv_src.astype(jnp.bfloat16), wk, preferred_element_type=jnp.float32)
        vs = jnp.dot(kv_src.astype(jnp.bfloat16), wv, preferred_element_type=jnp.float32)
        outs = []
        for b in range(bt):  # static unroll, small (bt <= _MAX_BATCH_TILE)
            qb = qs[b * n_q:(b + 1) * n_q].astype(jnp.bfloat16).reshape(n_q, num_heads, head_dim)
            kb = ks[b * n_k:(b + 1) * n_k].astype(jnp.bfloat16).reshape(n_k, num_heads, head_dim)
            vb = vs[b * n_k:(b + 1) * n_k].astype(jnp.bfloat16).reshape(n_k, num_heads, head_dim)
            # Head-batched contractions (single 'h' batch dim) — no per-head lane slicing
            # and no lane-axis concatenate.
            logits = jnp.einsum('qhd,khd->hqk', qb, kb,
                                preferred_element_type=jnp.float32) * scale
            probs = _softmax_lastdim(logits)
            ctx = jnp.einsum('hqk,khd->qhd', probs.astype(jnp.bfloat16), vb,
                             preferred_element_type=jnp.float32)
            outs.append(ctx.reshape(n_q, C))
        return outs[0] if bt == 1 else jnp.concatenate(outs, axis=0)

    # --- x1 = self.attn(q); q = norm1(q + x1) ---
    a = attention(q, q, n_q, wq1_ref[...], wk1_ref[...], wv1_ref[...])
    a = jnp.dot(a.astype(jnp.bfloat16), wo1_ref[...],
                preferred_element_type=jnp.float32) + bo1_ref[...]
    q = _layernorm(q + a, g1_ref[...], b1_ref[...])

    # --- x2 = self.attn2(q, x2); q = norm2(q + x2) ---
    ca = attention(q, x2, n_kv, wq2_ref[...], wk2_ref[...], wv2_ref[...])
    ca = jnp.dot(ca.astype(jnp.bfloat16), wo2_ref[...], preferred_element_type=jnp.float32)
    q = _layernorm(q + ca, g2_ref[...], b2_ref[...])

    # --- q = norm3(q + mlp(q)) ---
    h = jnp.dot(q.astype(jnp.bfloat16), wf1_ref[...],
                preferred_element_type=jnp.float32) + bf1_ref[...]
    h = _gelu_tanh(h)
    m = jnp.dot(h.astype(jnp.bfloat16), wf2_ref[...],
                preferred_element_type=jnp.float32) + bf2_ref[...]
    q = _layernorm(q + m, g3_ref[...], b3_ref[...])

    out_ref[...] = q.reshape(bt, n_q, C).astype(out_ref.dtype)


# ------------------------- wrapper -------------------------

def _pick_batch_tile(B, n_q, n_kv, C, num_heads, mlp_hidden):
    """Largest divisor of B (capped) whose per-step activations fit the VMEM budget."""
    def act_bytes(bt):
        rows_q, rows_kv = bt * n_q, bt * n_kv
        return 4 * (rows_q * C * 6                              # residual + q/k/v + attn-out
                    + rows_kv * C * 3                           # x2 + cross k/v
                    + num_heads * n_q * max(n_q, n_kv) * 2      # logits + probs
                    + rows_q * mlp_hidden * 2)                  # MLP hidden (pre/post act)
    best = 1
    for bt in range(1, min(B, _MAX_BATCH_TILE) + 1):
        if B % bt == 0 and act_bytes(bt) <= _ACT_VMEM_BUDGET:
            best = bt
    return best


def _cost_estimate(B, n_q, n_kv, C, mlp_hidden, num_heads, operands, out_bytes):
    flops = 2 * B * n_q * C * 3 * C             # self-attn qkv projections
    flops += 2 * B * n_q * n_q * C * 2          # self-attn logits + context (all heads)
    flops += 2 * B * n_q * C * C                # self-attn output projection
    flops += 2 * B * n_q * C * C                # cross-attn q projection
    flops += 2 * B * n_kv * C * 2 * C           # cross-attn kv projections
    flops += 2 * B * n_q * n_kv * C * 2         # cross-attn logits + context
    flops += 2 * B * n_q * C * C                # cross-attn output projection
    flops += 2 * B * n_q * C * mlp_hidden * 2   # MLP fc1 + fc2
    transcendentals = B * num_heads * n_q * (n_q + n_kv)   # softmax exp
    transcendentals += B * n_q * mlp_hidden                # GELU tanh
    transcendentals += 3 * B * n_q                         # LayerNorm rsqrt
    bytes_accessed = out_bytes + sum(int(a.size) * a.dtype.itemsize for a in operands)
    return pl.CostEstimate(flops=int(flops), transcendentals=int(transcendentals),
                           bytes_accessed=int(bytes_accessed))


def decoder_block(q, x1, x2, c, params, num_heads, *, batch_tile=None):
    del c  # `c` is unused by DecoderBlock.forward in the reference module
    B, N1, C = q.shape
    _, N2, _ = x2.shape
    head_dim = C // num_heads
    mlp_hidden = params["w_fc1"].shape[1]

    if batch_tile is None:
        batch_tile = _pick_batch_tile(B, N1, N2, C, num_heads, mlp_hidden)
    assert B % batch_tile == 0

    bf16 = lambda w: w.astype(jnp.bfloat16)
    # MXU weight operands in bf16 (f32 accumulation in-kernel); biases & LN params stay f32.
    weight_args = [
        bf16(params["w_q1"]), bf16(params["w_k1"]), bf16(params["w_v1"]),
        bf16(params["w_o1"]), params["b_o1"],
        bf16(params["w_q2"]), bf16(params["w_k2"]), bf16(params["w_v2"]), bf16(params["w_o2"]),
        bf16(params["w_fc1"]), params["b_fc1"], bf16(params["w_fc2"]), params["b_fc2"],
        params["g1"], params["b1"], params["g2"], params["b2"], params["g3"], params["b3"],
    ]

    def seq_spec(n):
        return pl.BlockSpec((batch_tile, n, C), lambda b: (b, 0, 0))

    def weight_spec(a, single_buffer):
        if single_buffer:
            # Constant index_map -> weights are never re-fetched; single-buffer them to
            # halve weight-resident VMEM (matters most on v7x's 64 MiB/TC).
            return pl.BlockSpec(a.shape, lambda b: (0, 0),
                                pipeline_mode=pl.Buffered(buffer_count=1))
        return pl.BlockSpec(a.shape, lambda b: (0, 0))

    out_shape = jax.ShapeDtypeStruct((B, N1, C), q.dtype)
    cost = _cost_estimate(B, N1, N2, C, mlp_hidden, num_heads,
                          [q, x1, x2] + weight_args,
                          B * N1 * C * q.dtype.itemsize)

    kernel = functools.partial(_decoder_block_kernel,
                               num_heads=num_heads, head_dim=head_dim)

    def build(single_buffer_weights):
        return pl.pallas_call(
            kernel,
            out_shape=out_shape,
            grid=(B // batch_tile,),
            in_specs=[seq_spec(N1), seq_spec(N1), seq_spec(N2)]
                     + [weight_spec(w, single_buffer_weights) for w in weight_args],
            out_specs=seq_spec(N1),
            compiler_params=pltpu.CompilerParams(
                dimension_semantics=("parallel",),
                vmem_limit_bytes=_VMEM_LIMIT_BYTES),
            cost_estimate=cost,
        )

    try:
        return build(True)(q, x1, x2, *weight_args)
    except Exception:
        # Fallback if this JAX version rejects pipeline_mode on top-level BlockSpecs.
        return build(False)(q, x1, x2, *weight_args)


# ------------------------- pure-JAX f32 reference (for sanity check) -------------------------

def decoder_block_reference(q, x1, x2, c, params, num_heads):
    del c
    B, N1, C = q.shape
    hd = C // num_heads

    def ln(x, g, b):
        m = x.mean(-1, keepdims=True)
        v = ((x - m) ** 2).mean(-1, keepdims=True)
        return (x - m) * jax.lax.rsqrt(v + 1e-5) * g + b

    def mha(qin, kvin, wq, wk, wv):
        nq, nk = qin.shape[1], kvin.shape[1]
        qs = (qin @ wq).reshape(B, nq, num_heads, hd).transpose(0, 2, 1, 3)
        ks = (kvin @ wk).reshape(B, nk, num_heads, hd).transpose(0, 2, 1, 3)
        vs = (kvin @ wv).reshape(B, nk, num_heads, hd).transpose(0, 2, 1, 3)
        logits = (qs * hd ** -0.5) @ ks.transpose(0, 1, 3, 2)
        ctx = jax.nn.softmax(logits, axis=-1) @ vs
        return ctx.transpose(0, 2, 1, 3).reshape(B, nq, C)

    q = q + x1
    a = mha(q, q, params["w_q1"], params["w_k1"], params["w_v1"]) @ params["w_o1"] + params["b_o1"]
    q = ln(q + a, params["g1"], params["b1"])
    ca = mha(q, x2, params["w_q2"], params["w_k2"], params["w_v2"]) @ params["w_o2"]
    q = ln(q + ca, params["g2"], params["b2"])
    h = jax.nn.gelu(q @ params["w_fc1"] + params["b_fc1"], approximate=True)
    q = ln(q + (h @ params["w_fc2"] + params["b_fc2"]), params["g3"], params["b3"])
    return q


# ------------------------- deterministic parameter init -------------------------

def init_params(key, C, mlp_ratio=4.0):
    H = int(C * mlp_ratio)
    ks = jax.random.split(key, 10)

    def w(k, i, o, scale=0.05):
        # sampled directly in (in, out) layout (== PyTorch (out, in) weight, transposed)
        return scale * jax.random.normal(k, (i, o), dtype=jnp.float32)

    p = {}
    # self-attention: qkv Linear(C, 3C, bias=False) split into q/k/v columns
    wqkv = w(ks[0], C, 3 * C)
    p["w_q1"], p["w_k1"], p["w_v1"] = wqkv[:, :C], wqkv[:, C:2 * C], wqkv[:, 2 * C:]
    p["w_o1"] = w(ks[1], C, C)                                   # proj (bias=True in timm)
    p["b_o1"] = 0.01 * jax.random.normal(ks[2], (1, C), jnp.float32)
    # cross-attention: q_mat(C,C), kv_mat(C,2C), proj(C,C) all bias=False
    p["w_q2"] = w(ks[3], C, C)
    wkv = w(ks[4], C, 2 * C)
    p["w_k2"], p["w_v2"] = wkv[:, :C], wkv[:, C:]
    p["w_o2"] = w(ks[5], C, C)
    # Mlp: fc1(C,H)+b, gelu(tanh), fc2(H,C)+b
    p["w_fc1"] = w(ks[6], C, H)
    p["b_fc1"] = 0.01 * jax.random.normal(ks[7], (1, H), jnp.float32)
    p["w_fc2"] = w(ks[8], H, C)
    p["b_fc2"] = 0.01 * jax.random.normal(ks[9], (1, C), jnp.float32)
    # LayerNorms (default PyTorch init: gamma=1, beta=0)
    for i in (1, 2, 3):
        p[f"g{i}"] = jnp.ones((1, C), jnp.float32)
        p[f"b{i}"] = jnp.zeros((1, C), jnp.float32)
    return p


if __name__ == "__main__":
    # hidden=128 (lane-dense output), 4 heads -> head_dim=32, mlp_hidden=512
    B, N1, N2, C, num_heads = 2, 8, 16, 128, 4
    key = jax.random.PRNGKey(0)
    kq, k1, k2, kc, kp = jax.random.split(key, 5)
    q = jax.random.normal(kq, (B, N1, C), jnp.float32)
    x1 = jax.random.normal(k1, (B, N1, C), jnp.float32)
    x2 = jax.random.normal(k2, (B, N2, C), jnp.float32)
    c = jax.random.normal(kc, (B, N1, C), jnp.float32)  # unused by forward (signature parity)
    params = init_params(kp, C)

    out = decoder_block(q, x1, x2, c, params, num_heads)
    jax.block_until_ready(out)
    assert out.shape == (B, N1, C)

    # Loose sanity check vs. the f32 reference (kernel uses bf16 MXU operands).
    ref = decoder_block_reference(q, x1, x2, c, params, num_heads)
    max_err = float(jnp.max(jnp.abs(out - ref)))
    assert max_err < 0.2, f"max abs error vs reference too large: {max_err}"
    print("KERNEL_OK")
</pallas_src>

<mosaic_0001>
module attributes {stable_mosaic.version = 11 : i64} {
  func.func @_decoder_block_kernel(%arg0: i32, %arg1: memref<2x8x128xf32, #tpu.memory_space<vmem>>, %arg2: memref<2x8x128xf32, #tpu.memory_space<vmem>>, %arg3: memref<2x16x128xf32, #tpu.memory_space<vmem>>, %arg4: memref<128x128xbf16, #tpu.memory_space<vmem>>, %arg5: memref<128x128xbf16, #tpu.memory_space<vmem>>, %arg6: memref<128x128xbf16, #tpu.memory_space<vmem>>, %arg7: memref<128x128xbf16, #tpu.memory_space<vmem>>, %arg8: memref<1x128xf32, #tpu.memory_space<vmem>>, %arg9: memref<128x128xbf16, #tpu.memory_space<vmem>>, %arg10: memref<128x128xbf16, #tpu.memory_space<vmem>>, %arg11: memref<128x128xbf16, #tpu.memory_space<vmem>>, %arg12: memref<128x128xbf16, #tpu.memory_space<vmem>>, %arg13: memref<128x512xbf16, #tpu.memory_space<vmem>>, %arg14: memref<1x512xf32, #tpu.memory_space<vmem>>, %arg15: memref<512x128xbf16, #tpu.memory_space<vmem>>, %arg16: memref<1x128xf32, #tpu.memory_space<vmem>>, %arg17: memref<1x128xf32, #tpu.memory_space<vmem>>, %arg18: memref<1x128xf32, #tpu.memory_space<vmem>>, %arg19: memref<1x128xf32, #tpu.memory_space<vmem>>, %arg20: memref<1x128xf32, #tpu.memory_space<vmem>>, %arg21: memref<1x128xf32, #tpu.memory_space<vmem>>, %arg22: memref<1x128xf32, #tpu.memory_space<vmem>>, %arg23: memref<2x8x128xf32, #tpu.memory_space<vmem>>) attributes {dimension_semantics = [#tpu.dimension_semantics<parallel>], iteration_bounds = array<i64: 1>, scalar_prefetch = 0 : i64, scratch_operands = 0 : i64, tpu.core_type = #tpu.core_type<tc>, window_params = [{transform_indices = @transform_0, window_bounds = array<i64: 2, 8, 128>}, {transform_indices = @transform_1, window_bounds = array<i64: 2, 8, 128>}, {transform_indices = @transform_2, window_bounds = array<i64: 2, 16, 128>}, {pipeline_mode = #tpu.pipeline_mode<synchronous>, transform_indices = @transform_3, window_bounds = array<i64: 128, 128>}, {pipeline_mode = #tpu.pipeline_mode<synchronous>, transform_indices = @transform_4, window_bounds = array<i64: 128, 128>}, {pipeline_mode = #tpu.pipeline_mode<synchronous>, transform_indices = @transform_5, window_bounds = array<i64: 128, 128>}, {pipeline_mode = #tpu.pipeline_mode<synchronous>, transform_indices = @transform_6, window_bounds = array<i64: 128, 128>}, {pipeline_mode = #tpu.pipeline_mode<synchronous>, transform_indices = @transform_7, window_bounds = array<i64: 1, 128>}, {pipeline_mode = #tpu.pipeline_mode<synchronous>, transform_indices = @transform_8, window_bounds = array<i64: 128, 128>}, {pipeline_mode = #tpu.pipeline_mode<synchronous>, transform_indices = @transform_9, window_bounds = array<i64: 128, 128>}, {pipeline_mode = #tpu.pipeline_mode<synchronous>, transform_indices = @transform_10, window_bounds = array<i64: 128, 128>}, {pipeline_mode = #tpu.pipeline_mode<synchronous>, transform_indices = @transform_11, window_bounds = array<i64: 128, 128>}, {pipeline_mode = #tpu.pipeline_mode<synchronous>, transform_indices = @transform_12, window_bounds = array<i64: 128, 512>}, {pipeline_mode = #tpu.pipeline_mode<synchronous>, transform_indices = @transform_13, window_bounds = array<i64: 1, 512>}, {pipeline_mode = #tpu.pipeline_mode<synchronous>, transform_indices = @transform_14, window_bounds = array<i64: 512, 128>}, {pipeline_mode = #tpu.pipeline_mode<synchronous>, transform_indices = @transform_15, window_bounds = array<i64: 1, 128>}, {pipeline_mode = #tpu.pipeline_mode<synchronous>, transform_indices = @transform_16, window_bounds = array<i64: 1, 128>}, {pipeline_mode = #tpu.pipeline_mode<synchronous>, transform_indices = @transform_17, window_bounds = array<i64: 1, 128>}, {pipeline_mode = #tpu.pipeline_mode<synchronous>, transform_indices = @transform_18, window_bounds = array<i64: 1, 128>}, {pipeline_mode = #tpu.pipeline_mode<synchronous>, transform_indices = @transform_19, window_bounds = array<i64: 1, 128>}, {pipeline_mode = #tpu.pipeline_mode<synchronous>, transform_indices = @transform_20, window_bounds = array<i64: 1, 128>}, {pipeline_mode = #tpu.pipeline_mode<synchronous>, transform_indices = @transform_21, window_bounds = array<i64: 1, 128>}, {transform_indices = @transform_22, window_bounds = array<i64: 2, 8, 128>}]} {
    %cst = arith.constant 3.200000e+01 : f32
    %cst_0 = arith.constant -5.000000e-01 : f32
    %0 = math.powf %cst, %cst_0 : f32
    %c0 = arith.constant 0 : index
    %c0_1 = arith.constant 0 : index
    %c0_2 = arith.constant 0 : index
    %1 = vector.load %arg1[%c0, %c0_1, %c0_2] : memref<2x8x128xf32, #tpu.memory_space<vmem>>, vector<2x8x128xf32>
    %c0_3 = arith.constant 0 : index
    %c0_4 = arith.constant 0 : index
    %c0_5 = arith.constant 0 : index
    %2 = vector.load %arg2[%c0_3, %c0_4, %c0_5] : memref<2x8x128xf32, #tpu.memory_space<vmem>>, vector<2x8x128xf32>
    %3 = arith.addf %1, %2 : vector<2x8x128xf32>
    %4 = vector.shape_cast %3 : vector<2x8x128xf32> to vector<16x128xf32>
    %c0_6 = arith.constant 0 : index
    %c0_7 = arith.constant 0 : index
    %c0_8 = arith.constant 0 : index
    %5 = vector.load %arg3[%c0_6, %c0_7, %c0_8] : memref<2x16x128xf32, #tpu.memory_space<vmem>>, vector<2x16x128xf32>
    %6 = vector.shape_cast %5 : vector<2x16x128xf32> to vector<32x128xf32>
    %c0_9 = arith.constant 0 : index
    %c0_10 = arith.constant 0 : index
    %7 = vector.load %arg4[%c0_9, %c0_10] : memref<128x128xbf16, #tpu.memory_space<vmem>>, vector<128x128xbf16>
    %c0_11 = arith.constant 0 : index
    %c0_12 = arith.constant 0 : index
    %8 = vector.load %arg5[%c0_11, %c0_12] : memref<128x128xbf16, #tpu.memory_space<vmem>>, vector<128x128xbf16>
    %c0_13 = arith.constant 0 : index
    %c0_14 = arith.constant 0 : index
    %9 = vector.load %arg6[%c0_13, %c0_14] : memref<128x128xbf16, #tpu.memory_space<vmem>>, vector<128x128xbf16>
    %10 = arith.truncf %4 : vector<16x128xf32> to vector<16x128xbf16>
    %cst_15 = arith.constant dense<0.000000e+00> : vector<16x128xf32>
    %11 = tpu.matmul %10, %7, %cst_15 {dimension_numbers = #tpu.dot_dimension_numbers<[1], [0], [0], [1], [0, 0, 1, 1], [], []>} : vector<16x128xbf16>, vector<128x128xbf16>, vector<16x128xf32> -> vector<16x128xf32>
    %12 = arith.truncf %4 : vector<16x128xf32> to vector<16x128xbf16>
    %cst_16 = arith.constant dense<0.000000e+00> : vector<16x128xf32>
    %13 = tpu.matmul %12, %8, %cst_16 {dimension_numbers = #tpu.dot_dimension_numbers<[1], [0], [0], [1], [0, 0, 1, 1], [], []>} : vector<16x128xbf16>, vector<128x128xbf16>, vector<16x128xf32> -> vector<16x128xf32>
    %14 = arith.truncf %4 : vector<16x128xf32> to vector<16x128xbf16>
    %cst_17 = arith.constant dense<0.000000e+00> : vector<16x128xf32>
    %15 = tpu.matmul %14, %9, %cst_17 {dimension_numbers = #tpu.dot_dimension_numbers<[1], [0], [0], [1], [0, 0, 1, 1], [], []>} : vector<16x128xbf16>, vector<128x128xbf16>, vector<16x128xf32> -> vector<16x128xf32>
    %16 = vector.extract_strided_slice %11 {offsets = [0, 0], sizes = [8, 128], strides = [1, 1]} : vector<16x128xf32> to vector<8x128xf32>
    %17 = arith.truncf %16 : vector<8x128xf32> to vector<8x128xbf16>
    %18 = vector.shape_cast %17 : vector<8x128xbf16> to vector<8x4x32xbf16>
    %19 = vector.extract_strided_slice %13 {offsets = [0, 0], sizes = [8, 128], strides = [1, 1]} : vector<16x128xf32> to vector<8x128xf32>
    %20 = arith.truncf %19 : vector<8x128xf32> to vector<8x128xbf16>
    %21 = vector.shape_cast %20 : vector<8x128xbf16> to vector<8x4x32xbf16>
    %22 = vector.extract_strided_slice %15 {offsets = [0, 0], sizes = [8, 128], strides = [1, 1]} : vector<16x128xf32> to vector<8x128xf32>
    %23 = arith.truncf %22 : vector<8x128xf32> to vector<8x128xbf16>
    %24 = vector.shape_cast %23 : vector<8x128xbf16> to vector<8x4x32xbf16>
    "tpu.trace_start"() <{level = 10 : i32, message = "qhd,khd->hqk"}> : () -> ()
    %cst_18 = arith.constant dense<0.000000e+00> : vector<4x8x8xf32>
    %25 = tpu.matmul %18, %21, %cst_18 {dimension_numbers = #tpu.dot_dimension_numbers<[2], [2], [0], [0], [0, 1, 0, 0, 1, 0], [1], [1]>} : vector<8x4x32xbf16>, vector<8x4x32xbf16>, vector<4x8x8xf32> -> vector<4x8x8xf32>
    "tpu.trace_stop"() : () -> ()
    %26 = vector.broadcast %0 : f32 to vector<4x8x8xf32>
    %27 = arith.mulf %25, %26 : vector<4x8x8xf32>
    %cst_19 = arith.constant dense<0xFF800000> : vector<4x8xf32>
    %28 = vector.multi_reduction <maximumf>, %27, %cst_19 [2] : vector<4x8x8xf32> to vector<4x8xf32>
    %29 = vector.shape_cast %28 : vector<4x8xf32> to vector<4x8x1xf32>
    %30 = vector.broadcast %29 : vector<4x8x1xf32> to vector<4x8x8xf32>
    %31 = arith.subf %27, %30 : vector<4x8x8xf32>
    %32 = math.exp %31 : vector<4x8x8xf32>
    %cst_20 = arith.constant dense<0.000000e+00> : vector<4x8xf32>
    %33 = vector.multi_reduction <add>, %32, %cst_20 [2] : vector<4x8x8xf32> to vector<4x8xf32>
    %34 = vector.shape_cast %33 : vector<4x8xf32> to vector<4x8x1xf32>
    %35 = tpu.reciprocal %34 {approx = true} : vector<4x8x1xf32> -> vector<4x8x1xf32>
    %36 = vector.broadcast %35 : vector<4x8x1xf32> to vector<4x8x8xf32>
    %37 = arith.mulf %32, %36 : vector<4x8x8xf32>
    %38 = arith.truncf %37 : vector<4x8x8xf32> to vector<4x8x8xbf16>
    "tpu.trace_start"() <{level = 10 : i32, message = "hqk,khd->qhd"}> : () -> ()
    %cst_21 = arith.constant dense<0.000000e+00> : vector<4x32x8xf32>
    %39 = tpu.matmul %24, %38, %cst_21 {dimension_numbers = #tpu.dot_dimension_numbers<[0], [2], [2], [1], [0, 1, 0, 2, 1, 1], [1], [0]>} : vector<8x4x32xbf16>, vector<4x8x8xbf16>, vector<4x32x8xf32> -> vector<4x32x8xf32>
    %40 = tpu.transpose %39, [2, 0, 1] : vector<4x32x8xf32> -> vector<8x4x32xf32>
    "tpu.trace_stop"() : () -> ()
    %41 = vector.shape_cast %40 : vector<8x4x32xf32> to vector<8x128xf32>
    %42 = vector.extract_strided_slice %11 {offsets = [8, 0], sizes = [8, 128], strides = [1, 1]} : vector<16x128xf32> to vector<8x128xf32>
    %43 = arith.truncf %42 : vector<8x128xf32> to vector<8x128xbf16>
    %44 = vector.shape_cast %43 : vector<8x128xbf16> to vector<8x4x32xbf16>
    %45 = vector.extract_strided_slice %13 {offsets = [8, 0], sizes = [8, 128], strides = [1, 1]} : vector<16x128xf32> to vector<8x128xf32>
    %46 = arith.truncf %45 : vector<8x128xf32> to vector<8x128xbf16>
    %47 = vector.shape_cast %46 : vector<8x128xbf16> to vector<8x4x32xbf16>
    %48 = vector.extract_strided_slice %15 {offsets = [8, 0], sizes = [8, 128], strides = [1, 1]} : vector<16x128xf32> to vector<8x128xf32>
    %49 = arith.truncf %48 : vector<8x128xf32> to vector<8x128xbf16>
    %50 = vector.shape_cast %49 : vector<8x128xbf16> to vector<8x4x32xbf16>
    "tpu.trace_start"() <{level = 10 : i32, message = "qhd,khd->hqk"}> : () -> ()
    %cst_22 = arith.constant dense<0.000000e+00> : vector<4x8x8xf32>
    %51 = tpu.matmul %44, %47, %cst_22 {dimension_numbers = #tpu.dot_dimension_numbers<[2], [2], [0], [0], [0, 1, 0, 0, 1, 0], [1], [1]>} : vector<8x4x32xbf16>, vector<8x4x32xbf16>, vector<4x8x8xf32> -> vector<4x8x8xf32>
    "tpu.trace_stop"() : () -> ()
    %52 = vector.broadcast %0 : f32 to vector<4x8x8xf32>
    %53 = arith.mulf %51, %52 : vector<4x8x8xf32>
    %cst_23 = arith.constant dense<0xFF800000> : vector<4x8xf32>
    %54 = vector.multi_reduction <maximumf>, %53, %cst_23 [2] : vector<4x8x8xf32> to vector<4x8xf32>
    %55 = vector.shape_cast %54 : vector<4x8xf32> to vector<4x8x1xf32>
    %56 = vector.broadcast %55 : vector<4x8x1xf32> to vector<4x8x8xf32>
    %57 = arith.subf %53, %56 : vector<4x8x8xf32>
    %58 = math.exp %57 : vector<4x8x8xf32>
    %cst_24 = arith.constant dense<0.000000e+00> : vector<4x8xf32>
    %59 = vector.multi_reduction <add>, %58, %cst_24 [2] : vector<4x8x8xf32> to vector<4x8xf32>
    %60 = vector.shape_cast %59 : vector<4x8xf32> to vector<4x8x1xf32>
    %61 = tpu.reciprocal %60 {approx = true} : vector<4x8x1xf32> -> vector<4x8x1xf32>
    %62 = vector.broadcast %61 : vector<4x8x1xf32> to vector<4x8x8xf32>
    %63 = arith.mulf %58, %62 : vector<4x8x8xf32>
    %64 = arith.truncf %63 : vector<4x8x8xf32> to vector<4x8x8xbf16>
    "tpu.trace_start"() <{level = 10 : i32, message = "hqk,khd->qhd"}> : () -> ()
    %cst_25 = arith.constant dense<0.000000e+00> : vector<4x32x8xf32>
    %65 = tpu.matmul %50, %64, %cst_25 {dimension_numbers = #tpu.dot_dimension_numbers<[0], [2], [2], [1], [0, 1, 0, 2, 1, 1], [1], [0]>} : vector<8x4x32xbf16>, vector<4x8x8xbf16>, vector<4x32x8xf32> -> vector<4x32x8xf32>
    %66 = tpu.transpose %65, [2, 0, 1] : vector<4x32x8xf32> -> vector<8x4x32xf32>
    "tpu.trace_stop"() : () -> ()
    %67 = vector.shape_cast %66 : vector<8x4x32xf32> to vector<8x128xf32>
    %68 = tpu.concatenate %41, %67 in 0 : vector<8x128xf32>, vector<8x128xf32> -> vector<16x128xf32>
    %69 = arith.truncf %68 : vector<16x128xf32> to vector<16x128xbf16>
    %c0_26 = arith.constant 0 : index
    %c0_27 = arith.constant 0 : index
    %70 = vector.load %arg7[%c0_26, %c0_27] : memref<128x128xbf16, #tpu.memory_space<vmem>>, vector<128x128xbf16>
    %cst_28 = arith.constant dense<0.000000e+00> : vector<16x128xf32>
    %71 = tpu.matmul %69, %70, %cst_28 {dimension_numbers = #tpu.dot_dimension_numbers<[1], [0], [0], [1], [0, 0, 1, 1], [], []>} : vector<16x128xbf16>, vector<128x128xbf16>, vector<16x128xf32> -> vector<16x128xf32>
    %c0_29 = arith.constant 0 : index
    %c0_30 = arith.constant 0 : index
    %72 = vector.load %arg8[%c0_29, %c0_30] : memref<1x128xf32, #tpu.memory_space<vmem>>, vector<1x128xf32>
    %73 = vector.broadcast %72 : vector<1x128xf32> to vector<16x128xf32>
    %74 = arith.addf %71, %73 : vector<16x128xf32>
    %75 = arith.addf %4, %74 : vector<16x128xf32>
    %c0_31 = arith.constant 0 : index
    %c0_32 = arith.constant 0 : index
    %76 = vector.load %arg17[%c0_31, %c0_32] : memref<1x128xf32, #tpu.memory_space<vmem>>, vector<1x128xf32>
    %c0_33 = arith.constant 0 : index
    %c0_34 = arith.constant 0 : index
    %77 = vector.load %arg18[%c0_33, %c0_34] : memref<1x128xf32, #tpu.memory_space<vmem>>, vector<1x128xf32>
    %cst_35 = arith.constant dense<0.000000e+00> : vector<16xf32>
    %78 = vector.multi_reduction <add>, %75, %cst_35 [1] : vector<16x128xf32> to vector<16xf32>
    %79 = vector.shape_cast %78 : vector<16xf32> to vector<16x1xf32>
    %cst_36 = arith.constant 1.280000e+02 : f32
    %80 = vector.broadcast %cst_36 : f32 to vector<16x1xf32>
    %81 = arith.divf %79, %80 : vector<16x1xf32>
    %82 = vector.broadcast %81 : vector<16x1xf32> to vector<16x128xf32>
    %83 = arith.subf %75, %82 : vector<16x128xf32>
    %84 = arith.mulf %83, %83 : vector<16x128xf32>
    %cst_37 = arith.constant dense<0.000000e+00> : vector<16xf32>
    %85 = vector.multi_reduction <add>, %84, %cst_37 [1] : vector<16x128xf32> to vector<16xf32>
    %86 = vector.shape_cast %85 : vector<16xf32> to vector<16x1xf32>
    %cst_38 = arith.constant 1.280000e+02 : f32
    %87 = vector.broadcast %cst_38 : f32 to vector<16x1xf32>
    %88 = arith.divf %86, %87 : vector<16x1xf32>
    %cst_39 = arith.constant 9.99999974E-6 : f32
    %89 = vector.broadcast %cst_39 : f32 to vector<16x1xf32>
    %90 = arith.addf %88, %89 : vector<16x1xf32>
    %91 = math.rsqrt %90 : vector<16x1xf32>
    %92 = vector.broadcast %91 : vector<16x1xf32> to vector<16x128xf32>
    %93 = arith.mulf %83, %92 : vector<16x128xf32>
    %94 = vector.broadcast %76 : vector<1x128xf32> to vector<16x128xf32>
    %95 = arith.mulf %93, %94 : vector<16x128xf32>
    %96 = vector.broadcast %77 : vector<1x128xf32> to vector<16x128xf32>
    %97 = arith.addf %95, %96 : vector<16x128xf32>
    %c0_40 = arith.constant 0 : index
    %c0_41 = arith.constant 0 : index
    %98 = vector.load %arg9[%c0_40, %c0_41] : memref<128x128xbf16, #tpu.memory_space<vmem>>, vector<128x128xbf16>
    %c0_42 = arith.constant 0 : index
    %c0_43 = arith.constant 0 : index
    %99 = vector.load %arg10[%c0_42, %c0_43] : memref<128x128xbf16, #tpu.memory_space<vmem>>, vector<128x128xbf16>
    %c0_44 = arith.constant 0 : index
    %c0_45 = arith.constant 0 : index
    %100 = vector.load %arg11[%c0_44, %c0_45] : memref<128x128xbf16, #tpu.memory_space<vmem>>, vector<128x128xbf16>
    %101 = arith.truncf %97 : vector<16x128xf32> to vector<16x128xbf16>
    %cst_46 = arith.constant dense<0.000000e+00> : vector<16x128xf32>
    %102 = tpu.matmul %101, %98, %cst_46 {dimension_numbers = #tpu.dot_dimension_numbers<[1], [0], [0], [1], [0, 0, 1, 1], [], []>} : vector<16x128xbf16>, vector<128x128xbf16>, vector<16x128xf32> -> vector<16x128xf32>
    %103 = arith.truncf %6 : vector<32x128xf32> to vector<32x128xbf16>
    %cst_47 = arith.constant dense<0.000000e+00> : vector<32x128xf32>
    %104 = tpu.matmul %103, %99, %cst_47 {dimension_numbers = #tpu.dot_dimension_numbers<[1], [0], [0], [1], [0, 0, 1, 1], [], []>} : vector<32x128xbf16>, vector<128x128xbf16>, vector<32x128xf32> -> vector<32x128xf32>
    %105 = arith.truncf %6 : vector<32x128xf32> to vector<32x128xbf16>
    %cst_48 = arith.constant dense<0.000000e+00> : vector<32x128xf32>
    %106 = tpu.matmul %105, %100, %cst_48 {dimension_numbers = #tpu.dot_dimension_numbers<[1], [0], [0], [1], [0, 0, 1, 1], [], []>} : vector<32x128xbf16>, vector<128x128xbf16>, vector<32x128xf32> -> vector<32x128xf32>
    %107 = vector.extract_strided_slice %102 {offsets = [0, 0], sizes = [8, 128], strides = [1, 1]} : vector<16x128xf32> to vector<8x128xf32>
    %108 = arith.truncf %107 : vector<8x128xf32> to vector<8x128xbf16>
    %109 = vector.shape_cast %108 : vector<8x128xbf16> to vector<8x4x32xbf16>
    %110 = vector.extract_strided_slice %104 {offsets = [0, 0], sizes = [16, 128], strides = [1, 1]} : vector<32x128xf32> to vector<16x128xf32>
    %111 = arith.truncf %110 : vector<16x128xf32> to vector<16x128xbf16>
    %112 = vector.shape_cast %111 : vector<16x128xbf16> to vector<16x4x32xbf16>
    %113 = vector.extract_strided_slice %106 {offsets = [0, 0], sizes = [16, 128], strides = [1, 1]} : vector<32x128xf32> to vector<16x128xf32>
    %114 = arith.truncf %113 : vector<16x128xf32> to vector<16x128xbf16>
    %115 = vector.shape_cast %114 : vector<16x128xbf16> to vector<16x4x32xbf16>
    "tpu.trace_start"() <{level = 10 : i32, message = "qhd,khd->hqk"}> : () -> ()
    %cst_49 = arith.constant dense<0.000000e+00> : vector<4x8x16xf32>
    %116 = tpu.matmul %109, %112, %cst_49 {dimension_numbers = #tpu.dot_dimension_numbers<[2], [2], [0], [0], [0, 1, 0, 0, 1, 0], [1], [1]>} : vector<8x4x32xbf16>, vector<16x4x32xbf16>, vector<4x8x16xf32> -> vector<4x8x16xf32>
    "tpu.trace_stop"() : () -> ()
    %117 = vector.broadcast %0 : f32 to vector<4x8x16xf32>
    %118 = arith.mulf %116, %117 : vector<4x8x16xf32>
    %cst_50 = arith.constant dense<0xFF800000> : vector<4x8xf32>
    %119 = vector.multi_reduction <maximumf>, %118, %cst_50 [2] : vector<4x8x16xf32> to vector<4x8xf32>
    %120 = vector.shape_cast %119 : vector<4x8xf32> to vector<4x8x1xf32>
    %121 = vector.broadcast %120 : vector<4x8x1xf32> to vector<4x8x16xf32>
    %122 = arith.subf %118, %121 : vector<4x8x16xf32>
    %123 = math.exp %122 : vector<4x8x16xf32>
    %cst_51 = arith.constant dense<0.000000e+00> : vector<4x8xf32>
    %124 = vector.multi_reduction <add>, %123, %cst_51 [2] : vector<4x8x16xf32> to vector<4x8xf32>
    %125 = vector.shape_cast %124 : vector<4x8xf32> to vector<4x8x1xf32>
    %126 = tpu.reciprocal %125 {approx = true} : vector<4x8x1xf32> -> vector<4x8x1xf32>
    %127 = vector.broadcast %126 : vector<4x8x1xf32> to vector<4x8x16xf32>
    %128 = arith.mulf %123, %127 : vector<4x8x16xf32>
    %129 = arith.truncf %128 : vector<4x8x16xf32> to vector<4x8x16xbf16>
    "tpu.trace_start"() <{level = 10 : i32, message = "hqk,khd->qhd"}> : () -> ()
    %cst_52 = arith.constant dense<0.000000e+00> : vector<4x32x8xf32>
    %130 = tpu.matmul %115, %129, %cst_52 {dimension_numbers = #tpu.dot_dimension_numbers<[0], [2], [2], [1], [0, 1, 0, 2, 1, 1], [1], [0]>} : vector<16x4x32xbf16>, vector<4x8x16xbf16>, vector<4x32x8xf32> -> vector<4x32x8xf32>
    %131 = tpu.transpose %130, [2, 0, 1] : vector<4x32x8xf32> -> vector<8x4x32xf32>
    "tpu.trace_stop"() : () -> ()
    %132 = vector.shape_cast %131 : vector<8x4x32xf32> to vector<8x128xf32>
    %133 = vector.extract_strided_slice %102 {offsets = [8, 0], sizes = [8, 128], strides = [1, 1]} : vector<16x128xf32> to vector<8x128xf32>
    %134 = arith.truncf %133 : vector<8x128xf32> to vector<8x128xbf16>
    %135 = vector.shape_cast %134 : vector<8x128xbf16> to vector<8x4x32xbf16>
    %136 = vector.extract_strided_slice %104 {offsets = [16, 0], sizes = [16, 128], strides = [1, 1]} : vector<32x128xf32> to vector<16x128xf32>
    %137 = arith.truncf %136 : vector<16x128xf32> to vector<16x128xbf16>
    %138 = vector.shape_cast %137 : vector<16x128xbf16> to vector<16x4x32xbf16>
    %139 = vector.extract_strided_slice %106 {offsets = [16, 0], sizes = [16, 128], strides = [1, 1]} : vector<32x128xf32> to vector<16x128xf32>
    %140 = arith.truncf %139 : vector<16x128xf32> to vector<16x128xbf16>
    %141 = vector.shape_cast %140 : vector<16x128xbf16> to vector<16x4x32xbf16>
    "tpu.trace_start"() <{level = 10 : i32, message = "qhd,khd->hqk"}> : () -> ()
    %cst_53 = arith.constant dense<0.000000e+00> : vector<4x8x16xf32>
    %142 = tpu.matmul %135, %138, %cst_53 {dimension_numbers = #tpu.dot_dimension_numbers<[2], [2], [0], [0], [0, 1, 0, 0, 1, 0], [1], [1]>} : vector<8x4x32xbf16>, vector<16x4x32xbf16>, vector<4x8x16xf32> -> vector<4x8x16xf32>
    "tpu.trace_stop"() : () -> ()
    %143 = vector.broadcast %0 : f32 to vector<4x8x16xf32>
    %144 = arith.mulf %142, %143 : vector<4x8x16xf32>
    %cst_54 = arith.constant dense<0xFF800000> : vector<4x8xf32>
    %145 = vector.multi_reduction <maximumf>, %144, %cst_54 [2] : vector<4x8x16xf32> to vector<4x8xf32>
    %146 = vector.shape_cast %145 : vector<4x8xf32> to vector<4x8x1xf32>
    %147 = vector.broadcast %146 : vector<4x8x1xf32> to vector<4x8x16xf32>
    %148 = arith.subf %144, %147 : vector<4x8x16xf32>
    %149 = math.exp %148 : vector<4x8x16xf32>
    %cst_55 = arith.constant dense<0.000000e+00> : vector<4x8xf32>
    %150 = vector.multi_reduction <add>, %149, %cst_55 [2] : vector<4x8x16xf32> to vector<4x8xf32>
    %151 = vector.shape_cast %150 : vector<4x8xf32> to vector<4x8x1xf32>
    %152 = tpu.reciprocal %151 {approx = true} : vector<4x8x1xf32> -> vector<4x8x1xf32>
    %153 = vector.broadcast %152 : vector<4x8x1xf32> to vector<4x8x16xf32>
    %154 = arith.mulf %149, %153 : vector<4x8x16xf32>
    %155 = arith.truncf %154 : vector<4x8x16xf32> to vector<4x8x16xbf16>
    "tpu.trace_start"() <{level = 10 : i32, message = "hqk,khd->qhd"}> : () -> ()
    %cst_56 = arith.constant dense<0.000000e+00> : vector<4x32x8xf32>
    %156 = tpu.matmul %141, %155, %cst_56 {dimension_numbers = #tpu.dot_dimension_numbers<[0], [2], [2], [1], [0, 1, 0, 2, 1, 1], [1], [0]>} : vector<16x4x32xbf16>, vector<4x8x16xbf16>, vector<4x32x8xf32> -> vector<4x32x8xf32>
    %157 = tpu.transpose %156, [2, 0, 1] : vector<4x32x8xf32> -> vector<8x4x32xf32>
    "tpu.trace_stop"() : () -> ()
    %158 = vector.shape_cast %157 : vector<8x4x32xf32> to vector<8x128xf32>
    %159 = tpu.concatenate %132, %158 in 0 : vector<8x128xf32>, vector<8x128xf32> -> vector<16x128xf32>
    %160 = arith.truncf %159 : vector<16x128xf32> to vector<16x128xbf16>
    %c0_57 = arith.constant 0 : index
    %c0_58 = arith.constant 0 : index
    %161 = vector.load %arg12[%c0_57, %c0_58] : memref<128x128xbf16, #tpu.memory_space<vmem>>, vector<128x128xbf16>
    %cst_59 = arith.constant dense<0.000000e+00> : vector<16x128xf32>
    %162 = tpu.matmul %160, %161, %cst_59 {dimension_numbers = #tpu.dot_dimension_numbers<[1], [0], [0], [1], [0, 0, 1, 1], [], []>} : vector<16x128xbf16>, vector<128x128xbf16>, vector<16x128xf32> -> vector<16x128xf32>
    %163 = arith.addf %97, %162 : vector<16x128xf32>
    %c0_60 = arith.constant 0 : index
    %c0_61 = arith.constant 0 : index
    %164 = vector.load %arg19[%c0_60, %c0_61] : memref<1x128xf32, #tpu.memory_space<vmem>>, vector<1x128xf32>
    %c0_62 = arith.constant 0 : index
    %c0_63 = arith.constant 0 : index
    %165 = vector.load %arg20[%c0_62, %c0_63] : memref<1x128xf32, #tpu.memory_space<vmem>>, vector<1x128xf32>
    %cst_64 = arith.constant dense<0.000000e+00> : vector<16xf32>
    %166 = vector.multi_reduction <add>, %163, %cst_64 [1] : vector<16x128xf32> to vector<16xf32>
    %167 = vector.shape_cast %166 : vector<16xf32> to vector<16x1xf32>
    %cst_65 = arith.constant 1.280000e+02 : f32
    %168 = vector.broadcast %cst_65 : f32 to vector<16x1xf32>
    %169 = arith.divf %167, %168 : vector<16x1xf32>
    %170 = vector.broadcast %169 : vector<16x1xf32> to vector<16x128xf32>
    %171 = arith.subf %163, %170 : vector<16x128xf32>
    %172 = arith.mulf %171, %171 : vector<16x128xf32>
    %cst_66 = arith.constant dense<0.000000e+00> : vector<16xf32>
    %173 = vector.multi_reduction <add>, %172, %cst_66 [1] : vector<16x128xf32> to vector<16xf32>
    %174 = vector.shape_cast %173 : vector<16xf32> to vector<16x1xf32>
    %cst_67 = arith.constant 1.280000e+02 : f32
    %175 = vector.broadcast %cst_67 : f32 to vector<16x1xf32>
    %176 = arith.divf %174, %175 : vector<16x1xf32>
    %cst_68 = arith.constant 9.99999974E-6 : f32
    %177 = vector.broadcast %cst_68 : f32 to vector<16x1xf32>
    %178 = arith.addf %176, %177 : vector<16x1xf32>
    %179 = math.rsqrt %178 : vector<16x1xf32>
    %180 = vector.broadcast %179 : vector<16x1xf32> to vector<16x128xf32>
    %181 = arith.mulf %171, %180 : vector<16x128xf32>
    %182 = vector.broadcast %164 : vector<1x128xf32> to vector<16x128xf32>
    %183 = arith.mulf %181, %182 : vector<16x128xf32>
    %184 = vector.broadcast %165 : vector<1x128xf32> to vector<16x128xf32>
    %185 = arith.addf %183, %184 : vector<16x128xf32>
    %186 = arith.truncf %185 : vector<16x128xf32> to vector<16x128xbf16>
    %c0_69 = arith.constant 0 : index
    %c0_70 = arith.constant 0 : index
    %187 = vector.load %arg13[%c0_69, %c0_70] : memref<128x512xbf16, #tpu.memory_space<vmem>>, vector<128x512xbf16>
    %cst_71 = arith.constant dense<0.000000e+00> : vector<16x512xf32>
    %188 = tpu.matmul %186, %187, %cst_71 {dimension_numbers = #tpu.dot_dimension_numbers<[1], [0], [0], [1], [0, 0, 1, 1], [], []>} : vector<16x128xbf16>, vector<128x512xbf16>, vector<16x512xf32> -> vector<16x512xf32>
    %c0_72 = arith.constant 0 : index
    %c0_73 = arith.constant 0 : index
    %189 = vector.load %arg14[%c0_72, %c0_73] : memref<1x512xf32, #tpu.memory_space<vmem>>, vector<1x512xf32>
    %190 = vector.broadcast %189 : vector<1x512xf32> to vector<16x512xf32>
    %191 = arith.addf %188, %190 : vector<16x512xf32>
    %cst_74 = arith.constant 5.000000e-01 : f32
    %192 = vector.broadcast %cst_74 : f32 to vector<16x512xf32>
    %193 = arith.mulf %192, %191 : vector<16x512xf32>
    %cst_75 = arith.constant 4.471500e-02 : f32
    %194 = vector.broadcast %cst_75 : f32 to vector<16x512xf32>
    %195 = arith.mulf %194, %191 : vector<16x512xf32>
    %196 = arith.mulf %195, %191 : vector<16x512xf32>
    %197 = arith.mulf %196, %191 : vector<16x512xf32>
    %198 = arith.addf %191, %197 : vector<16x512xf32>
    %cst_76 = arith.constant 0.797884583 : f32
    %199 = vector.broadcast %cst_76 : f32 to vector<16x512xf32>
    %200 = arith.mulf %199, %198 : vector<16x512xf32>
    %201 = math.tanh %200 : vector<16x512xf32>
    %cst_77 = arith.constant 1.000000e+00 : f32
    %202 = vector.broadcast %cst_77 : f32 to vector<16x512xf32>
    %203 = arith.addf %202, %201 : vector<16x512xf32>
    %204 = arith.mulf %193, %203 : vector<16x512xf32>
    %205 = arith.truncf %204 : vector<16x512xf32> to vector<16x512xbf16>
    %c0_78 = arith.constant 0 : index
    %c0_79 = arith.constant 0 : index
    %206 = vector.load %arg15[%c0_78, %c0_79] : memref<512x128xbf16, #tpu.memory_space<vmem>>, vector<512x128xbf16>
    %cst_80 = arith.constant dense<0.000000e+00> : vector<16x128xf32>
    %207 = tpu.matmul %205, %206, %cst_80 {dimension_numbers = #tpu.dot_dimension_numbers<[1], [0], [0], [1], [0, 0, 1, 1], [], []>} : vector<16x512xbf16>, vector<512x128xbf16>, vector<16x128xf32> -> vector<16x128xf32>
    %c0_81 = arith.constant 0 : index
    %c0_82 = arith.constant 0 : index
    %208 = vector.load %arg16[%c0_81, %c0_82] : memref<1x128xf32, #tpu.memory_space<vmem>>, vector<1x128xf32>
    %209 = vector.broadcast %208 : vector<1x128xf32> to vector<16x128xf32>
    %210 = arith.addf %207, %209 : vector<16x128xf32>
    %211 = arith.addf %185, %210 : vector<16x128xf32>
    %c0_83 = arith.constant 0 : index
    %c0_84 = arith.constant 0 : index
    %212 = vector.load %arg21[%c0_83, %c0_84] : memref<1x128xf32, #tpu.memory_space<vmem>>, vector<1x128xf32>
    %c0_85 = arith.constant 0 : index
    %c0_86 = arith.constant 0 : index
    %213 = vector.load %arg22[%c0_85, %c0_86] : memref<1x128xf32, #tpu.memory_space<vmem>>, vector<1x128xf32>
    %cst_87 = arith.constant dense<0.000000e+00> : vector<16xf32>
    %214 = vector.multi_reduction <add>, %211, %cst_87 [1] : vector<16x128xf32> to vector<16xf32>
    %215 = vector.shape_cast %214 : vector<16xf32> to vector<16x1xf32>
    %cst_88 = arith.constant 1.280000e+02 : f32
    %216 = vector.broadcast %cst_88 : f32 to vector<16x1xf32>
    %217 = arith.divf %215, %216 : vector<16x1xf32>
    %218 = vector.broadcast %217 : vector<16x1xf32> to vector<16x128xf32>
    %219 = arith.subf %211, %218 : vector<16x128xf32>
    %220 = arith.mulf %219, %219 : vector<16x128xf32>
    %cst_89 = arith.constant dense<0.000000e+00> : vector<16xf32>
    %221 = vector.multi_reduction <add>, %220, %cst_89 [1] : vector<16x128xf32> to vector<16xf32>
    %222 = vector.shape_cast %221 : vector<16xf32> to vector<16x1xf32>
    %cst_90 = arith.constant 1.280000e+02 : f32
    %223 = vector.broadcast %cst_90 : f32 to vector<16x1xf32>
    %224 = arith.divf %222, %223 : vector<16x1xf32>
    %cst_91 = arith.constant 9.99999974E-6 : f32
    %225 = vector.broadcast %cst_91 : f32 to vector<16x1xf32>
    %226 = arith.addf %224, %225 : vector<16x1xf32>
    %227 = math.rsqrt %226 : vector<16x1xf32>
    %228 = vector.broadcast %227 : vector<16x1xf32> to vector<16x128xf32>
    %229 = arith.mulf %219, %228 : vector<16x128xf32>
    %230 = vector.broadcast %212 : vector<1x128xf32> to vector<16x128xf32>
    %231 = arith.mulf %229, %230 : vector<16x128xf32>
    %232 = vector.broadcast %213 : vector<1x128xf32> to vector<16x128xf32>
    %233 = arith.addf %231, %232 : vector<16x128xf32>
    %234 = vector.shape_cast %233 : vector<16x128xf32> to vector<2x8x128xf32>
    %c0_92 = arith.constant 0 : index
    %c0_93 = arith.constant 0 : index
    %c0_94 = arith.constant 0 : index
    %235 = vector.load %arg23[%c0_92, %c0_93, %c0_94] : memref<2x8x128xf32, #tpu.memory_space<vmem>>, vector<2x8x128xf32>
    tpu.vector_store %arg23[%c0_92, %c0_93, %c0_94], %234 {strides = array<i32>} : memref<2x8x128xf32, #tpu.memory_space<vmem>>, vector<2x8x128xf32>,
    return
  }
  func.func @transform_0(%arg0: i32) -> (i32, i32, i32) {
    %c0_i32 = arith.constant 0 : i32
    %c0_i32_0 = arith.constant 0 : i32
    %c0_i32_1 = arith.constant 0 : i32
    return %arg0, %c0_i32, %c0_i32_0 : i32, i32, i32
  }
  func.func @transform_1(%arg0: i32) -> (i32, i32, i32) {
    %c0_i32 = arith.constant 0 : i32
    %c0_i32_0 = arith.constant 0 : i32
    %c0_i32_1 = arith.constant 0 : i32
    return %arg0, %c0_i32, %c0_i32_0 : i32, i32, i32
  }
  func.func @transform_2(%arg0: i32) -> (i32, i32, i32) {
    %c0_i32 = arith.constant 0 : i32
    %c0_i32_0 = arith.constant 0 : i32
    %c0_i32_1 = arith.constant 0 : i32
    return %arg0, %c0_i32, %c0_i32_0 : i32, i32, i32
  }
  func.func @transform_3(%arg0: i32) -> (i32, i32) {
    %c0_i32 = arith.constant 0 : i32
    %c0_i32_0 = arith.constant 0 : i32
    %c0_i32_1 = arith.constant 0 : i32
    return %c0_i32, %c0_i32_0 : i32, i32
  }
  func.func @transform_4(%arg0: i32) -> (i32, i32) {
    %c0_i32 = arith.constant 0 : i32
    %c0_i32_0 = arith.constant 0 : i32
    %c0_i32_1 = arith.constant 0 : i32
    return %c0_i32, %c0_i32_0 : i32, i32
  }
  func.func @transform_5(%arg0: i32) -> (i32, i32) {
    %c0_i32 = arith.constant 0 : i32
    %c0_i32_0 = arith.constant 0 : i32
    %c0_i32_1 = arith.constant 0 : i32
    return %c0_i32, %c0_i32_0 : i32, i32
  }
  func.func @transform_6(%arg0: i32) -> (i32, i32) {
    %c0_i32 = arith.constant 0 : i32
    %c0_i32_0 = arith.constant 0 : i32
    %c0_i32_1 = arith.constant 0 : i32
    return %c0_i32, %c0_i32_0 : i32, i32
  }
  func.func @transform_7(%arg0: i32) -> (i32, i32) {
    %c0_i32 = arith.constant 0 : i32
    %c0_i32_0 = arith.constant 0 : i32
    %c0_i32_1 = arith.constant 0 : i32
    return %c0_i32, %c0_i32_0 : i32, i32
  }
  func.func @transform_8(%arg0: i32) -> (i32, i32) {
    %c0_i32 = arith.constant 0 : i32
    %c0_i32_0 = arith.constant 0 : i32
    %c0_i32_1 = arith.constant 0 : i32
    return %c0_i32, %c0_i32_0 : i32, i32
  }
  func.func @transform_9(%arg0: i32) -> (i32, i32) {
    %c0_i32 = arith.constant 0 : i32
    %c0_i32_0 = arith.constant 0 : i32
    %c0_i32_1 = arith.constant 0 : i32
    return %c0_i32, %c0_i32_0 : i32, i32
  }
  func.func @transform_10(%arg0: i32) -> (i32, i32) {
    %c0_i32 = arith.constant 0 : i32
    %c0_i32_0 = arith.constant 0 : i32
    %c0_i32_1 = arith.constant 0 : i32
    return %c0_i32, %c0_i32_0 : i32, i32
  }
  func.func @transform_11(%arg0: i32) -> (i32, i32) {
    %c0_i32 = arith.constant 0 : i32
    %c0_i32_0 = arith.constant 0 : i32
    %c0_i32_1 = arith.constant 0 : i32
    return %c0_i32, %c0_i32_0 : i32, i32
  }
  func.func @transform_12(%arg0: i32) -> (i32, i32) {
    %c0_i32 = arith.constant 0 : i32
    %c0_i32_0 = arith.constant 0 : i32
    %c0_i32_1 = arith.constant 0 : i32
    return %c0_i32, %c0_i32_0 : i32, i32
  }
  func.func @transform_13(%arg0: i32) -> (i32, i32) {
    %c0_i32 = arith.constant 0 : i32
    %c0_i32_0 = arith.constant 0 : i32
    %c0_i32_1 = arith.constant 0 : i32
    return %c0_i32, %c0_i32_0 : i32, i32
  }
  func.func @transform_14(%arg0: i32) -> (i32, i32) {
    %c0_i32 = arith.constant 0 : i32
    %c0_i32_0 = arith.constant 0 : i32
    %c0_i32_1 = arith.constant 0 : i32
    return %c0_i32, %c0_i32_0 : i32, i32
  }
  func.func @transform_15(%arg0: i32) -> (i32, i32) {
    %c0_i32 = arith.constant 0 : i32
    %c0_i32_0 = arith.constant 0 : i32
    %c0_i32_1 = arith.constant 0 : i32
    return %c0_i32, %c0_i32_0 : i32, i32
  }
  func.func @transform_16(%arg0: i32) -> (i32, i32) {
    %c0_i32 = arith.constant 0 : i32
    %c0_i32_0 = arith.constant 0 : i32
    %c0_i32_1 = arith.constant 0 : i32
    return %c0_i32, %c0_i32_0 : i32, i32
  }
  func.func @transform_17(%arg0: i32) -> (i32, i32) {
    %c0_i32 = arith.constant 0 : i32
    %c0_i32_0 = arith.constant 0 : i32
    %c0_i32_1 = arith.constant 0 : i32
    return %c0_i32, %c0_i32_0 : i32, i32
  }
  func.func @transform_18(%arg0: i32) -> (i32, i32) {
    %c0_i32 = arith.constant 0 : i32
    %c0_i32_0 = arith.constant 0 : i32
    %c0_i32_1 = arith.constant 0 : i32
    return %c0_i32, %c0_i32_0 : i32, i32
  }
  func.func @transform_19(%arg0: i32) -> (i32, i32) {
    %c0_i32 = arith.constant 0 : i32
    %c0_i32_0 = arith.constant 0 : i32
    %c0_i32_1 = arith.constant 0 : i32
    return %c0_i32, %c0_i32_0 : i32, i32
  }
  func.func @transform_20(%arg0: i32) -> (i32, i32) {
    %c0_i32 = arith.constant 0 : i32
    %c0_i32_0 = arith.constant 0 : i32
    %c0_i32_1 = arith.constant 0 : i32
    return %c0_i32, %c0_i32_0 : i32, i32
  }
  func.func @transform_21(%arg0: i32) -> (i32, i32) {
    %c0_i32 = arith.constant 0 : i32
    %c0_i32_0 = arith.constant 0 : i32
    %c0_i32_1 = arith.constant 0 : i32
    return %c0_i32, %c0_i32_0 : i32, i32
  }
  func.func @transform_22(%arg0: i32) -> (i32, i32, i32) {
    %c0_i32 = arith.constant 0 : i32
    %c0_i32_0 = arith.constant 0 : i32
    %c0_i32_1 = arith.constant 0 : i32
    return %arg0, %c0_i32, %c0_i32_0 : i32, i32, i32
  }
}

module attributes {stable_mosaic.version = 11 : i64} {
  func.func @_decoder_block_kernel(%arg0: i32, %arg1: memref<2x8x128xf32, #tpu.memory_space<vmem>>, %arg2: memref<2x8x128xf32, #tpu.memory_space<vmem>>, %arg3: memref<2x16x128xf32, #tpu.memory_space<vmem>>, %arg4: memref<128x128xbf16, #tpu.memory_space<vmem>>, %arg5: memref<128x128xbf16, #tpu.memory_space<vmem>>, %arg6: memref<128x128xbf16, #tpu.memory_space<vmem>>, %arg7: memref<128x128xbf16, #tpu.memory_space<vmem>>, %arg8: memref<1x128xf32, #tpu.memory_space<vmem>>, %arg9: memref<128x128xbf16, #tpu.memory_space<vmem>>, %arg10: memref<128x128xbf16, #tpu.memory_space<vmem>>, %arg11: memref<128x128xbf16, #tpu.memory_space<vmem>>, %arg12: memref<128x128xbf16, #tpu.memory_space<vmem>>, %arg13: memref<128x512xbf16, #tpu.memory_space<vmem>>, %arg14: memref<1x512xf32, #tpu.memory_space<vmem>>, %arg15: memref<512x128xbf16, #tpu.memory_space<vmem>>, %arg16: memref<1x128xf32, #tpu.memory_space<vmem>>, %arg17: memref<1x128xf32, #tpu.memory_space<vmem>>, %arg18: memref<1x128xf32, #tpu.memory_space<vmem>>, %arg19: memref<1x128xf32, #tpu.memory_space<vmem>>, %arg20: memref<1x128xf32, #tpu.memory_space<vmem>>, %arg21: memref<1x128xf32, #tpu.memory_space<vmem>>, %arg22: memref<1x128xf32, #tpu.memory_space<vmem>>, %arg23: memref<2x8x128xf32, #tpu.memory_space<vmem>>) attributes {dimension_semantics = [#tpu.dimension_semantics<parallel>], iteration_bounds = array<i64: 1>, scalar_prefetch = 0 : i64, scratch_operands = 0 : i64, tpu.core_type = #tpu.core_type<tc>, window_params = [{transform_indices = @transform_0, window_bounds = array<i64: 2, 8, 128>}, {transform_indices = @transform_1, window_bounds = array<i64: 2, 8, 128>}, {transform_indices = @transform_2, window_bounds = array<i64: 2, 16, 128>}, {pipeline_mode = #tpu.pipeline_mode<synchronous>, transform_indices = @transform_3, window_bounds = array<i64: 128, 128>}, {pipeline_mode = #tpu.pipeline_mode<synchronous>, transform_indices = @transform_4, window_bounds = array<i64: 128, 128>}, {pipeline_mode = #tpu.pipeline_mode<synchronous>, transform_indices = @transform_5, window_bounds = array<i64: 128, 128>}, {pipeline_mode = #tpu.pipeline_mode<synchronous>, transform_indices = @transform_6, window_bounds = array<i64: 128, 128>}, {pipeline_mode = #tpu.pipeline_mode<synchronous>, transform_indices = @transform_7, window_bounds = array<i64: 1, 128>}, {pipeline_mode = #tpu.pipeline_mode<synchronous>, transform_indices = @transform_8, window_bounds = array<i64: 128, 128>}, {pipeline_mode = #tpu.pipeline_mode<synchronous>, transform_indices = @transform_9, window_bounds = array<i64: 128, 128>}, {pipeline_mode = #tpu.pipeline_mode<synchronous>, transform_indices = @transform_10, window_bounds = array<i64: 128, 128>}, {pipeline_mode = #tpu.pipeline_mode<synchronous>, transform_indices = @transform_11, window_bounds = array<i64: 128, 128>}, {pipeline_mode = #tpu.pipeline_mode<synchronous>, transform_indices = @transform_12, window_bounds = array<i64: 128, 512>}, {pipeline_mode = #tpu.pipeline_mode<synchronous>, transform_indices = @transform_13, window_bounds = array<i64: 1, 512>}, {pipeline_mode = #tpu.pipeline_mode<synchronous>, transform_indices = @transform_14, window_bounds = array<i64: 512, 128>}, {pipeline_mode = #tpu.pipeline_mode<synchronous>, transform_indices = @transform_15, window_bounds = array<i64: 1, 128>}, {pipeline_mode = #tpu.pipeline_mode<synchronous>, transform_indices = @transform_16, window_bounds = array<i64: 1, 128>}, {pipeline_mode = #tpu.pipeline_mode<synchronous>, transform_indices = @transform_17, window_bounds = array<i64: 1, 128>}, {pipeline_mode = #tpu.pipeline_mode<synchronous>, transform_indices = @transform_18, window_bounds = array<i64: 1, 128>}, {pipeline_mode = #tpu.pipeline_mode<synchronous>, transform_indices = @transform_19, window_bounds = array<i64: 1, 128>}, {pipeline_mode = #tpu.pipeline_mode<synchronous>, transform_indices = @transform_20, window_bounds = array<i64: 1, 128>}, {pipeline_mode = #tpu.pipeline_mode<synchronous>, transform_indices = @transform_21, window_bounds = array<i64: 1, 128>}, {transform_indices = @transform_22, window_bounds = array<i64: 2, 8, 128>}]} {
    %cst = arith.constant 3.200000e+01 : f32
    %cst_0 = arith.constant -5.000000e-01 : f32
    %0 = math.powf %cst, %cst_0 : f32
    %c0 = arith.constant 0 : index
    %c0_1 = arith.constant 0 : index
    %c0_2 = arith.constant 0 : index
    %1 = vector.load %arg1[%c0, %c0_1, %c0_2] : memref<2x8x128xf32, #tpu.memory_space<vmem>>, vector<2x8x128xf32>
    %c0_3 = arith.constant 0 : index
    %c0_4 = arith.constant 0 : index
    %c0_5 = arith.constant 0 : index
    %2 = vector.load %arg2[%c0_3, %c0_4, %c0_5] : memref<2x8x128xf32, #tpu.memory_space<vmem>>, vector<2x8x128xf32>
    %3 = arith.addf %1, %2 : vector<2x8x128xf32>
    %4 = vector.shape_cast %3 : vector<2x8x128xf32> to vector<16x128xf32>
    %c0_6 = arith.constant 0 : index
    %c0_7 = arith.constant 0 : index
    %c0_8 = arith.constant 0 : index
    %5 = vector.load %arg3[%c0_6, %c0_7, %c0_8] : memref<2x16x128xf32, #tpu.memory_space<vmem>>, vector<2x16x128xf32>
    %6 = vector.shape_cast %5 : vector<2x16x128xf32> to vector<32x128xf32>
    %c0_9 = arith.constant 0 : index
    %c0_10 = arith.constant 0 : index
    %7 = vector.load %arg4[%c0_9, %c0_10] : memref<128x128xbf16, #tpu.memory_space<vmem>>, vector<128x128xbf16>
    %c0_11 = arith.constant 0 : index
    %c0_12 = arith.constant 0 : index
    %8 = vector.load %arg5[%c0_11, %c0_12] : memref<128x128xbf16, #tpu.memory_space<vmem>>, vector<128x128xbf16>
    %c0_13 = arith.constant 0 : index
    %c0_14 = arith.constant 0 : index
    %9 = vector.load %arg6[%c0_13, %c0_14] : memref<128x128xbf16, #tpu.memory_space<vmem>>, vector<128x128xbf16>
    %10 = arith.truncf %4 : vector<16x128xf32> to vector<16x128xbf16>
    %cst_15 = arith.constant dense<0.000000e+00> : vector<16x128xf32>
    %11 = tpu.matmul %10, %7, %cst_15 {dimension_numbers = #tpu.dot_dimension_numbers<[1], [0], [0], [1], [0, 0, 1, 1], [], []>} : vector<16x128xbf16>, vector<128x128xbf16>, vector<16x128xf32> -> vector<16x128xf32>
    %12 = arith.truncf %4 : vector<16x128xf32> to vector<16x128xbf16>
    %cst_16 = arith.constant dense<0.000000e+00> : vector<16x128xf32>
    %13 = tpu.matmul %12, %8, %cst_16 {dimension_numbers = #tpu.dot_dimension_numbers<[1], [0], [0], [1], [0, 0, 1, 1], [], []>} : vector<16x128xbf16>, vector<128x128xbf16>, vector<16x128xf32> -> vector<16x128xf32>
    %14 = arith.truncf %4 : vector<16x128xf32> to vector<16x128xbf16>
    %cst_17 = arith.constant dense<0.000000e+00> : vector<16x128xf32>
    %15 = tpu.matmul %14, %9, %cst_17 {dimension_numbers = #tpu.dot_dimension_numbers<[1], [0], [0], [1], [0, 0, 1, 1], [], []>} : vector<16x128xbf16>, vector<128x128xbf16>, vector<16x128xf32> -> vector<16x128xf32>
    %16 = vector.extract_strided_slice %11 {offsets = [0, 0], sizes = [8, 128], strides = [1, 1]} : vector<16x128xf32> to vector<8x128xf32>
    %17 = arith.truncf %16 : vector<8x128xf32> to vector<8x128xbf16>
    %18 = vector.shape_cast %17 : vector<8x128xbf16> to vector<8x4x32xbf16>
    %19 = vector.extract_strided_slice %13 {offsets = [0, 0], sizes = [8, 128], strides = [1, 1]} : vector<16x128xf32> to vector<8x128xf32>
    %20 = arith.truncf %19 : vector<8x128xf32> to vector<8x128xbf16>
    %21 = vector.shape_cast %20 : vector<8x128xbf16> to vector<8x4x32xbf16>
    %22 = vector.extract_strided_slice %15 {offsets = [0, 0], sizes = [8, 128], strides = [1, 1]} : vector<16x128xf32> to vector<8x128xf32>
    %23 = arith.truncf %22 : vector<8x128xf32> to vector<8x128xbf16>
    %24 = vector.shape_cast %23 : vector<8x128xbf16> to vector<8x4x32xbf16>
    "tpu.trace_start"() <{level = 10 : i32, message = "qhd,khd->hqk"}> : () -> ()
    %cst_18 = arith.constant dense<0.000000e+00> : vector<4x8x8xf32>
    %25 = tpu.matmul %18, %21, %cst_18 {dimension_numbers = #tpu.dot_dimension_numbers<[2], [2], [0], [0], [0, 1, 0, 0, 1, 0], [1], [1]>} : vector<8x4x32xbf16>, vector<8x4x32xbf16>, vector<4x8x8xf32> -> vector<4x8x8xf32>
    "tpu.trace_stop"() : () -> ()
    %26 = vector.broadcast %0 : f32 to vector<4x8x8xf32>
    %27 = arith.mulf %25, %26 : vector<4x8x8xf32>
    %cst_19 = arith.constant dense<0xFF800000> : vector<4x8xf32>
    %28 = vector.multi_reduction <maximumf>, %27, %cst_19 [2] : vector<4x8x8xf32> to vector<4x8xf32>
    %29 = vector.shape_cast %28 : vector<4x8xf32> to vector<4x8x1xf32>
    %30 = vector.broadcast %29 : vector<4x8x1xf32> to vector<4x8x8xf32>
    %31 = arith.subf %27, %30 : vector<4x8x8xf32>
    %32 = math.exp %31 : vector<4x8x8xf32>
    %cst_20 = arith.constant dense<0.000000e+00> : vector<4x8xf32>
    %33 = vector.multi_reduction <add>, %32, %cst_20 [2] : vector<4x8x8xf32> to vector<4x8xf32>
    %34 = vector.shape_cast %33 : vector<4x8xf32> to vector<4x8x1xf32>
    %35 = tpu.reciprocal %34 {approx = true} : vector<4x8x1xf32> -> vector<4x8x1xf32>
    %36 = vector.broadcast %35 : vector<4x8x1xf32> to vector<4x8x8xf32>
    %37 = arith.mulf %32, %36 : vector<4x8x8xf32>
    %38 = arith.truncf %37 : vector<4x8x8xf32> to vector<4x8x8xbf16>
    "tpu.trace_start"() <{level = 10 : i32, message = "hqk,khd->qhd"}> : () -> ()
    %cst_21 = arith.constant dense<0.000000e+00> : vector<4x32x8xf32>
    %39 = tpu.matmul %24, %38, %cst_21 {dimension_numbers = #tpu.dot_dimension_numbers<[0], [2], [2], [1], [0, 1, 0, 2, 1, 1], [1], [0]>} : vector<8x4x32xbf16>, vector<4x8x8xbf16>, vector<4x32x8xf32> -> vector<4x32x8xf32>
    %40 = tpu.transpose %39, [2, 0, 1] : vector<4x32x8xf32> -> vector<8x4x32xf32>
    "tpu.trace_stop"() : () -> ()
    %41 = vector.shape_cast %40 : vector<8x4x32xf32> to vector<8x128xf32>
    %42 = vector.extract_strided_slice %11 {offsets = [8, 0], sizes = [8, 128], strides = [1, 1]} : vector<16x128xf32> to vector<8x128xf32>
    %43 = arith.truncf %42 : vector<8x128xf32> to vector<8x128xbf16>
    %44 = vector.shape_cast %43 : vector<8x128xbf16> to vector<8x4x32xbf16>
    %45 = vector.extract_strided_slice %13 {offsets = [8, 0], sizes = [8, 128], strides = [1, 1]} : vector<16x128xf32> to vector<8x128xf32>
    %46 = arith.truncf %45 : vector<8x128xf32> to vector<8x128xbf16>
    %47 = vector.shape_cast %46 : vector<8x128xbf16> to vector<8x4x32xbf16>
    %48 = vector.extract_strided_slice %15 {offsets = [8, 0], sizes = [8, 128], strides = [1, 1]} : vector<16x128xf32> to vector<8x128xf32>
    %49 = arith.truncf %48 : vector<8x128xf32> to vector<8x128xbf16>
    %50 = vector.shape_cast %49 : vector<8x128xbf16> to vector<8x4x32xbf16>
    "tpu.trace_start"() <{level = 10 : i32, message = "qhd,khd->hqk"}> : () -> ()
    %cst_22 = arith.constant dense<0.000000e+00> : vector<4x8x8xf32>
    %51 = tpu.matmul %44, %47, %cst_22 {dimension_numbers = #tpu.dot_dimension_numbers<[2], [2], [0], [0], [0, 1, 0, 0, 1, 0], [1], [1]>} : vector<8x4x32xbf16>, vector<8x4x32xbf16>, vector<4x8x8xf32> -> vector<4x8x8xf32>
    "tpu.trace_stop"() : () -> ()
    %52 = vector.broadcast %0 : f32 to vector<4x8x8xf32>
    %53 = arith.mulf %51, %52 : vector<4x8x8xf32>
    %cst_23 = arith.constant dense<0xFF800000> : vector<4x8xf32>
    %54 = vector.multi_reduction <maximumf>, %53, %cst_23 [2] : vector<4x8x8xf32> to vector<4x8xf32>
    %55 = vector.shape_cast %54 : vector<4x8xf32> to vector<4x8x1xf32>
    %56 = vector.broadcast %55 : vector<4x8x1xf32> to vector<4x8x8xf32>
    %57 = arith.subf %53, %56 : vector<4x8x8xf32>
    %58 = math.exp %57 : vector<4x8x8xf32>
    %cst_24 = arith.constant dense<0.000000e+00> : vector<4x8xf32>
    %59 = vector.multi_reduction <add>, %58, %cst_24 [2] : vector<4x8x8xf32> to vector<4x8xf32>
    %60 = vector.shape_cast %59 : vector<4x8xf32> to vector<4x8x1xf32>
    %61 = tpu.reciprocal %60 {approx = true} : vector<4x8x1xf32> -> vector<4x8x1xf32>
    %62 = vector.broadcast %61 : vector<4x8x1xf32> to vector<4x8x8xf32>
    %63 = arith.mulf %58, %62 : vector<4x8x8xf32>
    %64 = arith.truncf %63 : vector<4x8x8xf32> to vector<4x8x8xbf16>
    "tpu.trace_start"() <{level = 10 : i32, message = "hqk,khd->qhd"}> : () -> ()
    %cst_25 = arith.constant dense<0.000000e+00> : vector<4x32x8xf32>
    %65 = tpu.matmul %50, %64, %cst_25 {dimension_numbers = #tpu.dot_dimension_numbers<[0], [2], [2], [1], [0, 1, 0, 2, 1, 1], [1], [0]>} : vector<8x4x32xbf16>, vector<4x8x8xbf16>, vector<4x32x8xf32> -> vector<4x32x8xf32>
    %66 = tpu.transpose %65, [2, 0, 1] : vector<4x32x8xf32> -> vector<8x4x32xf32>
    "tpu.trace_stop"() : () -> ()
    %67 = vector.shape_cast %66 : vector<8x4x32xf32> to vector<8x128xf32>
    %68 = tpu.concatenate %41, %67 in 0 : vector<8x128xf32>, vector<8x128xf32> -> vector<16x128xf32>
    %69 = arith.truncf %68 : vector<16x128xf32> to vector<16x128xbf16>
    %c0_26 = arith.constant 0 : index
    %c0_27 = arith.constant 0 : index
    %70 = vector.load %arg7[%c0_26, %c0_27] : memref<128x128xbf16, #tpu.memory_space<vmem>>, vector<128x128xbf16>
    %cst_28 = arith.constant dense<0.000000e+00> : vector<16x128xf32>
    %71 = tpu.matmul %69, %70, %cst_28 {dimension_numbers = #tpu.dot_dimension_numbers<[1], [0], [0], [1], [0, 0, 1, 1], [], []>} : vector<16x128xbf16>, vector<128x128xbf16>, vector<16x128xf32> -> vector<16x128xf32>
    %c0_29 = arith.constant 0 : index
    %c0_30 = arith.constant 0 : index
    %72 = vector.load %arg8[%c0_29, %c0_30] : memref<1x128xf32, #tpu.memory_space<vmem>>, vector<1x128xf32>
    %73 = vector.broadcast %72 : vector<1x128xf32> to vector<16x128xf32>
    %74 = arith.addf %71, %73 : vector<16x128xf32>
    %75 = arith.addf %4, %74 : vector<16x128xf32>
    %c0_31 = arith.constant 0 : index
    %c0_32 = arith.constant 0 : index
    %76 = vector.load %arg17[%c0_31, %c0_32] : memref<1x128xf32, #tpu.memory_space<vmem>>, vector<1x128xf32>
    %c0_33 = arith.constant 0 : index
    %c0_34 = arith.constant 0 : index
    %77 = vector.load %arg18[%c0_33, %c0_34] : memref<1x128xf32, #tpu.memory_space<vmem>>, vector<1x128xf32>
    %cst_35 = arith.constant dense<0.000000e+00> : vector<16xf32>
    %78 = vector.multi_reduction <add>, %75, %cst_35 [1] : vector<16x128xf32> to vector<16xf32>
    %79 = vector.shape_cast %78 : vector<16xf32> to vector<16x1xf32>
    %cst_36 = arith.constant 1.280000e+02 : f32
    %80 = vector.broadcast %cst_36 : f32 to vector<16x1xf32>
    %81 = arith.divf %79, %80 : vector<16x1xf32>
    %82 = vector.broadcast %81 : vector<16x1xf32> to vector<16x128xf32>
    %83 = arith.subf %75, %82 : vector<16x128xf32>
    %84 = arith.mulf %83, %83 : vector<16x128xf32>
    %cst_37 = arith.constant dense<0.000000e+00> : vector<16xf32>
    %85 = vector.multi_reduction <add>, %84, %cst_37 [1] : vector<16x128xf32> to vector<16xf32>
    %86 = vector.shape_cast %85 : vector<16xf32> to vector<16x1xf32>
    %cst_38 = arith.constant 1.280000e+02 : f32
    %87 = vector.broadcast %cst_38 : f32 to vector<16x1xf32>
    %88 = arith.divf %86, %87 : vector<16x1xf32>
    %cst_39 = arith.constant 9.99999974E-6 : f32
    %89 = vector.broadcast %cst_39 : f32 to vector<16x1xf32>
    %90 = arith.addf %88, %89 : vector<16x1xf32>
    %91 = math.rsqrt %90 : vector<16x1xf32>
    %92 = vector.broadcast %91 : vector<16x1xf32> to vector<16x128xf32>
    %93 = arith.mulf %83, %92 : vector<16x128xf32>
    %94 = vector.broadcast %76 : vector<1x128xf32> to vector<16x128xf32>
    %95 = arith.mulf %93, %94 : vector<16x128xf32>
    %96 = vector.broadcast %77 : vector<1x128xf32> to vector<16x128xf32>
    %97 = arith.addf %95, %96 : vector<16x128xf32>
    %c0_40 = arith.constant 0 : index
    %c0_41 = arith.constant 0 : index
    %98 = vector.load %arg9[%c0_40, %c0_41] : memref<128x128xbf16, #tpu.memory_space<vmem>>, vector<128x128xbf16>
    %c0_42 = arith.constant 0 : index
    %c0_43 = arith.constant 0 : index
    %99 = vector.load %arg10[%c0_42, %c0_43] : memref<128x128xbf16, #tpu.memory_space<vmem>>, vector<128x128xbf16>
    %c0_44 = arith.constant 0 : index
    %c0_45 = arith.constant 0 : index
    %100 = vector.load %arg11[%c0_44, %c0_45] : memref<128x128xbf16, #tpu.memory_space<vmem>>, vector<128x128xbf16>
    %101 = arith.truncf %97 : vector<16x128xf32> to vector<16x128xbf16>
    %cst_46 = arith.constant dense<0.000000e+00> : vector<16x128xf32>
    %102 = tpu.matmul %101, %98, %cst_46 {dimension_numbers = #tpu.dot_dimension_numbers<[1], [0], [0], [1], [0, 0, 1, 1], [], []>} : vector<16x128xbf16>, vector<128x128xbf16>, vector<16x128xf32> -> vector<16x128xf32>
    %103 = arith.truncf %6 : vector<32x128xf32> to vector<32x128xbf16>
    %cst_47 = arith.constant dense<0.000000e+00> : vector<32x128xf32>
    %104 = tpu.matmul %103, %99, %cst_47 {dimension_numbers = #tpu.dot_dimension_numbers<[1], [0], [0], [1], [0, 0, 1, 1], [], []>} : vector<32x128xbf16>, vector<128x128xbf16>, vector<32x128xf32> -> vector<32x128xf32>
    %105 = arith.truncf %6 : vector<32x128xf32> to vector<32x128xbf16>
    %cst_48 = arith.constant dense<0.000000e+00> : vector<32x128xf32>
    %106 = tpu.matmul %105, %100, %cst_48 {dimension_numbers = #tpu.dot_dimension_numbers<[1], [0], [0], [1], [0, 0, 1, 1], [], []>} : vector<32x128xbf16>, vector<128x128xbf16>, vector<32x128xf32> -> vector<32x128xf32>
    %107 = vector.extract_strided_slice %102 {offsets = [0, 0], sizes = [8, 128], strides = [1, 1]} : vector<16x128xf32> to vector<8x128xf32>
    %108 = arith.truncf %107 : vector<8x128xf32> to vector<8x128xbf16>
    %109 = vector.shape_cast %108 : vector<8x128xbf16> to vector<8x4x32xbf16>
    %110 = vector.extract_strided_slice %104 {offsets = [0, 0], sizes = [16, 128], strides = [1, 1]} : vector<32x128xf32> to vector<16x128xf32>
    %111 = arith.truncf %110 : vector<16x128xf32> to vector<16x128xbf16>
    %112 = vector.shape_cast %111 : vector<16x128xbf16> to vector<16x4x32xbf16>
    %113 = vector.extract_strided_slice %106 {offsets = [0, 0], sizes = [16, 128], strides = [1, 1]} : vector<32x128xf32> to vector<16x128xf32>
    %114 = arith.truncf %113 : vector<16x128xf32> to vector<16x128xbf16>
    %115 = vector.shape_cast %114 : vector<16x128xbf16> to vector<16x4x32xbf16>
    "tpu.trace_start"() <{level = 10 : i32, message = "qhd,khd->hqk"}> : () -> ()
    %cst_49 = arith.constant dense<0.000000e+00> : vector<4x8x16xf32>
    %116 = tpu.matmul %109, %112, %cst_49 {dimension_numbers = #tpu.dot_dimension_numbers<[2], [2], [0], [0], [0, 1, 0, 0, 1, 0], [1], [1]>} : vector<8x4x32xbf16>, vector<16x4x32xbf16>, vector<4x8x16xf32> -> vector<4x8x16xf32>
    "tpu.trace_stop"() : () -> ()
    %117 = vector.broadcast %0 : f32 to vector<4x8x16xf32>
    %118 = arith.mulf %116, %117 : vector<4x8x16xf32>
    %cst_50 = arith.constant dense<0xFF800000> : vector<4x8xf32>
    %119 = vector.multi_reduction <maximumf>, %118, %cst_50 [2] : vector<4x8x16xf32> to vector<4x8xf32>
    %120 = vector.shape_cast %119 : vector<4x8xf32> to vector<4x8x1xf32>
    %121 = vector.broadcast %120 : vector<4x8x1xf32> to vector<4x8x16xf32>
    %122 = arith.subf %118, %121 : vector<4x8x16xf32>
    %123 = math.exp %122 : vector<4x8x16xf32>
    %cst_51 = arith.constant dense<0.000000e+00> : vector<4x8xf32>
    %124 = vector.multi_reduction <add>, %123, %cst_51 [2] : vector<4x8x16xf32> to vector<4x8xf32>
    %125 = vector.shape_cast %124 : vector<4x8xf32> to vector<4x8x1xf32>
    %126 = tpu.reciprocal %125 {approx = true} : vector<4x8x1xf32> -> vector<4x8x1xf32>
    %127 = vector.broadcast %126 : vector<4x8x1xf32> to vector<4x8x16xf32>
    %128 = arith.mulf %123, %127 : vector<4x8x16xf32>
    %129 = arith.truncf %128 : vector<4x8x16xf32> to vector<4x8x16xbf16>
    "tpu.trace_start"() <{level = 10 : i32, message = "hqk,khd->qhd"}> : () -> ()
    %cst_52 = arith.constant dense<0.000000e+00> : vector<4x32x8xf32>
    %130 = tpu.matmul %115, %129, %cst_52 {dimension_numbers = #tpu.dot_dimension_numbers<[0], [2], [2], [1], [0, 1, 0, 2, 1, 1], [1], [0]>} : vector<16x4x32xbf16>, vector<4x8x16xbf16>, vector<4x32x8xf32> -> vector<4x32x8xf32>
    %131 = tpu.transpose %130, [2, 0, 1] : vector<4x32x8xf32> -> vector<8x4x32xf32>
    "tpu.trace_stop"() : () -> ()
    %132 = vector.shape_cast %131 : vector<8x4x32xf32> to vector<8x128xf32>
    %133 = vector.extract_strided_slice %102 {offsets = [8, 0], sizes = [8, 128], strides = [1, 1]} : vector<16x128xf32> to vector<8x128xf32>
    %134 = arith.truncf %133 : vector<8x128xf32> to vector<8x128xbf16>
    %135 = vector.shape_cast %134 : vector<8x128xbf16> to vector<8x4x32xbf16>
    %136 = vector.extract_strided_slice %104 {offsets = [16, 0], sizes = [16, 128], strides = [1, 1]} : vector<32x128xf32> to vector<16x128xf32>
    %137 = arith.truncf %136 : vector<16x128xf32> to vector<16x128xbf16>
    %138 = vector.shape_cast %137 : vector<16x128xbf16> to vector<16x4x32xbf16>
    %139 = vector.extract_strided_slice %106 {offsets = [16, 0], sizes = [16, 128], strides = [1, 1]} : vector<32x128xf32> to vector<16x128xf32>
    %140 = arith.truncf %139 : vector<16x128xf32> to vector<16x128xbf16>
    %141 = vector.shape_cast %140 : vector<16x128xbf16> to vector<16x4x32xbf16>
    "tpu.trace_start"() <{level = 10 : i32, message = "qhd,khd->hqk"}> : () -> ()
    %cst_53 = arith.constant dense<0.000000e+00> : vector<4x8x16xf32>
    %142 = tpu.matmul %135, %138, %cst_53 {dimension_numbers = #tpu.dot_dimension_numbers<[2], [2], [0], [0], [0, 1, 0, 0, 1, 0], [1], [1]>} : vector<8x4x32xbf16>, vector<16x4x32xbf16>, vector<4x8x16xf32> -> vector<4x8x16xf32>
    "tpu.trace_stop"() : () -> ()
    %143 = vector.broadcast %0 : f32 to vector<4x8x16xf32>
    %144 = arith.mulf %142, %143 : vector<4x8x16xf32>
    %cst_54 = arith.constant dense<0xFF800000> : vector<4x8xf32>
    %145 = vector.multi_reduction <maximumf>, %144, %cst_54 [2] : vector<4x8x16xf32> to vector<4x8xf32>
    %146 = vector.shape_cast %145 : vector<4x8xf32> to vector<4x8x1xf32>
    %147 = vector.broadcast %146 : vector<4x8x1xf32> to vector<4x8x16xf32>
    %148 = arith.subf %144, %147 : vector<4x8x16xf32>
    %149 = math.exp %148 : vector<4x8x16xf32>
    %cst_55 = arith.constant dense<0.000000e+00> : vector<4x8xf32>
    %150 = vector.multi_reduction <add>, %149, %cst_55 [2] : vector<4x8x16xf32> to vector<4x8xf32>
    %151 = vector.shape_cast %150 : vector<4x8xf32> to vector<4x8x1xf32>
    %152 = tpu.reciprocal %151 {approx = true} : vector<4x8x1xf32> -> vector<4x8x1xf32>
    %153 = vector.broadcast %152 : vector<4x8x1xf32> to vector<4x8x16xf32>
    %154 = arith.mulf %149, %153 : vector<4x8x16xf32>
    %155 = arith.truncf %154 : vector<4x8x16xf32> to vector<4x8x16xbf16>
    "tpu.trace_start"() <{level = 10 : i32, message = "hqk,khd->qhd"}> : () -> ()
    %cst_56 = arith.constant dense<0.000000e+00> : vector<4x32x8xf32>
    %156 = tpu.matmul %141, %155, %cst_56 {dimension_numbers = #tpu.dot_dimension_numbers<[0], [2], [2], [1], [0, 1, 0, 2, 1, 1], [1], [0]>} : vector<16x4x32xbf16>, vector<4x8x16xbf16>, vector<4x32x8xf32> -> vector<4x32x8xf32>
    %157 = tpu.transpose %156, [2, 0, 1] : vector<4x32x8xf32> -> vector<8x4x32xf32>
    "tpu.trace_stop"() : () -> ()
    %158 = vector.shape_cast %157 : vector<8x4x32xf32> to vector<8x128xf32>
    %159 = tpu.concatenate %132, %158 in 0 : vector<8x128xf32>, vector<8x128xf32> -> vector<16x128xf32>
    %160 = arith.truncf %159 : vector<16x128xf32> to vector<16x128xbf16>
    %c0_57 = arith.constant 0 : index
    %c0_58 = arith.constant 0 : index
    %161 = vector.load %arg12[%c0_57, %c0_58] : memref<128x128xbf16, #tpu.memory_space<vmem>>, vector<128x128xbf16>
    %cst_59 = arith.constant dense<0.000000e+00> : vector<16x128xf32>
    %162 = tpu.matmul %160, %161, %cst_59 {dimension_numbers = #tpu.dot_dimension_numbers<[1], [0], [0], [1], [0, 0, 1, 1], [], []>} : vector<16x128xbf16>, vector<128x128xbf16>, vector<16x128xf32> -> vector<16x128xf32>
    %163 = arith.addf %97, %162 : vector<16x128xf32>
    %c0_60 = arith.constant 0 : index
    %c0_61 = arith.constant 0 : index
    %164 = vector.load %arg19[%c0_60, %c0_61] : memref<1x128xf32, #tpu.memory_space<vmem>>, vector<1x128xf32>
    %c0_62 = arith.constant 0 : index
    %c0_63 = arith.constant 0 : index
    %165 = vector.load %arg20[%c0_62, %c0_63] : memref<1x128xf32, #tpu.memory_space<vmem>>, vector<1x128xf32>
    %cst_64 = arith.constant dense<0.000000e+00> : vector<16xf32>
    %166 = vector.multi_reduction <add>, %163, %cst_64 [1] : vector<16x128xf32> to vector<16xf32>
    %167 = vector.shape_cast %166 : vector<16xf32> to vector<16x1xf32>
    %cst_65 = arith.constant 1.280000e+02 : f32
    %168 = vector.broadcast %cst_65 : f32 to vector<16x1xf32>
    %169 = arith.divf %167, %168 : vector<16x1xf32>
    %170 = vector.broadcast %169 : vector<16x1xf32> to vector<16x128xf32>
    %171 = arith.subf %163, %170 : vector<16x128xf32>
    %172 = arith.mulf %171, %171 : vector<16x128xf32>
    %cst_66 = arith.constant dense<0.000000e+00> : vector<16xf32>
    %173 = vector.multi_reduction <add>, %172, %cst_66 [1] : vector<16x128xf32> to vector<16xf32>
    %174 = vector.shape_cast %173 : vector<16xf32> to vector<16x1xf32>
    %cst_67 = arith.constant 1.280000e+02 : f32
    %175 = vector.broadcast %cst_67 : f32 to vector<16x1xf32>
    %176 = arith.divf %174, %175 : vector<16x1xf32>
    %cst_68 = arith.constant 9.99999974E-6 : f32
    %177 = vector.broadcast %cst_68 : f32 to vector<16x1xf32>
    %178 = arith.addf %176, %177 : vector<16x1xf32>
    %179 = math.rsqrt %178 : vector<16x1xf32>
    %180 = vector.broadcast %179 : vector<16x1xf32> to vector<16x128xf32>
    %181 = arith.mulf %171, %180 : vector<16x128xf32>
    %182 = vector.broadcast %164 : vector<1x128xf32> to vector<16x128xf32>
    %183 = arith.mulf %181, %182 : vector<16x128xf32>
    %184 = vector.broadcast %165 : vector<1x128xf32> to vector<16x128xf32>
    %185 = arith.addf %183, %184 : vector<16x128xf32>
    %186 = arith.truncf %185 : vector<16x128xf32> to vector<16x128xbf16>
    %c0_69 = arith.constant 0 : index
    %c0_70 = arith.constant 0 : index
    %187 = vector.load %arg13[%c0_69, %c0_70] : memref<128x512xbf16, #tpu.memory_space<vmem>>, vector<128x512xbf16>
    %cst_71 = arith.constant dense<0.000000e+00> : vector<16x512xf32>
    %188 = tpu.matmul %186, %187, %cst_71 {dimension_numbers = #tpu.dot_dimension_numbers<[1], [0], [0], [1], [0, 0, 1, 1], [], []>} : vector<16x128xbf16>, vector<128x512xbf16>, vector<16x512xf32> -> vector<16x512xf32>
    %c0_72 = arith.constant 0 : index
    %c0_73 = arith.constant 0 : index
    %189 = vector.load %arg14[%c0_72, %c0_73] : memref<1x512xf32, #tpu.memory_space<vmem>>, vector<1x512xf32>
    %190 = vector.broadcast %189 : vector<1x512xf32> to vector<16x512xf32>
    %191 = arith.addf %188, %190 : vector<16x512xf32>
    %cst_74 = arith.constant 5.000000e-01 : f32
    %192 = vector.broadcast %cst_74 : f32 to vector<16x512xf32>
    %193 = arith.mulf %192, %191 : vector<16x512xf32>
    %cst_75 = arith.constant 4.471500e-02 : f32
    %194 = vector.broadcast %cst_75 : f32 to vector<16x512xf32>
    %195 = arith.mulf %194, %191 : vector<16x512xf32>
    %196 = arith.mulf %195, %191 : vector<16x512xf32>
    %197 = arith.mulf %196, %191 : vector<16x512xf32>
    %198 = arith.addf %191, %197 : vector<16x512xf32>
    %cst_76 = arith.constant 0.797884583 : f32
    %199 = vector.broadcast %cst_76 : f32 to vector<16x512xf32>
    %200 = arith.mulf %199, %198 : vector<16x512xf32>
    %201 = math.tanh %200 : vector<16x512xf32>
    %cst_77 = arith.constant 1.000000e+00 : f32
    %202 = vector.broadcast %cst_77 : f32 to vector<16x512xf32>
    %203 = arith.addf %202, %201 : vector<16x512xf32>
    %204 = arith.mulf %193, %203 : vector<16x512xf32>
    %205 = arith.truncf %204 : vector<16x512xf32> to vector<16x512xbf16>
    %c0_78 = arith.constant 0 : index
    %c0_79 = arith.constant 0 : index
    %206 = vector.load %arg15[%c0_78, %c0_79] : memref<512x128xbf16, #tpu.memory_space<vmem>>, vector<512x128xbf16>
    %cst_80 = arith.constant dense<0.000000e+00> : vector<16x128xf32>
    %207 = tpu.matmul %205, %206, %cst_80 {dimension_numbers = #tpu.dot_dimension_numbers<[1], [0], [0], [1], [0, 0, 1, 1], [], []>} : vector<16x512xbf16>, vector<512x128xbf16>, vector<16x128xf32> -> vector<16x128xf32>
    %c0_81 = arith.constant 0 : index
    %c0_82 = arith.constant 0 : index
    %208 = vector.load %arg16[%c0_81, %c0_82] : memref<1x128xf32, #tpu.memory_space<vmem>>, vector<1x128xf32>
    %209 = vector.broadcast %208 : vector<1x128xf32> to vector<16x128xf32>
    %210 = arith.addf %207, %209 : vector<16x128xf32>
    %211 = arith.addf %185, %210 : vector<16x128xf32>
    %c0_83 = arith.constant 0 : index
    %c0_84 = arith.constant 0 : index
    %212 = vector.load %arg21[%c0_83, %c0_84] : memref<1x128xf32, #tpu.memory_space<vmem>>, vector<1x128xf32>
    %c0_85 = arith.constant 0 : index
    %c0_86 = arith.constant 0 : index
    %213 = vector.load %arg22[%c0_85, %c0_86] : memref<1x128xf32, #tpu.memory_space<vmem>>, vector<1x128xf32>
    %cst_87 = arith.constant dense<0.000000e+00> : vector<16xf32>
    %214 = vector.multi_reduction <add>, %211, %cst_87 [1] : vector<16x128xf32> to vector<16xf32>
    %215 = vector.shape_cast %214 : vector<16xf32> to vector<16x1xf32>
    %cst_88 = arith.constant 1.280000e+02 : f32
    %216 = vector.broadcast %cst_88 : f32 to vector<16x1xf32>
    %217 = arith.divf %215, %216 : vector<16x1xf32>
    %218 = vector.broadcast %217 : vector<16x1xf32> to vector<16x128xf32>
    %219 = arith.subf %211, %218 : vector<16x128xf32>
    %220 = arith.mulf %219, %219 : vector<16x128xf32>
    %cst_89 = arith.constant dense<0.000000e+00> : vector<16xf32>
    %221 = vector.multi_reduction <add>, %220, %cst_89 [1] : vector<16x128xf32> to vector<16xf32>
    %222 = vector.shape_cast %221 : vector<16xf32> to vector<16x1xf32>
    %cst_90 = arith.constant 1.280000e+02 : f32
    %223 = vector.broadcast %cst_90 : f32 to vector<16x1xf32>
    %224 = arith.divf %222, %223 : vector<16x1xf32>
    %cst_91 = arith.constant 9.99999974E-6 : f32
    %225 = vector.broadcast %cst_91 : f32 to vector<16x1xf32>
    %226 = arith.addf %224, %225 : vector<16x1xf32>
    %227 = math.rsqrt %226 : vector<16x1xf32>
    %228 = vector.broadcast %227 : vector<16x1xf32> to vector<16x128xf32>
    %229 = arith.mulf %219, %228 : vector<16x128xf32>
    %230 = vector.broadcast %212 : vector<1x128xf32> to vector<16x128xf32>
    %231 = arith.mulf %229, %230 : vector<16x128xf32>
    %232 = vector.broadcast %213 : vector<1x128xf32> to vector<16x128xf32>
    %233 = arith.addf %231, %232 : vector<16x128xf32>
    %234 = vector.shape_cast %233 : vector<16x128xf32> to vector<2x8x128xf32>
    %c0_92 = arith.constant 0 : index
    %c0_93 = arith.constant 0 : index
    %c0_94 = arith.constant 0 : index
    %235 = vector.load %arg23[%c0_92, %c0_93, %c0_94] : memref<2x8x128xf32, #tpu.memory_space<vmem>>, vector<2x8x128xf32>
    tpu.vector_store %arg23[%c0_92, %c0_93, %c0_94], %234 {strides = array<i32>} : memref<2x8x128xf32, #tpu.memory_space<vmem>>, vector<2x8x128xf32>,
    return
  }
  func.func @transform_0(%arg0: i32) -> (i32, i32, i32) {
    %c0_i32 = arith.constant 0 : i32
    %c0_i32_0 = arith.constant 0 : i32
    %c0_i32_1 = arith.constant 0 : i32
    return %arg0, %c0_i32, %c0_i32_0 : i32, i32, i32
  }
  func.func @transform_1(%arg0: i32) -> (i32, i32, i32) {
    %c0_i32 = arith.constant 0 : i32
    %c0_i32_0 = arith.constant 0 : i32
    %c0_i32_1 = arith.constant 0 : i32
    return %arg0, %c0_i32, %c0_i32_0 : i32, i32, i32
  }
  func.func @transform_2(%arg0: i32) -> (i32, i32, i32) {
    %c0_i32 = arith.constant 0 : i32
    %c0_i32_0 = arith.constant 0 : i32
    %c0_i32_1 = arith.constant 0 : i32
    return %arg0, %c0_i32, %c0_i32_0 : i32, i32, i32
  }
  func.func @transform_3(%arg0: i32) -> (i32, i32) {
    %c0_i32 = arith.constant 0 : i32
    %c0_i32_0 = arith.constant 0 : i32
    %c0_i32_1 = arith.constant 0 : i32
    return %c0_i32, %c0_i32_0 : i32, i32
  }
  func.func @transform_4(%arg0: i32) -> (i32, i32) {
    %c0_i32 = arith.constant 0 : i32
    %c0_i32_0 = arith.constant 0 : i32
    %c0_i32_1 = arith.constant 0 : i32
    return %c0_i32, %c0_i32_0 : i32, i32
  }
  func.func @transform_5(%arg0: i32) -> (i32, i32) {
    %c0_i32 = arith.constant 0 : i32
    %c0_i32_0 = arith.constant 0 : i32
    %c0_i32_1 = arith.constant 0 : i32
    return %c0_i32, %c0_i32_0 : i32, i32
  }
  func.func @transform_6(%arg0: i32) -> (i32, i32) {
    %c0_i32 = arith.constant 0 : i32
    %c0_i32_0 = arith.constant 0 : i32
    %c0_i32_1 = arith.constant 0 : i32
    return %c0_i32, %c0_i32_0 : i32, i32
  }
  func.func @transform_7(%arg0: i32) -> (i32, i32) {
    %c0_i32 = arith.constant 0 : i32
    %c0_i32_0 = arith.constant 0 : i32
    %c0_i32_1 = arith.constant 0 : i32
    return %c0_i32, %c0_i32_0 : i32, i32
  }
  func.func @transform_8(%arg0: i32) -> (i32, i32) {
    %c0_i32 = arith.constant 0 : i32
    %c0_i32_0 = arith.constant 0 : i32
    %c0_i32_1 = arith.constant 0 : i32
    return %c0_i32, %c0_i32_0 : i32, i32
  }
  func.func @transform_9(%arg0: i32) -> (i32, i32) {
    %c0_i32 = arith.constant 0 : i32
    %c0_i32_0 = arith.constant 0 : i32
    %c0_i32_1 = arith.constant 0 : i32
    return %c0_i32, %c0_i32_0 : i32, i32
  }
  func.func @transform_10(%arg0: i32) -> (i32, i32) {
    %c0_i32 = arith.constant 0 : i32
    %c0_i32_0 = arith.constant 0 : i32
    %c0_i32_1 = arith.constant 0 : i32
    return %c0_i32, %c0_i32_0 : i32, i32
  }
  func.func @transform_11(%arg0: i32) -> (i32, i32) {
    %c0_i32 = arith.constant 0 : i32
    %c0_i32_0 = arith.constant 0 : i32
    %c0_i32_1 = arith.constant 0 : i32
    return %c0_i32, %c0_i32_0 : i32, i32
  }
  func.func @transform_12(%arg0: i32) -> (i32, i32) {
    %c0_i32 = arith.constant 0 : i32
    %c0_i32_0 = arith.constant 0 : i32
    %c0_i32_1 = arith.constant 0 : i32
    return %c0_i32, %c0_i32_0 : i32, i32
  }
  func.func @transform_13(%arg0: i32) -> (i32, i32) {
    %c0_i32 = arith.constant 0 : i32
    %c0_i32_0 = arith.constant 0 : i32
    %c0_i32_1 = arith.constant 0 : i32
    return %c0_i32, %c0_i32_0 : i32, i32
  }
  func.func @transform_14(%arg0: i32) -> (i32, i32) {
    %c0_i32 = arith.constant 0 : i32
    %c0_i32_0 = arith.constant 0 : i32
    %c0_i32_1 = arith.constant 0 : i32
    return %c0_i32, %c0_i32_0 : i32, i32
  }
  func.func @transform_15(%arg0: i32) -> (i32, i32) {
    %c0_i32 = arith.constant 0 : i32
    %c0_i32_0 = arith.constant 0 : i32
    %c0_i32_1 = arith.constant 0 : i32
    return %c0_i32, %c0_i32_0 : i32, i32
  }
  func.func @transform_16(%arg0: i32) -> (i32, i32) {
    %c0_i32 = arith.constant 0 : i32
    %c0_i32_0 = arith.constant 0 : i32
    %c0_i32_1 = arith.constant 0 : i32
    return %c0_i32, %c0_i32_0 : i32, i32
  }
  func.func @transform_17(%arg0: i32) -> (i32, i32) {
    %c0_i32 = arith.constant 0 : i32
    %c0_i32_0 = arith.constant 0 : i32
    %c0_i32_1 = arith.constant 0 : i32
    return %c0_i32, %c0_i32_0 : i32, i32
  }
  func.func @transform_18(%arg0: i32) -> (i32, i32) {
    %c0_i32 = arith.constant 0 : i32
    %c0_i32_0 = arith.constant 0 : i32
    %c0_i32_1 = arith.constant 0 : i32
    return %c0_i32, %c0_i32_0 : i32, i32
  }
  func.func @transform_19(%arg0: i32) -> (i32, i32) {
    %c0_i32 = arith.constant 0 : i32
    %c0_i32_0 = arith.constant 0 : i32
    %c0_i32_1 = arith.constant 0 : i32
    return %c0_i32, %c0_i32_0 : i32, i32
  }
  func.func @transform_20(%arg0: i32) -> (i32, i32) {
    %c0_i32 = arith.constant 0 : i32
    %c0_i32_0 = arith.constant 0 : i32
    %c0_i32_1 = arith.constant 0 : i32
    return %c0_i32, %c0_i32_0 : i32, i32
  }
  func.func @transform_21(%arg0: i32) -> (i32, i32) {
    %c0_i32 = arith.constant 0 : i32
    %c0_i32_0 = arith.constant 0 : i32
    %c0_i32_1 = arith.constant 0 : i32
    return %c0_i32, %c0_i32_0 : i32, i32
  }
  func.func @transform_22(%arg0: i32) -> (i32, i32, i32) {
    %c0_i32 = arith.constant 0 : i32
    %c0_i32_0 = arith.constant 0 : i32
    %c0_i32_1 = arith.constant 0 : i32
    return %arg0, %c0_i32, %c0_i32_0 : i32, i32, i32
  }
}

</mosaic_0001>

<bundles_post_ra>
// kernel: tpu_custom_call.1
= control target key start
LH: loop header
LB: loop body
LE: loop exit
PB: predicated region body
PF: predicated region fallthrough
CT: control target
= control target key end

     0   :  { %s8070_s0 = inlined_call_operand.hbm [shape: f32[2,8,128], index: 0, kind: input, shape index: {}]   ;;  %s8071_s1 = inlined_call_operand.hbm [shape: f32[2,8,128], index: 1, kind: input, shape index: {}]   ;;  %s8072_s2 = inlined_call_operand.hbm [shape: f32[2,16,128], index: 2, kind: input, shape index: {}]   ;;  %s8073_s3 = inlined_call_operand.hbm [shape: bf16[128,128], index: 3, kind: input, shape index: {}]   ;;  %s8074_s4 = inlined_call_operand.hbm [shape: bf16[128,128], index: 4, kind: input, shape index: {}]   ;;  %s8075_s5 = inlined_call_operand.hbm [shape: bf16[128,128], index: 5, kind: input, shape index: {}]   ;;  %s8076_s6 = inlined_call_operand.hbm [shape: bf16[128,128], index: 6, kind: input, shape index: {}]   ;;  %s8077_s7 = inlined_call_operand.vmem [shape: f32[1,128], index: 7, kind: input, shape index: {}]   ;;  %s8078_s8 = inlined_call_operand.hbm [shape: bf16[128,128], index: 8, kind: input, shape index: {}]   ;;  %s8079_s9 = inlined_call_operand.hbm [shape: bf16[128,128], index: 9, kind: input, shape index: {}]   ;;  %s8080_s10 = inlined_call_operand.hbm [shape: bf16[128,128], index: 10, kind: input, shape index: {}]   ;;  %s8081_s11 = inlined_call_operand.hbm [shape: bf16[128,128], index: 11, kind: input, shape index: {}]   ;;  %s8082_s12 = inlined_call_operand.hbm [shape: bf16[128,512], index: 12, kind: input, shape index: {}]   ;;  %s8083_s13 = inlined_call_operand.vmem [shape: f32[1,512], index: 13, kind: input, shape index: {}]   ;;  %s8084_s14 = inlined_call_operand.hbm [shape: bf16[512,128], index: 14, kind: input, shape index: {}]   ;;  %s8085_s15 = inlined_call_operand.vmem [shape: f32[1,128], index: 15, kind: input, shape index: {}]   ;;  %s8086_s16 = inlined_call_operand.vmem [shape: f32[1,128], index: 16, kind: input, shape index: {}]   ;;  %s8087_s17 = inlined_call_operand.vmem [shape: f32[1,128], index: 17, kind: input, shape index: {}]   ;;  %s8088_s18 = inlined_call_operand.vmem [shape: f32[1,128], index: 18, kind: input, shape index: {}]   ;;  %s8089_s19 = inlined_call_operand.vmem [shape: f32[1,128], index: 19, kind: input, shape index: {}]   ;;  %s8090_s20 = inlined_call_operand.vmem [shape: f32[1,128], index: 20, kind: input, shape index: {}]   ;;  %s8091_s21 = inlined_call_operand.vmem [shape: f32[1,128], index: 21, kind: input, shape index: {}]   ;;  %s8092_s22 = inlined_call_operand.hbm [shape: f32[2,8,128], index: 22, kind: output, shape index: {}]  }
   0x1   :  { %8105 = sst [smem:[#allocation32_spill]] %s8070_s0 }
   0x2   :  { %8106 = sst [smem:[#allocation33_spill]] %s8071_s1 }
   0x3   :  { %8107 = sst [smem:[#allocation34_spill]] %s8072_s2 }
   0x4   :  { %8108 = sst [smem:[#allocation35_spill]] %s8073_s3 }
   0x5   :  { %8109 = sst [smem:[#allocation36_spill]] %s8074_s4 }
   0x6   :  { %8110 = sst [smem:[#allocation37_spill]] %s8075_s5 }
   0x7   :  { %8111 = sst [smem:[#allocation38_spill]] %s8076_s6 }
   0x8   :  { %8112 = sst [smem:[#allocation39_spill]] %s8090_s20 }
   0x9   :  { %8113 = sst [smem:[#allocation40_spill]] %s8091_s21 }
   0xa   :  { %8114 = sst [smem:[#allocation41_spill]] %s8092_s22 }
   0xb   :  { %27 = vsyncpa [#allocation3], 0 }
   0xc   :  { %28 = vsyncpa [#allocation6], 0 }
   0xd   :  { %29 = vsyncpa [#allocation9], 0 }
   0xe   :  { %30 = vsyncpa [#allocation12], 0 }
   0xf   :  { %31 = vsyncpa [#allocation15], 0 }
  0x10   :  { %32 = vsyncpa [#allocation18], 0 }
  0x11   :  { %33 = vsyncpa [#allocation21], 0 }
  0x12   :  { %34 = vsyncpa [#allocation4], 0  ;;  %s7002_s3 = smov [#allocation5]   ;;  %s7003_s29 = smov [#allocation8]  }
  0x13   :  { %s52_s28 = sshll.u32 %s7002_s3, 4  ;;  %s76_s30 = sshll.u32 %s7003_s29, 4  ;;  %s53_s28 = int_to_ptr.vmem [resolvable:$true] %s52_s28  ;;  %s7144_s30 = int_to_ptr.vmem [resolvable:$true] %s76_s30 }
  0x14   :  { %s8115_s23 = sld [smem:[#allocation33_spill]] }
  0x1a   :  { %s6678_s1 = scalar_lea.hbm %s8115_s23, 256 }
  0x1b   :  { %p6679_p0 = scmp.ne.s32.totalorder %s8115_s23, %s6678_s1  ;;  %p6682_p1 = scmp.lt.u32.totalorder %s6678_s1, %s8115_s23 }
  0x1d   :  { %p6684_p2 = pnand %p6682_p1, %p6679_p0 }
  0x1f   :  { %6687 = shalt.err (!%p6684_p2)
}
  0x20   :  { %s6688_s26 = scalar_lea.vmem %s53_s28, 256  ;;  %p6693_p4 = scmp.lt.s32.totalorder %s53_s28, %s53_s28 }
  0x21   :  { %p6689_p3 = scmp.ne.s32.totalorder %s53_s28, %s6688_s26  ;;  %p6694_p5 = scmp.lt.s32.totalorder %s6688_s26, %s6688_s26 }
  0x23   :  { %p6695_p6 = por %p6694_p5, %p6693_p4 }
  0x25   :  { %p6696_p7 = pnand %p6695_p6, %p6689_p3 }
  0x27   :  { %6699 = shalt.err (!%p6696_p7)
}
  0x28   :  { %s8101_s2 = smov 128   ;;  %s8103_s27 = smov 8  }
  0x29   :  { %58 = dma.hbm_to_vmem [thread:$0]  %s8115_s23, 256, %s53_s28, [#allocation6], %s8101_s2, %s8101_s2, %s8103_s27  }
  0x2a   :  { %s8116_s1 = sld [smem:[#allocation35_spill]] }
  0x30   :  { %s6700_s5 = scalar_lea.hbm %s8116_s1, 1024 }
  0x31   :  { %p6701_p8 = scmp.ne.s32.totalorder %s8116_s1, %s6700_s5  ;;  %p6704_p9 = scmp.lt.u32.totalorder %s6700_s5, %s8116_s1 }
  0x33   :  { %p6706_p10 = pnand %p6704_p9, %p6701_p8 }
  0x35   :  { %6709 = shalt.err (!%p6706_p10)
}
  0x36   :  { %s6710_s22 = scalar_lea.vmem %s7144_s30, 1024  ;;  %p6715_p12 = scmp.lt.s32.totalorder %s7144_s30, %s7144_s30 }
  0x37   :  { %p6711_p11 = scmp.ne.s32.totalorder %s7144_s30, %s6710_s22  ;;  %p6716_p13 = scmp.lt.s32.totalorder %s6710_s22, %s6710_s22 }
  0x39   :  { %p6717_p0 = por %p6716_p13, %p6715_p12 }
  0x3b   :  { %p6718_p1 = pnand %p6717_p0, %p6711_p11 }
  0x3d   :  { %6721 = shalt.err (!%p6718_p1)
}
  0x3e   :  { %s7006_s28 = smov 64   ;;  %s7007_s23 = smov 4  }
  0x3f   :  { %82 = dma.hbm_to_vmem [thread:$0]  %s8116_s1, 1024, %s7144_s30, [#allocation9], %s7006_s28, %s7006_s28, %s7007_s23  }
  0x40   :  { %s7008_s4 = smov [#allocation11]   ;;  %s7009_s5 = smov [#allocation14]  }
  0x41   :  { %s100_s0 = sshll.u32 %s7008_s4, 4  ;;  %s126_s24 = sshll.u32 %s7009_s5, 4  ;;  %s101_s0 = int_to_ptr.vmem [resolvable:$true] %s100_s0  ;;  %s7181_s24 = int_to_ptr.vmem [resolvable:$true] %s126_s24 }
  0x42   :  { %s8117_s25 = sld [smem:[#allocation37_spill]] }
  0x48   :  { %s6722_s26 = scalar_lea.hbm %s8117_s25, 1024 }
  0x49   :  { %p6723_p2 = scmp.ne.s32.totalorder %s8117_s25, %s6722_s26  ;;  %p6726_p3 = scmp.lt.u32.totalorder %s6722_s26, %s8117_s25 }
  0x4b   :  { %p6728_p4 = pnand %p6726_p3, %p6723_p2 }
  0x4d   :  { %6731 = shalt.err (!%p6728_p4)
}
  0x4e   :  { %s6732_s30 = scalar_lea.vmem %s101_s0, 1024  ;;  %p6737_p6 = scmp.lt.s32.totalorder %s101_s0, %s101_s0 }
  0x4f   :  { %p6733_p5 = scmp.ne.s32.totalorder %s101_s0, %s6732_s30  ;;  %p6738_p7 = scmp.lt.s32.totalorder %s6732_s30, %s6732_s30 }
  0x51   :  { %p6739_p8 = por %p6738_p7, %p6737_p6 }
  0x53   :  { %p6740_p9 = pnand %p6739_p8, %p6733_p5 }
  0x55   :  { %6743 = shalt.err (!%p6740_p9)
}
  0x56   :  { %106 = dma.hbm_to_vmem [thread:$0]  %s8117_s25, 1024, %s101_s0, [#allocation12], %s7006_s28, %s7006_s28, %s7007_s23  }
  0x57   :  { %s6744_s20 = scalar_lea.hbm %s8078_s8, 1024 }
  0x58   :  { %p6745_p10 = scmp.ne.s32.totalorder %s8078_s8, %s6744_s20  ;;  %p6748_p11 = scmp.lt.u32.totalorder %s6744_s20, %s8078_s8 }
  0x5a   :  { %p6750_p12 = pnand %p6748_p11, %p6745_p10 }
  0x5c   :  { %6753 = shalt.err (!%p6750_p12)
}
  0x5d   :  { %s6754_s22 = scalar_lea.vmem %s7181_s24, 1024  ;;  %p6759_p0 = scmp.lt.s32.totalorder %s7181_s24, %s7181_s24 }
  0x5e   :  { %p6755_p13 = scmp.ne.s32.totalorder %s7181_s24, %s6754_s22  ;;  %p6760_p1 = scmp.lt.s32.totalorder %s6754_s22, %s6754_s22 }
  0x60   :  { %p6761_p2 = por %p6760_p1, %p6759_p0 }
  0x62   :  { %p6762_p3 = pnand %p6761_p2, %p6755_p13 }
  0x64   :  { %6765 = shalt.err (!%p6762_p3)
}
  0x65   :  { %132 = dma.hbm_to_vmem [thread:$0]  %s8078_s8, 1024, %s7181_s24, [#allocation15], %s7006_s28, %s7006_s28, %s7007_s23  }
  0x66   :  { %s7010_s25 = smov [#allocation17]   ;;  %s7011_s30 = smov [#allocation20]  }
  0x67   :  { %s150_s26 = sshll.u32 %s7010_s25, 4  ;;  %s174_s1 = sshll.u32 %s7011_s30, 4  ;;  %s151_s26 = int_to_ptr.vmem [resolvable:$true] %s150_s26  ;;  %s7218_s1 = int_to_ptr.vmem [resolvable:$true] %s174_s1 }
  0x68   :  { %s6766_s27 = scalar_lea.hbm %s8080_s10, 1024 }
  0x69   :  { %p6767_p4 = scmp.ne.s32.totalorder %s8080_s10, %s6766_s27  ;;  %p6770_p5 = scmp.lt.u32.totalorder %s6766_s27, %s8080_s10 }
  0x6b   :  { %p6772_p6 = pnand %p6770_p5, %p6767_p4 }
  0x6d   :  { %6775 = shalt.err (!%p6772_p6)
}
  0x6e   :  { %s6776_s8 = scalar_lea.vmem %s151_s26, 1024  ;;  %p6781_p8 = scmp.lt.s32.totalorder %s151_s26, %s151_s26 }
  0x6f   :  { %p6777_p7 = scmp.ne.s32.totalorder %s151_s26, %s6776_s8  ;;  %p6782_p9 = scmp.lt.s32.totalorder %s6776_s8, %s6776_s8 }
  0x71   :  { %p6783_p10 = por %p6782_p9, %p6781_p8 }
  0x73   :  { %p6784_p11 = pnand %p6783_p10, %p6777_p7 }
  0x75   :  { %6787 = shalt.err (!%p6784_p11)
}
  0x76   :  { %156 = dma.hbm_to_vmem [thread:$0]  %s8080_s10, 1024, %s151_s26, [#allocation18], %s7006_s28, %s7006_s28, %s7007_s23  }
  0x77   :  { %s6788_s6 = scalar_lea.hbm %s8082_s12, 4096 }
  0x78   :  { %p6789_p12 = scmp.ne.s32.totalorder %s8082_s12, %s6788_s6  ;;  %p6792_p13 = scmp.lt.u32.totalorder %s6788_s6, %s8082_s12 }
  0x7a   :  { %p6794_p0 = pnand %p6792_p13, %p6789_p12 }
  0x7c   :  { %6797 = shalt.err (!%p6794_p0)
}
  0x7d   :  { %s6798_s27 = scalar_lea.vmem %s7218_s1, 4096  ;;  %p6803_p2 = scmp.lt.s32.totalorder %s7218_s1, %s7218_s1 }
  0x7e   :  { %p6799_p1 = scmp.ne.s32.totalorder %s7218_s1, %s6798_s27  ;;  %p6804_p3 = scmp.lt.s32.totalorder %s6798_s27, %s6798_s27 }
  0x80   :  { %p6805_p4 = por %p6804_p3, %p6803_p2 }
  0x82   :  { %p6806_p5 = pnand %p6805_p4, %p6799_p1 }
  0x84   :  { %6809 = shalt.err (!%p6806_p5)
}
  0x85   :  { %s7012_s10 = smov 256   ;;  %s7013_s26 = smov 16  }
  0x86   :  { %180 = dma.hbm_to_vmem [thread:$0]  %s8082_s12, 4096, %s7218_s1, [#allocation21], %s7012_s10, %s7012_s10, %s7013_s26  }
  0x87   :  { %s7014_s29 = smov [#allocation2]   ;;  %s7015_s8 = smov [#allocation7]  }
  0x88   :  { %s40_s4 = sshll.u32 %s7014_s29, 4  ;;  %s64_s24 = sshll.u32 %s7015_s8, 4  ;;  %s41_s4 = int_to_ptr.vmem [resolvable:$true] %s40_s4  ;;  %s7252_s24 = int_to_ptr.vmem [resolvable:$true] %s64_s24 }
  0x89   :  { %s8118_s0 = sld [smem:[#allocation32_spill]] }
  0x8f   :  { %s6810_s6 = scalar_lea.hbm %s8118_s0, 256 }
  0x90   :  { %p6811_p6 = scmp.ne.s32.totalorder %s8118_s0, %s6810_s6  ;;  %p6814_p7 = scmp.lt.u32.totalorder %s6810_s6, %s8118_s0 }
  0x92   :  { %p6816_p8 = pnand %p6814_p7, %p6811_p6 }
  0x94   :  { %6819 = shalt.err (!%p6816_p8)
}
  0x95   :  { %s6820_s12 = scalar_lea.vmem %s41_s4, 256  ;;  %p6825_p10 = scmp.lt.s32.totalorder %s41_s4, %s41_s4 }
  0x96   :  { %p6821_p9 = scmp.ne.s32.totalorder %s41_s4, %s6820_s12  ;;  %p6826_p11 = scmp.lt.s32.totalorder %s6820_s12, %s6820_s12 }
  0x98   :  { %p6827_p12 = por %p6826_p11, %p6825_p10 }
  0x9a   :  { %p6828_p13 = pnand %p6827_p12, %p6821_p9 }
  0x9c   :  { %6831 = shalt.err (!%p6828_p13)
}
  0x9d   :  { %s8119_s1 = smov 8   ;;  %s8120_s27 = smov 128  }
  0x9e   :  { %46 = dma.hbm_to_vmem [thread:$0]  %s8118_s0, 256, %s41_s4, [#allocation3], %s8120_s27, %s8120_s27, %s8119_s1  }
  0x9f   :  { %s8121_s29 = sld [smem:[#allocation34_spill]] }
  0xa5   :  { %s6832_s8 = scalar_lea.hbm %s8121_s29, 512 }
  0xa6   :  { %p6833_p0 = scmp.ne.s32.totalorder %s8121_s29, %s6832_s8  ;;  %p6836_p1 = scmp.lt.u32.totalorder %s6832_s8, %s8121_s29 }
  0xa8   :  { %p6838_p2 = pnand %p6836_p1, %p6833_p0 }
  0xaa   :  { %6841 = shalt.err (!%p6838_p2)
}
  0xab   :  { %s6842_s30 = scalar_lea.vmem %s7252_s24, 512  ;;  %p6847_p4 = scmp.lt.s32.totalorder %s7252_s24, %s7252_s24 }
  0xac   :  { %p6843_p3 = scmp.ne.s32.totalorder %s7252_s24, %s6842_s30  ;;  %p6848_p5 = scmp.lt.s32.totalorder %s6842_s30, %s6842_s30 }
  0xae   :  { %p6849_p6 = por %p6848_p5, %p6847_p4 }
  0xb0   :  { %p6850_p7 = pnand %p6849_p6, %p6843_p3 }
  0xb2   :  { %6853 = shalt.err (!%p6850_p7)
}
  0xb3   :  { %70 = dma.hbm_to_vmem [thread:$0]  %s8121_s29, 512, %s7252_s24, [#allocation6], %s8120_s27, %s8120_s27, %s8119_s1  }
  0xb4   :  { %s7016_s3 = smov [#allocation10]   ;;  %s7017_s12 = smov [#allocation13]  }
  0xb5   :  { %s88_s2 = sshll.u32 %s7016_s3, 4  ;;  %s112_s10 = sshll.u32 %s7017_s12, 4  ;;  %s89_s2 = int_to_ptr.vmem [resolvable:$true] %s88_s2  ;;  %s7289_s10 = int_to_ptr.vmem [resolvable:$true] %s112_s10 }
  0xb6   :  { %s8122_s21 = sld [smem:[#allocation36_spill]] }
  0xbc   :  { %s6854_s8 = scalar_lea.hbm %s8122_s21, 1024 }
  0xbd   :  { %p6855_p8 = scmp.ne.s32.totalorder %s8122_s21, %s6854_s8  ;;  %p6858_p9 = scmp.lt.u32.totalorder %s6854_s8, %s8122_s21 }
  0xbf   :  { %p6860_p10 = pnand %p6858_p9, %p6855_p8 }
  0xc1   :  { %6863 = shalt.err (!%p6860_p10)
}
  0xc2   :  { %s6864_s24 = scalar_lea.vmem %s89_s2, 1024  ;;  %p6869_p12 = scmp.lt.s32.totalorder %s89_s2, %s89_s2 }
  0xc3   :  { %p6865_p11 = scmp.ne.s32.totalorder %s89_s2, %s6864_s24  ;;  %p6870_p13 = scmp.lt.s32.totalorder %s6864_s24, %s6864_s24 }
  0xc5   :  { %p6871_p0 = por %p6870_p13, %p6869_p12 }
  0xc7   :  { %p6872_p1 = pnand %p6871_p0, %p6865_p11 }
  0xc9   :  { %6875 = shalt.err (!%p6872_p1)
}
  0xca   :  { %94 = dma.hbm_to_vmem [thread:$0]  %s8122_s21, 1024, %s89_s2, [#allocation9], %s7006_s28, %s7006_s28, %s7007_s23  }
  0xcb   :  { %s8123_s3 = sld [smem:[#allocation38_spill]] }
  0xd1   :  { %s6876_s12 = scalar_lea.hbm %s8123_s3, 1024 }
  0xd2   :  { %p6877_p2 = scmp.ne.s32.totalorder %s8123_s3, %s6876_s12  ;;  %p6880_p3 = scmp.lt.u32.totalorder %s6876_s12, %s8123_s3 }
  0xd4   :  { %p6882_p4 = pnand %p6880_p3, %p6877_p2 }
  0xd6   :  { %6885 = shalt.err (!%p6882_p4)
}
  0xd7   :  { %s6886_s22 = scalar_lea.vmem %s7289_s10, 1024  ;;  %p6891_p6 = scmp.lt.s32.totalorder %s7289_s10, %s7289_s10 }
  0xd8   :  { %p6887_p5 = scmp.ne.s32.totalorder %s7289_s10, %s6886_s22  ;;  %p6892_p7 = scmp.lt.s32.totalorder %s6886_s22, %s6886_s22 }
  0xda   :  { %p6893_p8 = por %p6892_p7, %p6891_p6 }
  0xdc   :  { %p6894_p9 = pnand %p6893_p8, %p6887_p5 }
  0xde   :  { %6897 = shalt.err (!%p6894_p9)
}
  0xdf   :  { %118 = dma.hbm_to_vmem [thread:$0]  %s8123_s3, 1024, %s7289_s10, [#allocation12], %s7006_s28, %s7006_s28, %s7007_s23  }
  0xe0   :  { %s7018_s6 = smov [#allocation16]   ;;  %s7019_s24 = smov [#allocation19]  }
  0xe1   :  { %s138_s25 = sshll.u32 %s7018_s6, 4  ;;  %s162_s29 = sshll.u32 %s7019_s24, 4  ;;  %s139_s25 = int_to_ptr.vmem [resolvable:$true] %s138_s25  ;;  %s7326_s29 = int_to_ptr.vmem [resolvable:$true] %s162_s29 }
  0xe2   :  { %s6898_s0 = scalar_lea.hbm %s8079_s9, 1024 }
  0xe3   :  { %p6899_p10 = scmp.ne.s32.totalorder %s8079_s9, %s6898_s0  ;;  %p6902_p11 = scmp.lt.u32.totalorder %s6898_s0, %s8079_s9 }
  0xe5   :  { %p6904_p12 = pnand %p6902_p11, %p6899_p10 }
  0xe7   :  { %6907 = shalt.err (!%p6904_p12)
}
  0xe8   :  { %s6908_s10 = scalar_lea.vmem %s139_s25, 1024  ;;  %p6913_p0 = scmp.lt.s32.totalorder %s139_s25, %s139_s25 }
  0xe9   :  { %p6909_p13 = scmp.ne.s32.totalorder %s139_s25, %s6908_s10  ;;  %p6914_p1 = scmp.lt.s32.totalorder %s6908_s10, %s6908_s10 }
  0xeb   :  { %p6915_p2 = por %p6914_p1, %p6913_p0 }
  0xed   :  { %p6916_p3 = pnand %p6915_p2, %p6909_p13 }
  0xef   :  { %6919 = shalt.err (!%p6916_p3)
}
  0xf0   :  { %144 = dma.hbm_to_vmem [thread:$0]  %s8079_s9, 1024, %s139_s25, [#allocation15], %s7006_s28, %s7006_s28, %s7007_s23  }
  0xf1   :  { %s6920_s21 = scalar_lea.hbm %s8081_s11, 1024 }
  0xf2   :  { %p6921_p4 = scmp.ne.s32.totalorder %s8081_s11, %s6920_s21  ;;  %p6924_p5 = scmp.lt.u32.totalorder %s6920_s21, %s8081_s11 }
  0xf4   :  { %p6926_p6 = pnand %p6924_p5, %p6921_p4 }
  0xf6   :  { %6929 = shalt.err (!%p6926_p6)
}
  0xf7   :  { %s6930_s0 = scalar_lea.vmem %s7326_s29, 1024  ;;  %p6935_p8 = scmp.lt.s32.totalorder %s7326_s29, %s7326_s29 }
  0xf8   :  { %p6931_p7 = scmp.ne.s32.totalorder %s7326_s29, %s6930_s0  ;;  %p6936_p9 = scmp.lt.s32.totalorder %s6930_s0, %s6930_s0 }
  0xfa   :  { %p6937_p10 = por %p6936_p9, %p6935_p8 }
  0xfc   :  { %p6938_p11 = pnand %p6937_p10, %p6931_p7 }
  0xfe   :  { %6941 = shalt.err (!%p6938_p11)
}
  0xff   :  { %168 = dma.hbm_to_vmem [thread:$0]  %s8081_s11, 1024, %s7326_s29, [#allocation18], %s7006_s28, %s7006_s28, %s7007_s23  }
 0x100   :  { %s7020_s12 = smov [#allocation22]   ;;  %s6942_s10 = scalar_lea.hbm %s8084_s14, 4096 }
 0x101   :  { %s188_s26 = sshll.u32 %s7020_s12, 4  ;;  %p6943_p12 = scmp.ne.s32.totalorder %s8084_s14, %s6942_s10  ;;  %s189_s26 = int_to_ptr.vmem [resolvable:$true] %s188_s26 }
 0x102   :  { %p6946_p13 = scmp.lt.u32.totalorder %s6942_s10, %s8084_s14 }
 0x104   :  { %p6948_p0 = pnand %p6946_p13, %p6943_p12 }
 0x106   :  { %6951 = shalt.err (!%p6948_p0)
}
 0x107   :  { %s6952_s21 = scalar_lea.vmem %s189_s26, 4096  ;;  %p6957_p2 = scmp.lt.s32.totalorder %s189_s26, %s189_s26 }
 0x108   :  { %p6953_p1 = scmp.ne.s32.totalorder %s189_s26, %s6952_s21  ;;  %p6958_p3 = scmp.lt.s32.totalorder %s6952_s21, %s6952_s21 }
 0x10a   :  { %p6959_p4 = por %p6958_p3, %p6957_p2 }
 0x10c   :  { %p6960_p5 = pnand %p6959_p4, %p6953_p1 }
 0x10e   :  { %6963 = shalt.err (!%p6960_p5)
}
 0x10f   :  { %194 = dma.hbm_to_vmem [thread:$0]  %s8084_s14, 4096, %s189_s26, [#allocation21], %s7006_s28, %s7006_s28, %s7007_s23  }
 0x110   :  { %6986 = dma.done.wait [#allocation3], 256  }
 0x111   :  { %6987 = vsyncadd [#allocation3], 4294967040 }
 0x112   :  { %6988 = dma.done.wait [#allocation6], 768  }
 0x113   :  { %6989 = vsyncadd [#allocation6], 4294966528 }
 0x114   :  { %6990 = dma.done.wait [#allocation9], 2048  }
 0x115   :  { %6991 = vsyncadd [#allocation9], 4294965248 }
 0x116   :  { %6992 = dma.done.wait [#allocation12], 2048  }
 0x117   :  { %6993 = vsyncadd [#allocation12], 4294965248 }
 0x118   :  { %6994 = dma.done.wait [#allocation15], 2048  }
 0x119   :  { %6995 = vsyncadd [#allocation15], 4294965248 }
 0x11a   :  { %6996 = dma.done.wait [#allocation18], 2048  }
 0x11b   :  { %6997 = vsyncadd [#allocation18], 4294965248 }
 0x11c   :  { %6998 = dma.done.wait [#allocation21], 8192  }
 0x11d   :  { %6999 = vsyncadd [#allocation21], 4294959104  ;;  %v7021_v0 = vmov 0.0   ;;  %vm7022_vm0 = vmmov 0   ;;  %v6442_v1 = vld [vmem:[#allocation10] sm:$0xff]   ;;  %v6443_v2 = vld [vmem:[#allocation10 + $0x8] sm:$0xff]  }
 0x11e   :  { %6005 = vmatprep.subr.bf16.mxu1 %v7021_v0  ;;  %6021 = vmatprep.mubr.msk.bf16.mxu1 %vm7022_vm0, %v7021_v0  ;;  %v6444_v3 = vld [vmem:[#allocation10 + $0x10] sm:$0xff]   ;;  %v6445_v4 = vld [vmem:[#allocation10 + $0x18] sm:$0xff]   ;;  %v6450_v5 = vld [vmem:[#allocation8] sm:$0xff]   ;;  %s7023_s14 = smov 32   ;;  %s7024_s23 = smov 96   ;;  %vm669_vm1 = vcmask 261120  }
 0x11f   :  { %5985 = vmatprep.subr.bf16.mxu0 %v7021_v0  ;;  %6001 = vmatprep.mubr.msk.bf16.mxu0 %vm7022_vm0, %v7021_v0  ;;  %v6451_v6 = vld [vmem:[#allocation8 + $0x8] sm:$0xff]   ;;  %v6446_v7 = vld [vmem:[#allocation10 + $0x20] sm:$0xff]   ;;  %v6452_v8 = vld [vmem:[#allocation8 + $0x10] sm:$0xff]   ;;  %vm846_vm2 = vcmask 64512   ;;  %vm1468_vm3 = vcmask 523264   ;;  %vm1470_vm4 = vcmask 785408  }
 0x120   :  { %6006 = vmatpush3.bf16.msra.mxu1 %v6442_v1  ;;  %5986 = vmatpush3.bf16.msra.mxu0 %v6450_v5  ;;  %v6447_v9 = vld [vmem:[#allocation10 + $0x28] sm:$0xff]   ;;  %v6453_v10 = vld [vmem:[#allocation8 + $0x18] sm:$0xff]   ;;  %v6448_v11 = vld [vmem:[#allocation10 + $0x30] sm:$0xff]   ;;  %vm3125_vm5 = vcmask 130048   ;;  %s8124_s26 = sld [smem:[#allocation39_spill]]  ;;  %s8125_s10 = sld [smem:[#allocation40_spill]] }
 0x121   :  { %6007 = vmatprep.subr.bf16.mxu1 %v7021_v0  ;;  %5987 = vmatprep.subr.bf16.mxu0 %v7021_v0  ;;  %v249_v12 = vld [vmem:[#allocation2] sm:$0xff]  ;;  %v250_v13 = vld [vmem:[#allocation2 + $0x8] sm:$0xff]  ;;  %v251_v14 = vld [vmem:[#allocation5] sm:$0xff]  ;;  %s7028_s3 = smov [#allocation23]  }
 0x122   :  { %v252_v15 = vld [vmem:[#allocation5 + $0x8] sm:$0xff]  ;;  %v6454_v16 = vld [vmem:[#allocation8 + $0x20] sm:$0xff]   ;;  %v7393_v18 = vadd.f32 %v251_v14, %v249_v12  ;;  %v6455_v20 = vld [vmem:[#allocation8 + $0x28] sm:$0xff]   ;;  %s5561_s5 = sshll.u32 %s7028_s3, 4  ;;  %s5562_s5 = int_to_ptr.vmem [resolvable:$true] %s5561_s5 }
 0x123   :  { %v6449_v17 = vld [vmem:[#allocation10 + $0x38] sm:$0xff]   ;;  %v7395_v19 = vadd.f32 %v252_v15, %v250_v13  ;;  %v6456_v22 = vld [vmem:[#allocation8 + $0x30] sm:$0xff]   ;;  %v6458_v34 = vld [vmem:[#allocation11] sm:$0xff]   ;;  %s6964_s22 = scalar_lea.vmem %s5562_s5, 256  ;;  %p6969_p7 = scmp.lt.s32.totalorder %s5562_s5, %s5562_s5 }
 0x124   :  { %6008 = vmatpush3.bf16.msra.mxu1 %v6443_v2  ;;  %5988 = vmatpush3.bf16.msra.mxu0 %v6451_v6  ;;  %v6457_v23 = vld [vmem:[#allocation8 + $0x38] sm:$0xff]   ;;  %v6459_v35 = vld [vmem:[#allocation11 + $0x8] sm:$0xff]   ;;  %v6460_v36 = vld [vmem:[#allocation11 + $0x10] sm:$0xff]   ;;  %p6965_p6 = scmp.ne.s32.totalorder %s5562_s5, %s6964_s22  ;;  %p6970_p8 = scmp.lt.s32.totalorder %s6964_s22, %s6964_s22 }
 0x125   :  { %6009 = vmatprep.subr.bf16.mxu1 %v7021_v0  ;;  %5989 = vmatprep.subr.bf16.mxu0 %v7021_v0  ;;  %v7401_v21 = vpack.c.bf16 %v7395_v19, %v7393_v18  ;;  %v6461_v37 = vld [vmem:[#allocation11 + $0x18] sm:$0xff]   ;;  %v6462_v38 = vld [vmem:[#allocation11 + $0x20] sm:$0xff]   ;;  %v6463_v41 = vld [vmem:[#allocation11 + $0x28] sm:$0xff]  }
 0x126   :  { %v6464_v43 = vld [vmem:[#allocation11 + $0x30] sm:$0xff]   ;;  %v6465_v44 = vld [vmem:[#allocation11 + $0x38] sm:$0xff]   ;;  %p6971_p9 = por %p6970_p8, %p6969_p7 }
 0x128   :  { %6010 = vmatpush3.bf16.msra.mxu1 %v6444_v3  ;;  %5990 = vmatpush3.bf16.msra.mxu0 %v6452_v8  ;;  %p6972_p10 = pnand %p6971_p9, %p6965_p6 }
 0x129   :  { %6011 = vmatprep.subr.bf16.mxu1 %v7021_v0  ;;  %5991 = vmatprep.subr.bf16.mxu0 %v7021_v0 }
 0x12c   :  { %6012 = vmatpush3.bf16.msra.mxu1 %v6445_v4  ;;  %5992 = vmatpush3.bf16.msra.mxu0 %v6453_v10 }
 0x12d   :  { %6013 = vmatprep.subr.bf16.mxu1 %v7021_v0  ;;  %5993 = vmatprep.subr.bf16.mxu0 %v7021_v0 }
 0x130   :  { %6014 = vmatpush3.bf16.msra.mxu1 %v6446_v7  ;;  %5994 = vmatpush3.bf16.msra.mxu0 %v6454_v16 }
 0x131   :  { %6015 = vmatprep.subr.bf16.mxu1 %v7021_v0  ;;  %5995 = vmatprep.subr.bf16.mxu0 %v7021_v0 }
 0x134   :  { %6016 = vmatpush3.bf16.msra.mxu1 %v6447_v9  ;;  %5996 = vmatpush3.bf16.msra.mxu0 %v6455_v20 }
 0x135   :  { %6017 = vmatprep.subr.bf16.mxu1 %v7021_v0  ;;  %5997 = vmatprep.subr.bf16.mxu0 %v7021_v0 }
 0x138   :  { %6018 = vmatpush3.bf16.msra.mxu1 %v6448_v11  ;;  %5998 = vmatpush3.bf16.msra.mxu0 %v6456_v22 }
 0x139   :  { %6019 = vmatprep.subr.bf16.mxu1 %v7021_v0  ;;  %5999 = vmatprep.subr.bf16.mxu0 %v7021_v0 }
 0x13c   :  { %6020 = vmatpush3.bf16.msra.mxu1 %v6449_v17  ;;  %6000 = vmatpush3.bf16.msra.mxu0 %v6457_v23 }
 0x13d   :  { %6045 = vmatprep.subr.bf16.mxu1 %v7021_v0  ;;  %6025 = vmatprep.subr.bf16.mxu0 %v7021_v0 }
 0x13f   :  { %6022 = vmatmul.mubr.bf16.vlgmr.msra.gmra.mrb[0].mxu1 %v7401_v21  ;;  %6002 = vmatmul.mubr.bf16.vlgmr.msra.gmra.mrb[0].mxu0 %v7401_v21 }
 0x140   :  { %6049 = vmatprep.mubr.msk.bf16.mxu1 %vm7022_vm0, %v7021_v0  ;;  %6041 = vmatprep.mubr.msk.bf16.mxu0 %vm7022_vm0, %v7021_v0 }
 0x141   :  { %6026 = vmatpush3.bf16.msra.mxu0 %v6458_v34 }
 0x142   :  { %6027 = vmatprep.subr.bf16.mxu0 %v7021_v0 }
 0x145   :  { %6028 = vmatpush3.bf16.msra.mxu0 %v6459_v35 }
 0x146   :  { %6029 = vmatprep.subr.bf16.mxu0 %v7021_v0 }
 0x149   :  { %6030 = vmatpush3.bf16.msra.mxu0 %v6460_v36 }
 0x14a   :  { %6031 = vmatprep.subr.bf16.mxu0 %v7021_v0 }
 0x14d   :  { %6032 = vmatpush3.bf16.msra.mxu0 %v6461_v37 }
 0x14e   :  { %6033 = vmatprep.subr.bf16.mxu0 %v7021_v0 }
 0x151   :  { %6034 = vmatpush3.bf16.msra.mxu0 %v6462_v38 }
 0x152   :  { %6035 = vmatprep.subr.bf16.mxu0 %v7021_v0 }
 0x155   :  { %6036 = vmatpush3.bf16.msra.mxu0 %v6463_v41 }
 0x156   :  { %6037 = vmatprep.subr.bf16.mxu0 %v7021_v0 }
 0x159   :  { %6038 = vmatpush3.bf16.msra.mxu0 %v6464_v43 }
 0x15a   :  { %6039 = vmatprep.subr.bf16.mxu0 %v7021_v0 }
 0x15d   :  { %6040 = vmatpush3.bf16.msra.mxu0 %v6465_v44 }
 0x15e   :  { %6101 = vmatprep.subr.bf16.mxu0 %v7021_v0 }
 0x160   :  { %6042 = vmatmul.mubr.bf16.vlgmr.msra.gmra.mrb[4].mxu0 %v7401_v21 }
 0x161   :  { %6105 = vmatprep.mubr.msk.bf16.mxu0 %vm7022_vm0, %v7021_v0 }
 0x212   :  { %v479_v24 = vpop.f32.mrb[0].mxu1  ;;  %v390_v29 = vpop.f32.mrb[0].mxu0 }
 0x213   :  { %v583_v25 = vpack.c.bf16 %v479_v24, %v479_v24  ;;  %v6023_v26 = vpop.f32.mrb[1].mxu1  ;;  %v575_v30 = vpack.c.bf16 %v390_v29, %v390_v29  ;;  %v6003_v31 = vpop.f32.mrb[1].mxu0 }
 0x214   :  { %v7414_v27 = vpop.f32.mrb[2].mxu1  ;;  %v7419_v32 = vpop.f32.mrb[2].mxu0 }
 0x215   :  { %591 = vrot.lane.b32.xlu1 %v583_v25, %s7023_s14  ;;  %585 = vrot.lane.b32.xlu0 %v583_v25, %s7024_s23  ;;  %v6024_v28 = vpop.f32.mrb[3].mxu1  ;;  %v6004_v33 = vpop.f32.mrb[3].mxu0  ;;  %v1480_v24 = vpack.c.bf16 %v7414_v27, %v7414_v27 }
 0x219   :  { %588 = vrot.lane.b32.xlu0 %v583_v25, %s7006_s28  ;;  %577 = vrot.lane.b32.xlu1 %v575_v30, %s7024_s23 }
 0x21d   :  { %579 = vrot.lane.b32.xlu1 %v575_v30, %s7006_s28 }
 0x233   :  { %v568_v56 = vpop.f32.mrb[4].mxu0 }
 0x234   :  { %v6043_v57 = vpop.f32.mrb[5].mxu0  ;;  %v594_v23 = vpack.c.bf16 %v568_v56, %v568_v56 }
 0x235   :  { %v7452_v58 = vpop.f32.mrb[6].mxu0 }
 0x236   :  { %v6044_v59 = vpop.f32.mrb[7].mxu0 }
 0x237   :  { %605 = vxpose.xlu0.c.b16.start.end [1/1] (short) (narrow) %v583_v25, 32  ;;  %v1472_v25 = vpack.c.bf16 %v7419_v32, %v7419_v32 }
 0x244   :  { %581 = vrot.lane.b32.xlu0 %v575_v30, %s7023_s14 }
 0x287   :  { %v592_v39 = vpop.permute.xlu1 %591  ;;  %v586_v40 = vpop.permute.xlu0 %585 }
 0x288   :  { %653 = vxpose.xlu0.c.b16.start.end [1/1] (short) (narrow) %v592_v39, 32  ;;  %621 = vxpose.xlu1.c.b16.start.end [1/1] (short) (narrow) %v586_v40, 32 }
 0x28b   :  { %v589_v42 = vpop.permute.xlu0 %588  ;;  %v578_v47 = vpop.permute.xlu1 %577 }
 0x28d   :  { %637 = vxpose.xlu1.c.b16.start.end [1/1] (short) (narrow) %v589_v42, 32 }
 0x28f   :  { %v580_v48 = vpop.permute.xlu1 %579 }
 0x29d   :  { %v613_v45 = vpop.trf.xlu0 }
 0x29e   :  { %6046 = vmatpush3.bf16.msra.mxu1 %v613_v45 }
 0x29f   :  { %6047 = vmatprep.subr.bf16.mxu1 %v7021_v0 }
 0x2a1   :  { %v614_v46 = vpop.trf.xlu0 }
 0x2a2   :  { %6048 = vmatpush3.bf16.msra.mxu1 %v614_v46 }
 0x2a3   :  { %6053 = vmatprep.subr.bf16.mxu1 %v7021_v0 }
 0x2a5   :  { %6050 = vmatmul.mubr.msk.bf16.vlgmr.msra.gmra.mrb[4].mxu1 %vm669_vm1, %v575_v30 }
 0x2a6   :  { %6057 = vmatprep.mubr.msk.bf16.mxu1 %vm7022_vm0, %v7021_v0 }
 0x2b6   :  { %v582_v51 = vpop.permute.xlu0 %581 }
 0x2ee   :  { %v629_v49 = vpop.trf.xlu1  ;;  %v661_v54 = vpop.trf.xlu0 }
 0x2ef   :  { %6054 = vmatpush3.bf16.msra.mxu1 %v629_v49 }
 0x2f0   :  { %6055 = vmatprep.subr.bf16.mxu1 %v7021_v0 }
 0x2f2   :  { %v630_v50 = vpop.trf.xlu1  ;;  %v662_v55 = vpop.trf.xlu0 }
 0x2f3   :  { %6056 = vmatpush3.bf16.msra.mxu1 %v630_v50 }
 0x2f4   :  { %6061 = vmatprep.subr.bf16.mxu1 %v7021_v0 }
 0x2f6   :  { %v645_v52 = vpop.trf.xlu1  ;;  %6058 = vmatmul.mubr.msk.bf16.vlgmr.msra.gmra.mrb[8].mxu1 %vm669_vm1, %v578_v47 }
 0x2f7   :  { %6062 = vmatpush3.bf16.msra.mxu1 %v645_v52  ;;  %6065 = vmatprep.mubr.msk.bf16.mxu1 %vm7022_vm0, %v7021_v0 }
 0x2f8   :  { %6063 = vmatprep.subr.bf16.mxu1 %v7021_v0 }
 0x2fa   :  { %v646_v53 = vpop.trf.xlu1 }
 0x2fb   :  { %6064 = vmatpush3.bf16.msra.mxu1 %v646_v53 }
 0x2fc   :  { %6069 = vmatprep.subr.bf16.mxu1 %v7021_v0 }
 0x2fe   :  { %6066 = vmatmul.mubr.msk.bf16.vlgmr.msra.gmra.mrb[12].mxu1 %vm669_vm1, %v580_v48 }
 0x2ff   :  { %6070 = vmatpush3.bf16.msra.mxu1 %v661_v54  ;;  %6073 = vmatprep.mubr.msk.bf16.mxu1 %vm7022_vm0, %v7021_v0 }
 0x300   :  { %6071 = vmatprep.subr.bf16.mxu1 %v7021_v0 }
 0x303   :  { %6072 = vmatpush3.bf16.msra.mxu1 %v662_v55 }
 0x306   :  { %6074 = vmatmul.mubr.msk.bf16.vlgmr.msra.gmra.mrb[16].mxu1 %vm669_vm1, %v582_v51 }
 0x378   :  { %v707_v60 = vpop.f32.mrb[4].mxu1 }
 0x379   :  { %v842_v61 = vmul.f32 0.17677669, %v707_v60  ;;  %v6051_v62 = vpop.f32.mrb[5].mxu1 }
 0x37a   :  { %v710_v63 = vpop.f32.mrb[6].mxu1 }
 0x37b   :  { %v6052_v1 = vpop.f32.mrb[7].mxu1  ;;  %v847_v2 = vsel %vm846_vm2, %v842_v61, -inf }
 0x37c   :  { %848 = vmax.xlane.f32.xlu1 %v847_v2 }
 0x3c9   :  { %v750_v3 = vpop.f32.mrb[8].mxu1 }
 0x3ca   :  { %v843_v4 = vmul.f32 0.17677669, %v750_v3  ;;  %v6059_v5 = vpop.f32.mrb[9].mxu1 }
 0x3cb   :  { %v753_v6 = vpop.f32.mrb[10].mxu1 }
 0x3cc   :  { %v6060_v7 = vpop.f32.mrb[11].mxu1  ;;  %v850_v8 = vsel %vm846_vm2, %v843_v4, -inf }
 0x3cd   :  { %851 = vmax.xlane.f32.xlu1 %v850_v8 }
 0x3d1   :  { %v793_v9 = vpop.f32.mrb[12].mxu1 }
 0x3d2   :  { %v844_v10 = vmul.f32 0.17677669, %v793_v9  ;;  %v6067_v11 = vpop.f32.mrb[13].mxu1 }
 0x3d3   :  { %v796_v12 = vpop.f32.mrb[14].mxu1 }
 0x3d4   :  { %v6068_v13 = vpop.f32.mrb[15].mxu1  ;;  %v853_v14 = vsel %vm846_vm2, %v844_v10, -inf }
 0x3d5   :  { %854 = vmax.xlane.f32.xlu1 %v853_v14 }
 0x3d9   :  { %v836_v15 = vpop.f32.mrb[16].mxu1 }
 0x3da   :  { %v845_v16 = vmul.f32 0.17677669, %v836_v15  ;;  %v6075_v17 = vpop.f32.mrb[17].mxu1 }
 0x3db   :  { %v839_v20 = vpop.f32.mrb[18].mxu1 }
 0x3dc   :  { %v6076_v21 = vpop.f32.mrb[19].mxu1  ;;  %v856_v22 = vsel %vm846_vm2, %v845_v16, -inf }
 0x3dd   :  { %857 = vmax.xlane.f32.xlu1 %v856_v22 }
 0x3ee   :  { %596 = vrot.lane.b32.xlu1 %v594_v23, %s7024_s23 }
 0x3f2   :  { %599 = vrot.lane.b32.xlu1 %v594_v23, %s7006_s28 }
 0x3f6   :  { %602 = vrot.lane.b32.xlu1 %v594_v23, %s7023_s14 }
 0x3fa   :  { %1482 = vrot.lane.b32.xlu1 %v1480_v24, %s7024_s23 }
 0x409   :  { %v849_v26 = vpop.xlane.xlu1 %848 }
 0x40a   :  { %v859_v32 = vsub.f32 %v842_v61, %v849_v26 }
 0x40c   :  { %v863_v36 = vmul.f32 1.442695, %v859_v32 }
 0x40e   :  { %6586 = vpow2.f32 %v863_v36 }
 0x418   :  { %v6587_v39 = vpop.eup %6586 }
 0x419   :  { %v871_v40 = vsel %vm846_vm2, %v6587_v39, 0.0 }
 0x41d   :  { %895 = vxpose.xlu1.c.b16.start.end [1/1] (short) (narrow) %v594_v23, 32 }
 0x425   :  { %1488 = vrot.lane.b32.xlu1 %v1480_v24, %s7023_s14 }
 0x429   :  { %1474 = vrot.lane.b32.xlu1 %v1472_v25, %s7024_s23 }
 0x45a   :  { %v852_v28 = vpop.xlane.xlu1 %851 }
 0x45b   :  { %v860_v37 = vsub.f32 %v843_v4, %v852_v28 }
 0x45d   :  { %v865_v38 = vmul.f32 1.442695, %v860_v37 }
 0x45f   :  { %6588 = vpow2.f32 %v865_v38 }
 0x462   :  { %v855_v29 = vpop.xlane.xlu1 %854 }
 0x463   :  { %v861_v43 = vsub.f32 %v844_v10, %v855_v29 }
 0x465   :  { %v867_v44 = vmul.f32 1.442695, %v861_v43 }
 0x467   :  { %6590 = vpow2.f32 %v867_v44 }
 0x469   :  { %v6589_v41 = vpop.eup %6588 }
 0x46a   :  { %v858_v30 = vpop.xlane.xlu1 %857  ;;  %v874_v42 = vsel %vm846_vm2, %v6589_v41, 0.0 }
 0x46b   :  { %v862_v45 = vsub.f32 %v845_v16, %v858_v30 }
 0x46d   :  { %v869_v46 = vmul.f32 1.442695, %v862_v45 }
 0x46e   :  { %v597_v31 = vpop.permute.xlu1 %596 }
 0x46f   :  { %911 = vxpose.xlu0.c.b16.start.end [1/1] (short) (narrow) %v597_v31, 32  ;;  %6592 = vpow2.f32 %v869_v46 }
 0x471   :  { %v6591_v49 = vpop.eup %6590 }
 0x472   :  { %v600_v33 = vpop.permute.xlu1 %599  ;;  %v877_v50 = vsel %vm846_vm2, %v6591_v49, 0.0 }
 0x473   :  { %927 = vxpose.xlu1.c.b16.start.end [1/1] (short) (narrow) %v600_v33, 32 }
 0x476   :  { %v603_v34 = vpop.permute.xlu1 %602 }
 0x478   :  { %1502 = vxpose.xlu1.c.b16.start.end [1/1] (short) (narrow) %v1480_v24, 32 }
 0x479   :  { %v6593_v51 = vpop.eup %6592 }
 0x47a   :  { %v1483_v27 = vpop.permute.xlu1 %1482  ;;  %v880_v53 = vsel %vm846_vm2, %v6593_v51, 0.0 }
 0x47c   :  { %1485 = vrot.lane.b32.xlu0 %v1480_v24, %s7006_s28 }
 0x47d   :  { %1518 = vxpose.xlu1.c.b16.start.end [1/1] (short) (narrow) %v1483_v27, 32 }
 0x483   :  { %v903_v35 = vpop.trf.xlu1 }
 0x484   :  { %6079 = vmatprep.mubr.msk.bf16.mxu1 %vm846_vm2, %v903_v35 }
 0x487   :  { %v904_v47 = vpop.trf.xlu1 }
 0x497   :  { %v1489_v48 = vpop.permute.xlu1 %1488 }
 0x49b   :  { %872 = vadd.xlane.f32.xlu0 %v871_v40  ;;  %v7474_v52 = vpop.permute.xlu1 %1474 }
 0x49f   :  { %875 = vadd.xlane.f32.xlu0 %v874_v42 }
 0x4b5   :  { %1476 = vrot.lane.b32.xlu0 %v1472_v25, %s7006_s28 }
 0x4d4   :  { %878 = vadd.xlane.f32.xlu0 %v877_v50 }
 0x4d5   :  { %v919_v57 = vpop.trf.xlu0 }
 0x4d8   :  { %881 = vadd.xlane.f32.xlu0 %v880_v53 }
 0x4d9   :  { %v935_v54 = vpop.trf.xlu1  ;;  %v920_v60 = vpop.trf.xlu0 }
 0x4dd   :  { %v936_v55 = vpop.trf.xlu1 }
 0x4e1   :  { %v1510_v56 = vpop.trf.xlu1 }
 0x4e2   :  { %6102 = vmatpush3.bf16.msra.mxu0 %v1510_v56 }
 0x4e3   :  { %6103 = vmatprep.subr.bf16.mxu0 %v7021_v0 }
 0x4e5   :  { %v1511_v59 = vpop.trf.xlu1 }
 0x4e6   :  { %6104 = vmatpush3.bf16.msra.mxu0 %v1511_v59 }
 0x4e7   :  { %6117 = vmatprep.subr.bf16.mxu0 %v7021_v0 }
 0x4e9   :  { %6106 = vmatmul.mubr.msk.bf16.vlgmr.msra.gmra.mrb[8].mxu0 %vm669_vm1, %v1472_v25  ;;  %v1526_v9 = vpop.trf.xlu1 }
 0x4ea   :  { %6121 = vmatprep.mubr.msk.bf16.mxu0 %vm7022_vm0, %v7021_v0 }
 0x4ed   :  { %v1527_v10 = vpop.trf.xlu1 }
 0x4ee   :  { %1478 = vrot.lane.b32.xlu0 %v1472_v25, %s7023_s14  ;;  %v1486_v61 = vpop.permute.xlu0 %1485 }
 0x4ef   :  { %1534 = vxpose.xlu1.c.b16.start.end [1/1] (short) (narrow) %v1486_v61, 32 }
 0x4f4   :  { %1550 = vxpose.xlu1.c.b16.start.end [1/1] (short) (narrow) %v1489_v48, 32 }
 0x50c   :  { %943 = vxpose.xlu0.c.b16.start.end [1/1] (short) (narrow) %v603_v34, 32 }
 0x528   :  { %v873_v62 = vpop.xlane.xlu0 %872 }
 0x529   :  { %6594 = vrcp.f32 %v873_v62 }
 0x52c   :  { %v876_v63 = vpop.xlane.xlu0 %875 }
 0x52d   :  { %6596 = vrcp.f32 %v876_v63 }
 0x530   :  { %v1477_v13 = vpop.permute.xlu0 %1476 }
 0x533   :  { %v6595_v1 = vpop.eup %6594 }
 0x534   :  { %v887_v2 = vmul.f32 %v6595_v1, %v6587_v39 }
 0x536   :  { %v891_v3 = vpack.c.bf16 %v887_v2, %v887_v2 }
 0x537   :  { %v6597_v4 = vpop.eup %6596 }
 0x538   :  { %6369 = vmatprep.subr.msk.bf16.mxu1 %vm846_vm2, %v891_v3  ;;  %v966_v5 = vsel %vm846_vm2, %v891_v3, 0  ;;  %v888_v6 = vmul.f32 %v6597_v4, %v6589_v41 }
 0x539   :  { %6078 = vmatpush3.bf16.xpose.msra.mxu1 %v966_v5 }
 0x53a   :  { %v892_v7 = vpack.c.bf16 %v888_v6, %v888_v6 }
 0x53c   :  { %6370 = vmatprep.subr.msk.bf16.mxu1 %vm846_vm2, %v892_v7  ;;  %v1024_v8 = vsel %vm846_vm2, %v892_v7, 0 }
 0x540   :  { %6080 = vmatmul.mubr.msk.bf16.vlgmr.msra.gmra.mrb[20].mxu1 %vm846_vm2, %v904_v47 }
 0x541   :  { %6084 = vmatpush3.bf16.xpose.msra.mxu1 %v1024_v8  ;;  %6085 = vmatprep.mubr.msk.bf16.mxu1 %vm846_vm2, %v919_v57 }
 0x548   :  { %6086 = vmatmul.mubr.msk.bf16.vlgmr.msra.gmra.mrb[24].mxu1 %vm846_vm2, %v920_v60 }
 0x549   :  { %6091 = vmatprep.mubr.msk.bf16.mxu1 %vm846_vm2, %v935_v54 }
 0x555   :  { %v1542_v11 = vpop.trf.xlu1 }
 0x556   :  { %6118 = vmatpush3.bf16.msra.mxu0 %v1542_v11 }
 0x557   :  { %6119 = vmatprep.subr.bf16.mxu0 %v7021_v0 }
 0x559   :  { %v1543_v12 = vpop.trf.xlu1 }
 0x55a   :  { %6120 = vmatpush3.bf16.msra.mxu0 %v1543_v12 }
 0x55d   :  { %6122 = vmatmul.mubr.msk.bf16.vlgmr.msra.gmra.mrb[12].mxu0 %vm669_vm1, %v1477_v13  ;;  %v1558_v30 = vpop.trf.xlu1 }
 0x561   :  { %v879_v14 = vpop.xlane.xlu0 %878  ;;  %v1559_v31 = vpop.trf.xlu1 }
 0x562   :  { %6598 = vrcp.f32 %v879_v14 }
 0x565   :  { %v882_v15 = vpop.xlane.xlu0 %881 }
 0x566   :  { %6600 = vrcp.f32 %v882_v15 }
 0x569   :  { %v1479_v24 = vpop.permute.xlu0 %1478 }
 0x56c   :  { %v6599_v16 = vpop.eup %6598 }
 0x56d   :  { %v889_v17 = vmul.f32 %v6599_v16, %v6591_v49 }
 0x56f   :  { %v893_v20 = vpack.c.bf16 %v889_v17, %v889_v17 }
 0x570   :  { %v6601_v21 = vpop.eup %6600 }
 0x571   :  { %6371 = vmatprep.subr.msk.bf16.mxu1 %vm846_vm2, %v893_v20  ;;  %v1082_v22 = vsel %vm846_vm2, %v893_v20, 0  ;;  %v890_v23 = vmul.f32 %v6601_v21, %v6593_v51  ;;  %v1491_v51 = vpack.c.bf16 %v7452_v58, %v7452_v58 }
 0x572   :  { %6090 = vmatpush3.bf16.xpose.msra.mxu1 %v1082_v22  ;;  %v951_v26 = vpop.trf.xlu0 }
 0x573   :  { %v894_v25 = vpack.c.bf16 %v890_v23, %v890_v23 }
 0x575   :  { %6372 = vmatprep.subr.msk.bf16.mxu1 %vm846_vm2, %v894_v25  ;;  %v1140_v28 = vsel %vm846_vm2, %v894_v25, 0 }
 0x576   :  { %v952_v29 = vpop.trf.xlu0 }
 0x579   :  { %6092 = vmatmul.mubr.msk.bf16.vlgmr.msra.gmra.mrb[28].mxu1 %vm846_vm2, %v936_v55 }
 0x57a   :  { %6096 = vmatpush3.bf16.xpose.msra.mxu1 %v1140_v28  ;;  %6097 = vmatprep.mubr.msk.bf16.mxu1 %vm846_vm2, %v951_v26 }
 0x57b   :  { %6109 = vmatprep.subr.bf16.mxu1 %v7021_v0 }
 0x581   :  { %6098 = vmatmul.mubr.msk.bf16.vlgmr.msra.gmra.mrb[32].mxu1 %vm846_vm2, %v952_v29 }
 0x582   :  { %6110 = vmatpush3.bf16.msra.mxu1 %v1526_v9  ;;  %6113 = vmatprep.mubr.msk.bf16.mxu1 %vm7022_vm0, %v7021_v0 }
 0x583   :  { %6111 = vmatprep.subr.bf16.mxu1 %v7021_v0 }
 0x586   :  { %6112 = vmatpush3.bf16.msra.mxu1 %v1527_v10 }
 0x587   :  { %6125 = vmatprep.subr.bf16.mxu1 %v7021_v0 }
 0x589   :  { %6114 = vmatmul.mubr.msk.bf16.vlgmr.msra.gmra.mrb[36].mxu1 %vm669_vm1, %v7474_v52 }
 0x58a   :  { %6126 = vmatpush3.bf16.msra.mxu1 %v1558_v30  ;;  %6129 = vmatprep.mubr.msk.bf16.mxu1 %vm7022_vm0, %v7021_v0 }
 0x58b   :  { %6127 = vmatprep.subr.bf16.mxu1 %v7021_v0 }
 0x58e   :  { %6128 = vmatpush3.bf16.msra.mxu1 %v1559_v31 }
 0x591   :  { %6130 = vmatmul.mubr.msk.bf16.vlgmr.msra.gmra.mrb[40].mxu1 %vm669_vm1, %v1479_v24 }
 0x5bc   :  { %v1603_v33 = vpop.f32.mrb[8].mxu0 }
 0x5bd   :  { %v1738_v34 = vmul.f32 0.17677669, %v1603_v33  ;;  %v6107_v27 = vpop.f32.mrb[9].mxu0 }
 0x5be   :  { %v1606_v35 = vpop.f32.mrb[10].mxu0 }
 0x5bf   :  { %v6108_v32 = vpop.f32.mrb[11].mxu0  ;;  %v1742_v36 = vsel %vm846_vm2, %v1738_v34, -inf }
 0x5c0   :  { %1743 = vmax.xlane.f32.xlu0 %v1742_v36 }
 0x613   :  { %v7512_v37 = vpop.f32.mrb[20].mxu1 }
 0x614   :  { %v7514_v38 = vpop.f32.mrb[21].mxu1 }
 0x615   :  { %v7516_v39 = vpop.f32.mrb[22].mxu1 }
 0x616   :  { %v7518_v40 = vpop.f32.mrb[23].mxu1 }
 0x61b   :  { %v7520_v41 = vpop.f32.mrb[24].mxu1 }
 0x61c   :  { %v7522_v42 = vpop.f32.mrb[25].mxu1 }
 0x61d   :  { %v7524_v43 = vpop.f32.mrb[26].mxu1 }
 0x61e   :  { %v7526_v44 = vpop.f32.mrb[27].mxu1 }
 0x630   :  { %v1689_v45 = vpop.f32.mrb[12].mxu0 }
 0x631   :  { %v1740_v46 = vmul.f32 0.17677669, %v1689_v45  ;;  %v6123_v47 = vpop.f32.mrb[13].mxu0 }
 0x632   :  { %v1692_v48 = vpop.f32.mrb[14].mxu0 }
 0x633   :  { %v6124_v49 = vpop.f32.mrb[15].mxu0  ;;  %v1748_v50 = vsel %vm846_vm2, %v1740_v46, -inf }
 0x634   :  { %1749 = vmax.xlane.f32.xlu0 %v1748_v50 }
 0x64a   :  { %1493 = vrot.lane.b32.xlu0 %v1491_v51, %s7024_s23 }
 0x64c   :  { %v7532_v52 = vpop.f32.mrb[28].mxu1 }
 0x64d   :  { %v7534_v53 = vpop.f32.mrb[29].mxu1  ;;  %v1744_v56 = vpop.xlane.xlu0 %1743 }
 0x64e   :  { %v7536_v54 = vpop.f32.mrb[30].mxu1  ;;  %1499 = vrot.lane.b32.xlu0 %v1491_v51, %s7023_s14  ;;  %v1754_v60 = vsub.f32 %v1738_v34, %v1744_v56 }
 0x64f   :  { %v7539_v55 = vpop.f32.mrb[31].mxu1 }
 0x650   :  { %v1758_v62 = vmul.f32 1.442695, %v1754_v60 }
 0x652   :  { %6602 = vpow2.f32 %v1758_v62 }
 0x654   :  { %v7541_v57 = vpop.f32.mrb[32].mxu1 }
 0x655   :  { %v7543_v59 = vpop.f32.mrb[33].mxu1 }
 0x656   :  { %v7545_v61 = vpop.f32.mrb[34].mxu1 }
 0x657   :  { %v7547_v58 = vpop.f32.mrb[35].mxu1 }
 0x65c   :  { %v1646_v63 = vpop.f32.mrb[36].mxu1  ;;  %v6603_v12 = vpop.eup %6602 }
 0x65d   :  { %v1739_v1 = vmul.f32 0.17677669, %v1646_v63  ;;  %v6115_v2 = vpop.f32.mrb[37].mxu1  ;;  %v1766_v13 = vsel %vm846_vm2, %v6603_v12, 0.0 }
 0x65e   :  { %v1649_v3 = vpop.f32.mrb[38].mxu1 }
 0x65f   :  { %v6116_v4 = vpop.f32.mrb[39].mxu1  ;;  %v1745_v5 = vsel %vm846_vm2, %v1739_v1, -inf }
 0x660   :  { %1746 = vmax.xlane.f32.xlu1 %v1745_v5 }
 0x664   :  { %v1732_v6 = vpop.f32.mrb[40].mxu1 }
 0x665   :  { %v1741_v7 = vmul.f32 0.17677669, %v1732_v6  ;;  %v6131_v8 = vpop.f32.mrb[41].mxu1 }
 0x666   :  { %v1735_v9 = vpop.f32.mrb[42].mxu1 }
 0x667   :  { %v6132_v10 = vpop.f32.mrb[43].mxu1  ;;  %v1751_v11 = vsel %vm846_vm2, %v1741_v7, -inf  ;;  %v7025_v9 = vmov 1983009808  }
 0x668   :  { %1752 = vmax.xlane.f32.xlu1 %v1751_v11  ;;  %v1322_v10 = vunpack.c.l.s4 %v7025_v9  ;;  %v1324_v11 = vlaneseq }
 0x66c   :  { %1767 = vadd.xlane.f32.xlu1 %v1766_v13  ;;  %v7594_v13 = vshrl.u32 %v1324_v11, 7 }
 0x6c1   :  { %v1750_v14 = vpop.xlane.xlu0 %1749 }
 0x6c2   :  { %v1756_v15 = vsub.f32 %v1740_v46, %v1750_v14 }
 0x6c4   :  { %v1762_v16 = vmul.f32 1.442695, %v1756_v15 }
 0x6c5   :  { %v1494_v36 = vpop.permute.xlu0 %1493 }
 0x6c6   :  { %6604 = vpow2.f32 %v1762_v16 }
 0x6c9   :  { %v1500_v45 = vpop.permute.xlu0 %1499 }
 0x6d0   :  { %v6605_v17 = vpop.eup %6604 }
 0x6d1   :  { %v1772_v20 = vsel %vm846_vm2, %v6605_v17, 0.0 }
 0x6d2   :  { %1773 = vadd.xlane.f32.xlu0 %v1772_v20 }
 0x6ed   :  { %v1747_v21 = vpop.xlane.xlu1 %1746 }
 0x6ee   :  { %v1755_v22 = vsub.f32 %v1739_v1, %v1747_v21 }
 0x6f0   :  { %v1760_v23 = vmul.f32 1.442695, %v1755_v22 }
 0x6f2   :  { %6606 = vpow2.f32 %v1760_v23 }
 0x6f5   :  { %v1753_v24 = vpop.xlane.xlu1 %1752 }
 0x6f6   :  { %v1757_v34 = vsub.f32 %v1741_v7, %v1753_v24 }
 0x6f8   :  { %v1764_v27 = vmul.f32 1.442695, %v1757_v34 }
 0x6f9   :  { %v1768_v25 = vpop.xlane.xlu1 %1767 }
 0x6fa   :  { %6608 = vrcp.f32 %v1768_v25 }
 0x6fb   :  { %6610 = vpow2.f32 %v1764_v27 }
 0x6fc   :  { %v6607_v26 = vpop.eup %6606 }
 0x6fd   :  { %v1769_v28 = vsel %vm846_vm2, %v6607_v26, 0.0 }
 0x6fe   :  { %1770 = vadd.xlane.f32.xlu1 %v1769_v28 }
 0x6ff   :  { %1790 = vxpose.xlu0.c.b16.start.end [1/1] (short) (narrow) %v1491_v51, 32 }
 0x704   :  { %v6609_v29 = vpop.eup %6608 }
 0x705   :  { %v1782_v30 = vmul.f32 %v6609_v29, %v6603_v12  ;;  %v6611_v35 = vpop.eup %6610  ;;  %v1323_v12 = vunpack.c.0.s8 %v1322_v10 }
 0x706   :  { %v1775_v32 = vsel %vm846_vm2, %v6611_v35, 0.0 }
 0x707   :  { %v1786_v31 = vpack.c.bf16 %v1782_v30, %v1782_v30  ;;  %v7597_v16 = vsub.s32 %v1323_v12, %v7594_v13 }
 0x709   :  { %6373 = vmatprep.subr.msk.bf16.mxu0 %vm846_vm2, %v1786_v31  ;;  %v1861_v33 = vsel %vm846_vm2, %v1786_v31, 0 }
 0x70a   :  { %6134 = vmatpush3.bf16.xpose.msra.mxu0 %v1861_v33 }
 0x70f   :  { %1496 = vrot.lane.b32.xlu1 %v1491_v51, %s7006_s28 }
 0x733   :  { %1776 = vadd.xlane.f32.xlu1 %v1775_v32 }
 0x75f   :  { %v1774_v46 = vpop.xlane.xlu0 %1773 }
 0x760   :  { %6612 = vrcp.f32 %v1774_v46  ;;  %1806 = vxpose.xlu1.c.b16.start.end [1/1] (short) (narrow) %v1494_v36, 32 }
 0x765   :  { %v1798_v47 = vpop.trf.xlu0 }
 0x766   :  { %6135 = vmatprep.mubr.msk.bf16.mxu0 %vm846_vm2, %v1798_v47 }
 0x769   :  { %v1799_v48 = vpop.trf.xlu0 }
 0x76a   :  { %v6613_v49 = vpop.eup %6612  ;;  %6136 = vmatmul.mubr.msk.bf16.vlgmr.msra.gmra.mrb[16].mxu0 %vm846_vm2, %v1799_v48 }
 0x76b   :  { %v1784_v50 = vmul.f32 %v6613_v49, %v6605_v17  ;;  %v7026_v17 = vmov 1934713408  }
 0x76c   :  { %v1354_v20 = vunpack.c.l.s4 %v7026_v17 }
 0x76d   :  { %v1788_v51 = vpack.c.bf16 %v1784_v50, %v1784_v50 }
 0x76e   :  { %1191 = vxpose.xlu1.b32.start [1/4] (short) (narrow) %v7514_v38, 8  ;;  %v1355_v25 = vunpack.c.0.s8 %v1354_v20 }
 0x76f   :  { %6375 = vmatprep.subr.msk.bf16.mxu0 %vm846_vm2, %v1788_v51  ;;  %v1977_v56 = vsel %vm846_vm2, %v1788_v51, 0 }
 0x770   :  { %6146 = vmatpush3.bf16.xpose.msra.mxu0 %v1977_v56  ;;  %v7604_v31 = vsub.s32 %v1355_v25, %v7594_v13 }
 0x771   :  { %6157 = vmatprep.subr.bf16.mxu0 %v7021_v0 }
 0x772   :  { %1192 = vxpose.xlu1.b32.cont [2/4] (short) (narrow) %v7518_v40, 8 }
 0x776   :  { %1193 = vxpose.xlu1.b32.cont [3/4] (short) (narrow) %v7512_v37, 8 }
 0x77a   :  { %1194 = vxpose.xlu1.b32.end [4/4] (short) (narrow) %v7516_v39, 8 }
 0x77e   :  { %1287 = vxpose.xlu1.b32.start [1/4] (short) (narrow) %v7543_v59, 8 }
 0x782   :  { %1288 = vxpose.xlu1.b32.cont [2/4] (short) (narrow) %v7547_v58, 8 }
 0x786   :  { %1289 = vxpose.xlu1.b32.cont [3/4] (short) (narrow) %v7541_v57, 8 }
 0x78a   :  { %1290 = vxpose.xlu1.b32.end [4/4] (short) (narrow) %v7545_v61, 8 }
 0x78b   :  { %v1771_v38 = vpop.xlane.xlu1 %1770 }
 0x78c   :  { %6614 = vrcp.f32 %v1771_v38 }
 0x78f   :  { %v1497_v60 = vpop.permute.xlu1 %1496 }
 0x790   :  { %1822 = vxpose.xlu0.c.b16.start.end [1/1] (short) (narrow) %v1497_v60, 32 }
 0x795   :  { %1838 = vxpose.xlu0.c.b16.start.end [1/1] (short) (narrow) %v1500_v45, 32 }
 0x796   :  { %v6615_v62 = vpop.eup %6614 }
 0x797   :  { %v1783_v63 = vmul.f32 %v6615_v62, %v6607_v26 }
 0x799   :  { %v1787_v40 = vpack.c.bf16 %v1783_v63, %v1783_v63 }
 0x79b   :  { %6374 = vmatprep.subr.msk.bf16.mxu1 %vm846_vm2, %v1787_v40  ;;  %v1919_v37 = vsel %vm846_vm2, %v1787_v40, 0 }
 0x79c   :  { %6140 = vmatpush3.bf16.xpose.msra.mxu1 %v1919_v37 }
 0x79d   :  { %1223 = vxpose.xlu0.b32.start [1/4] (short) (narrow) %v7522_v42, 8 }
 0x7a1   :  { %1224 = vxpose.xlu0.b32.cont [2/4] (short) (narrow) %v7526_v44, 8 }
 0x7a5   :  { %1225 = vxpose.xlu0.b32.cont [3/4] (short) (narrow) %v7520_v41, 8 }
 0x7a9   :  { %1226 = vxpose.xlu0.b32.end [4/4] (short) (narrow) %v7524_v43, 8 }
 0x7ad   :  { %1255 = vxpose.xlu0.b32.start [1/4] (short) (narrow) %v7534_v53, 8 }
 0x7b1   :  { %1256 = vxpose.xlu0.b32.cont [2/4] (short) (narrow) %v7539_v55, 8 }
 0x7b5   :  { %1257 = vxpose.xlu0.b32.cont [3/4] (short) (narrow) %v7532_v52, 8 }
 0x7b9   :  { %1258 = vxpose.xlu0.b32.end [4/4] (short) (narrow) %v7536_v54, 8 }
 0x7c0   :  { %v1777_v39 = vpop.xlane.xlu1 %1776 }
 0x7c1   :  { %6616 = vrcp.f32 %v1777_v39 }
 0x7c6   :  { %v1814_v57 = vpop.trf.xlu1 }
 0x7c7   :  { %6141 = vmatprep.mubr.msk.bf16.mxu1 %vm846_vm2, %v1814_v57 }
 0x7ca   :  { %v1815_v42 = vpop.trf.xlu1 }
 0x7cb   :  { %v6617_v59 = vpop.eup %6616  ;;  %6142 = vmatmul.mubr.msk.bf16.vlgmr.msra.gmra.mrb[44].mxu1 %vm846_vm2, %v1815_v42 }
 0x7cc   :  { %v1785_v41 = vmul.f32 %v6617_v59, %v6611_v35 }
 0x7ce   :  { %v1789_v44 = vpack.c.bf16 %v1785_v41, %v1785_v41 }
 0x7d0   :  { %6376 = vmatprep.subr.msk.bf16.mxu1 %vm846_vm2, %v1789_v44  ;;  %v2035_v43 = vsel %vm846_vm2, %v1789_v44, 0 }
 0x7d1   :  { %6152 = vmatpush3.bf16.xpose.msra.mxu1 %v2035_v43 }
 0x7d2   :  { %6177 = vmatprep.subr.bf16.mxu1 %v7021_v0 }
 0x7ee   :  { %v1207_v7 = vpop.trf.xlu1 }
 0x7f6   :  { %v1830_v52 = vpop.trf.xlu0 }
 0x7f7   :  { %6147 = vmatprep.mubr.msk.bf16.mxu0 %vm846_vm2, %v1830_v52 }
 0x7fa   :  { %v1831_v53 = vpop.trf.xlu0 }
 0x7fb   :  { %6148 = vmatmul.mubr.msk.bf16.vlgmr.msra.gmra.mrb[20].mxu0 %vm846_vm2, %v1831_v53 }
 0x7fc   :  { %6173 = vmatprep.mubr.msk.bf16.mxu0 %vm7022_vm0, %v7021_v0 }
 0x7fe   :  { %v1846_v54 = vpop.trf.xlu0  ;;  %v1303_v14 = vpop.trf.xlu1 }
 0x7ff   :  { %6153 = vmatprep.mubr.msk.bf16.mxu1 %vm846_vm2, %v1846_v54  ;;  %v6466_v54 = vld [vmem:[#allocation13] sm:$0xff]  }
 0x800   :  { %6158 = vmatpush3.bf16.msra.mxu0 %v6466_v54 }
 0x801   :  { %6159 = vmatprep.subr.bf16.mxu0 %v7021_v0 }
 0x802   :  { %v1847_v55 = vpop.trf.xlu0 }
 0x803   :  { %6154 = vmatmul.mubr.msk.bf16.vlgmr.msra.gmra.mrb[48].mxu1 %vm846_vm2, %v1847_v55  ;;  %v6467_v55 = vld [vmem:[#allocation13 + $0x8] sm:$0xff]  }
 0x804   :  { %6193 = vmatprep.mubr.msk.bf16.mxu1 %vm7022_vm0, %v7021_v0  ;;  %6160 = vmatpush3.bf16.msra.mxu0 %v6467_v55 }
 0x805   :  { %6161 = vmatprep.subr.bf16.mxu0 %v7021_v0 }
 0x81d   :  { %v1239_v8 = vpop.trf.xlu0 }
 0x81e   :  { %v1335_v21 = vcombine.low %v1239_v8, %v1303_v14  ;;  %v1336_v22 = vcombine.high %v1239_v8, %v1303_v14 }
 0x820   :  { %v1343_v26 = vrot.slane %v1335_v21, %v7597_v16  ;;  %v1350_v28 = vrot.slane %v1336_v22, %v7597_v16 }
 0x82d   :  { %v1271_v15 = vpop.trf.xlu0 }
 0x82e   :  { %v1319_v23 = vcombine.low %v1207_v7, %v1271_v15  ;;  %v1320_v24 = vcombine.high %v1207_v7, %v1271_v15 }
 0x830   :  { %v1327_v29 = vrot.slane %v1319_v23, %v7597_v16  ;;  %v1334_v30 = vrot.slane %v1320_v24, %v7597_v16 }
 0x832   :  { %v1351_v34 = vcombine.low %v1327_v29, %v1343_v26  ;;  %v1352_v27 = vcombine.high %v1327_v29, %v1343_v26  ;;  %v1367_v35 = vcombine.low %v1334_v30, %v1350_v28  ;;  %v1368_v32 = vcombine.high %v1334_v30, %v1350_v28 }
 0x834   :  { %v1359_v47 = vrot.slane %v1351_v34, %v7604_v31  ;;  %v1366_v48 = vrot.slane %v1352_v27, %v7604_v31  ;;  %v1375_v49 = vrot.slane %v1367_v35, %v7604_v31  ;;  %v1382_v50 = vrot.slane %v1368_v32, %v7604_v31  ;;  %v6472_v35 = vld [vmem:[#allocation13 + $0x30] sm:$0xff]  }
 0x836   :  { %v1387_v56 = vcombine.low %v1359_v47, %v1366_v48  ;;  %v5615_v38 = vcombine.high %v1359_v47, %v1366_v48  ;;  %v1403_v60 = vcombine.low %v1375_v49, %v1382_v50  ;;  %v5616_v62 = vcombine.high %v1375_v49, %v1382_v50 }
 0x838   :  { %v7611_v37 = vrot.slane %v1387_v56, %v7597_v16  ;;  %v7614_v39 = vrot.slane %v5615_v38, %v7597_v16  ;;  %v7617_v57 = vrot.slane %v1403_v60, %v7597_v16  ;;  %v1418_v59 = vrot.slane %v5616_v62, %v7597_v16  ;;  %v6473_v38 = vld [vmem:[#allocation13 + $0x38] sm:$0xff]  }
 0x83a   :  { %v1419_v41 = vcombine.low %v7611_v37, %v7614_v39  ;;  %v1435_v44 = vcombine.low %v7617_v57, %v1418_v59  ;;  %v1420_v28 = vcombine.high %v7611_v37, %v7614_v39  ;;  %v1436_v29 = vcombine.high %v7617_v57, %v1418_v59 }
 0x83c   :  { %v7624_v43 = vrot.slane %v1419_v41, %v7604_v31  ;;  %v7627_v52 = vrot.slane %v1435_v44, %v7604_v31  ;;  %v1434_v47 = vrot.slane %v1420_v28, %v7604_v31  ;;  %v1450_v48 = vrot.slane %v1436_v29, %v7604_v31  ;;  %v6481_v28 = vld [vmem:[#allocation16 + $0x38] sm:$0xff]   ;;  %v5631_v29 = vld [vmem:[%s8077_s7] ss:$0 sm:$0xff] }
 0x83d   :  { %v6137_v61 = vpop.f32.mrb[16].mxu0 }
 0x83e   :  { %v1897_v58 = vpop.f32.mrb[17].mxu0  ;;  %v1451_v53 = vcombine.low %v7624_v43, %v7627_v52  ;;  %v1453_v37 = vcombine.low %v1434_v47, %v1450_v48  ;;  %v1452_v57 = vcombine.high %v7624_v43, %v7627_v52  ;;  %v1454_v55 = vcombine.high %v1434_v47, %v1450_v48  ;;  %v6474_v43 = vld [vmem:[#allocation16] sm:$0xff]   ;;  %v6475_v52 = vld [vmem:[#allocation16 + $0x8] sm:$0xff]   ;;  %v258_v47 = vld [vmem:[#allocation7 + $0x18] sm:$0xff] }
 0x83f   :  { %2086 = vxpose.xlu0.b32.start [1/4] (short) (narrow) %v1897_v58, 8  ;;  %v6138_v1 = vpop.f32.mrb[18].mxu0  ;;  %v6469_v58 = vld [vmem:[#allocation13 + $0x18] sm:$0xff]  }
 0x840   :  { %v1900_v2 = vpop.f32.mrb[19].mxu0 }
 0x843   :  { %2087 = vxpose.xlu0.b32.cont [2/4] (short) (narrow) %v1900_v2, 8  ;;  %v6471_v2 = vld [vmem:[#allocation13 + $0x28] sm:$0xff]  }
 0x847   :  { %2088 = vxpose.xlu0.b32.cont [3/4] (short) (narrow) %v6137_v61, 8  ;;  %v6468_v61 = vld [vmem:[#allocation13 + $0x10] sm:$0xff]  }
 0x848   :  { %6162 = vmatpush3.bf16.msra.mxu0 %v6468_v61 }
 0x849   :  { %6163 = vmatprep.subr.bf16.mxu0 %v7021_v0 }
 0x84b   :  { %2089 = vxpose.xlu0.b32.end [4/4] (short) (narrow) %v6138_v1, 8  ;;  %v6470_v1 = vld [vmem:[#allocation13 + $0x20] sm:$0xff]  }
 0x84c   :  { %6164 = vmatpush3.bf16.msra.mxu0 %v6469_v58 }
 0x84d   :  { %6165 = vmatprep.subr.bf16.mxu0 %v7021_v0 }
 0x850   :  { %6166 = vmatpush3.bf16.msra.mxu0 %v6470_v1 }
 0x851   :  { %6167 = vmatprep.subr.bf16.mxu0 %v7021_v0 }
 0x854   :  { %6168 = vmatpush3.bf16.msra.mxu0 %v6471_v2 }
 0x855   :  { %6169 = vmatprep.subr.bf16.mxu0 %v7021_v0 }
 0x858   :  { %6170 = vmatpush3.bf16.msra.mxu0 %v6472_v35 }
 0x859   :  { %6171 = vmatprep.subr.bf16.mxu0 %v7021_v0 }
 0x85c   :  { %6172 = vmatpush3.bf16.msra.mxu0 %v6473_v38 }
 0x85d   :  { %6197 = vmatprep.subr.bf16.mxu0 %v6474_v43 }
 0x89e   :  { %v6143_v3 = vpop.f32.mrb[44].mxu1 }
 0x89f   :  { %v1955_v4 = vpop.f32.mrb[45].mxu1 }
 0x8a0   :  { %2118 = vxpose.xlu1.b32.start [1/4] (short) (narrow) %v1955_v4, 8  ;;  %v6144_v5 = vpop.f32.mrb[46].mxu1 }
 0x8a1   :  { %v1958_v6 = vpop.f32.mrb[47].mxu1 }
 0x8a4   :  { %2119 = vxpose.xlu1.b32.cont [2/4] (short) (narrow) %v1958_v6, 8 }
 0x8a8   :  { %2120 = vxpose.xlu1.b32.cont [3/4] (short) (narrow) %v6143_v3, 8 }
 0x8ac   :  { %2121 = vxpose.xlu1.b32.end [4/4] (short) (narrow) %v6144_v5, 8 }
 0x8bf   :  { %v2102_v3 = vpop.trf.xlu0 }
 0x8ce   :  { %v6149_v33 = vpop.f32.mrb[20].mxu0 }
 0x8cf   :  { %v2013_v36 = vpop.f32.mrb[21].mxu0 }
 0x8d0   :  { %2150 = vxpose.xlu0.b32.start [1/4] (short) (narrow) %v2013_v36, 8  ;;  %v6150_v45 = vpop.f32.mrb[22].mxu0 }
 0x8d1   :  { %v2016_v46 = vpop.f32.mrb[23].mxu0 }
 0x8d4   :  { %2151 = vxpose.xlu0.b32.cont [2/4] (short) (narrow) %v2016_v46, 8 }
 0x8d6   :  { %v6155_v51 = vpop.f32.mrb[48].mxu1 }
 0x8d7   :  { %v2071_v63 = vpop.f32.mrb[49].mxu1 }
 0x8d8   :  { %2182 = vxpose.xlu1.b32.start [1/4] (short) (narrow) %v2071_v63, 8  ;;  %v6156_v40 = vpop.f32.mrb[50].mxu1  ;;  %2152 = vxpose.xlu0.b32.cont [3/4] (short) (narrow) %v6149_v33, 8 }
 0x8d9   :  { %v2074_v42 = vpop.f32.mrb[51].mxu1 }
 0x8dc   :  { %2183 = vxpose.xlu1.b32.cont [2/4] (short) (narrow) %v2074_v42, 8  ;;  %2153 = vxpose.xlu0.b32.end [4/4] (short) (narrow) %v6150_v45, 8 }
 0x8e0   :  { %2184 = vxpose.xlu1.b32.cont [3/4] (short) (narrow) %v6155_v51, 8 }
 0x8e4   :  { %2185 = vxpose.xlu1.b32.end [4/4] (short) (narrow) %v6156_v40, 8 }
 0x920   :  { %v2134_v4 = vpop.trf.xlu1 }
 0x950   :  { %v2166_v5 = vpop.trf.xlu0 }
 0x951   :  { %v2214_v6 = vcombine.low %v2102_v3, %v2166_v5  ;;  %v2215_v7 = vcombine.high %v2102_v3, %v2166_v5 }
 0x953   :  { %v2222_v11 = vrot.slane %v2214_v6, %v7597_v16  ;;  %v2229_v12 = vrot.slane %v2215_v7, %v7597_v16 }
 0x958   :  { %v2198_v8 = vpop.trf.xlu1 }
 0x959   :  { %v2230_v9 = vcombine.low %v2134_v4, %v2198_v8  ;;  %v2231_v10 = vcombine.high %v2134_v4, %v2198_v8 }
 0x95b   :  { %v2238_v14 = vrot.slane %v2230_v9, %v7597_v16  ;;  %v2245_v15 = vrot.slane %v2231_v10, %v7597_v16 }
 0x95d   :  { %v2246_v17 = vcombine.low %v2222_v11, %v2238_v14  ;;  %v2247_v20 = vcombine.high %v2222_v11, %v2238_v14  ;;  %v2262_v21 = vcombine.low %v2229_v12, %v2245_v15  ;;  %v2263_v22 = vcombine.high %v2229_v12, %v2245_v15 }
 0x95f   :  { %v2254_v23 = vrot.slane %v2246_v17, %v7604_v31  ;;  %v2261_v24 = vrot.slane %v2247_v20, %v7604_v31  ;;  %v2270_v25 = vrot.slane %v2262_v21, %v7604_v31  ;;  %v2277_v26 = vrot.slane %v2263_v22, %v7604_v31  ;;  %v256_v20 = vld [vmem:[#allocation7 + $0x8] sm:$0xff]  ;;  %v6476_v21 = vld [vmem:[#allocation16 + $0x10] sm:$0xff]  }
 0x961   :  { %v2282_v30 = vcombine.low %v2254_v23, %v2261_v24  ;;  %v5629_v33 = vcombine.high %v2254_v23, %v2261_v24  ;;  %v2298_v34 = vcombine.low %v2270_v25, %v2277_v26  ;;  %v5630_v27 = vcombine.high %v2270_v25, %v2277_v26  ;;  %v6477_v23 = vld [vmem:[#allocation16 + $0x18] sm:$0xff]   ;;  %v6478_v24 = vld [vmem:[#allocation16 + $0x20] sm:$0xff]   ;;  %v6479_v25 = vld [vmem:[#allocation16 + $0x28] sm:$0xff]  }
 0x962   :  { %v6480_v26 = vld [vmem:[#allocation16 + $0x30] sm:$0xff]  }
 0x963   :  { %v2289_v32 = vrot.slane %v2282_v30, %v7597_v16  ;;  %v2297_v36 = vrot.slane %v5629_v33, %v7597_v16  ;;  %v2305_v45 = vrot.slane %v2298_v34, %v7597_v16  ;;  %v2313_v46 = vrot.slane %v5630_v27, %v7597_v16 }
 0x965   :  { %v2315_v49 = vcombine.high %v2289_v32, %v2297_v36  ;;  %v2331_v50 = vcombine.high %v2305_v45, %v2313_v46  ;;  %v2314_v51 = vcombine.low %v2289_v32, %v2297_v36  ;;  %v2330_v56 = vcombine.low %v2305_v45, %v2313_v46  ;;  %v257_v46 = vld [vmem:[#allocation7 + $0x10] sm:$0xff] }
 0x966   :  { %v7682_v48 = vpack.c.bf16 %v258_v47, %v257_v46 }
 0x967   :  { %v2329_v60 = vrot.slane %v2315_v49, %v7604_v31  ;;  %v2345_v62 = vrot.slane %v2331_v50, %v7604_v31  ;;  %v2322_v63 = vrot.slane %v2314_v51, %v7604_v31  ;;  %v2338_v40 = vrot.slane %v2330_v56, %v7604_v31  ;;  %v6482_v49 = vld [vmem:[#allocation14] sm:$0xff]   ;;  %v6483_v50 = vld [vmem:[#allocation14 + $0x8] sm:$0xff]  }
 0x968   :  { %6178 = vmatpush3.bf16.msra.mxu1 %v6482_v49 }
 0x969   :  { %v2348_v39 = vcombine.low %v2329_v60, %v2345_v62  ;;  %v2347_v42 = vcombine.high %v2322_v63, %v2338_v40  ;;  %v2346_v59 = vcombine.low %v2322_v63, %v2338_v40  ;;  %v2349_v54 = vcombine.high %v2329_v60, %v2345_v62  ;;  %6179 = vmatprep.subr.bf16.mxu1 %v7021_v0  ;;  %v6484_v40 = vld [vmem:[#allocation14 + $0x10] sm:$0xff]  }
 0x96b   :  { %v6417_v41 = vpack.i.bf16 %v2348_v39, %v1453_v37  ;;  %v6412_v44 = vpack.i.bf16 %v2347_v42, %v1452_v57  ;;  %v6422_v61 = vpack.i.bf16 %v2349_v54, %v1454_v55  ;;  %v6485_v37 = vld [vmem:[#allocation14 + $0x18] sm:$0xff]   ;;  %v6486_v39 = vld [vmem:[#allocation14 + $0x20] sm:$0xff]   ;;  %v6487_v57 = vld [vmem:[#allocation14 + $0x28] sm:$0xff]  }
 0x96c   :  { %6180 = vmatpush3.bf16.msra.mxu1 %v6483_v50  ;;  %v6488_v42 = vld [vmem:[#allocation14 + $0x30] sm:$0xff]  }
 0x96d   :  { %6418 = vrot.lane.b32.xlu1 %v6417_v41, %s7006_s28  ;;  %6413 = vrot.lane.b32.xlu0 %v6412_v44, %s7023_s14 }
 0x96e   :  { %6181 = vmatprep.subr.bf16.mxu1 %v7021_v0 }
 0x970   :  { %6182 = vmatpush3.bf16.msra.mxu1 %v6484_v40 }
 0x971   :  { %6423 = vrot.lane.b32.xlu1 %v6422_v61, %s7024_s23  ;;  %6183 = vmatprep.subr.bf16.mxu1 %v7021_v0 }
 0x974   :  { %6184 = vmatpush3.bf16.msra.mxu1 %v6485_v37 }
 0x975   :  { %6185 = vmatprep.subr.bf16.mxu1 %v7021_v0 }
 0x978   :  { %6186 = vmatpush3.bf16.msra.mxu1 %v6486_v39 }
 0x979   :  { %6187 = vmatprep.subr.bf16.mxu1 %v7021_v0 }
 0x97c   :  { %6188 = vmatpush3.bf16.msra.mxu1 %v6487_v57 }
 0x97d   :  { %6189 = vmatprep.subr.bf16.mxu1 %v7021_v0 }
 0x980   :  { %6190 = vmatpush3.bf16.msra.mxu1 %v6488_v42 }
 0x981   :  { %6191 = vmatprep.subr.bf16.mxu1 %v7021_v0 }
 0x9df   :  { %v6419_v58 = vpop.permute.xlu1 %6418  ;;  %v6414_v1 = vpop.permute.xlu0 %6413 }
 0x9e0   :  { %v6416_v2 = vunpack.i.h.bf16 %v6414_v1  ;;  %v6415_v3 = vunpack.i.l.bf16 %v6414_v1  ;;  %v6421_v4 = vunpack.i.h.bf16 %v6419_v58  ;;  %v6420_v5 = vunpack.i.l.bf16 %v6419_v58 }
 0x9e2   :  { %v1467_v6 = vsel %vm669_vm1, %v1451_v53, %v6415_v3  ;;  %v2362_v7 = vsel %vm669_vm1, %v2346_v59, %v6416_v2  ;;  %v255_v53 = vld [vmem:[#allocation7] sm:$0xff]  ;;  %v6489_v59 = vld [vmem:[#allocation14 + $0x38] sm:$0xff]  }
 0x9e3   :  { %v6424_v8 = vpop.permute.xlu1 %6423  ;;  %v1469_v11 = vsel %vm1468_vm3, %v1467_v6, %v6420_v5  ;;  %v2363_v12 = vsel %vm1468_vm3, %v2362_v7, %v6421_v4  ;;  %v7673_v22 = vpack.c.bf16 %v256_v20, %v255_v53  ;;  %6192 = vmatpush3.bf16.msra.mxu1 %v6489_v59 }
 0x9e4   :  { %v6426_v9 = vunpack.i.h.bf16 %v6424_v8  ;;  %v6425_v10 = vunpack.i.l.bf16 %v6424_v8  ;;  %v5640_v8 = vld [vmem:[%s8086_s16] ss:$0 sm:$0xff] }
 0x9e6   :  { %v1471_v14 = vsel %vm1470_vm4, %v1469_v11, %v6425_v10  ;;  %v2364_v15 = vsel %vm1470_vm4, %v2363_v12, %v6426_v9 }
 0x9e7   :  { %v2365_v17 = vpack.c.bf16 %v2364_v15, %v1471_v14  ;;  %v5641_v14 = vld [vmem:[%s8087_s17] ss:$0 sm:$0xff] }
 0x9e9   :  { %6174 = vmatmul.mubr.bf16.vlgmr.msra.gmra.mrb[24].mxu0 %v2365_v17 }
 0x9ea   :  { %6198 = vmatpush3.bf16.msra.mxu0 %v6474_v43  ;;  %6213 = vmatprep.mubr.bf16.mxu0 %v7673_v22 }
 0x9eb   :  { %6199 = vmatprep.subr.bf16.mxu0 %v6475_v52 }
 0x9ee   :  { %6200 = vmatpush3.bf16.msra.mxu0 %v6475_v52 }
 0x9ef   :  { %6201 = vmatprep.subr.bf16.mxu0 %v6476_v21 }
 0x9f2   :  { %6202 = vmatpush3.bf16.msra.mxu0 %v6476_v21 }
 0x9f3   :  { %6203 = vmatprep.subr.bf16.mxu0 %v6477_v23 }
 0x9f6   :  { %6204 = vmatpush3.bf16.msra.mxu0 %v6477_v23 }
 0x9f7   :  { %6205 = vmatprep.subr.bf16.mxu0 %v6478_v24 }
 0x9fa   :  { %6206 = vmatpush3.bf16.msra.mxu0 %v6478_v24 }
 0x9fb   :  { %6207 = vmatprep.subr.bf16.mxu0 %v6479_v25 }
 0x9fe   :  { %6208 = vmatpush3.bf16.msra.mxu0 %v6479_v25  ;;  %v6490_v25 = vld [vmem:[#allocation17] sm:$0xff]  }
 0x9ff   :  { %6209 = vmatprep.subr.bf16.mxu0 %v6480_v26  ;;  %6217 = vmatprep.subr.bf16.mxu1 %v6490_v25 }
 0xa02   :  { %6210 = vmatpush3.bf16.msra.mxu0 %v6480_v26  ;;  %v6491_v26 = vld [vmem:[#allocation17 + $0x8] sm:$0xff]  }
 0xa03   :  { %6211 = vmatprep.subr.bf16.mxu0 %v6481_v28 }
 0xa06   :  { %6212 = vmatpush3.bf16.msra.mxu0 %v6481_v28  ;;  %v6492_v28 = vld [vmem:[#allocation17 + $0x10] sm:$0xff]  }
 0xa07   :  { %6237 = vmatprep.subr.bf16.mxu0 %v7021_v0 }
 0xa09   :  { %6214 = vmatmul.mubr.bf16.vlgmr.msra.gmra.mrb[28].mxu0 %v7682_v48 }
 0xa0a   :  { %6241 = vmatprep.mubr.msk.bf16.mxu0 %vm7022_vm0, %v7021_v0 }
 0xabc   :  { %v2471_v30 = vpop.f32.mrb[24].mxu0 }
 0xabd   :  { %v2472_v33 = vadd.f32 %v5631_v29, %v2471_v30  ;;  %v6175_v34 = vpop.f32.mrb[25].mxu0  ;;  %v6495_v30 = vld [vmem:[#allocation17 + $0x28] sm:$0xff]  }
 0xabe   :  { %v2474_v27 = vpop.f32.mrb[26].mxu0  ;;  %v6497_v34 = vld [vmem:[#allocation17 + $0x38] sm:$0xff]  }
 0xabf   :  { %v2475_v35 = vadd.f32 %v5631_v29, %v2474_v27  ;;  %v6176_v32 = vpop.f32.mrb[27].mxu0  ;;  %v2478_v36 = vadd.f32 %v2472_v33, %v7393_v18  ;;  %v6494_v29 = vld [vmem:[#allocation17 + $0x20] sm:$0xff]   ;;  %v6496_v33 = vld [vmem:[#allocation17 + $0x30] sm:$0xff]  }
 0xac1   :  { %2482 = vadd.xlane.f32.xlu1 %v2478_v36  ;;  %v2479_v45 = vadd.f32 %v2475_v35, %v7395_v19 }
 0xac3   :  { %2484 = vadd.xlane.f32.xlu0 %v2479_v45 }
 0xadc   :  { %v6215_v41 = vpop.f32.mrb[28].mxu0 }
 0xadd   :  { %v2743_v44 = vpop.f32.mrb[29].mxu0 }
 0xade   :  { %v6216_v54 = vpop.f32.mrb[30].mxu0 }
 0xadf   :  { %v7694_v55 = vpack.c.bf16 %v6216_v54, %v6215_v41  ;;  %v2746_v61 = vpop.f32.mrb[31].mxu0 }
 0xae0   :  { %v2863_v58 = vpack.c.bf16 %v2746_v61, %v2743_v44 }
 0xb4e   :  { %v2483_v18 = vpop.xlane.xlu1 %2482 }
 0xb4f   :  { %v2487_v19 = vmul.f32 0.0078125, %v2483_v18 }
 0xb50   :  { %v2485_v51 = vpop.xlane.xlu0 %2484 }
 0xb51   :  { %v2489_v56 = vsub.f32 %v2478_v36, %v2487_v19  ;;  %v2488_v38 = vmul.f32 0.0078125, %v2485_v51 }
 0xb53   :  { %v2490_v60 = vsub.f32 %v2479_v45, %v2488_v38  ;;  %v2491_v62 = vmul.f32 %v2489_v56, %v2489_v56 }
 0xb55   :  { %2493 = vadd.xlane.f32.xlu0 %v2491_v62  ;;  %v2492_v63 = vmul.f32 %v2490_v60, %v2490_v60 }
 0xb57   :  { %2495 = vadd.xlane.f32.xlu1 %v2492_v63 }
 0xb68   :  { %2868 = vrot.lane.b32.xlu1 %v2863_v58, %s7006_s28 }
 0xb6b   :  { %2865 = vrot.lane.b32.xlu0 %v2863_v58, %s7024_s23 }
 0xb6c   :  { %2871 = vrot.lane.b32.xlu1 %v2863_v58, %s7023_s14 }
 0xb8f   :  { %2885 = vxpose.xlu1.c.b16.start.end [1/1] (short) (narrow) %v2863_v58, 32 }
 0xbe2   :  { %v2494_v1 = vpop.xlane.xlu0 %2493 }
 0xbe3   :  { %v2497_v2 = vmul.f32 0.0078125, %v2494_v1 }
 0xbe4   :  { %v2496_v3 = vpop.xlane.xlu1 %2495 }
 0xbe5   :  { %v2499_v4 = vadd.f32 1e-05, %v2497_v2  ;;  %v2498_v5 = vmul.f32 0.0078125, %v2496_v3 }
 0xbe6   :  { %v2866_v53 = vpop.permute.xlu0 %2865 }
 0xbe7   :  { %6618 = vrsqrt.f32 %v2499_v4  ;;  %v2500_v6 = vadd.f32 1e-05, %v2498_v5  ;;  %2901 = vxpose.xlu0.c.b16.start.end [1/1] (short) (narrow) %v2866_v53, 32 }
 0xbe8   :  { %v2869_v20 = vpop.permute.xlu1 %2868 }
 0xbe9   :  { %6620 = vrsqrt.f32 %v2500_v6 }
 0xbec   :  { %v2872_v21 = vpop.permute.xlu1 %2871 }
 0xbf1   :  { %v6619_v7 = vpop.eup %6618 }
 0xbf2   :  { %v2503_v9 = vmul.f32 %v6619_v7, %v2489_v56 }
 0xbf3   :  { %v6621_v10 = vpop.eup %6620 }
 0xbf4   :  { %v2504_v11 = vmul.f32 %v6621_v10, %v2490_v60  ;;  %v2511_v12 = vmul.f32 %v5640_v8, %v2503_v9 }
 0xbf5   :  { %v2893_v23 = vpop.trf.xlu1 }
 0xbf6   :  { %v2512_v15 = vmul.f32 %v5640_v8, %v2504_v11  ;;  %v7705_v17 = vadd.f32 %v5641_v14, %v2511_v12  ;;  %6238 = vmatpush3.bf16.msra.mxu0 %v2893_v23 }
 0xbf7   :  { %6239 = vmatprep.subr.bf16.mxu0 %v7021_v0 }
 0xbf8   :  { %v7707_v43 = vadd.f32 %v5641_v14, %v2512_v15 }
 0xbf9   :  { %v2894_v24 = vpop.trf.xlu1 }
 0xbfa   :  { %v2569_v52 = vpack.c.bf16 %v7707_v43, %v7705_v17  ;;  %6240 = vmatpush3.bf16.msra.mxu0 %v2894_v24 }
 0xbfb   :  { %6253 = vmatprep.subr.bf16.mxu0 %v7021_v0 }
 0xbfc   :  { %6194 = vmatmul.mubr.bf16.vlgmr.msra.gmra.mrb[52].mxu1 %v2569_v52 }
 0xbfd   :  { %6233 = vmatprep.mubr.bf16.mxu1 %v7673_v22  ;;  %6218 = vmatpush3.bf16.msra.mxu1 %v6490_v25  ;;  %v6493_v22 = vld [vmem:[#allocation17 + $0x18] sm:$0xff]  }
 0xbfe   :  { %6219 = vmatprep.subr.bf16.mxu1 %v6491_v26 }
 0xc01   :  { %6220 = vmatpush3.bf16.msra.mxu1 %v6491_v26 }
 0xc02   :  { %6221 = vmatprep.subr.bf16.mxu1 %v6492_v28 }
 0xc05   :  { %6222 = vmatpush3.bf16.msra.mxu1 %v6492_v28 }
 0xc06   :  { %6223 = vmatprep.subr.bf16.mxu1 %v6493_v22 }
 0xc09   :  { %6224 = vmatpush3.bf16.msra.mxu1 %v6493_v22 }
 0xc0a   :  { %6225 = vmatprep.subr.bf16.mxu1 %v6494_v29 }
 0xc0d   :  { %6226 = vmatpush3.bf16.msra.mxu1 %v6494_v29 }
 0xc0e   :  { %6227 = vmatprep.subr.bf16.mxu1 %v6495_v30 }
 0xc11   :  { %6228 = vmatpush3.bf16.msra.mxu1 %v6495_v30 }
 0xc12   :  { %6229 = vmatprep.subr.bf16.mxu1 %v6496_v33 }
 0xc15   :  { %6230 = vmatpush3.bf16.msra.mxu1 %v6496_v33 }
 0xc16   :  { %6231 = vmatprep.subr.bf16.mxu1 %v6497_v34 }
 0xc19   :  { %6232 = vmatpush3.bf16.msra.mxu1 %v6497_v34 }
 0xc1a   :  { %6245 = vmatprep.subr.bf16.mxu1 %v7021_v0 }
 0xc1c   :  { %6234 = vmatmul.mubr.bf16.vlgmr.msra.gmra.mrb[56].mxu1 %v7682_v48 }
 0xc1d   :  { %6249 = vmatprep.mubr.msk.bf16.mxu1 %vm7022_vm0, %v7021_v0 }
 0xc4d   :  { %v2909_v27 = vpop.trf.xlu0 }
 0xc4e   :  { %6246 = vmatpush3.bf16.msra.mxu1 %v2909_v27 }
 0xc4f   :  { %6247 = vmatprep.subr.bf16.mxu1 %v7021_v0 }
 0xc51   :  { %v2910_v35 = vpop.trf.xlu0 }
 0xc52   :  { %6248 = vmatpush3.bf16.msra.mxu1 %v2910_v35 }
 0xc53   :  { %6261 = vmatprep.subr.bf16.mxu1 %v7021_v0 }
 0xccf   :  { %v2652_v32 = vpop.f32.mrb[52].mxu1 }
 0xcd0   :  { %v2855_v36 = vpack.c.bf16 %v2652_v32, %v2652_v32  ;;  %v6195_v45 = vpop.f32.mrb[53].mxu1 }
 0xcd1   :  { %v7720_v46 = vpop.f32.mrb[54].mxu1 }
 0xcd2   :  { %v6196_v47 = vpop.f32.mrb[55].mxu1  ;;  %2859 = vrot.lane.b32.xlu1 %v2855_v36, %s7006_s28  ;;  %6242 = vmatmul.mubr.msk.bf16.vlgmr.msra.gmra.mrb[32].mxu0 %vm669_vm1, %v2855_v36  ;;  %v7753_v53 = vpack.c.bf16 %v7720_v46, %v7720_v46 }
 0xcd3   :  { %2857 = vrot.lane.b32.xlu0 %v2855_v36, %s7024_s23  ;;  %6257 = vmatprep.mubr.msk.bf16.mxu0 %vm7022_vm0, %v7021_v0 }
 0xcd7   :  { %2861 = vrot.lane.b32.xlu0 %v2855_v36, %s7023_s14 }
 0xcef   :  { %v6235_v38 = vpop.f32.mrb[56].mxu1 }
 0xcf0   :  { %v2840_v60 = vpop.f32.mrb[57].mxu1 }
 0xcf1   :  { %v6236_v62 = vpop.f32.mrb[58].mxu1 }
 0xcf2   :  { %v7735_v63 = vpack.c.bf16 %v6236_v62, %v6235_v38  ;;  %v2843_v40 = vpop.f32.mrb[59].mxu1 }
 0xcf3   :  { %v7737_v37 = vpack.c.bf16 %v2843_v40, %v2840_v60 }
 0xcf5   :  { %2917 = vxpose.xlu0.c.b16.start.end [1/1] (short) (narrow) %v2869_v20, 32  ;;  %2933 = vxpose.xlu1.c.b16.start.end [1/1] (short) (narrow) %v2872_v21, 32 }
 0xd44   :  { %v2860_v49 = vpop.permute.xlu1 %2859 }
 0xd45   :  { %v2858_v48 = vpop.permute.xlu0 %2857 }
 0xd46   :  { %6250 = vmatmul.mubr.msk.bf16.vlgmr.msra.gmra.mrb[60].mxu1 %vm669_vm1, %v2858_v48 }
 0xd47   :  { %6265 = vmatprep.mubr.msk.bf16.mxu1 %vm7022_vm0, %v7021_v0 }
 0xd49   :  { %v2862_v50 = vpop.permute.xlu0 %2861 }
 0xd5b   :  { %v2925_v18 = vpop.trf.xlu0  ;;  %v2941_v19 = vpop.trf.xlu1 }
 0xd5c   :  { %6254 = vmatpush3.bf16.msra.mxu0 %v2925_v18  ;;  %6262 = vmatpush3.bf16.msra.mxu1 %v2941_v19 }
 0xd5d   :  { %6255 = vmatprep.subr.bf16.mxu0 %v7021_v0  ;;  %6263 = vmatprep.subr.bf16.mxu1 %v7021_v0 }
 0xd5f   :  { %v2926_v51 = vpop.trf.xlu0  ;;  %v2942_v56 = vpop.trf.xlu1 }
 0xd60   :  { %6256 = vmatpush3.bf16.msra.mxu0 %v2926_v51  ;;  %6264 = vmatpush3.bf16.msra.mxu1 %v2942_v56 }
 0xd63   :  { %6258 = vmatmul.mubr.msk.bf16.vlgmr.msra.gmra.mrb[36].mxu0 %vm669_vm1, %v2860_v49  ;;  %6266 = vmatmul.mubr.msk.bf16.vlgmr.msra.gmra.mrb[64].mxu1 %vm669_vm1, %v2862_v50 }
 0xda5   :  { %v2986_v39 = vpop.f32.mrb[32].mxu0 }
 0xda6   :  { %v3121_v57 = vmul.f32 0.17677669, %v2986_v39  ;;  %v6243_v42 = vpop.f32.mrb[33].mxu0 }
 0xda7   :  { %v2989_v59 = vpop.f32.mrb[34].mxu0 }
 0xda8   :  { %v6244_v41 = vpop.f32.mrb[35].mxu0  ;;  %v3126_v44 = vsel %vm3125_vm5, %v3121_v57, -inf }
 0xda9   :  { %3127 = vmax.xlane.f32.xlu0 %v3126_v44 }
 0xe19   :  { %v3029_v54 = vpop.f32.mrb[60].mxu1 }
 0xe1a   :  { %v3122_v61 = vmul.f32 0.17677669, %v3029_v54  ;;  %v6251_v58 = vpop.f32.mrb[61].mxu1 }
 0xe1b   :  { %v3032_v1 = vpop.f32.mrb[62].mxu1 }
 0xe1c   :  { %v6252_v2 = vpop.f32.mrb[63].mxu1  ;;  %v3129_v3 = vsel %vm3125_vm5, %v3122_v61, -inf }
 0xe1d   :  { %3130 = vmax.xlane.f32.xlu1 %v3129_v3 }
 0xe36   :  { %v3072_v4 = vpop.f32.mrb[36].mxu0  ;;  %v3115_v5 = vpop.f32.mrb[64].mxu1 }
 0xe37   :  { %v3123_v6 = vmul.f32 0.17677669, %v3072_v4  ;;  %v6259_v7 = vpop.f32.mrb[37].mxu0  ;;  %v3124_v8 = vmul.f32 0.17677669, %v3115_v5  ;;  %v6267_v10 = vpop.f32.mrb[65].mxu1 }
 0xe38   :  { %v3075_v9 = vpop.f32.mrb[38].mxu0  ;;  %v3118_v12 = vpop.f32.mrb[66].mxu1 }
 0xe39   :  { %v6260_v11 = vpop.f32.mrb[39].mxu0  ;;  %v3132_v14 = vsel %vm3125_vm5, %v3123_v6, -inf  ;;  %v3135_v15 = vsel %vm3125_vm5, %v3124_v8, -inf  ;;  %v6268_v52 = vpop.f32.mrb[67].mxu1 }
 0xe3a   :  { %3133 = vmax.xlane.f32.xlu0 %v3132_v14  ;;  %3136 = vmax.xlane.f32.xlu1 %v3135_v15  ;;  %v3128_v20 = vpop.xlane.xlu0 %3127 }
 0xe3b   :  { %v3138_v22 = vsub.f32 %v3121_v57, %v3128_v20 }
 0xe3d   :  { %v3142_v30 = vmul.f32 1.442695, %v3138_v22 }
 0xe50   :  { %2876 = vrot.lane.b32.xlu0 %v7737_v37, %s7024_s23 }
 0xe54   :  { %2882 = vrot.lane.b32.xlu0 %v7737_v37, %s7023_s14 }
 0xe58   :  { %3759 = vrot.lane.b32.xlu0 %v7694_v55, %s7024_s23 }
 0xe5c   :  { %3765 = vrot.lane.b32.xlu0 %v7694_v55, %s7023_s14 }
 0xe60   :  { %3753 = vrot.lane.b32.xlu0 %v7753_v53, %s7006_s28 }
 0xeaa   :  { %v3131_v29 = vpop.xlane.xlu1 %3130 }
 0xeab   :  { %v3139_v33 = vsub.f32 %v3122_v61, %v3131_v29 }
 0xead   :  { %v3144_v27 = vmul.f32 1.442695, %v3139_v33 }
 0xec7   :  { %v3134_v21 = vpop.xlane.xlu0 %3133  ;;  %v3137_v34 = vpop.xlane.xlu1 %3136 }
 0xec8   :  { %v3140_v23 = vsub.f32 %v3123_v6, %v3134_v21  ;;  %v3141_v35 = vsub.f32 %v3124_v8, %v3137_v34 }
 0xeca   :  { %v3146_v24 = vmul.f32 1.442695, %v3140_v23  ;;  %v3148_v32 = vmul.f32 1.442695, %v3141_v35 }
 0xecb   :  { %v2877_v25 = vpop.permute.xlu0 %2876 }
 0xecc   :  { %6622 = vpow2.f32 %v3146_v24  ;;  %3190 = vxpose.xlu1.c.b16.start.end [1/1] (short) (narrow) %v2877_v25, 32 }
 0xecd   :  { %6624 = vpow2.f32 %v3142_v30 }
 0xece   :  { %6626 = vpow2.f32 %v3144_v27 }
 0xecf   :  { %6628 = vpow2.f32 %v3148_v32  ;;  %v2883_v18 = vpop.permute.xlu0 %2882 }
 0xed3   :  { %v3760_v38 = vpop.permute.xlu0 %3759 }
 0xed4   :  { %2879 = vrot.lane.b32.xlu1 %v7737_v37, %s7006_s28 }
 0xed6   :  { %v6623_v26 = vpop.eup %6622 }
 0xed7   :  { %v3156_v28 = vsel %vm3125_vm5, %v6623_v26, 0.0  ;;  %v6625_v36 = vpop.eup %6624  ;;  %v3766_v60 = vpop.permute.xlu0 %3765 }
 0xed8   :  { %3157 = vadd.xlane.f32.xlu0 %v3156_v28  ;;  %3762 = vrot.lane.b32.xlu1 %v7694_v55, %s7006_s28  ;;  %v3150_v45 = vsel %vm3125_vm5, %v6625_v36, 0.0  ;;  %v6627_v46 = vpop.eup %6626 }
 0xed9   :  { %v3153_v47 = vsel %vm3125_vm5, %v6627_v46, 0.0  ;;  %v6629_v48 = vpop.eup %6628 }
 0xeda   :  { %v3159_v49 = vsel %vm3125_vm5, %v6629_v48, 0.0 }
 0xedb   :  { %v7772_v62 = vpop.permute.xlu0 %3753 }
 0xedc   :  { %3751 = vrot.lane.b32.xlu1 %v7753_v53, %s7024_s23 }
 0xf00   :  { %3151 = vadd.xlane.f32.xlu1 %v3150_v45 }
 0xf04   :  { %3154 = vadd.xlane.f32.xlu1 %v3153_v47 }
 0xf05   :  { %3174 = vxpose.xlu0.c.b16.start.end [1/1] (short) (narrow) %v7737_v37, 32 }
 0xf08   :  { %3160 = vadd.xlane.f32.xlu1 %v3159_v49 }
 0xf19   :  { %3755 = vrot.lane.b32.xlu1 %v7753_v53, %s7023_s14 }
 0xf32   :  { %v3198_v50 = vpop.trf.xlu1 }
 0xf33   :  { %6277 = vmatprep.mubr.msk.bf16.mxu1 %vm3125_vm5, %v3198_v50 }
 0xf36   :  { %v3199_v19 = vpop.trf.xlu1 }
 0xf3c   :  { %3222 = vxpose.xlu1.c.b16.start.end [1/1] (short) (narrow) %v2883_v18, 32 }
 0xf46   :  { %v2880_v51 = vpop.permute.xlu1 %2879 }
 0xf47   :  { %3206 = vxpose.xlu0.c.b16.start.end [1/1] (short) (narrow) %v2880_v51, 32 }
 0xf4a   :  { %v3763_v56 = vpop.permute.xlu1 %3762 }
 0xf4b   :  { %3811 = vxpose.xlu1.c.b16.start.end [1/1] (short) (narrow) %v3763_v56, 32 }
 0xf4c   :  { %3779 = vxpose.xlu0.c.b16.start.end [1/1] (short) (narrow) %v7694_v55, 32 }
 0xf4e   :  { %v7775_v39 = vpop.permute.xlu1 %3751 }
 0xf51   :  { %3795 = vxpose.xlu0.c.b16.start.end [1/1] (short) (narrow) %v3760_v38, 32 }
 0xf56   :  { %3827 = vxpose.xlu0.c.b16.start.end [1/1] (short) (narrow) %v3766_v60, 32 }
 0xf65   :  { %v3158_v40 = vpop.xlane.xlu0 %3157 }
 0xf66   :  { %6630 = vrcp.f32 %v3158_v40 }
 0xf6b   :  { %v3182_v37 = vpop.trf.xlu0 }
 0xf6c   :  { %6271 = vmatprep.mubr.msk.bf16.mxu0 %vm3125_vm5, %v3182_v37 }
 0xf6f   :  { %v3183_v8 = vpop.trf.xlu0 }
 0xf70   :  { %v6631_v41 = vpop.eup %6630 }
 0xf71   :  { %v3168_v54 = vmul.f32 %v6631_v41, %v6623_v26 }
 0xf73   :  { %v3172_v2 = vpack.c.bf16 %v3168_v54, %v3168_v54 }
 0xf75   :  { %v3361_v11 = vsel %vm3125_vm5, %v3172_v2, 0 }
 0xf8d   :  { %v3152_v57 = vpop.xlane.xlu1 %3151 }
 0xf8e   :  { %6632 = vrcp.f32 %v3152_v57 }
 0xf91   :  { %v3155_v42 = vpop.xlane.xlu1 %3154 }
 0xf92   :  { %6634 = vrcp.f32 %v3155_v42 }
 0xf95   :  { %v3161_v59 = vpop.xlane.xlu1 %3160 }
 0xf96   :  { %6636 = vrcp.f32 %v3161_v59 }
 0xf98   :  { %v6633_v55 = vpop.eup %6632 }
 0xf99   :  { %v3166_v44 = vmul.f32 %v6633_v55, %v6625_v36  ;;  %v3756_v10 = vpop.permute.xlu1 %3755 }
 0xf9b   :  { %v3170_v61 = vpack.c.bf16 %v3166_v44, %v3166_v44 }
 0xf9c   :  { %v6635_v58 = vpop.eup %6634 }
 0xf9d   :  { %6377 = vmatprep.subr.msk.bf16.mxu0 %vm3125_vm5, %v3170_v61  ;;  %v3245_v1 = vsel %vm3125_vm5, %v3170_v61, 0  ;;  %v3167_v3 = vmul.f32 %v6635_v58, %v6627_v46 }
 0xf9e   :  { %6270 = vmatpush3.bf16.xpose.msra.mxu0 %v3245_v1 }
 0xf9f   :  { %6379 = vmatprep.subr.msk.bf16.mxu0 %vm3125_vm5, %v3172_v2  ;;  %v3171_v4 = vpack.c.bf16 %v3167_v3, %v3167_v3 }
 0xfa0   :  { %v6637_v5 = vpop.eup %6636 }
 0xfa1   :  { %6378 = vmatprep.subr.msk.bf16.mxu1 %vm3125_vm5, %v3171_v4  ;;  %v3303_v6 = vsel %vm3125_vm5, %v3171_v4, 0  ;;  %v3169_v7 = vmul.f32 %v6637_v5, %v6629_v48 }
 0xfa2   :  { %6276 = vmatpush3.bf16.xpose.msra.mxu1 %v3303_v6  ;;  %v3230_v12 = vpop.trf.xlu1 }
 0xfa3   :  { %v3173_v9 = vpack.c.bf16 %v3169_v7, %v3169_v7 }
 0xfa5   :  { %6380 = vmatprep.subr.msk.bf16.mxu1 %vm3125_vm5, %v3173_v9  ;;  %6272 = vmatmul.mubr.msk.bf16.vlgmr.msra.gmra.mrb[40].mxu0 %vm3125_vm5, %v3183_v8  ;;  %v3419_v14 = vsel %vm3125_vm5, %v3173_v9, 0 }
 0xfa6   :  { %6282 = vmatpush3.bf16.xpose.msra.mxu0 %v3361_v11  ;;  %v3231_v52 = vpop.trf.xlu1 }
 0xfa7   :  { %6293 = vmatprep.subr.bf16.mxu0 %v7021_v0 }
 0xfa9   :  { %6278 = vmatmul.mubr.msk.bf16.vlgmr.msra.gmra.mrb[68].mxu1 %vm3125_vm5, %v3199_v19 }
 0xfaa   :  { %6288 = vmatpush3.bf16.xpose.msra.mxu1 %v3419_v14  ;;  %6289 = vmatprep.mubr.msk.bf16.mxu1 %vm3125_vm5, %v3230_v12 }
 0xfab   :  { %6301 = vmatprep.subr.bf16.mxu1 %v7021_v0 }
 0xfad   :  { %v3214_v15 = vpop.trf.xlu0 }
 0xfae   :  { %6283 = vmatprep.mubr.msk.bf16.mxu0 %vm3125_vm5, %v3214_v15 }
 0xfb1   :  { %v3215_v20 = vpop.trf.xlu0  ;;  %6290 = vmatmul.mubr.msk.bf16.vlgmr.msra.gmra.mrb[72].mxu1 %vm3125_vm5, %v3231_v52  ;;  %v3819_v24 = vpop.trf.xlu1 }
 0xfb2   :  { %6284 = vmatmul.mubr.msk.bf16.vlgmr.msra.gmra.mrb[44].mxu0 %vm3125_vm5, %v3215_v20  ;;  %6305 = vmatprep.mubr.msk.bf16.mxu1 %vm7022_vm0, %v7021_v0 }
 0xfb3   :  { %6297 = vmatprep.mubr.msk.bf16.mxu0 %vm7022_vm0, %v7021_v0 }
 0xfb5   :  { %v3787_v21 = vpop.trf.xlu0  ;;  %v3820_v26 = vpop.trf.xlu1 }
 0xfb6   :  { %6294 = vmatpush3.bf16.msra.mxu0 %v3787_v21 }
 0xfb7   :  { %6295 = vmatprep.subr.bf16.mxu0 %v7021_v0 }
 0xfb9   :  { %v3788_v23 = vpop.trf.xlu0 }
 0xfba   :  { %6296 = vmatpush3.bf16.msra.mxu0 %v3788_v23 }
 0xfbb   :  { %6309 = vmatprep.subr.bf16.mxu0 %v7021_v0 }
 0xfbd   :  { %6298 = vmatmul.mubr.msk.bf16.vlgmr.msra.gmra.mrb[48].mxu0 %vm669_vm1, %v7753_v53  ;;  %v3803_v25 = vpop.trf.xlu0 }
 0xfbe   :  { %6302 = vmatpush3.bf16.msra.mxu1 %v3803_v25  ;;  %6310 = vmatpush3.bf16.msra.mxu0 %v3819_v24 }
 0xfbf   :  { %6303 = vmatprep.subr.bf16.mxu1 %v7021_v0  ;;  %6311 = vmatprep.subr.bf16.mxu0 %v7021_v0 }
 0xfc0   :  { %6313 = vmatprep.mubr.msk.bf16.mxu0 %vm7022_vm0, %v7021_v0 }
 0xfc1   :  { %v3804_v28 = vpop.trf.xlu0 }
 0xfc2   :  { %6304 = vmatpush3.bf16.msra.mxu1 %v3804_v28  ;;  %6312 = vmatpush3.bf16.msra.mxu0 %v3820_v26 }
 0xfc3   :  { %6317 = vmatprep.subr.bf16.mxu1 %v7021_v0 }
 0xfc5   :  { %6306 = vmatmul.mubr.msk.bf16.vlgmr.msra.gmra.mrb[76].mxu1 %vm669_vm1, %v7775_v39  ;;  %6314 = vmatmul.mubr.msk.bf16.vlgmr.msra.gmra.mrb[52].mxu0 %vm669_vm1, %v7772_v62  ;;  %v3835_v53 = vpop.trf.xlu0 }
 0xfc6   :  { %6318 = vmatpush3.bf16.msra.mxu1 %v3835_v53  ;;  %6321 = vmatprep.mubr.msk.bf16.mxu1 %vm7022_vm0, %v7021_v0 }
 0xfc7   :  { %6319 = vmatprep.subr.bf16.mxu1 %v7021_v0 }
 0xfc9   :  { %v3836_v22 = vpop.trf.xlu0 }
 0xfca   :  { %6320 = vmatpush3.bf16.msra.mxu1 %v3836_v22 }
 0xfcd   :  { %6322 = vmatmul.mubr.msk.bf16.vlgmr.msra.gmra.mrb[80].mxu1 %vm669_vm1, %v3756_v10 }
0x1078   :  { %v7814_v29 = vpop.f32.mrb[40].mxu0 }
0x1079   :  { %v7816_v30 = vpop.f32.mrb[41].mxu0 }
0x107a   :  { %v7818_v33 = vpop.f32.mrb[42].mxu0 }
0x107b   :  { %v7820_v34 = vpop.f32.mrb[43].mxu0 }
0x107c   :  { %v7822_v27 = vpop.f32.mrb[68].mxu1 }
0x107d   :  { %v7824_v35 = vpop.f32.mrb[69].mxu1 }
0x107e   :  { %v7826_v32 = vpop.f32.mrb[70].mxu1 }
0x107f   :  { %v7828_v36 = vpop.f32.mrb[71].mxu1 }
0x1084   :  { %v7830_v45 = vpop.f32.mrb[72].mxu1 }
0x1085   :  { %v7832_v46 = vpop.f32.mrb[44].mxu0  ;;  %v7834_v47 = vpop.f32.mrb[73].mxu1 }
0x1086   :  { %v7836_v48 = vpop.f32.mrb[45].mxu0  ;;  %v7838_v49 = vpop.f32.mrb[74].mxu1 }
0x1087   :  { %v7840_v50 = vpop.f32.mrb[46].mxu0  ;;  %v7842_v18 = vpop.f32.mrb[75].mxu1 }
0x1088   :  { %v7844_v19 = vpop.f32.mrb[47].mxu0 }
0x1090   :  { %v3880_v51 = vpop.f32.mrb[48].mxu0 }
0x1091   :  { %v4015_v56 = vmul.f32 0.17677669, %v3880_v51  ;;  %v6299_v38 = vpop.f32.mrb[49].mxu0 }
0x1092   :  { %v3883_v60 = vpop.f32.mrb[50].mxu0 }
0x1093   :  { %v6300_v62 = vpop.f32.mrb[51].mxu0  ;;  %v4019_v40 = vsel %vm3125_vm5, %v4015_v56, -inf }
0x1094   :  { %4020 = vmax.xlane.f32.xlu1 %v4019_v40 }
0x1098   :  { %v3923_v37 = vpop.f32.mrb[76].mxu1  ;;  %v3966_v39 = vpop.f32.mrb[52].mxu0 }
0x1099   :  { %v4016_v57 = vmul.f32 0.17677669, %v3923_v37  ;;  %v4017_v42 = vmul.f32 0.17677669, %v3966_v39  ;;  %v6307_v59 = vpop.f32.mrb[77].mxu1  ;;  %v6315_v41 = vpop.f32.mrb[53].mxu0 }
0x109a   :  { %v3926_v55 = vpop.f32.mrb[78].mxu1  ;;  %v3969_v44 = vpop.f32.mrb[54].mxu0 }
0x109b   :  { %v6308_v54 = vpop.f32.mrb[79].mxu1  ;;  %v6316_v61 = vpop.f32.mrb[55].mxu0  ;;  %v4025_v58 = vsel %vm3125_vm5, %v4017_v42, -inf  ;;  %v4022_v1 = vsel %vm3125_vm5, %v4016_v57, -inf }
0x109c   :  { %4026 = vmax.xlane.f32.xlu1 %v4025_v58  ;;  %4023 = vmax.xlane.f32.xlu0 %v4022_v1 }
0x10a0   :  { %v4009_v2 = vpop.f32.mrb[80].mxu1 }
0x10a1   :  { %v4018_v3 = vmul.f32 0.17677669, %v4009_v2  ;;  %v6323_v4 = vpop.f32.mrb[81].mxu1 }
0x10a2   :  { %v4012_v5 = vpop.f32.mrb[82].mxu1 }
0x10a3   :  { %v6324_v6 = vpop.f32.mrb[83].mxu1  ;;  %v4028_v7 = vsel %vm3125_vm5, %v4018_v3, -inf }
0x10a4   :  { %4029 = vmax.xlane.f32.xlu1 %v4028_v7 }
0x10b2   :  { %3770 = vrot.lane.b32.xlu0 %v7735_v63, %s7024_s23 }
0x10b6   :  { %3776 = vrot.lane.b32.xlu0 %v7735_v63, %s7023_s14 }
0x1121   :  { %v4021_v8 = vpop.xlane.xlu1 %4020 }
0x1122   :  { %v4031_v9 = vsub.f32 %v4015_v56, %v4021_v8 }
0x1124   :  { %v4035_v10 = vmul.f32 1.442695, %v4031_v9 }
0x1126   :  { %6638 = vpow2.f32 %v4035_v10 }
0x1129   :  { %v4027_v11 = vpop.xlane.xlu1 %4026  ;;  %v4024_v12 = vpop.xlane.xlu0 %4023 }
0x112a   :  { %v4033_v14 = vsub.f32 %v4017_v42, %v4027_v11  ;;  %v4032_v15 = vsub.f32 %v4016_v57, %v4024_v12 }
0x112c   :  { %v4039_v52 = vmul.f32 1.442695, %v4033_v14  ;;  %v4037_v20 = vmul.f32 1.442695, %v4032_v15 }
0x112d   :  { %v3771_v60 = vpop.permute.xlu0 %3770 }
0x112e   :  { %6640 = vpow2.f32 %v4039_v52 }
0x112f   :  { %6642 = vpow2.f32 %v4037_v20 }
0x1130   :  { %v6639_v21 = vpop.eup %6638 }
0x1131   :  { %v4043_v23 = vsel %vm3125_vm5, %v6639_v21, 0.0  ;;  %v4030_v53 = vpop.xlane.xlu1 %4029 }
0x1132   :  { %4044 = vadd.xlane.f32.xlu1 %v4043_v23  ;;  %v4034_v22 = vsub.f32 %v4018_v3, %v4030_v53 }
0x1134   :  { %v4041_v51 = vmul.f32 1.442695, %v4034_v22 }
0x1136   :  { %6644 = vpow2.f32 %v4041_v51 }
0x1138   :  { %v6641_v24 = vpop.eup %6640 }
0x1139   :  { %v6643_v25 = vpop.eup %6642  ;;  %v4049_v26 = vsel %vm3125_vm5, %v6641_v24, 0.0 }
0x113a   :  { %4050 = vadd.xlane.f32.xlu0 %v4049_v26  ;;  %v4046_v28 = vsel %vm3125_vm5, %v6643_v25, 0.0 }
0x113b   :  { %4047 = vadd.xlane.f32.xlu1 %v4046_v28 }
0x1140   :  { %v6645_v56 = vpop.eup %6644 }
0x1141   :  { %v4052_v38 = vsel %vm3125_vm5, %v6645_v56, 0.0 }
0x114c   :  { %3773 = vrot.lane.b32.xlu1 %v7735_v63, %s7006_s28 }
0x1167   :  { %4067 = vxpose.xlu0.c.b16.start.end [1/1] (short) (narrow) %v7735_v63, 32  ;;  %v3777_v63 = vpop.permute.xlu0 %3776 }
0x1170   :  { %4053 = vadd.xlane.f32.xlu1 %v4052_v38 }
0x119d   :  { %4083 = vxpose.xlu1.c.b16.start.end [1/1] (short) (narrow) %v3771_v60, 32 }
0x11ab   :  { %3470 = vxpose.xlu1.b32.start [1/4] (short) (narrow) %v7816_v30, 8 }
0x11af   :  { %3471 = vxpose.xlu1.b32.cont [2/4] (short) (narrow) %v7820_v34, 8 }
0x11b3   :  { %3472 = vxpose.xlu1.b32.cont [3/4] (short) (narrow) %v7814_v29, 8 }
0x11b7   :  { %3473 = vxpose.xlu1.b32.end [4/4] (short) (narrow) %v7818_v33, 8 }
0x11bb   :  { %3566 = vxpose.xlu1.b32.start [1/4] (short) (narrow) %v7834_v47, 8 }
0x11bf   :  { %3567 = vxpose.xlu1.b32.cont [2/4] (short) (narrow) %v7842_v18, 8  ;;  %v4045_v62 = vpop.xlane.xlu1 %4044 }
0x11c0   :  { %6646 = vrcp.f32 %v4045_v62 }
0x11c3   :  { %3568 = vxpose.xlu1.b32.cont [3/4] (short) (narrow) %v7830_v45, 8 }
0x11c7   :  { %3569 = vxpose.xlu1.b32.end [4/4] (short) (narrow) %v7838_v49, 8  ;;  %v4051_v40 = vpop.xlane.xlu0 %4050 }
0x11c8   :  { %v4048_v37 = vpop.xlane.xlu1 %4047  ;;  %6648 = vrcp.f32 %v4051_v40 }
0x11c9   :  { %6650 = vrcp.f32 %v4048_v37 }
0x11ca   :  { %v6647_v30 = vpop.eup %6646 }
0x11cb   :  { %v4059_v34 = vmul.f32 %v6647_v30, %v6639_v21 }
0x11cc   :  { %v3774_v29 = vpop.permute.xlu1 %3773 }
0x11cd   :  { %4099 = vxpose.xlu0.c.b16.start.end [1/1] (short) (narrow) %v3774_v29, 32  ;;  %v4063_v33 = vpack.c.bf16 %v4059_v34, %v4059_v34  ;;  %v4075_v39 = vpop.trf.xlu0 }
0x11ce   :  { %6327 = vmatprep.mubr.msk.bf16.mxu0 %vm3125_vm5, %v4075_v39 }
0x11cf   :  { %6381 = vmatprep.subr.msk.bf16.mxu0 %vm3125_vm5, %v4063_v33  ;;  %v4138_v47 = vsel %vm3125_vm5, %v4063_v33, 0 }
0x11d0   :  { %6326 = vmatpush3.bf16.xpose.msra.mxu0 %v4138_v47 }
0x11d1   :  { %v4076_v42 = vpop.trf.xlu0 }
0x11d2   :  { %v6649_v45 = vpop.eup %6648  ;;  %4115 = vxpose.xlu0.c.b16.start.end [1/1] (short) (narrow) %v3777_v63, 32 }
0x11d3   :  { %v6651_v49 = vpop.eup %6650  ;;  %v4061_v18 = vmul.f32 %v6649_v45, %v6641_v24 }
0x11d4   :  { %v4060_v57 = vmul.f32 %v6651_v49, %v6643_v25 }
0x11d5   :  { %v4065_v59 = vpack.c.bf16 %v4061_v18, %v4061_v18 }
0x11d6   :  { %v4064_v41 = vpack.c.bf16 %v4060_v57, %v4060_v57 }
0x11d7   :  { %6383 = vmatprep.subr.msk.bf16.mxu0 %vm3125_vm5, %v4065_v59  ;;  %6328 = vmatmul.mubr.msk.bf16.vlgmr.msra.gmra.mrb[56].mxu0 %vm3125_vm5, %v4076_v42  ;;  %v4254_v55 = vsel %vm3125_vm5, %v4065_v59, 0 }
0x11d8   :  { %6382 = vmatprep.subr.msk.bf16.mxu1 %vm3125_vm5, %v4064_v41  ;;  %v4196_v44 = vsel %vm3125_vm5, %v4064_v41, 0  ;;  %6338 = vmatpush3.bf16.xpose.msra.mxu0 %v4254_v55 }
0x11d9   :  { %6332 = vmatpush3.bf16.xpose.msra.mxu1 %v4196_v44  ;;  %6349 = vmatprep.subr.bf16.mxu0 %v7021_v0 }
0x11da   :  { %3502 = vxpose.xlu0.b32.start [1/4] (short) (narrow) %v7824_v35, 8 }
0x11de   :  { %3503 = vxpose.xlu0.b32.cont [2/4] (short) (narrow) %v7828_v36, 8 }
0x11e2   :  { %3504 = vxpose.xlu0.b32.cont [3/4] (short) (narrow) %v7822_v27, 8 }
0x11e6   :  { %3505 = vxpose.xlu0.b32.end [4/4] (short) (narrow) %v7826_v32, 8 }
0x11ea   :  { %3534 = vxpose.xlu0.b32.start [1/4] (short) (narrow) %v7836_v48, 8 }
0x11ee   :  { %3535 = vxpose.xlu0.b32.cont [2/4] (short) (narrow) %v7844_v19, 8 }
0x11f2   :  { %3536 = vxpose.xlu0.b32.cont [3/4] (short) (narrow) %v7832_v46, 8 }
0x11f6   :  { %3537 = vxpose.xlu0.b32.end [4/4] (short) (narrow) %v7840_v50, 8 }
0x11fd   :  { %v4054_v54 = vpop.xlane.xlu1 %4053 }
0x11fe   :  { %6652 = vrcp.f32 %v4054_v54 }
0x1203   :  { %v4091_v61 = vpop.trf.xlu1 }
0x1204   :  { %6333 = vmatprep.mubr.msk.bf16.mxu1 %vm3125_vm5, %v4091_v61 }
0x1207   :  { %v4092_v35 = vpop.trf.xlu1 }
0x1208   :  { %v6653_v58 = vpop.eup %6652  ;;  %6334 = vmatmul.mubr.msk.bf16.vlgmr.msra.gmra.mrb[84].mxu1 %vm3125_vm5, %v4092_v35  ;;  %v6498_v35 = vld [vmem:[#allocation19] sm:$0xff]  }
0x1209   :  { %v4062_v27 = vmul.f32 %v6653_v58, %v6645_v56  ;;  %v6499_v58 = vld [vmem:[#allocation19 + $0x8] sm:$0xff]  }
0x120b   :  { %v4066_v36 = vpack.c.bf16 %v4062_v27, %v4062_v27  ;;  %v6500_v27 = vld [vmem:[#allocation19 + $0x10] sm:$0xff]  }
0x120d   :  { %6384 = vmatprep.subr.msk.bf16.mxu1 %vm3125_vm5, %v4066_v36  ;;  %v4312_v32 = vsel %vm3125_vm5, %v4066_v36, 0  ;;  %v6501_v36 = vld [vmem:[#allocation19 + $0x18] sm:$0xff]  }
0x120e   :  { %6344 = vmatpush3.bf16.xpose.msra.mxu1 %v4312_v32  ;;  %v6502_v32 = vld [vmem:[#allocation19 + $0x20] sm:$0xff]  }
0x122b   :  { %v3486_v9 = vpop.trf.xlu1 }
0x1233   :  { %v4107_v48 = vpop.trf.xlu0 }
0x1234   :  { %6339 = vmatprep.mubr.msk.bf16.mxu0 %vm3125_vm5, %v4107_v48  ;;  %v6503_v48 = vld [vmem:[#allocation19 + $0x28] sm:$0xff]  }
0x1237   :  { %v4108_v46 = vpop.trf.xlu0 }
0x1238   :  { %6340 = vmatmul.mubr.msk.bf16.vlgmr.msra.gmra.mrb[60].mxu0 %vm3125_vm5, %v4108_v46 }
0x1239   :  { %6365 = vmatprep.mubr.msk.bf16.mxu0 %vm7022_vm0, %v7021_v0  ;;  %6350 = vmatpush3.bf16.msra.mxu0 %v6498_v35 }
0x123a   :  { %6351 = vmatprep.subr.bf16.mxu0 %v7021_v0 }
0x123b   :  { %v4123_v50 = vpop.trf.xlu0  ;;  %v3582_v11 = vpop.trf.xlu1 }
0x123c   :  { %6345 = vmatprep.mubr.msk.bf16.mxu1 %vm3125_vm5, %v4123_v50 }
0x123d   :  { %6352 = vmatpush3.bf16.msra.mxu0 %v6499_v58 }
0x123e   :  { %6353 = vmatprep.subr.bf16.mxu0 %v7021_v0 }
0x123f   :  { %v4124_v19 = vpop.trf.xlu0 }
0x1240   :  { %6346 = vmatmul.mubr.msk.bf16.vlgmr.msra.gmra.mrb[88].mxu1 %vm3125_vm5, %v4124_v19 }
0x1241   :  { %6354 = vmatpush3.bf16.msra.mxu0 %v6500_v27 }
0x1242   :  { %6355 = vmatprep.subr.bf16.mxu0 %v7021_v0 }
0x1245   :  { %6356 = vmatpush3.bf16.msra.mxu0 %v6501_v36 }
0x1246   :  { %6357 = vmatprep.subr.bf16.mxu0 %v7021_v0 }
0x1249   :  { %6358 = vmatpush3.bf16.msra.mxu0 %v6502_v32 }
0x124a   :  { %6359 = vmatprep.subr.bf16.mxu0 %v7021_v0 }
0x124d   :  { %6360 = vmatpush3.bf16.msra.mxu0 %v6503_v48 }
0x124e   :  { %6361 = vmatprep.subr.bf16.mxu0 %v7021_v0 }
0x125a   :  { %v3518_v10 = vpop.trf.xlu0 }
0x125b   :  { %v3614_v14 = vcombine.low %v3518_v10, %v3582_v11  ;;  %v3615_v15 = vcombine.high %v3518_v10, %v3582_v11 }
0x125d   :  { %v3622_v21 = vrot.slane %v3614_v14, %v7597_v16  ;;  %v3629_v23 = vrot.slane %v3615_v15, %v7597_v16 }
0x126a   :  { %v3550_v12 = vpop.trf.xlu0 }
0x126b   :  { %v3598_v52 = vcombine.low %v3486_v9, %v3550_v12  ;;  %v3599_v20 = vcombine.high %v3486_v9, %v3550_v12 }
0x126d   :  { %v3606_v24 = vrot.slane %v3598_v52, %v7597_v16  ;;  %v3613_v25 = vrot.slane %v3599_v20, %v7597_v16 }
0x126f   :  { %v3630_v26 = vcombine.low %v3606_v24, %v3622_v21  ;;  %v3631_v28 = vcombine.high %v3606_v24, %v3622_v21  ;;  %v3646_v53 = vcombine.low %v3613_v25, %v3629_v23  ;;  %v3647_v22 = vcombine.high %v3613_v25, %v3629_v23  ;;  %v6504_v25 = vld [vmem:[#allocation19 + $0x30] sm:$0xff]  }
0x1270   :  { %6362 = vmatpush3.bf16.msra.mxu0 %v6504_v25 }
0x1271   :  { %v3638_v51 = vrot.slane %v3630_v26, %v7604_v31  ;;  %v3645_v56 = vrot.slane %v3631_v28, %v7604_v31  ;;  %v3654_v38 = vrot.slane %v3646_v53, %v7604_v31  ;;  %v3661_v60 = vrot.slane %v3647_v22, %v7604_v31  ;;  %6363 = vmatprep.subr.bf16.mxu0 %v7021_v0 }
0x1273   :  { %v3666_v30 = vcombine.low %v3638_v51, %v3645_v56  ;;  %v5678_v34 = vcombine.high %v3638_v51, %v3645_v56  ;;  %v3682_v29 = vcombine.low %v3654_v38, %v3661_v60  ;;  %v5679_v33 = vcombine.high %v3654_v38, %v3661_v60 }
0x1275   :  { %v7905_v39 = vrot.slane %v3666_v30, %v7597_v16  ;;  %v7908_v47 = vrot.slane %v5678_v34, %v7597_v16  ;;  %v7911_v45 = vrot.slane %v3682_v29, %v7597_v16  ;;  %v7914_v49 = vrot.slane %v5679_v33, %v7597_v16 }
0x1277   :  { %v3698_v41 = vcombine.low %v7905_v39, %v7908_v47  ;;  %v3714_v55 = vcombine.low %v7911_v45, %v7914_v49  ;;  %v3699_v23 = vcombine.high %v7905_v39, %v7908_v47  ;;  %v3715_v24 = vcombine.high %v7911_v45, %v7914_v49 }
0x1279   :  { %v7921_v44 = vrot.slane %v3698_v41, %v7604_v31  ;;  %v7924_v54 = vrot.slane %v3714_v55, %v7604_v31 }
0x127b   :  { %v3730_v61 = vcombine.low %v7921_v44, %v7924_v54  ;;  %v3731_v49 = vcombine.high %v7921_v44, %v7924_v54 }
0x12aa   :  { %v6329_v1 = vpop.f32.mrb[56].mxu0 }
0x12ab   :  { %v4174_v2 = vpop.f32.mrb[57].mxu0 }
0x12ac   :  { %4363 = vxpose.xlu0.b32.start [1/4] (short) (narrow) %v4174_v2, 8  ;;  %v6330_v3 = vpop.f32.mrb[58].mxu0 }
0x12ad   :  { %v4177_v4 = vpop.f32.mrb[59].mxu0 }
0x12b0   :  { %4364 = vxpose.xlu0.b32.cont [2/4] (short) (narrow) %v4177_v4, 8 }
0x12b4   :  { %4365 = vxpose.xlu0.b32.cont [3/4] (short) (narrow) %v6329_v1, 8 }
0x12b8   :  { %4366 = vxpose.xlu0.b32.end [4/4] (short) (narrow) %v6330_v3, 8 }
0x12db   :  { %v6335_v5 = vpop.f32.mrb[84].mxu1 }
0x12dc   :  { %v4232_v6 = vpop.f32.mrb[85].mxu1 }
0x12dd   :  { %4395 = vxpose.xlu1.b32.start [1/4] (short) (narrow) %v4232_v6, 8  ;;  %v6336_v7 = vpop.f32.mrb[86].mxu1 }
0x12de   :  { %v4235_v8 = vpop.f32.mrb[87].mxu1 }
0x12e1   :  { %4396 = vxpose.xlu1.b32.cont [2/4] (short) (narrow) %v4235_v8, 8 }
0x12e5   :  { %4397 = vxpose.xlu1.b32.cont [3/4] (short) (narrow) %v6335_v5, 8 }
0x12e9   :  { %4398 = vxpose.xlu1.b32.end [4/4] (short) (narrow) %v6336_v7, 8 }
0x130b   :  { %v6341_v62 = vpop.f32.mrb[60].mxu0 }
0x130c   :  { %v4290_v63 = vpop.f32.mrb[61].mxu0 }
0x130d   :  { %4427 = vxpose.xlu0.b32.start [1/4] (short) (narrow) %v4290_v63, 8  ;;  %v6342_v40 = vpop.f32.mrb[62].mxu0  ;;  %v3729_v63 = vrot.slane %v3715_v24, %v7604_v31 }
0x130e   :  { %v4293_v37 = vpop.f32.mrb[63].mxu0 }
0x1311   :  { %4428 = vxpose.xlu0.b32.cont [2/4] (short) (narrow) %v4293_v37, 8 }
0x1313   :  { %v6347_v18 = vpop.f32.mrb[88].mxu1 }
0x1314   :  { %v4348_v57 = vpop.f32.mrb[89].mxu1 }
0x1315   :  { %4429 = vxpose.xlu0.b32.cont [3/4] (short) (narrow) %v6341_v62, 8  ;;  %4459 = vxpose.xlu1.b32.start [1/4] (short) (narrow) %v4348_v57, 8  ;;  %v6348_v42 = vpop.f32.mrb[90].mxu1  ;;  %v3713_v62 = vrot.slane %v3699_v23, %v7604_v31 }
0x1316   :  { %v4351_v59 = vpop.f32.mrb[91].mxu1 }
0x1317   :  { %v3732_v45 = vcombine.low %v3713_v62, %v3729_v63  ;;  %v3733_v55 = vcombine.high %v3713_v62, %v3729_v63  ;;  %v6526_v62 = vld [vmem:[#allocation20 + $0x64] ss:$16 sps:$4 sm:$0xff]   ;;  %v6529_v63 = vld [vmem:[#allocation20 + $0x6c] ss:$16 sps:$4 sm:$0xff]  }
0x1319   :  { %4430 = vxpose.xlu0.b32.end [4/4] (short) (narrow) %v6342_v40, 8  ;;  %4460 = vxpose.xlu1.b32.cont [2/4] (short) (narrow) %v4351_v59, 8  ;;  %v6505_v40 = vld [vmem:[#allocation19 + $0x38] sm:$0xff]  }
0x131a   :  { %6364 = vmatpush3.bf16.msra.mxu0 %v6505_v40  ;;  %v6524_v40 = vld [vmem:[#allocation20 + $0x60] ss:$16 sps:$4 sm:$0xff]  }
0x131d   :  { %4461 = vxpose.xlu1.b32.cont [3/4] (short) (narrow) %v6347_v18, 8 }
0x1321   :  { %4462 = vxpose.xlu1.b32.end [4/4] (short) (narrow) %v6348_v42, 8 }
0x132c   :  { %v4379_v46 = vpop.trf.xlu0 }
0x135d   :  { %v4411_v50 = vpop.trf.xlu1 }
0x138d   :  { %v4443_v19 = vpop.trf.xlu0 }
0x138e   :  { %v4491_v1 = vcombine.low %v4379_v46, %v4443_v19  ;;  %v4492_v2 = vcombine.high %v4379_v46, %v4443_v19 }
0x1390   :  { %v4499_v6 = vrot.slane %v4491_v1, %v7597_v16  ;;  %v4506_v7 = vrot.slane %v4492_v2, %v7597_v16 }
0x1395   :  { %v4475_v3 = vpop.trf.xlu1 }
0x1396   :  { %v4507_v4 = vcombine.low %v4411_v50, %v4475_v3  ;;  %v4508_v5 = vcombine.high %v4411_v50, %v4475_v3 }
0x1398   :  { %v4515_v8 = vrot.slane %v4507_v4, %v7597_v16  ;;  %v4522_v9 = vrot.slane %v4508_v5, %v7597_v16 }
0x139a   :  { %v4523_v10 = vcombine.low %v4499_v6, %v4515_v8  ;;  %v4524_v11 = vcombine.high %v4499_v6, %v4515_v8  ;;  %v4539_v12 = vcombine.low %v4506_v7, %v4522_v9  ;;  %v4540_v14 = vcombine.high %v4506_v7, %v4522_v9 }
0x139c   :  { %v4531_v15 = vrot.slane %v4523_v10, %v7604_v31  ;;  %v4538_v52 = vrot.slane %v4524_v11, %v7604_v31  ;;  %v4547_v20 = vrot.slane %v4539_v12, %v7604_v31  ;;  %v4554_v21 = vrot.slane %v4540_v14, %v7604_v31  ;;  %v6506_v11 = vld [vmem:[#allocation20] ss:$16 sps:$4 sm:$0xff]   ;;  %v6508_v12 = vld [vmem:[#allocation20 + $0x4] ss:$16 sps:$4 sm:$0xff]   ;;  %v6509_v14 = vld [vmem:[#allocation20 + $0x8] ss:$16 sps:$4 sm:$0xff]  }
0x139d   :  { %5005 = vmatprep.subr.bf16.mxu1 %v6508_v12  ;;  %v6560_v12 = vld [vmem:[#allocation22 + $0x8] sm:$0xff]  }
0x139e   :  { %v4559_v26 = vcombine.low %v4531_v15, %v4538_v52  ;;  %v5692_v28 = vcombine.high %v4531_v15, %v4538_v52  ;;  %v4575_v53 = vcombine.low %v4547_v20, %v4554_v21  ;;  %v5693_v22 = vcombine.high %v4547_v20, %v4554_v21  ;;  %v6511_v15 = vld [vmem:[#allocation20 + $0xc] ss:$16 sps:$4 sm:$0xff]   ;;  %v6514_v52 = vld [vmem:[#allocation20 + $0x24] ss:$16 sps:$4 sm:$0xff]   ;;  %5006 = vmatpush1.bf16.msra.mxu1 %v6506_v11  ;;  %v6512_v21 = vld [vmem:[#allocation20 + $0x20] ss:$16 sps:$4 sm:$0xff]  }
0x139f   :  { %v6517_v20 = vld [vmem:[#allocation20 + $0x2c] ss:$16 sps:$4 sm:$0xff]   ;;  %5048 = vmatprep.subr.bf16.mxu0 %v6511_v15  ;;  %5007 = vmatprep.subr.bf16.mxu1 %v6514_v52  ;;  %v6562_v15 = vld [vmem:[#allocation22 + $0x50] sm:$0xff]  }
0x13a0   :  { %v4566_v51 = vrot.slane %v4559_v26, %v7597_v16  ;;  %v4574_v56 = vrot.slane %v5692_v28, %v7597_v16  ;;  %v4582_v38 = vrot.slane %v4575_v53, %v7597_v16  ;;  %v4590_v60 = vrot.slane %v5693_v22, %v7597_v16  ;;  %v6559_v11 = vld [vmem:[#allocation22 + $0xc8] sm:$0xff]   ;;  %v6563_v52 = vld [vmem:[#allocation22 + $0xd0] sm:$0xff]  }
0x13a2   :  { %v4592_v37 = vcombine.high %v4566_v51, %v4574_v56  ;;  %v4608_v30 = vcombine.high %v4582_v38, %v4590_v60  ;;  %v4591_v34 = vcombine.low %v4566_v51, %v4574_v56  ;;  %v4607_v29 = vcombine.low %v4582_v38, %v4590_v60  ;;  %5008 = vmatpush1.bf16.msra.mxu1 %v6512_v21  ;;  %v6520_v51 = vld [vmem:[#allocation20 + $0x44] ss:$16 sps:$4 sm:$0xff]   ;;  %v6523_v56 = vld [vmem:[#allocation20 + $0x4c] ss:$16 sps:$4 sm:$0xff]   ;;  %v6518_v38 = vld [vmem:[#allocation20 + $0x40] ss:$16 sps:$4 sm:$0xff]  }
0x13a3   :  { %v6521_v60 = vld [vmem:[#allocation20 + $0x48] ss:$16 sps:$4 sm:$0xff]   ;;  %5009 = vmatprep.subr.bf16.mxu1 %v6520_v51  ;;  %v6565_v21 = vld [vmem:[#allocation22 + $0x90] sm:$0xff]  }
0x13a4   :  { %v4606_v33 = vrot.slane %v4592_v37, %v7604_v31  ;;  %v4622_v39 = vrot.slane %v4608_v30, %v7604_v31  ;;  %v4599_v47 = vrot.slane %v4591_v34, %v7604_v31  ;;  %v4615_v16 = vrot.slane %v4607_v29, %v7604_v31  ;;  %v6527_v37 = vld [vmem:[#allocation20 + $0x68] ss:$16 sps:$4 sm:$0xff]   ;;  %v6532_v30 = vld [vmem:[#allocation20 + $0x84] ss:$16 sps:$4 sm:$0xff]   ;;  %v6535_v34 = vld [vmem:[#allocation20 + $0x8c] ss:$16 sps:$4 sm:$0xff]  }
0x13a5   :  { %v6530_v29 = vld [vmem:[#allocation20 + $0x80] ss:$16 sps:$4 sm:$0xff]   ;;  %v6575_v51 = vld [vmem:[#allocation22 + $0xe8] sm:$0xff]  }
0x13a6   :  { %v4625_v0 = vcombine.low %v4606_v33, %v4622_v39  ;;  %v4624_v18 = vcombine.high %v4599_v47, %v4615_v16  ;;  %v4623_v57 = vcombine.low %v4599_v47, %v4615_v16  ;;  %v4626_v41 = vcombine.high %v4606_v33, %v4622_v39  ;;  %5010 = vmatpush1.bf16.msra.mxu1 %v6518_v38  ;;  %v6533_v33 = vld [vmem:[#allocation20 + $0x88] ss:$16 sps:$4 sm:$0xff]   ;;  %v6538_v39 = vld [vmem:[#allocation20 + $0xa4] ss:$16 sps:$4 sm:$0xff]   ;;  %v6541_v47 = vld [vmem:[#allocation20 + $0xac] ss:$16 sps:$4 sm:$0xff]  }
0x13a7   :  { %5011 = vmatprep.subr.bf16.mxu1 %v6526_v62  ;;  %v6536_v16 = vld [vmem:[#allocation20 + $0xa0] ss:$16 sps:$4 sm:$0xff]   ;;  %v6577_v38 = vld [vmem:[#allocation22 + $0xa8] sm:$0xff]  }
0x13a8   :  { %v6432_v42 = vpack.i.bf16 %v4625_v0, %v3732_v45  ;;  %v6427_v59 = vpack.i.bf16 %v4624_v18, %v3731_v49  ;;  %v6437_v35 = vpack.i.bf16 %v4626_v41, %v3733_v55  ;;  %v6539_v45 = vld [vmem:[#allocation20 + $0xa8] ss:$16 sps:$4 sm:$0xff]   ;;  %v6544_v0 = vld [vmem:[#allocation20 + $0xc4] ss:$16 sps:$4 sm:$0xff]   ;;  %v6547_v49 = vld [vmem:[#allocation20 + $0xcc] ss:$16 sps:$4 sm:$0xff]  }
0x13a9   :  { %v6542_v18 = vld [vmem:[#allocation20 + $0xc0] ss:$16 sps:$4 sm:$0xff]   ;;  %v6551_v41 = vld [vmem:[#allocation20 + $0xe8] ss:$16 sps:$4 sm:$0xff]   ;;  %v6553_v55 = vld [vmem:[#allocation20 + $0xec] ss:$16 sps:$4 sm:$0xff]  }
0x13aa   :  { %6433 = vrot.lane.b32.xlu1 %v6432_v42, %s7006_s28  ;;  %6428 = vrot.lane.b32.xlu0 %v6427_v59, %s7023_s14  ;;  %v6548_v42 = vld [vmem:[#allocation20 + $0xe0] ss:$16 sps:$4 sm:$0xff]   ;;  %v6550_v59 = vld [vmem:[#allocation20 + $0xe4] ss:$16 sps:$4 sm:$0xff]  }
0x13ab   :  { %5012 = vmatpush1.bf16.msra.mxu1 %v6524_v40  ;;  %v6579_v62 = vld [vmem:[#allocation22 + $0xf0] sm:$0xff]  }
0x13ac   :  { %5013 = vmatprep.subr.bf16.mxu1 %v6532_v30  ;;  %v6581_v40 = vld [vmem:[#allocation22 + $0xb0] sm:$0xff]   ;;  %v6583_v30 = vld [vmem:[#allocation22 + $0xf8] sm:$0xff]  }
0x13ae   :  { %6438 = vrot.lane.b32.xlu1 %v6437_v35, %s7024_s23  ;;  %v7027_v35 = vmov 0  }
0x13af   :  { %5014 = vmatpush1.bf16.msra.mxu1 %v6530_v29  ;;  %5037 = vmatprep.mubr.bf16.mxu1 %v7027_v35  ;;  %v6585_v29 = vld [vmem:[#allocation22 + $0xb8] sm:$0xff]  }
0x13b0   :  { %5015 = vmatprep.subr.bf16.mxu1 %v6538_v39  ;;  %v4835_v39 = vsub.s32 2, %v7594_v13 }
0x13b3   :  { %5016 = vmatpush1.bf16.msra.mxu1 %v6536_v16  ;;  %v4831_v16 = vsub.s32 1, %v7594_v13 }
0x13b4   :  { %5017 = vmatprep.subr.bf16.mxu1 %v6544_v0 }
0x13b7   :  { %5018 = vmatpush1.bf16.msra.mxu1 %v6542_v18 }
0x13b8   :  { %5019 = vmatprep.subr.bf16.mxu1 %v6550_v59 }
0x13bb   :  { %5020 = vmatpush1.bf16.msra.mxu1 %v6548_v42 }
0x141c   :  { %v6434_v58 = vpop.permute.xlu1 %6433  ;;  %v6429_v31 = vpop.permute.xlu0 %6428 }
0x141d   :  { %v6431_v27 = vunpack.i.h.bf16 %v6429_v31  ;;  %v6430_v36 = vunpack.i.l.bf16 %v6429_v31  ;;  %v6436_v32 = vunpack.i.h.bf16 %v6434_v58  ;;  %v6435_v48 = vunpack.i.l.bf16 %v6434_v58 }
0x141f   :  { %v3746_v46 = vsel %vm669_vm1, %v3730_v61, %v6430_v36  ;;  %v4639_v50 = vsel %vm669_vm1, %v4623_v57, %v6431_v27  ;;  %v6545_v57 = vld [vmem:[#allocation20 + $0xc8] ss:$16 sps:$4 sm:$0xff]  }
0x1420   :  { %v6439_v19 = vpop.permute.xlu1 %6438  ;;  %v3747_v3 = vsel %vm1468_vm3, %v3746_v46, %v6435_v48  ;;  %v4640_v4 = vsel %vm1468_vm3, %v4639_v50, %v6436_v32  ;;  %v5702_v50 = vld [vmem:[%s8088_s18] ss:$0 sm:$0xff] }
0x1421   :  { %v6441_v1 = vunpack.i.h.bf16 %v6439_v19  ;;  %v6440_v2 = vunpack.i.l.bf16 %v6439_v19 }
0x1423   :  { %v3748_v5 = vsel %vm1470_vm4, %v3747_v3, %v6440_v2  ;;  %v4641_v6 = vsel %vm1470_vm4, %v4640_v4, %v6441_v1  ;;  %v5703_v4 = vld [vmem:[%s8089_s19] ss:$0 sm:$0xff] }
0x1424   :  { %v4642_v7 = vpack.c.bf16 %v4641_v6, %v3748_v5 }
0x1426   :  { %6366 = vmatmul.mubr.bf16.vlgmr.msra.gmra.mrb[64].mxu0 %v4642_v7 }
0x1427   :  { %5049 = vmatpush1.bf16.msra.mxu0 %v6509_v14  ;;  %5080 = vmatprep.mubr.bf16.mxu0 %v7027_v35  ;;  %v6561_v14 = vld [vmem:[#allocation22 + $0x88] sm:$0xff]  }
0x1428   :  { %5050 = vmatprep.subr.bf16.mxu0 %v6517_v20  ;;  %v6564_v20 = vld [vmem:[#allocation22 + $0x10] sm:$0xff]  }
0x14f9   :  { %v4741_v8 = vpop.f32.mrb[64].mxu0 }
0x14fa   :  { %v4748_v44 = vadd.f32 %v4741_v8, %v7705_v17  ;;  %v6367_v54 = vpop.f32.mrb[65].mxu0  ;;  %v6515_v17 = vld [vmem:[#allocation20 + $0x28] ss:$16 sps:$4 sm:$0xff]  }
0x14fb   :  { %v4744_v61 = vpop.f32.mrb[66].mxu0  ;;  %5051 = vmatpush1.bf16.msra.mxu0 %v6515_v17  ;;  %v6555_v54 = vld [vmem:[#allocation22 + $0xc0] sm:$0xff]   ;;  %v6566_v17 = vld [vmem:[#allocation22 + $0x58] sm:$0xff]  }
0x14fc   :  { %v4749_v9 = vadd.f32 %v4744_v61, %v7707_v43  ;;  %4752 = vadd.xlane.f32.xlu1 %v4748_v44  ;;  %v6368_v10 = vpop.f32.mrb[67].mxu0  ;;  %5052 = vmatprep.subr.bf16.mxu0 %v6523_v56  ;;  %v6556_v61 = vld [vmem:[#allocation22] sm:$0xff]   ;;  %v6576_v56 = vld [vmem:[#allocation22 + $0x28] sm:$0xff]  }
0x14fd   :  { %v6558_v10 = vld [vmem:[#allocation22 + $0x48] sm:$0xff]  }
0x14fe   :  { %4754 = vadd.xlane.f32.xlu0 %v4749_v9 }
0x14ff   :  { %5053 = vmatpush1.bf16.msra.mxu0 %v6521_v60  ;;  %v6578_v60 = vld [vmem:[#allocation22 + $0x70] sm:$0xff]  }
0x1500   :  { %5054 = vmatprep.subr.bf16.mxu0 %v6529_v63  ;;  %v6580_v63 = vld [vmem:[#allocation22 + $0x30] sm:$0xff]  }
0x1503   :  { %5055 = vmatpush1.bf16.msra.mxu0 %v6527_v37  ;;  %v6582_v37 = vld [vmem:[#allocation22 + $0x78] sm:$0xff]  }
0x1504   :  { %5056 = vmatprep.subr.bf16.mxu0 %v6535_v34  ;;  %v6584_v34 = vld [vmem:[#allocation22 + $0x38] sm:$0xff]  }
0x1507   :  { %5057 = vmatpush1.bf16.msra.mxu0 %v6533_v33  ;;  %v4827_v33 = vsub.s32 0, %v7594_v13 }
0x1508   :  { %5058 = vmatprep.subr.bf16.mxu0 %v6541_v47  ;;  %v4823_v47 = vld [vmem:[%s8083_s13] sm:$0xf] }
0x1509   :  { %v4828_v0 = vrot.slane %v4823_v47, %v4827_v33  ;;  %v4832_v18 = vrot.slane %v4823_v47, %v4831_v16 }
0x150b   :  { %5059 = vmatpush1.bf16.msra.mxu0 %v6539_v45  ;;  %v4839_v45 = vsub.s32 3, %v7594_v13 }
0x150c   :  { %5060 = vmatprep.subr.bf16.mxu0 %v6547_v49  ;;  %v4836_v49 = vrot.slane %v4823_v47, %v4835_v39 }
0x150f   :  { %5061 = vmatpush1.bf16.msra.mxu0 %v6545_v57  ;;  %v4840_v57 = vrot.slane %v4823_v47, %v4839_v45 }
0x1510   :  { %5062 = vmatprep.subr.bf16.mxu0 %v6553_v55 }
0x1513   :  { %5063 = vmatpush1.bf16.msra.mxu0 %v6551_v41 }
0x1514   :  { %5963 = vmatprep.subr.bf16.mxu0 %v6555_v54 }
0x1589   :  { %v4753_v43 = vpop.xlane.xlu1 %4752 }
0x158a   :  { %v4756_v23 = vmul.f32 0.0078125, %v4753_v43  ;;  %v6567_v43 = vld [vmem:[#allocation22 + $0xd8] sm:$0xff]  }
0x158b   :  { %v4755_v24 = vpop.xlane.xlu0 %4754 }
0x158c   :  { %v7973_v25 = vsub.f32 %v4748_v44, %v4756_v23  ;;  %v4757_v26 = vmul.f32 0.0078125, %v4755_v24  ;;  %v6554_v44 = vld [vmem:[#allocation22 + $0x40] sm:$0xff]   ;;  %v6568_v23 = vld [vmem:[#allocation22 + $0x18] sm:$0xff]  }
0x158d   :  { %5941 = vmatprep.subr.bf16.mxu1 %v6554_v44  ;;  %v6569_v24 = vld [vmem:[#allocation22 + $0x98] sm:$0xff]  }
0x158e   :  { %v7975_v28 = vsub.f32 %v4749_v9, %v4757_v26  ;;  %v4760_v53 = vmul.f32 %v7973_v25, %v7973_v25  ;;  %v6557_v9 = vld [vmem:[#allocation22 + $0x80] sm:$0xff]  }
0x158f   :  { %v6571_v26 = vld [vmem:[#allocation22 + $0xe0] sm:$0xff]  }
0x1590   :  { %4762 = vadd.xlane.f32.xlu0 %v4760_v53  ;;  %v4761_v22 = vmul.f32 %v7975_v28, %v7975_v28  ;;  %v6573_v53 = vld [vmem:[#allocation22 + $0xa0] sm:$0xff]  }
0x1592   :  { %4764 = vadd.xlane.f32.xlu1 %v4761_v22  ;;  %v6574_v22 = vld [vmem:[#allocation22 + $0x68] sm:$0xff]  }
0x161d   :  { %v4763_v58 = vpop.xlane.xlu0 %4762 }
0x161e   :  { %v4766_v31 = vmul.f32 0.0078125, %v4763_v58 }
0x161f   :  { %v4765_v27 = vpop.xlane.xlu1 %4764 }
0x1620   :  { %v4768_v36 = vadd.f32 1e-05, %v4766_v31  ;;  %v4767_v32 = vmul.f32 0.0078125, %v4765_v27 }
0x1622   :  { %6654 = vrsqrt.f32 %v4768_v36  ;;  %v4769_v48 = vadd.f32 1e-05, %v4767_v32 }
0x1624   :  { %6656 = vrsqrt.f32 %v4769_v48 }
0x162c   :  { %v6655_v46 = vpop.eup %6654 }
0x162d   :  { %v4772_v19 = vmul.f32 %v6655_v46, %v7973_v25  ;;  %v6570_v25 = vld [vmem:[#allocation22 + $0x60] sm:$0xff]  }
0x162e   :  { %v6657_v1 = vpop.eup %6656 }
0x162f   :  { %v4773_v2 = vmul.f32 %v6657_v1, %v7975_v28  ;;  %v4780_v3 = vmul.f32 %v5702_v50, %v4772_v19  ;;  %v6572_v28 = vld [vmem:[#allocation22 + $0x20] sm:$0xff]  }
0x1631   :  { %v4781_v5 = vmul.f32 %v5702_v50, %v4773_v2  ;;  %v7989_v6 = vadd.f32 %v5703_v4, %v4780_v3 }
0x1633   :  { %v7991_v7 = vadd.f32 %v5703_v4, %v4781_v5 }
0x1635   :  { %v4790_v8 = vpack.c.bf16 %v7991_v7, %v7989_v6 }
0x1637   :  { %5038 = vmatmul.mubr.bf16.vlgmr.msra.gmra.mrb[92].mxu1 %v4790_v8  ;;  %5081 = vmatmul.mubr.bf16.vlgmr.msra.gmra.mrb[68].mxu0 %v4790_v8 }
0x1638   :  { %5942 = vmatpush3.bf16.msra.mxu1 %v6556_v61  ;;  %5964 = vmatpush3.bf16.msra.mxu0 %v6557_v9 }
0x1639   :  { %5943 = vmatprep.subr.bf16.mxu1 %v6558_v10  ;;  %5965 = vmatprep.subr.bf16.mxu0 %v6559_v11 }
0x163c   :  { %5944 = vmatpush3.bf16.msra.mxu1 %v6560_v12  ;;  %5966 = vmatpush3.bf16.msra.mxu0 %v6561_v14 }
0x163d   :  { %5945 = vmatprep.subr.bf16.mxu1 %v6562_v15  ;;  %5967 = vmatprep.subr.bf16.mxu0 %v6563_v52 }
0x1640   :  { %5946 = vmatpush3.bf16.msra.mxu1 %v6564_v20  ;;  %5968 = vmatpush3.bf16.msra.mxu0 %v6565_v21 }
0x1641   :  { %5947 = vmatprep.subr.bf16.mxu1 %v6566_v17  ;;  %5969 = vmatprep.subr.bf16.mxu0 %v6567_v43 }
0x1644   :  { %5948 = vmatpush3.bf16.msra.mxu1 %v6568_v23  ;;  %5970 = vmatpush3.bf16.msra.mxu0 %v6569_v24 }
0x1645   :  { %5949 = vmatprep.subr.bf16.mxu1 %v6570_v25  ;;  %5971 = vmatprep.subr.bf16.mxu0 %v6571_v26 }
0x1648   :  { %5950 = vmatpush3.bf16.msra.mxu1 %v6572_v28  ;;  %5972 = vmatpush3.bf16.msra.mxu0 %v6573_v53 }
0x1649   :  { %5951 = vmatprep.subr.bf16.mxu1 %v6574_v22  ;;  %5973 = vmatprep.subr.bf16.mxu0 %v6575_v51 }
0x164c   :  { %5952 = vmatpush3.bf16.msra.mxu1 %v6576_v56  ;;  %5974 = vmatpush3.bf16.msra.mxu0 %v6577_v38 }
0x164d   :  { %5953 = vmatprep.subr.bf16.mxu1 %v6578_v60  ;;  %5975 = vmatprep.subr.bf16.mxu0 %v6579_v62 }
0x1650   :  { %5954 = vmatpush3.bf16.msra.mxu1 %v6580_v63  ;;  %5976 = vmatpush3.bf16.msra.mxu0 %v6581_v40 }
0x1651   :  { %5955 = vmatprep.subr.bf16.mxu1 %v6582_v37  ;;  %5977 = vmatprep.subr.bf16.mxu0 %v6583_v30 }
0x1654   :  { %5956 = vmatpush3.bf16.msra.mxu1 %v6584_v34  ;;  %5978 = vmatpush3.bf16.msra.mxu0 %v6585_v29 }
0x170a   :  { %v5039_v42 = vpop.f32.mrb[92].mxu1  ;;  %v5082_v59 = vpop.f32.mrb[68].mxu0 }
0x170b   :  { %v8002_v41 = vadd.f32 %v5039_v42, %v4828_v0  ;;  %v8004_v55 = vadd.f32 %v5082_v59, %v4836_v49  ;;  %v5041_v35 = vpop.f32.mrb[93].mxu1  ;;  %v5084_v58 = vpop.f32.mrb[69].mxu0 }
0x170c   :  { %v8006_v31 = vadd.f32 %v5041_v35, %v4832_v18  ;;  %v8008_v27 = vadd.f32 %v5084_v58, %v4840_v57  ;;  %v5043_v36 = vpop.f32.mrb[94].mxu1  ;;  %v5086_v32 = vpop.f32.mrb[70].mxu0 }
0x170d   :  { %v5099_v13 = vmul.f32 0.044715, %v8002_v41  ;;  %v5101_v48 = vmul.f32 0.044715, %v8004_v55  ;;  %v5044_v46 = vadd.f32 %v5043_v36, %v4828_v0  ;;  %v5087_v50 = vadd.f32 %v5086_v32, %v4836_v49  ;;  %v5045_v19 = vpop.f32.mrb[95].mxu1  ;;  %v5088_v1 = vpop.f32.mrb[71].mxu0 }
0x170e   :  { %v5100_v2 = vmul.f32 0.044715, %v8006_v31  ;;  %v5102_v3 = vmul.f32 0.044715, %v8008_v27  ;;  %v8014_v4 = vadd.f32 %v5045_v19, %v4832_v18  ;;  %v8016_v5 = vadd.f32 %v5088_v1, %v4840_v57 }
0x170f   :  { %v5107_v8 = vmul.f32 %v5099_v13, %v8002_v41  ;;  %v5109_v44 = vmul.f32 %v5101_v48, %v8004_v55  ;;  %v5103_v54 = vmul.f32 0.044715, %v5044_v46  ;;  %v5105_v61 = vmul.f32 0.044715, %v5087_v50 }
0x1710   :  { %v5108_v9 = vmul.f32 %v5100_v2, %v8006_v31  ;;  %v5110_v10 = vmul.f32 %v5102_v3, %v8008_v27  ;;  %v5104_v11 = vmul.f32 0.044715, %v8014_v4  ;;  %v5106_v12 = vmul.f32 0.044715, %v8016_v5 }
0x1711   :  { %v5115_v14 = vmul.f32 %v5107_v8, %v8002_v41  ;;  %v5117_v15 = vmul.f32 %v5109_v44, %v8004_v55  ;;  %v5111_v52 = vmul.f32 %v5103_v54, %v5044_v46  ;;  %v5113_v20 = vmul.f32 %v5105_v61, %v5087_v50 }
0x1712   :  { %v5116_v21 = vmul.f32 %v5108_v9, %v8006_v31  ;;  %v5118_v17 = vmul.f32 %v5110_v10, %v8008_v27  ;;  %v5112_v43 = vmul.f32 %v5104_v11, %v8014_v4  ;;  %v5114_v23 = vmul.f32 %v5106_v12, %v8016_v5 }
0x1713   :  { %v5123_v24 = vadd.f32 %v5115_v14, %v8002_v41  ;;  %v5125_v25 = vadd.f32 %v5117_v15, %v8004_v55  ;;  %v5119_v26 = vmul.f32 %v5111_v52, %v5044_v46  ;;  %v5121_v28 = vmul.f32 %v5113_v20, %v5087_v50 }
0x1714   :  { %v5120_v53 = vmul.f32 %v5112_v43, %v8014_v4  ;;  %v5122_v22 = vmul.f32 %v5114_v23, %v8016_v5  ;;  %v5124_v62 = vadd.f32 %v5116_v21, %v8006_v31  ;;  %v5126_v30 = vadd.f32 %v5118_v17, %v8008_v27 }
0x1715   :  { %v5131_v51 = vmul.f32 0.7978846, %v5123_v24  ;;  %v5133_v56 = vmul.f32 0.7978846, %v5125_v25  ;;  %v5127_v38 = vadd.f32 %v5119_v26, %v5044_v46  ;;  %v5129_v60 = vadd.f32 %v5121_v28, %v5087_v50 }
0x1716   :  { %v5128_v63 = vadd.f32 %v5120_v53, %v8014_v4  ;;  %v5132_v34 = vmul.f32 0.7978846, %v5124_v62  ;;  %v5130_v33 = vadd.f32 %v5122_v22, %v8016_v5  ;;  %v5134_v39 = vmul.f32 0.7978846, %v5126_v30 }
0x1717   :  { %6658 = vtanh.f32 %v5131_v51  ;;  %v5135_v40 = vmul.f32 0.7978846, %v5127_v38  ;;  %v5137_v37 = vmul.f32 0.7978846, %v5129_v60  ;;  %v5091_v42 = vmul.f32 0.5, %v8002_v41 }
0x1718   :  { %6660 = vtanh.f32 %v5133_v56  ;;  %v5136_v29 = vmul.f32 0.7978846, %v5128_v63  ;;  %v5138_v47 = vmul.f32 0.7978846, %v5130_v33  ;;  %v5095_v59 = vmul.f32 0.5, %v5044_v46 }
0x1719   :  { %6662 = vtanh.f32 %v5135_v40  ;;  %v5093_v36 = vmul.f32 0.5, %v8004_v55  ;;  %v5097_v32 = vmul.f32 0.5, %v5087_v50  ;;  %v5092_v19 = vmul.f32 0.5, %v8006_v31 }
0x171a   :  { %6664 = vtanh.f32 %v5137_v37  ;;  %v5096_v44 = vmul.f32 0.5, %v8014_v4  ;;  %v5094_v46 = vmul.f32 0.5, %v8008_v27  ;;  %v5098_v10 = vmul.f32 0.5, %v8016_v5  ;;  %v5736_v27 = vld [vmem:[%s8085_s15] ss:$0 sm:$0xff] }
0x171b   :  { %6666 = vtanh.f32 %v5132_v34 }
0x171c   :  { %6668 = vtanh.f32 %v5136_v29 }
0x171d   :  { %6670 = vtanh.f32 %v5134_v39 }
0x171e   :  { %6672 = vtanh.f32 %v5138_v47 }
0x1721   :  { %v6659_v16 = vpop.eup %6658 }
0x1722   :  { %v6661_v45 = vpop.eup %6660  ;;  %v5147_v0 = vadd.f32 1.0, %v6659_v16 }
0x1723   :  { %v6663_v49 = vpop.eup %6662  ;;  %v5149_v18 = vadd.f32 1.0, %v6661_v45 }
0x1724   :  { %v6665_v57 = vpop.eup %6664  ;;  %v5151_v35 = vadd.f32 1.0, %v6663_v49  ;;  %v5155_v2 = vmul.f32 %v5147_v0, %v5091_v42  ;;  %v5769_v42 = vld [vmem:[%s8124_s26] ss:$0 sm:$0xff] }
0x1725   :  { %v6667_v58 = vpop.eup %6666  ;;  %v5153_v13 = vadd.f32 1.0, %v6665_v57  ;;  %v5157_v61 = vmul.f32 %v5149_v18, %v5093_v36 }
0x1726   :  { %v6669_v48 = vpop.eup %6668  ;;  %v5148_v1 = vadd.f32 1.0, %v6667_v58  ;;  %v5159_v3 = vmul.f32 %v5151_v35, %v5095_v59  ;;  %v5770_v58 = vld [vmem:[%s8125_s10] ss:$0 sm:$0xff] }
0x1727   :  { %v6671_v8 = vpop.eup %6670  ;;  %v5152_v54 = vadd.f32 1.0, %v6669_v48  ;;  %v5161_v9 = vmul.f32 %v5153_v13, %v5097_v32 }
0x1728   :  { %v6673_v41 = vpop.eup %6672  ;;  %v5150_v55 = vadd.f32 1.0, %v6671_v8  ;;  %v5163_v50 = vpack.c.bf16 %v5159_v3, %v5155_v2  ;;  %v5156_v11 = vmul.f32 %v5148_v1, %v5092_v19 }
0x1729   :  { %v5160_v12 = vmul.f32 %v5152_v54, %v5096_v44  ;;  %v5154_v14 = vadd.f32 1.0, %v6673_v41  ;;  %v5165_v31 = vpack.c.bf16 %v5161_v9, %v5157_v61 }
0x172a   :  { %v5158_v52 = vmul.f32 %v5150_v55, %v5094_v46 }
0x172b   :  { %v5164_v15 = vpack.c.bf16 %v5160_v12, %v5156_v11  ;;  %v5162_v20 = vmul.f32 %v5154_v14, %v5098_v10 }
0x172d   :  { %5462 = vmatprep.mubr.bf16.mxu1 %v5164_v15  ;;  %v5166_v21 = vpack.c.bf16 %v5162_v20, %v5158_v52 }
0x172e   :  { %5463 = vmatmul.mubr.bf16.vlgmr.msra.gmra.mrb[96].mxu1 %v5163_v50 }
0x172f   :  { %5503 = vmatprep.mubr.bf16.mxu0 %v5166_v21 }
0x1730   :  { %5504 = vmatmul.mubr.bf16.vlgmr.msra.gmra.mrb[72].mxu0 %v5165_v31 }
0x1801   :  { %v5957_v4 = vpop.f32.mrb[96].mxu1 }
0x1802   :  { %v5958_v5 = vpop.f32.mrb[97].mxu1 }
0x1803   :  { %v5979_v17 = vpop.f32.mrb[72].mxu0  ;;  %v5959_v43 = vadd.f32 %v5958_v5, %v5957_v4  ;;  %v5960_v23 = vpop.f32.mrb[98].mxu1 }
0x1804   :  { %v5980_v24 = vpop.f32.mrb[73].mxu0  ;;  %v5961_v25 = vpop.f32.mrb[99].mxu1 }
0x1805   :  { %v5465_v26 = vadd.f32 %v5959_v43, %v5736_v27  ;;  %v5981_v28 = vadd.f32 %v5980_v24, %v5979_v17  ;;  %v5982_v53 = vpop.f32.mrb[74].mxu0  ;;  %v5962_v22 = vadd.f32 %v5961_v25, %v5960_v23 }
0x1806   :  { %v5983_v51 = vpop.f32.mrb[75].mxu0 }
0x1807   :  { %v5506_v56 = vadd.f32 %v5981_v28, %v5465_v26  ;;  %v5468_v38 = vadd.f32 %v5962_v22, %v5736_v27  ;;  %v5984_v60 = vadd.f32 %v5983_v51, %v5982_v53 }
0x1809   :  { %v5509_v62 = vadd.f32 %v5984_v60, %v5468_v38  ;;  %v5512_v63 = vadd.f32 %v5506_v56, %v7989_v6 }
0x180b   :  { %5516 = vadd.xlane.f32.xlu0 %v5512_v63  ;;  %v5513_v40 = vadd.f32 %v5509_v62, %v7991_v7 }
0x180d   :  { %5518 = vadd.xlane.f32.xlu1 %v5513_v40 }
0x1898   :  { %v5517_v37 = vpop.xlane.xlu0 %5516 }
0x1899   :  { %v5520_v30 = vmul.f32 0.0078125, %v5517_v37 }
0x189a   :  { %v5519_v34 = vpop.xlane.xlu1 %5518 }
0x189b   :  { %v5522_v29 = vsub.f32 %v5512_v63, %v5520_v30  ;;  %v5521_v33 = vmul.f32 0.0078125, %v5519_v34 }
0x189d   :  { %v5523_v39 = vsub.f32 %v5513_v40, %v5521_v33  ;;  %v5524_v47 = vmul.f32 %v5522_v29, %v5522_v29 }
0x189f   :  { %5526 = vadd.xlane.f32.xlu0 %v5524_v47  ;;  %v5525_v16 = vmul.f32 %v5523_v39, %v5523_v39 }
0x18a1   :  { %5528 = vadd.xlane.f32.xlu1 %v5525_v16 }
0x192c   :  { %v5527_v45 = vpop.xlane.xlu0 %5526 }
0x192d   :  { %v5530_v0 = vmul.f32 0.0078125, %v5527_v45 }
0x192e   :  { %v5529_v49 = vpop.xlane.xlu1 %5528 }
0x192f   :  { %v5532_v18 = vadd.f32 1e-05, %v5530_v0  ;;  %v5531_v57 = vmul.f32 0.0078125, %v5529_v49 }
0x1931   :  { %6674 = vrsqrt.f32 %v5532_v18  ;;  %v5533_v6 = vadd.f32 1e-05, %v5531_v57 }
0x1933   :  { %6676 = vrsqrt.f32 %v5533_v6 }
0x193b   :  { %v6675_v7 = vpop.eup %6674 }
0x193c   :  { %v5536_v59 = vmul.f32 %v6675_v7, %v5522_v29 }
0x193d   :  { %v6677_v35 = vpop.eup %6676 }
0x193e   :  { %v5537_v36 = vmul.f32 %v6677_v35, %v5523_v39  ;;  %v5544_v32 = vmul.f32 %v5769_v42, %v5536_v59 }
0x1940   :  { %v5545_v13 = vmul.f32 %v5769_v42, %v5537_v36  ;;  %v5552_v48 = vadd.f32 %v5770_v58, %v5544_v32 }
0x1942   :  { %v5553_v19 = vadd.f32 %v5770_v58, %v5545_v13  ;;  %5554 = vst [vmem:[#allocation23] sm:$0xff] %v5552_v48 }
0x1944   :  { %5555 = vst [vmem:[#allocation23 + $0x8] sm:$0xff] %v5553_v19 }
0x1945   :  { %6975 = shalt.err (!%p6972_p10)
}
0x1946   :  { %s8126_s11 = sld [smem:[#allocation41_spill]] }
0x194c   :  { %s6976_s29 = scalar_lea.hbm %s8126_s11, 256 }
0x194d   :  { %p6977_p11 = scmp.ne.s32.totalorder %s8126_s11, %s6976_s29  ;;  %p6980_p12 = scmp.lt.u32.totalorder %s6976_s29, %s8126_s11 }
0x194f   :  { %p6982_p13 = pnand %p6980_p12, %p6977_p11 }
0x1951   :  { %6985 = shalt.err (!%p6982_p13)
}
0x1952   :  { %5567 = dma.vmem_to_hbm [thread:$0]  %s5562_s5, 256, %s8126_s11, [#allocation4], %s8120_s27, %s8120_s27, %s8119_s1  }
0x1953   :  { %7000 = dma.done.wait [#allocation4], 256  }
0x1954   :  { %7001 = vsyncadd [#allocation4], 4294967040 }
0x1955   :  { %5571 = vsyncpa [#allocation3], 1 }
0x1956   :  { %5572 = vsyncpa [#allocation6], 1 }
0x1957   :  { %5573 = vsyncpa [#allocation9], 1 }
0x1958   :  { %5574 = vsyncpa [#allocation12], 1 }
0x1959   :  { %5575 = vsyncpa [#allocation15], 1 }
0x195a   :  { %5576 = vsyncpa [#allocation18], 1 }
0x195b   :  { %5577 = vsyncpa [#allocation21], 1 }
0x195c   :  { %5578 = vsyncpa [#allocation4], 1 }

// kernel: tpu_custom_call.1
= control target key start
LH: loop header
LB: loop body
LE: loop exit
PB: predicated region body
PF: predicated region fallthrough
CT: control target
= control target key end

     0   :  { %s8070_s0 = inlined_call_operand.hbm [shape: f32[2,8,128], index: 0, kind: input, shape index: {}]   ;;  %s8071_s1 = inlined_call_operand.hbm [shape: f32[2,8,128], index: 1, kind: input, shape index: {}]   ;;  %s8072_s2 = inlined_call_operand.hbm [shape: f32[2,16,128], index: 2, kind: input, shape index: {}]   ;;  %s8073_s3 = inlined_call_operand.hbm [shape: bf16[128,128], index: 3, kind: input, shape index: {}]   ;;  %s8074_s4 = inlined_call_operand.hbm [shape: bf16[128,128], index: 4, kind: input, shape index: {}]   ;;  %s8075_s5 = inlined_call_operand.hbm [shape: bf16[128,128], index: 5, kind: input, shape index: {}]   ;;  %s8076_s6 = inlined_call_operand.hbm [shape: bf16[128,128], index: 6, kind: input, shape index: {}]   ;;  %s8077_s7 = inlined_call_operand.vmem [shape: f32[1,128], index: 7, kind: input, shape index: {}]   ;;  %s8078_s8 = inlined_call_operand.hbm [shape: bf16[128,128], index: 8, kind: input, shape index: {}]   ;;  %s8079_s9 = inlined_call_operand.hbm [shape: bf16[128,128], index: 9, kind: input, shape index: {}]   ;;  %s8080_s10 = inlined_call_operand.hbm [shape: bf16[128,128], index: 10, kind: input, shape index: {}]   ;;  %s8081_s11 = inlined_call_operand.hbm [shape: bf16[128,128], index: 11, kind: input, shape index: {}]   ;;  %s8082_s12 = inlined_call_operand.hbm [shape: bf16[128,512], index: 12, kind: input, shape index: {}]   ;;  %s8083_s13 = inlined_call_operand.vmem [shape: f32[1,512], index: 13, kind: input, shape index: {}]   ;;  %s8084_s14 = inlined_call_operand.hbm [shape: bf16[512,128], index: 14, kind: input, shape index: {}]   ;;  %s8085_s15 = inlined_call_operand.vmem [shape: f32[1,128], index: 15, kind: input, shape index: {}]   ;;  %s8086_s16 = inlined_call_operand.vmem [shape: f32[1,128], index: 16, kind: input, shape index: {}]   ;;  %s8087_s17 = inlined_call_operand.vmem [shape: f32[1,128], index: 17, kind: input, shape index: {}]   ;;  %s8088_s18 = inlined_call_operand.vmem [shape: f32[1,128], index: 18, kind: input, shape index: {}]   ;;  %s8089_s19 = inlined_call_operand.vmem [shape: f32[1,128], index: 19, kind: input, shape index: {}]   ;;  %s8090_s20 = inlined_call_operand.vmem [shape: f32[1,128], index: 20, kind: input, shape index: {}]   ;;  %s8091_s21 = inlined_call_operand.vmem [shape: f32[1,128], index: 21, kind: input, shape index: {}]   ;;  %s8092_s22 = inlined_call_operand.hbm [shape: f32[2,8,128], index: 22, kind: output, shape index: {}]  }
   0x1   :  { %8105 = sst [smem:[#allocation32_spill]] %s8070_s0 }
   0x2   :  { %8106 = sst [smem:[#allocation33_spill]] %s8071_s1 }
   0x3   :  { %8107 = sst [smem:[#allocation34_spill]] %s8072_s2 }
   0x4   :  { %8108 = sst [smem:[#allocation35_spill]] %s8073_s3 }
   0x5   :  { %8109 = sst [smem:[#allocation36_spill]] %s8074_s4 }
   0x6   :  { %8110 = sst [smem:[#allocation37_spill]] %s8075_s5 }
   0x7   :  { %8111 = sst [smem:[#allocation38_spill]] %s8076_s6 }
   0x8   :  { %8112 = sst [smem:[#allocation39_spill]] %s8090_s20 }
   0x9   :  { %8113 = sst [smem:[#allocation40_spill]] %s8091_s21 }
   0xa   :  { %8114 = sst [smem:[#allocation41_spill]] %s8092_s22 }
   0xb   :  { %27 = vsyncpa [#allocation3], 0 }
   0xc   :  { %28 = vsyncpa [#allocation6], 0 }
   0xd   :  { %29 = vsyncpa [#allocation9], 0 }
   0xe   :  { %30 = vsyncpa [#allocation12], 0 }
   0xf   :  { %31 = vsyncpa [#allocation15], 0 }
  0x10   :  { %32 = vsyncpa [#allocation18], 0 }
  0x11   :  { %33 = vsyncpa [#allocation21], 0 }
  0x12   :  { %34 = vsyncpa [#allocation4], 0  ;;  %s7002_s3 = smov [#allocation5]   ;;  %s7003_s29 = smov [#allocation8]  }
  0x13   :  { %s52_s28 = sshll.u32 %s7002_s3, 4  ;;  %s76_s30 = sshll.u32 %s7003_s29, 4  ;;  %s53_s28 = int_to_ptr.vmem [resolvable:$true] %s52_s28  ;;  %s7144_s30 = int_to_ptr.vmem [resolvable:$true] %s76_s30 }
  0x14   :  { %s8115_s23 = sld [smem:[#allocation33_spill]] }
  0x1a   :  { %s6678_s1 = scalar_lea.hbm %s8115_s23, 256 }
  0x1b   :  { %p6679_p0 = scmp.ne.s32.totalorder %s8115_s23, %s6678_s1  ;;  %p6682_p1 = scmp.lt.u32.totalorder %s6678_s1, %s8115_s23 }
  0x1d   :  { %p6684_p2 = pnand %p6682_p1, %p6679_p0 }
  0x1f   :  { %6687 = shalt.err (!%p6684_p2)
}
  0x20   :  { %s6688_s26 = scalar_lea.vmem %s53_s28, 256  ;;  %p6693_p4 = scmp.lt.s32.totalorder %s53_s28, %s53_s28 }
  0x21   :  { %p6689_p3 = scmp.ne.s32.totalorder %s53_s28, %s6688_s26  ;;  %p6694_p5 = scmp.lt.s32.totalorder %s6688_s26, %s6688_s26 }
  0x23   :  { %p6695_p6 = por %p6694_p5, %p6693_p4 }
  0x25   :  { %p6696_p7 = pnand %p6695_p6, %p6689_p3 }
  0x27   :  { %6699 = shalt.err (!%p6696_p7)
}
  0x28   :  { %s8101_s2 = smov 128   ;;  %s8103_s27 = smov 8  }
  0x29   :  { %58 = dma.hbm_to_vmem [thread:$0]  %s8115_s23, 256, %s53_s28, [#allocation6], %s8101_s2, %s8101_s2, %s8103_s27  }
  0x2a   :  { %s8116_s1 = sld [smem:[#allocation35_spill]] }
  0x30   :  { %s6700_s5 = scalar_lea.hbm %s8116_s1, 1024 }
  0x31   :  { %p6701_p8 = scmp.ne.s32.totalorder %s8116_s1, %s6700_s5  ;;  %p6704_p9 = scmp.lt.u32.totalorder %s6700_s5, %s8116_s1 }
  0x33   :  { %p6706_p10 = pnand %p6704_p9, %p6701_p8 }
  0x35   :  { %6709 = shalt.err (!%p6706_p10)
}
  0x36   :  { %s6710_s22 = scalar_lea.vmem %s7144_s30, 1024  ;;  %p6715_p12 = scmp.lt.s32.totalorder %s7144_s30, %s7144_s30 }
  0x37   :  { %p6711_p11 = scmp.ne.s32.totalorder %s7144_s30, %s6710_s22  ;;  %p6716_p13 = scmp.lt.s32.totalorder %s6710_s22, %s6710_s22 }
  0x39   :  { %p6717_p0 = por %p6716_p13, %p6715_p12 }
  0x3b   :  { %p6718_p1 = pnand %p6717_p0, %p6711_p11 }
  0x3d   :  { %6721 = shalt.err (!%p6718_p1)
}
  0x3e   :  { %s7006_s28 = smov 64   ;;  %s7007_s23 = smov 4  }
  0x3f   :  { %82 = dma.hbm_to_vmem [thread:$0]  %s8116_s1, 1024, %s7144_s30, [#allocation9], %s7006_s28, %s7006_s28, %s7007_s23  }
  0x40   :  { %s7008_s4 = smov [#allocation11]   ;;  %s7009_s5 = smov [#allocation14]  }
  0x41   :  { %s100_s0 = sshll.u32 %s7008_s4, 4  ;;  %s126_s24 = sshll.u32 %s7009_s5, 4  ;;  %s101_s0 = int_to_ptr.vmem [resolvable:$true] %s100_s0  ;;  %s7181_s24 = int_to_ptr.vmem [resolvable:$true] %s126_s24 }
  0x42   :  { %s8117_s25 = sld [smem:[#allocation37_spill]] }
  0x48   :  { %s6722_s26 = scalar_lea.hbm %s8117_s25, 1024 }
  0x49   :  { %p6723_p2 = scmp.ne.s32.totalorder %s8117_s25, %s6722_s26  ;;  %p6726_p3 = scmp.lt.u32.totalorder %s6722_s26, %s8117_s25 }
  0x4b   :  { %p6728_p4 = pnand %p6726_p3, %p6723_p2 }
  0x4d   :  { %6731 = shalt.err (!%p6728_p4)
}
  0x4e   :  { %s6732_s30 = scalar_lea.vmem %s101_s0, 1024  ;;  %p6737_p6 = scmp.lt.s32.totalorder %s101_s0, %s101_s0 }
  0x4f   :  { %p6733_p5 = scmp.ne.s32.totalorder %s101_s0, %s6732_s30  ;;  %p6738_p7 = scmp.lt.s32.totalorder %s6732_s30, %s6732_s30 }
  0x51   :  { %p6739_p8 = por %p6738_p7, %p6737_p6 }
  0x53   :  { %p6740_p9 = pnand %p6739_p8, %p6733_p5 }
  0x55   :  { %6743 = shalt.err (!%p6740_p9)
}
  0x56   :  { %106 = dma.hbm_to_vmem [thread:$0]  %s8117_s25, 1024, %s101_s0, [#allocation12], %s7006_s28, %s7006_s28, %s7007_s23  }
  0x57   :  { %s6744_s20 = scalar_lea.hbm %s8078_s8, 1024 }
  0x58   :  { %p6745_p10 = scmp.ne.s32.totalorder %s8078_s8, %s6744_s20  ;;  %p6748_p11 = scmp.lt.u32.totalorder %s6744_s20, %s8078_s8 }
  0x5a   :  { %p6750_p12 = pnand %p6748_p11, %p6745_p10 }
  0x5c   :  { %6753 = shalt.err (!%p6750_p12)
}
  0x5d   :  { %s6754_s22 = scalar_lea.vmem %s7181_s24, 1024  ;;  %p6759_p0 = scmp.lt.s32.totalorder %s7181_s24, %s7181_s24 }
  0x5e   :  { %p6755_p13 = scmp.ne.s32.totalorder %s7181_s24, %s6754_s22  ;;  %p6760_p1 = scmp.lt.s32.totalorder %s6754_s22, %s6754_s22 }
  0x60   :  { %p6761_p2 = por %p6760_p1, %p6759_p0 }
  0x62   :  { %p6762_p3 = pnand %p6761_p2, %p6755_p13 }
  0x64   :  { %6765 = shalt.err (!%p6762_p3)
}
  0x65   :  { %132 = dma.hbm_to_vmem [thread:$0]  %s8078_s8, 1024, %s7181_s24, [#allocation15], %s7006_s28, %s7006_s28, %s7007_s23  }
  0x66   :  { %s7010_s25 = smov [#allocation17]   ;;  %s7011_s30 = smov [#allocation20]  }
  0x67   :  { %s150_s26 = sshll.u32 %s7010_s25, 4  ;;  %s174_s1 = sshll.u32 %s7011_s30, 4  ;;  %s151_s26 = int_to_ptr.vmem [resolvable:$true] %s150_s26  ;;  %s7218_s1 = int_to_ptr.vmem [resolvable:$true] %s174_s1 }
  0x68   :  { %s6766_s27 = scalar_lea.hbm %s8080_s10, 1024 }
  0x69   :  { %p6767_p4 = scmp.ne.s32.totalorder %s8080_s10, %s6766_s27  ;;  %p6770_p5 = scmp.lt.u32.totalorder %s6766_s27, %s8080_s10 }
  0x6b   :  { %p6772_p6 = pnand %p6770_p5, %p6767_p4 }
  0x6d   :  { %6775 = shalt.err (!%p6772_p6)
}
  0x6e   :  { %s6776_s8 = scalar_lea.vmem %s151_s26, 1024  ;;  %p6781_p8 = scmp.lt.s32.totalorder %s151_s26, %s151_s26 }
  0x6f   :  { %p6777_p7 = scmp.ne.s32.totalorder %s151_s26, %s6776_s8  ;;  %p6782_p9 = scmp.lt.s32.totalorder %s6776_s8, %s6776_s8 }
  0x71   :  { %p6783_p10 = por %p6782_p9, %p6781_p8 }
  0x73   :  { %p6784_p11 = pnand %p6783_p10, %p6777_p7 }
  0x75   :  { %6787 = shalt.err (!%p6784_p11)
}
  0x76   :  { %156 = dma.hbm_to_vmem [thread:$0]  %s8080_s10, 1024, %s151_s26, [#allocation18], %s7006_s28, %s7006_s28, %s7007_s23  }
  0x77   :  { %s6788_s6 = scalar_lea.hbm %s8082_s12, 4096 }
  0x78   :  { %p6789_p12 = scmp.ne.s32.totalorder %s8082_s12, %s6788_s6  ;;  %p6792_p13 = scmp.lt.u32.totalorder %s6788_s6, %s8082_s12 }
  0x7a   :  { %p6794_p0 = pnand %p6792_p13, %p6789_p12 }
  0x7c   :  { %6797 = shalt.err (!%p6794_p0)
}
  0x7d   :  { %s6798_s27 = scalar_lea.vmem %s7218_s1, 4096  ;;  %p6803_p2 = scmp.lt.s32.totalorder %s7218_s1, %s7218_s1 }
  0x7e   :  { %p6799_p1 = scmp.ne.s32.totalorder %s7218_s1, %s6798_s27  ;;  %p6804_p3 = scmp.lt.s32.totalorder %s6798_s27, %s6798_s27 }
  0x80   :  { %p6805_p4 = por %p6804_p3, %p6803_p2 }
  0x82   :  { %p6806_p5 = pnand %p6805_p4, %p6799_p1 }
  0x84   :  { %6809 = shalt.err (!%p6806_p5)
}
  0x85   :  { %s7012_s10 = smov 256   ;;  %s7013_s26 = smov 16  }
  0x86   :  { %180 = dma.hbm_to_vmem [thread:$0]  %s8082_s12, 4096, %s7218_s1, [#allocation21], %s7012_s10, %s7012_s10, %s7013_s26  }
  0x87   :  { %s7014_s29 = smov [#allocation2]   ;;  %s7015_s8 = smov [#allocation7]  }
  0x88   :  { %s40_s4 = sshll.u32 %s7014_s29, 4  ;;  %s64_s24 = sshll.u32 %s7015_s8, 4  ;;  %s41_s4 = int_to_ptr.vmem [resolvable:$true] %s40_s4  ;;  %s7252_s24 = int_to_ptr.vmem [resolvable:$true] %s64_s24 }
  0x89   :  { %s8118_s0 = sld [smem:[#allocation32_spill]] }
  0x8f   :  { %s6810_s6 = scalar_lea.hbm %s8118_s0, 256 }
  0x90   :  { %p6811_p6 = scmp.ne.s32.totalorder %s8118_s0, %s6810_s6  ;;  %p6814_p7 = scmp.lt.u32.totalorder %s6810_s6, %s8118_s0 }
  0x92   :  { %p6816_p8 = pnand %p6814_p7, %p6811_p6 }
  0x94   :  { %6819 = shalt.err (!%p6816_p8)
}
  0x95   :  { %s6820_s12 = scalar_lea.vmem %s41_s4, 256  ;;  %p6825_p10 = scmp.lt.s32.totalorder %s41_s4, %s41_s4 }
  0x96   :  { %p6821_p9 = scmp.ne.s32.totalorder %s41_s4, %s6820_s12  ;;  %p6826_p11 = scmp.lt.s32.totalorder %s6820_s12, %s6820_s12 }
  0x98   :  { %p6827_p12 = por %p6826_p11, %p6825_p10 }
  0x9a   :  { %p6828_p13 = pnand %p6827_p12, %p6821_p9 }
  0x9c   :  { %6831 = shalt.err (!%p6828_p13)
}
  0x9d   :  { %s8119_s1 = smov 8   ;;  %s8120_s27 = smov 128  }
  0x9e   :  { %46 = dma.hbm_to_vmem [thread:$0]  %s8118_s0, 256, %s41_s4, [#allocation3], %s8120_s27, %s8120_s27, %s8119_s1  }
  0x9f   :  { %s8121_s29 = sld [smem:[#allocation34_spill]] }
  0xa5   :  { %s6832_s8 = scalar_lea.hbm %s8121_s29, 512 }
  0xa6   :  { %p6833_p0 = scmp.ne.s32.totalorder %s8121_s29, %s6832_s8  ;;  %p6836_p1 = scmp.lt.u32.totalorder %s6832_s8, %s8121_s29 }
  0xa8   :  { %p6838_p2 = pnand %p6836_p1, %p6833_p0 }
  0xaa   :  { %6841 = shalt.err (!%p6838_p2)
}
  0xab   :  { %s6842_s30 = scalar_lea.vmem %s7252_s24, 512  ;;  %p6847_p4 = scmp.lt.s32.totalorder %s7252_s24, %s7252_s24 }
  0xac   :  { %p6843_p3 = scmp.ne.s32.totalorder %s7252_s24, %s6842_s30  ;;  %p6848_p5 = scmp.lt.s32.totalorder %s6842_s30, %s6842_s30 }
  0xae   :  { %p6849_p6 = por %p6848_p5, %p6847_p4 }
  0xb0   :  { %p6850_p7 = pnand %p6849_p6, %p6843_p3 }
  0xb2   :  { %6853 = shalt.err (!%p6850_p7)
}
  0xb3   :  { %70 = dma.hbm_to_vmem [thread:$0]  %s8121_s29, 512, %s7252_s24, [#allocation6], %s8120_s27, %s8120_s27, %s8119_s1  }
  0xb4   :  { %s7016_s3 = smov [#allocation10]   ;;  %s7017_s12 = smov [#allocation13]  }
  0xb5   :  { %s88_s2 = sshll.u32 %s7016_s3, 4  ;;  %s112_s10 = sshll.u32 %s7017_s12, 4  ;;  %s89_s2 = int_to_ptr.vmem [resolvable:$true] %s88_s2  ;;  %s7289_s10 = int_to_ptr.vmem [resolvable:$true] %s112_s10 }
  0xb6   :  { %s8122_s21 = sld [smem:[#allocation36_spill]] }
  0xbc   :  { %s6854_s8 = scalar_lea.hbm %s8122_s21, 1024 }
  0xbd   :  { %p6855_p8 = scmp.ne.s32.totalorder %s8122_s21, %s6854_s8  ;;  %p6858_p9 = scmp.lt.u32.totalorder %s6854_s8, %s8122_s21 }
  0xbf   :  { %p6860_p10 = pnand %p6858_p9, %p6855_p8 }
  0xc1   :  { %6863 = shalt.err (!%p6860_p10)
}
  0xc2   :  { %s6864_s24 = scalar_lea.vmem %s89_s2, 1024  ;;  %p6869_p12 = scmp.lt.s32.totalorder %s89_s2, %s89_s2 }
  0xc3   :  { %p6865_p11 = scmp.ne.s32.totalorder %s89_s2, %s6864_s24  ;;  %p6870_p13 = scmp.lt.s32.totalorder %s6864_s24, %s6864_s24 }
  0xc5   :  { %p6871_p0 = por %p6870_p13, %p6869_p12 }
  0xc7   :  { %p6872_p1 = pnand %p6871_p0, %p6865_p11 }
  0xc9   :  { %6875 = shalt.err (!%p6872_p1)
}
  0xca   :  { %94 = dma.hbm_to_vmem [thread:$0]  %s8122_s21, 1024, %s89_s2, [#allocation9], %s7006_s28, %s7006_s28, %s7007_s23  }
  0xcb   :  { %s8123_s3 = sld [smem:[#allocation38_spill]] }
  0xd1   :  { %s6876_s12 = scalar_lea.hbm %s8123_s3, 1024 }
  0xd2   :  { %p6877_p2 = scmp.ne.s32.totalorder %s8123_s3, %s6876_s12  ;;  %p6880_p3 = scmp.lt.u32.totalorder %s6876_s12, %s8123_s3 }
  0xd4   :  { %p6882_p4 = pnand %p6880_p3, %p6877_p2 }
  0xd6   :  { %6885 = shalt.err (!%p6882_p4)
}
  0xd7   :  { %s6886_s22 = scalar_lea.vmem %s7289_s10, 1024  ;;  %p6891_p6 = scmp.lt.s32.totalorder %s7289_s10, %s7289_s10 }
  0xd8   :  { %p6887_p5 = scmp.ne.s32.totalorder %s7289_s10, %s6886_s22  ;;  %p6892_p7 = scmp.lt.s32.totalorder %s6886_s22, %s6886_s22 }
  0xda   :  { %p6893_p8 = por %p6892_p7, %p6891_p6 }
  0xdc   :  { %p6894_p9 = pnand %p6893_p8, %p6887_p5 }
  0xde   :  { %6897 = shalt.err (!%p6894_p9)
}
  0xdf   :  { %118 = dma.hbm_to_vmem [thread:$0]  %s8123_s3, 1024, %s7289_s10, [#allocation12], %s7006_s28, %s7006_s28, %s7007_s23  }
  0xe0   :  { %s7018_s6 = smov [#allocation16]   ;;  %s7019_s24 = smov [#allocation19]  }
  0xe1   :  { %s138_s25 = sshll.u32 %s7018_s6, 4  ;;  %s162_s29 = sshll.u32 %s7019_s24, 4  ;;  %s139_s25 = int_to_ptr.vmem [resolvable:$true] %s138_s25  ;;  %s7326_s29 = int_to_ptr.vmem [resolvable:$true] %s162_s29 }
  0xe2   :  { %s6898_s0 = scalar_lea.hbm %s8079_s9, 1024 }
  0xe3   :  { %p6899_p10 = scmp.ne.s32.totalorder %s8079_s9, %s6898_s0  ;;  %p6902_p11 = scmp.lt.u32.totalorder %s6898_s0, %s8079_s9 }
  0xe5   :  { %p6904_p12 = pnand %p6902_p11, %p6899_p10 }
  0xe7   :  { %6907 = shalt.err (!%p6904_p12)
}
  0xe8   :  { %s6908_s10 = scalar_lea.vmem %s139_s25, 1024  ;;  %p6913_p0 = scmp.lt.s32.totalorder %s139_s25, %s139_s25 }
  0xe9   :  { %p6909_p13 = scmp.ne.s32.totalorder %s139_s25, %s6908_s10  ;;  %p6914_p1 = scmp.lt.s32.totalorder %s6908_s10, %s6908_s10 }
  0xeb   :  { %p6915_p2 = por %p6914_p1, %p6913_p0 }
  0xed   :  { %p6916_p3 = pnand %p6915_p2, %p6909_p13 }
  0xef   :  { %6919 = shalt.err (!%p6916_p3)
}
  0xf0   :  { %144 = dma.hbm_to_vmem [thread:$0]  %s8079_s9, 1024, %s139_s25, [#allocation15], %s7006_s28, %s7006_s28, %s7007_s23  }
  0xf1   :  { %s6920_s21 = scalar_lea.hbm %s8081_s11, 1024 }
  0xf2   :  { %p6921_p4 = scmp.ne.s32.totalorder %s8081_s11, %s6920_s21  ;;  %p6924_p5 = scmp.lt.u32.totalorder %s6920_s21, %s8081_s11 }
  0xf4   :  { %p6926_p6 = pnand %p6924_p5, %p6921_p4 }
  0xf6   :  { %6929 = shalt.err (!%p6926_p6)
}
  0xf7   :  { %s6930_s0 = scalar_lea.vmem %s7326_s29, 1024  ;;  %p6935_p8 = scmp.lt.s32.totalorder %s7326_s29, %s7326_s29 }
  0xf8   :  { %p6931_p7 = scmp.ne.s32.totalorder %s7326_s29, %s6930_s0  ;;  %p6936_p9 = scmp.lt.s32.totalorder %s6930_s0, %s6930_s0 }
  0xfa   :  { %p6937_p10 = por %p6936_p9, %p6935_p8 }
  0xfc   :  { %p6938_p11 = pnand %p6937_p10, %p6931_p7 }
  0xfe   :  { %6941 = shalt.err (!%p6938_p11)
}
  0xff   :  { %168 = dma.hbm_to_vmem [thread:$0]  %s8081_s11, 1024, %s7326_s29, [#allocation18], %s7006_s28, %s7006_s28, %s7007_s23  }
 0x100   :  { %s7020_s12 = smov [#allocation22]   ;;  %s6942_s10 = scalar_lea.hbm %s8084_s14, 4096 }
 0x101   :  { %s188_s26 = sshll.u32 %s7020_s12, 4  ;;  %p6943_p12 = scmp.ne.s32.totalorder %s8084_s14, %s6942_s10  ;;  %s189_s26 = int_to_ptr.vmem [resolvable:$true] %s188_s26 }
 0x102   :  { %p6946_p13 = scmp.lt.u32.totalorder %s6942_s10, %s8084_s14 }
 0x104   :  { %p6948_p0 = pnand %p6946_p13, %p6943_p12 }
 0x106   :  { %6951 = shalt.err (!%p6948_p0)
}
 0x107   :  { %s6952_s21 = scalar_lea.vmem %s189_s26, 4096  ;;  %p6957_p2 = scmp.lt.s32.totalorder %s189_s26, %s189_s26 }
 0x108   :  { %p6953_p1 = scmp.ne.s32.totalorder %s189_s26, %s6952_s21  ;;  %p6958_p3 = scmp.lt.s32.totalorder %s6952_s21, %s6952_s21 }
 0x10a   :  { %p6959_p4 = por %p6958_p3, %p6957_p2 }
 0x10c   :  { %p6960_p5 = pnand %p6959_p4, %p6953_p1 }
 0x10e   :  { %6963 = shalt.err (!%p6960_p5)
}
 0x10f   :  { %194 = dma.hbm_to_vmem [thread:$0]  %s8084_s14, 4096, %s189_s26, [#allocation21], %s7006_s28, %s7006_s28, %s7007_s23  }
 0x110   :  { %6986 = dma.done.wait [#allocation3], 256  }
 0x111   :  { %6987 = vsyncadd [#allocation3], 4294967040 }
 0x112   :  { %6988 = dma.done.wait [#allocation6], 768  }
 0x113   :  { %6989 = vsyncadd [#allocation6], 4294966528 }
 0x114   :  { %6990 = dma.done.wait [#allocation9], 2048  }
 0x115   :  { %6991 = vsyncadd [#allocation9], 4294965248 }
 0x116   :  { %6992 = dma.done.wait [#allocation12], 2048  }
 0x117   :  { %6993 = vsyncadd [#allocation12], 4294965248 }
 0x118   :  { %6994 = dma.done.wait [#allocation15], 2048  }
 0x119   :  { %6995 = vsyncadd [#allocation15], 4294965248 }
 0x11a   :  { %6996 = dma.done.wait [#allocation18], 2048  }
 0x11b   :  { %6997 = vsyncadd [#allocation18], 4294965248 }
 0x11c   :  { %6998 = dma.done.wait [#allocation21], 8192  }
 0x11d   :  { %6999 = vsyncadd [#allocation21], 4294959104  ;;  %v7021_v0 = vmov 0.0   ;;  %vm7022_vm0 = vmmov 0   ;;  %v6442_v1 = vld [vmem:[#allocation10] sm:$0xff]   ;;  %v6443_v2 = vld [vmem:[#allocation10 + $0x8] sm:$0xff]  }
 0x11e   :  { %6005 = vmatprep.subr.bf16.mxu1 %v7021_v0  ;;  %6021 = vmatprep.mubr.msk.bf16.mxu1 %vm7022_vm0, %v7021_v0  ;;  %v6444_v3 = vld [vmem:[#allocation10 + $0x10] sm:$0xff]   ;;  %v6445_v4 = vld [vmem:[#allocation10 + $0x18] sm:$0xff]   ;;  %v6450_v5 = vld [vmem:[#allocation8] sm:$0xff]   ;;  %s7023_s14 = smov 32   ;;  %s7024_s23 = smov 96   ;;  %vm669_vm1 = vcmask 261120  }
 0x11f   :  { %5985 = vmatprep.subr.bf16.mxu0 %v7021_v0  ;;  %6001 = vmatprep.mubr.msk.bf16.mxu0 %vm7022_vm0, %v7021_v0  ;;  %v6451_v6 = vld [vmem:[#allocation8 + $0x8] sm:$0xff]   ;;  %v6446_v7 = vld [vmem:[#allocation10 + $0x20] sm:$0xff]   ;;  %v6452_v8 = vld [vmem:[#allocation8 + $0x10] sm:$0xff]   ;;  %vm846_vm2 = vcmask 64512   ;;  %vm1468_vm3 = vcmask 523264   ;;  %vm1470_vm4 = vcmask 785408  }
 0x120   :  { %6006 = vmatpush3.bf16.msra.mxu1 %v6442_v1  ;;  %5986 = vmatpush3.bf16.msra.mxu0 %v6450_v5  ;;  %v6447_v9 = vld [vmem:[#allocation10 + $0x28] sm:$0xff]   ;;  %v6453_v10 = vld [vmem:[#allocation8 + $0x18] sm:$0xff]   ;;  %v6448_v11 = vld [vmem:[#allocation10 + $0x30] sm:$0xff]   ;;  %vm3125_vm5 = vcmask 130048   ;;  %s8124_s26 = sld [smem:[#allocation39_spill]]  ;;  %s8125_s10 = sld [smem:[#allocation40_spill]] }
 0x121   :  { %6007 = vmatprep.subr.bf16.mxu1 %v7021_v0  ;;  %5987 = vmatprep.subr.bf16.mxu0 %v7021_v0  ;;  %v249_v12 = vld [vmem:[#allocation2] sm:$0xff]  ;;  %v250_v13 = vld [vmem:[#allocation2 + $0x8] sm:$0xff]  ;;  %v251_v14 = vld [vmem:[#allocation5] sm:$0xff]  ;;  %s7028_s3 = smov [#allocation23]  }
 0x122   :  { %v252_v15 = vld [vmem:[#allocation5 + $0x8] sm:$0xff]  ;;  %v6454_v16 = vld [vmem:[#allocation8 + $0x20] sm:$0xff]   ;;  %v7393_v18 = vadd.f32 %v251_v14, %v249_v12  ;;  %v6455_v20 = vld [vmem:[#allocation8 + $0x28] sm:$0xff]   ;;  %s5561_s5 = sshll.u32 %s7028_s3, 4  ;;  %s5562_s5 = int_to_ptr.vmem [resolvable:$true] %s5561_s5 }
 0x123   :  { %v6449_v17 = vld [vmem:[#allocation10 + $0x38] sm:$0xff]   ;;  %v7395_v19 = vadd.f32 %v252_v15, %v250_v13  ;;  %v6456_v22 = vld [vmem:[#allocation8 + $0x30] sm:$0xff]   ;;  %v6458_v34 = vld [vmem:[#allocation11] sm:$0xff]   ;;  %s6964_s22 = scalar_lea.vmem %s5562_s5, 256  ;;  %p6969_p7 = scmp.lt.s32.totalorder %s5562_s5, %s5562_s5 }
 0x124   :  { %6008 = vmatpush3.bf16.msra.mxu1 %v6443_v2  ;;  %5988 = vmatpush3.bf16.msra.mxu0 %v6451_v6  ;;  %v6457_v23 = vld [vmem:[#allocation8 + $0x38] sm:$0xff]   ;;  %v6459_v35 = vld [vmem:[#allocation11 + $0x8] sm:$0xff]   ;;  %v6460_v36 = vld [vmem:[#allocation11 + $0x10] sm:$0xff]   ;;  %p6965_p6 = scmp.ne.s32.totalorder %s5562_s5, %s6964_s22  ;;  %p6970_p8 = scmp.lt.s32.totalorder %s6964_s22, %s6964_s22 }
 0x125   :  { %6009 = vmatprep.subr.bf16.mxu1 %v7021_v0  ;;  %5989 = vmatprep.subr.bf16.mxu0 %v7021_v0  ;;  %v7401_v21 = vpack.c.bf16 %v7395_v19, %v7393_v18  ;;  %v6461_v37 = vld [vmem:[#allocation11 + $0x18] sm:$0xff]   ;;  %v6462_v38 = vld [vmem:[#allocation11 + $0x20] sm:$0xff]   ;;  %v6463_v41 = vld [vmem:[#allocation11 + $0x28] sm:$0xff]  }
 0x126   :  { %v6464_v43 = vld [vmem:[#allocation11 + $0x30] sm:$0xff]   ;;  %v6465_v44 = vld [vmem:[#allocation11 + $0x38] sm:$0xff]   ;;  %p6971_p9 = por %p6970_p8, %p6969_p7 }
 0x128   :  { %6010 = vmatpush3.bf16.msra.mxu1 %v6444_v3  ;;  %5990 = vmatpush3.bf16.msra.mxu0 %v6452_v8  ;;  %p6972_p10 = pnand %p6971_p9, %p6965_p6 }
 0x129   :  { %6011 = vmatprep.subr.bf16.mxu1 %v7021_v0  ;;  %5991 = vmatprep.subr.bf16.mxu0 %v7021_v0 }
 0x12c   :  { %6012 = vmatpush3.bf16.msra.mxu1 %v6445_v4  ;;  %5992 = vmatpush3.bf16.msra.mxu0 %v6453_v10 }
 0x12d   :  { %6013 = vmatprep.subr.bf16.mxu1 %v7021_v0  ;;  %5993 = vmatprep.subr.bf16.mxu0 %v7021_v0 }
 0x130   :  { %6014 = vmatpush3.bf16.msra.mxu1 %v6446_v7  ;;  %5994 = vmatpush3.bf16.msra.mxu0 %v6454_v16 }
 0x131   :  { %6015 = vmatprep.subr.bf16.mxu1 %v7021_v0  ;;  %5995 = vmatprep.subr.bf16.mxu0 %v7021_v0 }
 0x134   :  { %6016 = vmatpush3.bf16.msra.mxu1 %v6447_v9  ;;  %5996 = vmatpush3.bf16.msra.mxu0 %v6455_v20 }
 0x135   :  { %6017 = vmatprep.subr.bf16.mxu1 %v7021_v0  ;;  %5997 = vmatprep.subr.bf16.mxu0 %v7021_v0 }
 0x138   :  { %6018 = vmatpush3.bf16.msra.mxu1 %v6448_v11  ;;  %5998 = vmatpush3.bf16.msra.mxu0 %v6456_v22 }
 0x139   :  { %6019 = vmatprep.subr.bf16.mxu1 %v7021_v0  ;;  %5999 = vmatprep.subr.bf16.mxu0 %v7021_v0 }
 0x13c   :  { %6020 = vmatpush3.bf16.msra.mxu1 %v6449_v17  ;;  %6000 = vmatpush3.bf16.msra.mxu0 %v6457_v23 }
 0x13d   :  { %6045 = vmatprep.subr.bf16.mxu1 %v7021_v0  ;;  %6025 = vmatprep.subr.bf16.mxu0 %v7021_v0 }
 0x13f   :  { %6022 = vmatmul.mubr.bf16.vlgmr.msra.gmra.mrb[0].mxu1 %v7401_v21  ;;  %6002 = vmatmul.mubr.bf16.vlgmr.msra.gmra.mrb[0].mxu0 %v7401_v21 }
 0x140   :  { %6049 = vmatprep.mubr.msk.bf16.mxu1 %vm7022_vm0, %v7021_v0  ;;  %6041 = vmatprep.mubr.msk.bf16.mxu0 %vm7022_vm0, %v7021_v0 }
 0x141   :  { %6026 = vmatpush3.bf16.msra.mxu0 %v6458_v34 }
 0x142   :  { %6027 = vmatprep.subr.bf16.mxu0 %v7021_v0 }
 0x145   :  { %6028 = vmatpush3.bf16.msra.mxu0 %v6459_v35 }
 0x146   :  { %6029 = vmatprep.subr.bf16.mxu0 %v7021_v0 }
 0x149   :  { %6030 = vmatpush3.bf16.msra.mxu0 %v6460_v36 }
 0x14a   :  { %6031 = vmatprep.subr.bf16.mxu0 %v7021_v0 }
 0x14d   :  { %6032 = vmatpush3.bf16.msra.mxu0 %v6461_v37 }
 0x14e   :  { %6033 = vmatprep.subr.bf16.mxu0 %v7021_v0 }
 0x151   :  { %6034 = vmatpush3.bf16.msra.mxu0 %v6462_v38 }
 0x152   :  { %6035 = vmatprep.subr.bf16.mxu0 %v7021_v0 }
 0x155   :  { %6036 = vmatpush3.bf16.msra.mxu0 %v6463_v41 }
 0x156   :  { %6037 = vmatprep.subr.bf16.mxu0 %v7021_v0 }
 0x159   :  { %6038 = vmatpush3.bf16.msra.mxu0 %v6464_v43 }
 0x15a   :  { %6039 = vmatprep.subr.bf16.mxu0 %v7021_v0 }
 0x15d   :  { %6040 = vmatpush3.bf16.msra.mxu0 %v6465_v44 }
 0x15e   :  { %6101 = vmatprep.subr.bf16.mxu0 %v7021_v0 }
 0x160   :  { %6042 = vmatmul.mubr.bf16.vlgmr.msra.gmra.mrb[4].mxu0 %v7401_v21 }
 0x161   :  { %6105 = vmatprep.mubr.msk.bf16.mxu0 %vm7022_vm0, %v7021_v0 }
 0x212   :  { %v479_v24 = vpop.f32.mrb[0].mxu1  ;;  %v390_v29 = vpop.f32.mrb[0].mxu0 }
 0x213   :  { %v583_v25 = vpack.c.bf16 %v479_v24, %v479_v24  ;;  %v6023_v26 = vpop.f32.mrb[1].mxu1  ;;  %v575_v30 = vpack.c.bf16 %v390_v29, %v390_v29  ;;  %v6003_v31 = vpop.f32.mrb[1].mxu0 }
 0x214   :  { %v7414_v27 = vpop.f32.mrb[2].mxu1  ;;  %v7419_v32 = vpop.f32.mrb[2].mxu0 }
 0x215   :  { %591 = vrot.lane.b32.xlu1 %v583_v25, %s7023_s14  ;;  %585 = vrot.lane.b32.xlu0 %v583_v25, %s7024_s23  ;;  %v6024_v28 = vpop.f32.mrb[3].mxu1  ;;  %v6004_v33 = vpop.f32.mrb[3].mxu0  ;;  %v1480_v24 = vpack.c.bf16 %v7414_v27, %v7414_v27 }
 0x219   :  { %588 = vrot.lane.b32.xlu0 %v583_v25, %s7006_s28  ;;  %577 = vrot.lane.b32.xlu1 %v575_v30, %s7024_s23 }
 0x21d   :  { %579 = vrot.lane.b32.xlu1 %v575_v30, %s7006_s28 }
 0x233   :  { %v568_v56 = vpop.f32.mrb[4].mxu0 }
 0x234   :  { %v6043_v57 = vpop.f32.mrb[5].mxu0  ;;  %v594_v23 = vpack.c.bf16 %v568_v56, %v568_v56 }
 0x235   :  { %v7452_v58 = vpop.f32.mrb[6].mxu0 }
 0x236   :  { %v6044_v59 = vpop.f32.mrb[7].mxu0 }
 0x237   :  { %605 = vxpose.xlu0.c.b16.start.end [1/1] (short) (narrow) %v583_v25, 32  ;;  %v1472_v25 = vpack.c.bf16 %v7419_v32, %v7419_v32 }
 0x244   :  { %581 = vrot.lane.b32.xlu0 %v575_v30, %s7023_s14 }
 0x287   :  { %v592_v39 = vpop.permute.xlu1 %591  ;;  %v586_v40 = vpop.permute.xlu0 %585 }
 0x288   :  { %653 = vxpose.xlu0.c.b16.start.end [1/1] (short) (narrow) %v592_v39, 32  ;;  %621 = vxpose.xlu1.c.b16.start.end [1/1] (short) (narrow) %v586_v40, 32 }
 0x28b   :  { %v589_v42 = vpop.permute.xlu0 %588  ;;  %v578_v47 = vpop.permute.xlu1 %577 }
 0x28d   :  { %637 = vxpose.xlu1.c.b16.start.end [1/1] (short) (narrow) %v589_v42, 32 }
 0x28f   :  { %v580_v48 = vpop.permute.xlu1 %579 }
 0x29d   :  { %v613_v45 = vpop.trf.xlu0 }
 0x29e   :  { %6046 = vmatpush3.bf16.msra.mxu1 %v613_v45 }
 0x29f   :  { %6047 = vmatprep.subr.bf16.mxu1 %v7021_v0 }
 0x2a1   :  { %v614_v46 = vpop.trf.xlu0 }
 0x2a2   :  { %6048 = vmatpush3.bf16.msra.mxu1 %v614_v46 }
 0x2a3   :  { %6053 = vmatprep.subr.bf16.mxu1 %v7021_v0 }
 0x2a5   :  { %6050 = vmatmul.mubr.msk.bf16.vlgmr.msra.gmra.mrb[4].mxu1 %vm669_vm1, %v575_v30 }
 0x2a6   :  { %6057 = vmatprep.mubr.msk.bf16.mxu1 %vm7022_vm0, %v7021_v0 }
 0x2b6   :  { %v582_v51 = vpop.permute.xlu0 %581 }
 0x2ee   :  { %v629_v49 = vpop.trf.xlu1  ;;  %v661_v54 = vpop.trf.xlu0 }
 0x2ef   :  { %6054 = vmatpush3.bf16.msra.mxu1 %v629_v49 }
 0x2f0   :  { %6055 = vmatprep.subr.bf16.mxu1 %v7021_v0 }
 0x2f2   :  { %v630_v50 = vpop.trf.xlu1  ;;  %v662_v55 = vpop.trf.xlu0 }
 0x2f3   :  { %6056 = vmatpush3.bf16.msra.mxu1 %v630_v50 }
 0x2f4   :  { %6061 = vmatprep.subr.bf16.mxu1 %v7021_v0 }
 0x2f6   :  { %v645_v52 = vpop.trf.xlu1  ;;  %6058 = vmatmul.mubr.msk.bf16.vlgmr.msra.gmra.mrb[8].mxu1 %vm669_vm1, %v578_v47 }
 0x2f7   :  { %6062 = vmatpush3.bf16.msra.mxu1 %v645_v52  ;;  %6065 = vmatprep.mubr.msk.bf16.mxu1 %vm7022_vm0, %v7021_v0 }
 0x2f8   :  { %6063 = vmatprep.subr.bf16.mxu1 %v7021_v0 }
 0x2fa   :  { %v646_v53 = vpop.trf.xlu1 }
 0x2fb   :  { %6064 = vmatpush3.bf16.msra.mxu1 %v646_v53 }
 0x2fc   :  { %6069 = vmatprep.subr.bf16.mxu1 %v7021_v0 }
 0x2fe   :  { %6066 = vmatmul.mubr.msk.bf16.vlgmr.msra.gmra.mrb[12].mxu1 %vm669_vm1, %v580_v48 }
 0x2ff   :  { %6070 = vmatpush3.bf16.msra.mxu1 %v661_v54  ;;  %6073 = vmatprep.mubr.msk.bf16.mxu1 %vm7022_vm0, %v7021_v0 }
 0x300   :  { %6071 = vmatprep.subr.bf16.mxu1 %v7021_v0 }
 0x303   :  { %6072 = vmatpush3.bf16.msra.mxu1 %v662_v55 }
 0x306   :  { %6074 = vmatmul.mubr.msk.bf16.vlgmr.msra.gmra.mrb[16].mxu1 %vm669_vm1, %v582_v51 }
 0x378   :  { %v707_v60 = vpop.f32.mrb[4].mxu1 }
 0x379   :  { %v842_v61 = vmul.f32 0.17677669, %v707_v60  ;;  %v6051_v62 = vpop.f32.mrb[5].mxu1 }
 0x37a   :  { %v710_v63 = vpop.f32.mrb[6].mxu1 }
 0x37b   :  { %v6052_v1 = vpop.f32.mrb[7].mxu1  ;;  %v847_v2 = vsel %vm846_vm2, %v842_v61, -inf }
 0x37c   :  { %848 = vmax.xlane.f32.xlu1 %v847_v2 }
 0x3c9   :  { %v750_v3 = vpop.f32.mrb[8].mxu1 }
 0x3ca   :  { %v843_v4 = vmul.f32 0.17677669, %v750_v3  ;;  %v6059_v5 = vpop.f32.mrb[9].mxu1 }
 0x3cb   :  { %v753_v6 = vpop.f32.mrb[10].mxu1 }
 0x3cc   :  { %v6060_v7 = vpop.f32.mrb[11].mxu1  ;;  %v850_v8 = vsel %vm846_vm2, %v843_v4, -inf }
 0x3cd   :  { %851 = vmax.xlane.f32.xlu1 %v850_v8 }
 0x3d1   :  { %v793_v9 = vpop.f32.mrb[12].mxu1 }
 0x3d2   :  { %v844_v10 = vmul.f32 0.17677669, %v793_v9  ;;  %v6067_v11 = vpop.f32.mrb[13].mxu1 }
 0x3d3   :  { %v796_v12 = vpop.f32.mrb[14].mxu1 }
 0x3d4   :  { %v6068_v13 = vpop.f32.mrb[15].mxu1  ;;  %v853_v14 = vsel %vm846_vm2, %v844_v10, -inf }
 0x3d5   :  { %854 = vmax.xlane.f32.xlu1 %v853_v14 }
 0x3d9   :  { %v836_v15 = vpop.f32.mrb[16].mxu1 }
 0x3da   :  { %v845_v16 = vmul.f32 0.17677669, %v836_v15  ;;  %v6075_v17 = vpop.f32.mrb[17].mxu1 }
 0x3db   :  { %v839_v20 = vpop.f32.mrb[18].mxu1 }
 0x3dc   :  { %v6076_v21 = vpop.f32.mrb[19].mxu1  ;;  %v856_v22 = vsel %vm846_vm2, %v845_v16, -inf }
 0x3dd   :  { %857 = vmax.xlane.f32.xlu1 %v856_v22 }
 0x3ee   :  { %596 = vrot.lane.b32.xlu1 %v594_v23, %s7024_s23 }
 0x3f2   :  { %599 = vrot.lane.b32.xlu1 %v594_v23, %s7006_s28 }
 0x3f6   :  { %602 = vrot.lane.b32.xlu1 %v594_v23, %s7023_s14 }
 0x3fa   :  { %1482 = vrot.lane.b32.xlu1 %v1480_v24, %s7024_s23 }
 0x409   :  { %v849_v26 = vpop.xlane.xlu1 %848 }
 0x40a   :  { %v859_v32 = vsub.f32 %v842_v61, %v849_v26 }
 0x40c   :  { %v863_v36 = vmul.f32 1.442695, %v859_v32 }
 0x40e   :  { %6586 = vpow2.f32 %v863_v36 }
 0x418   :  { %v6587_v39 = vpop.eup %6586 }
 0x419   :  { %v871_v40 = vsel %vm846_vm2, %v6587_v39, 0.0 }
 0x41d   :  { %895 = vxpose.xlu1.c.b16.start.end [1/1] (short) (narrow) %v594_v23, 32 }
 0x425   :  { %1488 = vrot.lane.b32.xlu1 %v1480_v24, %s7023_s14 }
 0x429   :  { %1474 = vrot.lane.b32.xlu1 %v1472_v25, %s7024_s23 }
 0x45a   :  { %v852_v28 = vpop.xlane.xlu1 %851 }
 0x45b   :  { %v860_v37 = vsub.f32 %v843_v4, %v852_v28 }
 0x45d   :  { %v865_v38 = vmul.f32 1.442695, %v860_v37 }
 0x45f   :  { %6588 = vpow2.f32 %v865_v38 }
 0x462   :  { %v855_v29 = vpop.xlane.xlu1 %854 }
 0x463   :  { %v861_v43 = vsub.f32 %v844_v10, %v855_v29 }
 0x465   :  { %v867_v44 = vmul.f32 1.442695, %v861_v43 }
 0x467   :  { %6590 = vpow2.f32 %v867_v44 }
 0x469   :  { %v6589_v41 = vpop.eup %6588 }
 0x46a   :  { %v858_v30 = vpop.xlane.xlu1 %857  ;;  %v874_v42 = vsel %vm846_vm2, %v6589_v41, 0.0 }
 0x46b   :  { %v862_v45 = vsub.f32 %v845_v16, %v858_v30 }
 0x46d   :  { %v869_v46 = vmul.f32 1.442695, %v862_v45 }
 0x46e   :  { %v597_v31 = vpop.permute.xlu1 %596 }
 0x46f   :  { %911 = vxpose.xlu0.c.b16.start.end [1/1] (short) (narrow) %v597_v31, 32  ;;  %6592 = vpow2.f32 %v869_v46 }
 0x471   :  { %v6591_v49 = vpop.eup %6590 }
 0x472   :  { %v600_v33 = vpop.permute.xlu1 %599  ;;  %v877_v50 = vsel %vm846_vm2, %v6591_v49, 0.0 }
 0x473   :  { %927 = vxpose.xlu1.c.b16.start.end [1/1] (short) (narrow) %v600_v33, 32 }
 0x476   :  { %v603_v34 = vpop.permute.xlu1 %602 }
 0x478   :  { %1502 = vxpose.xlu1.c.b16.start.end [1/1] (short) (narrow) %v1480_v24, 32 }
 0x479   :  { %v6593_v51 = vpop.eup %6592 }
 0x47a   :  { %v1483_v27 = vpop.permute.xlu1 %1482  ;;  %v880_v53 = vsel %vm846_vm2, %v6593_v51, 0.0 }
 0x47c   :  { %1485 = vrot.lane.b32.xlu0 %v1480_v24, %s7006_s28 }
 0x47d   :  { %1518 = vxpose.xlu1.c.b16.start.end [1/1] (short) (narrow) %v1483_v27, 32 }
 0x483   :  { %v903_v35 = vpop.trf.xlu1 }
 0x484   :  { %6079 = vmatprep.mubr.msk.bf16.mxu1 %vm846_vm2, %v903_v35 }
 0x487   :  { %v904_v47 = vpop.trf.xlu1 }
 0x497   :  { %v1489_v48 = vpop.permute.xlu1 %1488 }
 0x49b   :  { %872 = vadd.xlane.f32.xlu0 %v871_v40  ;;  %v7474_v52 = vpop.permute.xlu1 %1474 }
 0x49f   :  { %875 = vadd.xlane.f32.xlu0 %v874_v42 }
 0x4b5   :  { %1476 = vrot.lane.b32.xlu0 %v1472_v25, %s7006_s28 }
 0x4d4   :  { %878 = vadd.xlane.f32.xlu0 %v877_v50 }
 0x4d5   :  { %v919_v57 = vpop.trf.xlu0 }
 0x4d8   :  { %881 = vadd.xlane.f32.xlu0 %v880_v53 }
 0x4d9   :  { %v935_v54 = vpop.trf.xlu1  ;;  %v920_v60 = vpop.trf.xlu0 }
 0x4dd   :  { %v936_v55 = vpop.trf.xlu1 }
 0x4e1   :  { %v1510_v56 = vpop.trf.xlu1 }
 0x4e2   :  { %6102 = vmatpush3.bf16.msra.mxu0 %v1510_v56 }
 0x4e3   :  { %6103 = vmatprep.subr.bf16.mxu0 %v7021_v0 }
 0x4e5   :  { %v1511_v59 = vpop.trf.xlu1 }
 0x4e6   :  { %6104 = vmatpush3.bf16.msra.mxu0 %v1511_v59 }
 0x4e7   :  { %6117 = vmatprep.subr.bf16.mxu0 %v7021_v0 }
 0x4e9   :  { %6106 = vmatmul.mubr.msk.bf16.vlgmr.msra.gmra.mrb[8].mxu0 %vm669_vm1, %v1472_v25  ;;  %v1526_v9 = vpop.trf.xlu1 }
 0x4ea   :  { %6121 = vmatprep.mubr.msk.bf16.mxu0 %vm7022_vm0, %v7021_v0 }
 0x4ed   :  { %v1527_v10 = vpop.trf.xlu1 }
 0x4ee   :  { %1478 = vrot.lane.b32.xlu0 %v1472_v25, %s7023_s14  ;;  %v1486_v61 = vpop.permute.xlu0 %1485 }
 0x4ef   :  { %1534 = vxpose.xlu1.c.b16.start.end [1/1] (short) (narrow) %v1486_v61, 32 }
 0x4f4   :  { %1550 = vxpose.xlu1.c.b16.start.end [1/1] (short) (narrow) %v1489_v48, 32 }
 0x50c   :  { %943 = vxpose.xlu0.c.b16.start.end [1/1] (short) (narrow) %v603_v34, 32 }
 0x528   :  { %v873_v62 = vpop.xlane.xlu0 %872 }
 0x529   :  { %6594 = vrcp.f32 %v873_v62 }
 0x52c   :  { %v876_v63 = vpop.xlane.xlu0 %875 }
 0x52d   :  { %6596 = vrcp.f32 %v876_v63 }
 0x530   :  { %v1477_v13 = vpop.permute.xlu0 %1476 }
 0x533   :  { %v6595_v1 = vpop.eup %6594 }
 0x534   :  { %v887_v2 = vmul.f32 %v6595_v1, %v6587_v39 }
 0x536   :  { %v891_v3 = vpack.c.bf16 %v887_v2, %v887_v2 }
 0x537   :  { %v6597_v4 = vpop.eup %6596 }
 0x538   :  { %6369 = vmatprep.subr.msk.bf16.mxu1 %vm846_vm2, %v891_v3  ;;  %v966_v5 = vsel %vm846_vm2, %v891_v3, 0  ;;  %v888_v6 = vmul.f32 %v6597_v4, %v6589_v41 }
 0x539   :  { %6078 = vmatpush3.bf16.xpose.msra.mxu1 %v966_v5 }
 0x53a   :  { %v892_v7 = vpack.c.bf16 %v888_v6, %v888_v6 }
 0x53c   :  { %6370 = vmatprep.subr.msk.bf16.mxu1 %vm846_vm2, %v892_v7  ;;  %v1024_v8 = vsel %vm846_vm2, %v892_v7, 0 }
 0x540   :  { %6080 = vmatmul.mubr.msk.bf16.vlgmr.msra.gmra.mrb[20].mxu1 %vm846_vm2, %v904_v47 }
 0x541   :  { %6084 = vmatpush3.bf16.xpose.msra.mxu1 %v1024_v8  ;;  %6085 = vmatprep.mubr.msk.bf16.mxu1 %vm846_vm2, %v919_v57 }
 0x548   :  { %6086 = vmatmul.mubr.msk.bf16.vlgmr.msra.gmra.mrb[24].mxu1 %vm846_vm2, %v920_v60 }
 0x549   :  { %6091 = vmatprep.mubr.msk.bf16.mxu1 %vm846_vm2, %v935_v54 }
 0x555   :  { %v1542_v11 = vpop.trf.xlu1 }
 0x556   :  { %6118 = vmatpush3.bf16.msra.mxu0 %v1542_v11 }
 0x557   :  { %6119 = vmatprep.subr.bf16.mxu0 %v7021_v0 }
 0x559   :  { %v1543_v12 = vpop.trf.xlu1 }
 0x55a   :  { %6120 = vmatpush3.bf16.msra.mxu0 %v1543_v12 }
 0x55d   :  { %6122 = vmatmul.mubr.msk.bf16.vlgmr.msra.gmra.mrb[12].mxu0 %vm669_vm1, %v1477_v13  ;;  %v1558_v30 = vpop.trf.xlu1 }
 0x561   :  { %v879_v14 = vpop.xlane.xlu0 %878  ;;  %v1559_v31 = vpop.trf.xlu1 }
 0x562   :  { %6598 = vrcp.f32 %v879_v14 }
 0x565   :  { %v882_v15 = vpop.xlane.xlu0 %881 }
 0x566   :  { %6600 = vrcp.f32 %v882_v15 }
 0x569   :  { %v1479_v24 = vpop.permute.xlu0 %1478 }
 0x56c   :  { %v6599_v16 = vpop.eup %6598 }
 0x56d   :  { %v889_v17 = vmul.f32 %v6599_v16, %v6591_v49 }
 0x56f   :  { %v893_v20 = vpack.c.bf16 %v889_v17, %v889_v17 }
 0x570   :  { %v6601_v21 = vpop.eup %6600 }
 0x571   :  { %6371 = vmatprep.subr.msk.bf16.mxu1 %vm846_vm2, %v893_v20  ;;  %v1082_v22 = vsel %vm846_vm2, %v893_v20, 0  ;;  %v890_v23 = vmul.f32 %v6601_v21, %v6593_v51  ;;  %v1491_v51 = vpack.c.bf16 %v7452_v58, %v7452_v58 }
 0x572   :  { %6090 = vmatpush3.bf16.xpose.msra.mxu1 %v1082_v22  ;;  %v951_v26 = vpop.trf.xlu0 }
 0x573   :  { %v894_v25 = vpack.c.bf16 %v890_v23, %v890_v23 }
 0x575   :  { %6372 = vmatprep.subr.msk.bf16.mxu1 %vm846_vm2, %v894_v25  ;;  %v1140_v28 = vsel %vm846_vm2, %v894_v25, 0 }
 0x576   :  { %v952_v29 = vpop.trf.xlu0 }
 0x579   :  { %6092 = vmatmul.mubr.msk.bf16.vlgmr.msra.gmra.mrb[28].mxu1 %vm846_vm2, %v936_v55 }
 0x57a   :  { %6096 = vmatpush3.bf16.xpose.msra.mxu1 %v1140_v28  ;;  %6097 = vmatprep.mubr.msk.bf16.mxu1 %vm846_vm2, %v951_v26 }
 0x57b   :  { %6109 = vmatprep.subr.bf16.mxu1 %v7021_v0 }
 0x581   :  { %6098 = vmatmul.mubr.msk.bf16.vlgmr.msra.gmra.mrb[32].mxu1 %vm846_vm2, %v952_v29 }
 0x582   :  { %6110 = vmatpush3.bf16.msra.mxu1 %v1526_v9  ;;  %6113 = vmatprep.mubr.msk.bf16.mxu1 %vm7022_vm0, %v7021_v0 }
 0x583   :  { %6111 = vmatprep.subr.bf16.mxu1 %v7021_v0 }
 0x586   :  { %6112 = vmatpush3.bf16.msra.mxu1 %v1527_v10 }
 0x587   :  { %6125 = vmatprep.subr.bf16.mxu1 %v7021_v0 }
 0x589   :  { %6114 = vmatmul.mubr.msk.bf16.vlgmr.msra.gmra.mrb[36].mxu1 %vm669_vm1, %v7474_v52 }
 0x58a   :  { %6126 = vmatpush3.bf16.msra.mxu1 %v1558_v30  ;;  %6129 = vmatprep.mubr.msk.bf16.mxu1 %vm7022_vm0, %v7021_v0 }
 0x58b   :  { %6127 = vmatprep.subr.bf16.mxu1 %v7021_v0 }
 0x58e   :  { %6128 = vmatpush3.bf16.msra.mxu1 %v1559_v31 }
 0x591   :  { %6130 = vmatmul.mubr.msk.bf16.vlgmr.msra.gmra.mrb[40].mxu1 %vm669_vm1, %v1479_v24 }
 0x5bc   :  { %v1603_v33 = vpop.f32.mrb[8].mxu0 }
 0x5bd   :  { %v1738_v34 = vmul.f32 0.17677669, %v1603_v33  ;;  %v6107_v27 = vpop.f32.mrb[9].mxu0 }
 0x5be   :  { %v1606_v35 = vpop.f32.mrb[10].mxu0 }
 0x5bf   :  { %v6108_v32 = vpop.f32.mrb[11].mxu0  ;;  %v1742_v36 = vsel %vm846_vm2, %v1738_v34, -inf }
 0x5c0   :  { %1743 = vmax.xlane.f32.xlu0 %v1742_v36 }
 0x613   :  { %v7512_v37 = vpop.f32.mrb[20].mxu1 }
 0x614   :  { %v7514_v38 = vpop.f32.mrb[21].mxu1 }
 0x615   :  { %v7516_v39 = vpop.f32.mrb[22].mxu1 }
 0x616   :  { %v7518_v40 = vpop.f32.mrb[23].mxu1 }
 0x61b   :  { %v7520_v41 = vpop.f32.mrb[24].mxu1 }
 0x61c   :  { %v7522_v42 = vpop.f32.mrb[25].mxu1 }
 0x61d   :  { %v7524_v43 = vpop.f32.mrb[26].mxu1 }
 0x61e   :  { %v7526_v44 = vpop.f32.mrb[27].mxu1 }
 0x630   :  { %v1689_v45 = vpop.f32.mrb[12].mxu0 }
 0x631   :  { %v1740_v46 = vmul.f32 0.17677669, %v1689_v45  ;;  %v6123_v47 = vpop.f32.mrb[13].mxu0 }
 0x632   :  { %v1692_v48 = vpop.f32.mrb[14].mxu0 }
 0x633   :  { %v6124_v49 = vpop.f32.mrb[15].mxu0  ;;  %v1748_v50 = vsel %vm846_vm2, %v1740_v46, -inf }
 0x634   :  { %1749 = vmax.xlane.f32.xlu0 %v1748_v50 }
 0x64a   :  { %1493 = vrot.lane.b32.xlu0 %v1491_v51, %s7024_s23 }
 0x64c   :  { %v7532_v52 = vpop.f32.mrb[28].mxu1 }
 0x64d   :  { %v7534_v53 = vpop.f32.mrb[29].mxu1  ;;  %v1744_v56 = vpop.xlane.xlu0 %1743 }
 0x64e   :  { %v7536_v54 = vpop.f32.mrb[30].mxu1  ;;  %1499 = vrot.lane.b32.xlu0 %v1491_v51, %s7023_s14  ;;  %v1754_v60 = vsub.f32 %v1738_v34, %v1744_v56 }
 0x64f   :  { %v7539_v55 = vpop.f32.mrb[31].mxu1 }
 0x650   :  { %v1758_v62 = vmul.f32 1.442695, %v1754_v60 }
 0x652   :  { %6602 = vpow2.f32 %v1758_v62 }
 0x654   :  { %v7541_v57 = vpop.f32.mrb[32].mxu1 }
 0x655   :  { %v7543_v59 = vpop.f32.mrb[33].mxu1 }
 0x656   :  { %v7545_v61 = vpop.f32.mrb[34].mxu1 }
 0x657   :  { %v7547_v58 = vpop.f32.mrb[35].mxu1 }
 0x65c   :  { %v1646_v63 = vpop.f32.mrb[36].mxu1  ;;  %v6603_v12 = vpop.eup %6602 }
 0x65d   :  { %v1739_v1 = vmul.f32 0.17677669, %v1646_v63  ;;  %v6115_v2 = vpop.f32.mrb[37].mxu1  ;;  %v1766_v13 = vsel %vm846_vm2, %v6603_v12, 0.0 }
 0x65e   :  { %v1649_v3 = vpop.f32.mrb[38].mxu1 }
 0x65f   :  { %v6116_v4 = vpop.f32.mrb[39].mxu1  ;;  %v1745_v5 = vsel %vm846_vm2, %v1739_v1, -inf }
 0x660   :  { %1746 = vmax.xlane.f32.xlu1 %v1745_v5 }
 0x664   :  { %v1732_v6 = vpop.f32.mrb[40].mxu1 }
 0x665   :  { %v1741_v7 = vmul.f32 0.17677669, %v1732_v6  ;;  %v6131_v8 = vpop.f32.mrb[41].mxu1 }
 0x666   :  { %v1735_v9 = vpop.f32.mrb[42].mxu1 }
 0x667   :  { %v6132_v10 = vpop.f32.mrb[43].mxu1  ;;  %v1751_v11 = vsel %vm846_vm2, %v1741_v7, -inf  ;;  %v7025_v9 = vmov 1983009808  }
 0x668   :  { %1752 = vmax.xlane.f32.xlu1 %v1751_v11  ;;  %v1322_v10 = vunpack.c.l.s4 %v7025_v9  ;;  %v1324_v11 = vlaneseq }
 0x66c   :  { %1767 = vadd.xlane.f32.xlu1 %v1766_v13  ;;  %v7594_v13 = vshrl.u32 %v1324_v11, 7 }
 0x6c1   :  { %v1750_v14 = vpop.xlane.xlu0 %1749 }
 0x6c2   :  { %v1756_v15 = vsub.f32 %v1740_v46, %v1750_v14 }
 0x6c4   :  { %v1762_v16 = vmul.f32 1.442695, %v1756_v15 }
 0x6c5   :  { %v1494_v36 = vpop.permute.xlu0 %1493 }
 0x6c6   :  { %6604 = vpow2.f32 %v1762_v16 }
 0x6c9   :  { %v1500_v45 = vpop.permute.xlu0 %1499 }
 0x6d0   :  { %v6605_v17 = vpop.eup %6604 }
 0x6d1   :  { %v1772_v20 = vsel %vm846_vm2, %v6605_v17, 0.0 }
 0x6d2   :  { %1773 = vadd.xlane.f32.xlu0 %v1772_v20 }
 0x6ed   :  { %v1747_v21 = vpop.xlane.xlu1 %1746 }
 0x6ee   :  { %v1755_v22 = vsub.f32 %v1739_v1, %v1747_v21 }
 0x6f0   :  { %v1760_v23 = vmul.f32 1.442695, %v1755_v22 }
 0x6f2   :  { %6606 = vpow2.f32 %v1760_v23 }
 0x6f5   :  { %v1753_v24 = vpop.xlane.xlu1 %1752 }
 0x6f6   :  { %v1757_v34 = vsub.f32 %v1741_v7, %v1753_v24 }
 0x6f8   :  { %v1764_v27 = vmul.f32 1.442695, %v1757_v34 }
 0x6f9   :  { %v1768_v25 = vpop.xlane.xlu1 %1767 }
 0x6fa   :  { %6608 = vrcp.f32 %v1768_v25 }
 0x6fb   :  { %6610 = vpow2.f32 %v1764_v27 }
 0x6fc   :  { %v6607_v26 = vpop.eup %6606 }
 0x6fd   :  { %v1769_v28 = vsel %vm846_vm2, %v6607_v26, 0.0 }
 0x6fe   :  { %1770 = vadd.xlane.f32.xlu1 %v1769_v28 }
 0x6ff   :  { %1790 = vxpose.xlu0.c.b16.start.end [1/1] (short) (narrow) %v1491_v51, 32 }
 0x704   :  { %v6609_v29 = vpop.eup %6608 }
 0x705   :  { %v1782_v30 = vmul.f32 %v6609_v29, %v6603_v12  ;;  %v6611_v35 = vpop.eup %6610  ;;  %v1323_v12 = vunpack.c.0.s8 %v1322_v10 }
 0x706   :  { %v1775_v32 = vsel %vm846_vm2, %v6611_v35, 0.0 }
 0x707   :  { %v1786_v31 = vpack.c.bf16 %v1782_v30, %v1782_v30  ;;  %v7597_v16 = vsub.s32 %v1323_v12, %v7594_v13 }
 0x709   :  { %6373 = vmatprep.subr.msk.bf16.mxu0 %vm846_vm2, %v1786_v31  ;;  %v1861_v33 = vsel %vm846_vm2, %v1786_v31, 0 }
 0x70a   :  { %6134 = vmatpush3.bf16.xpose.msra.mxu0 %v1861_v33 }
 0x70f   :  { %1496 = vrot.lane.b32.xlu1 %v1491_v51, %s7006_s28 }
 0x733   :  { %1776 = vadd.xlane.f32.xlu1 %v1775_v32 }
 0x75f   :  { %v1774_v46 = vpop.xlane.xlu0 %1773 }
 0x760   :  { %6612 = vrcp.f32 %v1774_v46  ;;  %1806 = vxpose.xlu1.c.b16.start.end [1/1] (short) (narrow) %v1494_v36, 32 }
 0x765   :  { %v1798_v47 = vpop.trf.xlu0 }
 0x766   :  { %6135 = vmatprep.mubr.msk.bf16.mxu0 %vm846_vm2, %v1798_v47 }
 0x769   :  { %v1799_v48 = vpop.trf.xlu0 }
 0x76a   :  { %v6613_v49 = vpop.eup %6612  ;;  %6136 = vmatmul.mubr.msk.bf16.vlgmr.msra.gmra.mrb[16].mxu0 %vm846_vm2, %v1799_v48 }
 0x76b   :  { %v1784_v50 = vmul.f32 %v6613_v49, %v6605_v17  ;;  %v7026_v17 = vmov 1934713408  }
 0x76c   :  { %v1354_v20 = vunpack.c.l.s4 %v7026_v17 }
 0x76d   :  { %v1788_v51 = vpack.c.bf16 %v1784_v50, %v1784_v50 }
 0x76e   :  { %1191 = vxpose.xlu1.b32.start [1/4] (short) (narrow) %v7514_v38, 8  ;;  %v1355_v25 = vunpack.c.0.s8 %v1354_v20 }
 0x76f   :  { %6375 = vmatprep.subr.msk.bf16.mxu0 %vm846_vm2, %v1788_v51  ;;  %v1977_v56 = vsel %vm846_vm2, %v1788_v51, 0 }
 0x770   :  { %6146 = vmatpush3.bf16.xpose.msra.mxu0 %v1977_v56  ;;  %v7604_v31 = vsub.s32 %v1355_v25, %v7594_v13 }
 0x771   :  { %6157 = vmatprep.subr.bf16.mxu0 %v7021_v0 }
 0x772   :  { %1192 = vxpose.xlu1.b32.cont [2/4] (short) (narrow) %v7518_v40, 8 }
 0x776   :  { %1193 = vxpose.xlu1.b32.cont [3/4] (short) (narrow) %v7512_v37, 8 }
 0x77a   :  { %1194 = vxpose.xlu1.b32.end [4/4] (short) (narrow) %v7516_v39, 8 }
 0x77e   :  { %1287 = vxpose.xlu1.b32.start [1/4] (short) (narrow) %v7543_v59, 8 }
 0x782   :  { %1288 = vxpose.xlu1.b32.cont [2/4] (short) (narrow) %v7547_v58, 8 }
 0x786   :  { %1289 = vxpose.xlu1.b32.cont [3/4] (short) (narrow) %v7541_v57, 8 }
 0x78a   :  { %1290 = vxpose.xlu1.b32.end [4/4] (short) (narrow) %v7545_v61, 8 }
 0x78b   :  { %v1771_v38 = vpop.xlane.xlu1 %1770 }
 0x78c   :  { %6614 = vrcp.f32 %v1771_v38 }
 0x78f   :  { %v1497_v60 = vpop.permute.xlu1 %1496 }
 0x790   :  { %1822 = vxpose.xlu0.c.b16.start.end [1/1] (short) (narrow) %v1497_v60, 32 }
 0x795   :  { %1838 = vxpose.xlu0.c.b16.start.end [1/1] (short) (narrow) %v1500_v45, 32 }
 0x796   :  { %v6615_v62 = vpop.eup %6614 }
 0x797   :  { %v1783_v63 = vmul.f32 %v6615_v62, %v6607_v26 }
 0x799   :  { %v1787_v40 = vpack.c.bf16 %v1783_v63, %v1783_v63 }
 0x79b   :  { %6374 = vmatprep.subr.msk.bf16.mxu1 %vm846_vm2, %v1787_v40  ;;  %v1919_v37 = vsel %vm846_vm2, %v1787_v40, 0 }
 0x79c   :  { %6140 = vmatpush3.bf16.xpose.msra.mxu1 %v1919_v37 }
 0x79d   :  { %1223 = vxpose.xlu0.b32.start [1/4] (short) (narrow) %v7522_v42, 8 }
 0x7a1   :  { %1224 = vxpose.xlu0.b32.cont [2/4] (short) (narrow) %v7526_v44, 8 }
 0x7a5   :  { %1225 = vxpose.xlu0.b32.cont [3/4] (short) (narrow) %v7520_v41, 8 }
 0x7a9   :  { %1226 = vxpose.xlu0.b32.end [4/4] (short) (narrow) %v7524_v43, 8 }
 0x7ad   :  { %1255 = vxpose.xlu0.b32.start [1/4] (short) (narrow) %v7534_v53, 8 }
 0x7b1   :  { %1256 = vxpose.xlu0.b32.cont [2/4] (short) (narrow) %v7539_v55, 8 }
 0x7b5   :  { %1257 = vxpose.xlu0.b32.cont [3/4] (short) (narrow) %v7532_v52, 8 }
 0x7b9   :  { %1258 = vxpose.xlu0.b32.end [4/4] (short) (narrow) %v7536_v54, 8 }
 0x7c0   :  { %v1777_v39 = vpop.xlane.xlu1 %1776 }
 0x7c1   :  { %6616 = vrcp.f32 %v1777_v39 }
 0x7c6   :  { %v1814_v57 = vpop.trf.xlu1 }
 0x7c7   :  { %6141 = vmatprep.mubr.msk.bf16.mxu1 %vm846_vm2, %v1814_v57 }
 0x7ca   :  { %v1815_v42 = vpop.trf.xlu1 }
 0x7cb   :  { %v6617_v59 = vpop.eup %6616  ;;  %6142 = vmatmul.mubr.msk.bf16.vlgmr.msra.gmra.mrb[44].mxu1 %vm846_vm2, %v1815_v42 }
 0x7cc   :  { %v1785_v41 = vmul.f32 %v6617_v59, %v6611_v35 }
 0x7ce   :  { %v1789_v44 = vpack.c.bf16 %v1785_v41, %v1785_v41 }
 0x7d0   :  { %6376 = vmatprep.subr.msk.bf16.mxu1 %vm846_vm2, %v1789_v44  ;;  %v2035_v43 = vsel %vm846_vm2, %v1789_v44, 0 }
 0x7d1   :  { %6152 = vmatpush3.bf16.xpose.msra.mxu1 %v2035_v43 }
 0x7d2   :  { %6177 = vmatprep.subr.bf16.mxu1 %v7021_v0 }
 0x7ee   :  { %v1207_v7 = vpop.trf.xlu1 }
 0x7f6   :  { %v1830_v52 = vpop.trf.xlu0 }
 0x7f7   :  { %6147 = vmatprep.mubr.msk.bf16.mxu0 %vm846_vm2, %v1830_v52 }
 0x7fa   :  { %v1831_v53 = vpop.trf.xlu0 }
 0x7fb   :  { %6148 = vmatmul.mubr.msk.bf16.vlgmr.msra.gmra.mrb[20].mxu0 %vm846_vm2, %v1831_v53 }
 0x7fc   :  { %6173 = vmatprep.mubr.msk.bf16.mxu0 %vm7022_vm0, %v7021_v0 }
 0x7fe   :  { %v1846_v54 = vpop.trf.xlu0  ;;  %v1303_v14 = vpop.trf.xlu1 }
 0x7ff   :  { %6153 = vmatprep.mubr.msk.bf16.mxu1 %vm846_vm2, %v1846_v54  ;;  %v6466_v54 = vld [vmem:[#allocation13] sm:$0xff]  }
 0x800   :  { %6158 = vmatpush3.bf16.msra.mxu0 %v6466_v54 }
 0x801   :  { %6159 = vmatprep.subr.bf16.mxu0 %v7021_v0 }
 0x802   :  { %v1847_v55 = vpop.trf.xlu0 }
 0x803   :  { %6154 = vmatmul.mubr.msk.bf16.vlgmr.msra.gmra.mrb[48].mxu1 %vm846_vm2, %v1847_v55  ;;  %v6467_v55 = vld [vmem:[#allocation13 + $0x8] sm:$0xff]  }
 0x804   :  { %6193 = vmatprep.mubr.msk.bf16.mxu1 %vm7022_vm0, %v7021_v0  ;;  %6160 = vmatpush3.bf16.msra.mxu0 %v6467_v55 }
 0x805   :  { %6161 = vmatprep.subr.bf16.mxu0 %v7021_v0 }
 0x81d   :  { %v1239_v8 = vpop.trf.xlu0 }
 0x81e   :  { %v1335_v21 = vcombine.low %v1239_v8, %v1303_v14  ;;  %v1336_v22 = vcombine.high %v1239_v8, %v1303_v14 }
 0x820   :  { %v1343_v26 = vrot.slane %v1335_v21, %v7597_v16  ;;  %v1350_v28 = vrot.slane %v1336_v22, %v7597_v16 }
 0x82d   :  { %v1271_v15 = vpop.trf.xlu0 }
 0x82e   :  { %v1319_v23 = vcombine.low %v1207_v7, %v1271_v15  ;;  %v1320_v24 = vcombine.high %v1207_v7, %v1271_v15 }
 0x830   :  { %v1327_v29 = vrot.slane %v1319_v23, %v7597_v16  ;;  %v1334_v30 = vrot.slane %v1320_v24, %v7597_v16 }
 0x832   :  { %v1351_v34 = vcombine.low %v1327_v29, %v1343_v26  ;;  %v1352_v27 = vcombine.high %v1327_v29, %v1343_v26  ;;  %v1367_v35 = vcombine.low %v1334_v30, %v1350_v28  ;;  %v1368_v32 = vcombine.high %v1334_v30, %v1350_v28 }
 0x834   :  { %v1359_v47 = vrot.slane %v1351_v34, %v7604_v31  ;;  %v1366_v48 = vrot.slane %v1352_v27, %v7604_v31  ;;  %v1375_v49 = vrot.slane %v1367_v35, %v7604_v31  ;;  %v1382_v50 = vrot.slane %v1368_v32, %v7604_v31  ;;  %v6472_v35 = vld [vmem:[#allocation13 + $0x30] sm:$0xff]  }
 0x836   :  { %v1387_v56 = vcombine.low %v1359_v47, %v1366_v48  ;;  %v5615_v38 = vcombine.high %v1359_v47, %v1366_v48  ;;  %v1403_v60 = vcombine.low %v1375_v49, %v1382_v50  ;;  %v5616_v62 = vcombine.high %v1375_v49, %v1382_v50 }
 0x838   :  { %v7611_v37 = vrot.slane %v1387_v56, %v7597_v16  ;;  %v7614_v39 = vrot.slane %v5615_v38, %v7597_v16  ;;  %v7617_v57 = vrot.slane %v1403_v60, %v7597_v16  ;;  %v1418_v59 = vrot.slane %v5616_v62, %v7597_v16  ;;  %v6473_v38 = vld [vmem:[#allocation13 + $0x38] sm:$0xff]  }
 0x83a   :  { %v1419_v41 = vcombine.low %v7611_v37, %v7614_v39  ;;  %v1435_v44 = vcombine.low %v7617_v57, %v1418_v59  ;;  %v1420_v28 = vcombine.high %v7611_v37, %v7614_v39  ;;  %v1436_v29 = vcombine.high %v7617_v57, %v1418_v59 }
 0x83c   :  { %v7624_v43 = vrot.slane %v1419_v41, %v7604_v31  ;;  %v7627_v52 = vrot.slane %v1435_v44, %v7604_v31  ;;  %v1434_v47 = vrot.slane %v1420_v28, %v7604_v31  ;;  %v1450_v48 = vrot.slane %v1436_v29, %v7604_v31  ;;  %v6481_v28 = vld [vmem:[#allocation16 + $0x38] sm:$0xff]   ;;  %v5631_v29 = vld [vmem:[%s8077_s7] ss:$0 sm:$0xff] }
 0x83d   :  { %v6137_v61 = vpop.f32.mrb[16].mxu0 }
 0x83e   :  { %v1897_v58 = vpop.f32.mrb[17].mxu0  ;;  %v1451_v53 = vcombine.low %v7624_v43, %v7627_v52  ;;  %v1453_v37 = vcombine.low %v1434_v47, %v1450_v48  ;;  %v1452_v57 = vcombine.high %v7624_v43, %v7627_v52  ;;  %v1454_v55 = vcombine.high %v1434_v47, %v1450_v48  ;;  %v6474_v43 = vld [vmem:[#allocation16] sm:$0xff]   ;;  %v6475_v52 = vld [vmem:[#allocation16 + $0x8] sm:$0xff]   ;;  %v258_v47 = vld [vmem:[#allocation7 + $0x18] sm:$0xff] }
 0x83f   :  { %2086 = vxpose.xlu0.b32.start [1/4] (short) (narrow) %v1897_v58, 8  ;;  %v6138_v1 = vpop.f32.mrb[18].mxu0  ;;  %v6469_v58 = vld [vmem:[#allocation13 + $0x18] sm:$0xff]  }
 0x840   :  { %v1900_v2 = vpop.f32.mrb[19].mxu0 }
 0x843   :  { %2087 = vxpose.xlu0.b32.cont [2/4] (short) (narrow) %v1900_v2, 8  ;;  %v6471_v2 = vld [vmem:[#allocation13 + $0x28] sm:$0xff]  }
 0x847   :  { %2088 = vxpose.xlu0.b32.cont [3/4] (short) (narrow) %v6137_v61, 8  ;;  %v6468_v61 = vld [vmem:[#allocation13 + $0x10] sm:$0xff]  }
 0x848   :  { %6162 = vmatpush3.bf16.msra.mxu0 %v6468_v61 }
 0x849   :  { %6163 = vmatprep.subr.bf16.mxu0 %v7021_v0 }
 0x84b   :  { %2089 = vxpose.xlu0.b32.end [4/4] (short) (narrow) %v6138_v1, 8  ;;  %v6470_v1 = vld [vmem:[#allocation13 + $0x20] sm:$0xff]  }
 0x84c   :  { %6164 = vmatpush3.bf16.msra.mxu0 %v6469_v58 }
 0x84d   :  { %6165 = vmatprep.subr.bf16.mxu0 %v7021_v0 }
 0x850   :  { %6166 = vmatpush3.bf16.msra.mxu0 %v6470_v1 }
 0x851   :  { %6167 = vmatprep.subr.bf16.mxu0 %v7021_v0 }
 0x854   :  { %6168 = vmatpush3.bf16.msra.mxu0 %v6471_v2 }
 0x855   :  { %6169 = vmatprep.subr.bf16.mxu0 %v7021_v0 }
 0x858   :  { %6170 = vmatpush3.bf16.msra.mxu0 %v6472_v35 }
 0x859   :  { %6171 = vmatprep.subr.bf16.mxu0 %v7021_v0 }
 0x85c   :  { %6172 = vmatpush3.bf16.msra.mxu0 %v6473_v38 }
 0x85d   :  { %6197 = vmatprep.subr.bf16.mxu0 %v6474_v43 }
 0x89e   :  { %v6143_v3 = vpop.f32.mrb[44].mxu1 }
 0x89f   :  { %v1955_v4 = vpop.f32.mrb[45].mxu1 }
 0x8a0   :  { %2118 = vxpose.xlu1.b32.start [1/4] (short) (narrow) %v1955_v4, 8  ;;  %v6144_v5 = vpop.f32.mrb[46].mxu1 }
 0x8a1   :  { %v1958_v6 = vpop.f32.mrb[47].mxu1 }
 0x8a4   :  { %2119 = vxpose.xlu1.b32.cont [2/4] (short) (narrow) %v1958_v6, 8 }
 0x8a8   :  { %2120 = vxpose.xlu1.b32.cont [3/4] (short) (narrow) %v6143_v3, 8 }
 0x8ac   :  { %2121 = vxpose.xlu1.b32.end [4/4] (short) (narrow) %v6144_v5, 8 }
 0x8bf   :  { %v2102_v3 = vpop.trf.xlu0 }
 0x8ce   :  { %v6149_v33 = vpop.f32.mrb[20].mxu0 }
 0x8cf   :  { %v2013_v36 = vpop.f32.mrb[21].mxu0 }
 0x8d0   :  { %2150 = vxpose.xlu0.b32.start [1/4] (short) (narrow) %v2013_v36, 8  ;;  %v6150_v45 = vpop.f32.mrb[22].mxu0 }
 0x8d1   :  { %v2016_v46 = vpop.f32.mrb[23].mxu0 }
 0x8d4   :  { %2151 = vxpose.xlu0.b32.cont [2/4] (short) (narrow) %v2016_v46, 8 }
 0x8d6   :  { %v6155_v51 = vpop.f32.mrb[48].mxu1 }
 0x8d7   :  { %v2071_v63 = vpop.f32.mrb[49].mxu1 }
 0x8d8   :  { %2182 = vxpose.xlu1.b32.start [1/4] (short) (narrow) %v2071_v63, 8  ;;  %v6156_v40 = vpop.f32.mrb[50].mxu1  ;;  %2152 = vxpose.xlu0.b32.cont [3/4] (short) (narrow) %v6149_v33, 8 }
 0x8d9   :  { %v2074_v42 = vpop.f32.mrb[51].mxu1 }
 0x8dc   :  { %2183 = vxpose.xlu1.b32.cont [2/4] (short) (narrow) %v2074_v42, 8  ;;  %2153 = vxpose.xlu0.b32.end [4/4] (short) (narrow) %v6150_v45, 8 }
 0x8e0   :  { %2184 = vxpose.xlu1.b32.cont [3/4] (short) (narrow) %v6155_v51, 8 }
 0x8e4   :  { %2185 = vxpose.xlu1.b32.end [4/4] (short) (narrow) %v6156_v40, 8 }
 0x920   :  { %v2134_v4 = vpop.trf.xlu1 }
 0x950   :  { %v2166_v5 = vpop.trf.xlu0 }
 0x951   :  { %v2214_v6 = vcombine.low %v2102_v3, %v2166_v5  ;;  %v2215_v7 = vcombine.high %v2102_v3, %v2166_v5 }
 0x953   :  { %v2222_v11 = vrot.slane %v2214_v6, %v7597_v16  ;;  %v2229_v12 = vrot.slane %v2215_v7, %v7597_v16 }
 0x958   :  { %v2198_v8 = vpop.trf.xlu1 }
 0x959   :  { %v2230_v9 = vcombine.low %v2134_v4, %v2198_v8  ;;  %v2231_v10 = vcombine.high %v2134_v4, %v2198_v8 }
 0x95b   :  { %v2238_v14 = vrot.slane %v2230_v9, %v7597_v16  ;;  %v2245_v15 = vrot.slane %v2231_v10, %v7597_v16 }
 0x95d   :  { %v2246_v17 = vcombine.low %v2222_v11, %v2238_v14  ;;  %v2247_v20 = vcombine.high %v2222_v11, %v2238_v14  ;;  %v2262_v21 = vcombine.low %v2229_v12, %v2245_v15  ;;  %v2263_v22 = vcombine.high %v2229_v12, %v2245_v15 }
 0x95f   :  { %v2254_v23 = vrot.slane %v2246_v17, %v7604_v31  ;;  %v2261_v24 = vrot.slane %v2247_v20, %v7604_v31  ;;  %v2270_v25 = vrot.slane %v2262_v21, %v7604_v31  ;;  %v2277_v26 = vrot.slane %v2263_v22, %v7604_v31  ;;  %v256_v20 = vld [vmem:[#allocation7 + $0x8] sm:$0xff]  ;;  %v6476_v21 = vld [vmem:[#allocation16 + $0x10] sm:$0xff]  }
 0x961   :  { %v2282_v30 = vcombine.low %v2254_v23, %v2261_v24  ;;  %v5629_v33 = vcombine.high %v2254_v23, %v2261_v24  ;;  %v2298_v34 = vcombine.low %v2270_v25, %v2277_v26  ;;  %v5630_v27 = vcombine.high %v2270_v25, %v2277_v26  ;;  %v6477_v23 = vld [vmem:[#allocation16 + $0x18] sm:$0xff]   ;;  %v6478_v24 = vld [vmem:[#allocation16 + $0x20] sm:$0xff]   ;;  %v6479_v25 = vld [vmem:[#allocation16 + $0x28] sm:$0xff]  }
 0x962   :  { %v6480_v26 = vld [vmem:[#allocation16 + $0x30] sm:$0xff]  }
 0x963   :  { %v2289_v32 = vrot.slane %v2282_v30, %v7597_v16  ;;  %v2297_v36 = vrot.slane %v5629_v33, %v7597_v16  ;;  %v2305_v45 = vrot.slane %v2298_v34, %v7597_v16  ;;  %v2313_v46 = vrot.slane %v5630_v27, %v7597_v16 }
 0x965   :  { %v2315_v49 = vcombine.high %v2289_v32, %v2297_v36  ;;  %v2331_v50 = vcombine.high %v2305_v45, %v2313_v46  ;;  %v2314_v51 = vcombine.low %v2289_v32, %v2297_v36  ;;  %v2330_v56 = vcombine.low %v2305_v45, %v2313_v46  ;;  %v257_v46 = vld [vmem:[#allocation7 + $0x10] sm:$0xff] }
 0x966   :  { %v7682_v48 = vpack.c.bf16 %v258_v47, %v257_v46 }
 0x967   :  { %v2329_v60 = vrot.slane %v2315_v49, %v7604_v31  ;;  %v2345_v62 = vrot.slane %v2331_v50, %v7604_v31  ;;  %v2322_v63 = vrot.slane %v2314_v51, %v7604_v31  ;;  %v2338_v40 = vrot.slane %v2330_v56, %v7604_v31  ;;  %v6482_v49 = vld [vmem:[#allocation14] sm:$0xff]   ;;  %v6483_v50 = vld [vmem:[#allocation14 + $0x8] sm:$0xff]  }
 0x968   :  { %6178 = vmatpush3.bf16.msra.mxu1 %v6482_v49 }
 0x969   :  { %v2348_v39 = vcombine.low %v2329_v60, %v2345_v62  ;;  %v2347_v42 = vcombine.high %v2322_v63, %v2338_v40  ;;  %v2346_v59 = vcombine.low %v2322_v63, %v2338_v40  ;;  %v2349_v54 = vcombine.high %v2329_v60, %v2345_v62  ;;  %6179 = vmatprep.subr.bf16.mxu1 %v7021_v0  ;;  %v6484_v40 = vld [vmem:[#allocation14 + $0x10] sm:$0xff]  }
 0x96b   :  { %v6417_v41 = vpack.i.bf16 %v2348_v39, %v1453_v37  ;;  %v6412_v44 = vpack.i.bf16 %v2347_v42, %v1452_v57  ;;  %v6422_v61 = vpack.i.bf16 %v2349_v54, %v1454_v55  ;;  %v6485_v37 = vld [vmem:[#allocation14 + $0x18] sm:$0xff]   ;;  %v6486_v39 = vld [vmem:[#allocation14 + $0x20] sm:$0xff]   ;;  %v6487_v57 = vld [vmem:[#allocation14 + $0x28] sm:$0xff]  }
 0x96c   :  { %6180 = vmatpush3.bf16.msra.mxu1 %v6483_v50  ;;  %v6488_v42 = vld [vmem:[#allocation14 + $0x30] sm:$0xff]  }
 0x96d   :  { %6418 = vrot.lane.b32.xlu1 %v6417_v41, %s7006_s28  ;;  %6413 = vrot.lane.b32.xlu0 %v6412_v44, %s7023_s14 }
 0x96e   :  { %6181 = vmatprep.subr.bf16.mxu1 %v7021_v0 }
 0x970   :  { %6182 = vmatpush3.bf16.msra.mxu1 %v6484_v40 }
 0x971   :  { %6423 = vrot.lane.b32.xlu1 %v6422_v61, %s7024_s23  ;;  %6183 = vmatprep.subr.bf16.mxu1 %v7021_v0 }
 0x974   :  { %6184 = vmatpush3.bf16.msra.mxu1 %v6485_v37 }
 0x975   :  { %6185 = vmatprep.subr.bf16.mxu1 %v7021_v0 }
 0x978   :  { %6186 = vmatpush3.bf16.msra.mxu1 %v6486_v39 }
 0x979   :  { %6187 = vmatprep.subr.bf16.mxu1 %v7021_v0 }
 0x97c   :  { %6188 = vmatpush3.bf16.msra.mxu1 %v6487_v57 }
 0x97d   :  { %6189 = vmatprep.subr.bf16.mxu1 %v7021_v0 }
 0x980   :  { %6190 = vmatpush3.bf16.msra.mxu1 %v6488_v42 }
 0x981   :  { %6191 = vmatprep.subr.bf16.mxu1 %v7021_v0 }
 0x9df   :  { %v6419_v58 = vpop.permute.xlu1 %6418  ;;  %v6414_v1 = vpop.permute.xlu0 %6413 }
 0x9e0   :  { %v6416_v2 = vunpack.i.h.bf16 %v6414_v1  ;;  %v6415_v3 = vunpack.i.l.bf16 %v6414_v1  ;;  %v6421_v4 = vunpack.i.h.bf16 %v6419_v58  ;;  %v6420_v5 = vunpack.i.l.bf16 %v6419_v58 }
 0x9e2   :  { %v1467_v6 = vsel %vm669_vm1, %v1451_v53, %v6415_v3  ;;  %v2362_v7 = vsel %vm669_vm1, %v2346_v59, %v6416_v2  ;;  %v255_v53 = vld [vmem:[#allocation7] sm:$0xff]  ;;  %v6489_v59 = vld [vmem:[#allocation14 + $0x38] sm:$0xff]  }
 0x9e3   :  { %v6424_v8 = vpop.permute.xlu1 %6423  ;;  %v1469_v11 = vsel %vm1468_vm3, %v1467_v6, %v6420_v5  ;;  %v2363_v12 = vsel %vm1468_vm3, %v2362_v7, %v6421_v4  ;;  %v7673_v22 = vpack.c.bf16 %v256_v20, %v255_v53  ;;  %6192 = vmatpush3.bf16.msra.mxu1 %v6489_v59 }
 0x9e4   :  { %v6426_v9 = vunpack.i.h.bf16 %v6424_v8  ;;  %v6425_v10 = vunpack.i.l.bf16 %v6424_v8  ;;  %v5640_v8 = vld [vmem:[%s8086_s16] ss:$0 sm:$0xff] }
 0x9e6   :  { %v1471_v14 = vsel %vm1470_vm4, %v1469_v11, %v6425_v10  ;;  %v2364_v15 = vsel %vm1470_vm4, %v2363_v12, %v6426_v9 }
 0x9e7   :  { %v2365_v17 = vpack.c.bf16 %v2364_v15, %v1471_v14  ;;  %v5641_v14 = vld [vmem:[%s8087_s17] ss:$0 sm:$0xff] }
 0x9e9   :  { %6174 = vmatmul.mubr.bf16.vlgmr.msra.gmra.mrb[24].mxu0 %v2365_v17 }
 0x9ea   :  { %6198 = vmatpush3.bf16.msra.mxu0 %v6474_v43  ;;  %6213 = vmatprep.mubr.bf16.mxu0 %v7673_v22 }
 0x9eb   :  { %6199 = vmatprep.subr.bf16.mxu0 %v6475_v52 }
 0x9ee   :  { %6200 = vmatpush3.bf16.msra.mxu0 %v6475_v52 }
 0x9ef   :  { %6201 = vmatprep.subr.bf16.mxu0 %v6476_v21 }
 0x9f2   :  { %6202 = vmatpush3.bf16.msra.mxu0 %v6476_v21 }
 0x9f3   :  { %6203 = vmatprep.subr.bf16.mxu0 %v6477_v23 }
 0x9f6   :  { %6204 = vmatpush3.bf16.msra.mxu0 %v6477_v23 }
 0x9f7   :  { %6205 = vmatprep.subr.bf16.mxu0 %v6478_v24 }
 0x9fa   :  { %6206 = vmatpush3.bf16.msra.mxu0 %v6478_v24 }
 0x9fb   :  { %6207 = vmatprep.subr.bf16.mxu0 %v6479_v25 }
 0x9fe   :  { %6208 = vmatpush3.bf16.msra.mxu0 %v6479_v25  ;;  %v6490_v25 = vld [vmem:[#allocation17] sm:$0xff]  }
 0x9ff   :  { %6209 = vmatprep.subr.bf16.mxu0 %v6480_v26  ;;  %6217 = vmatprep.subr.bf16.mxu1 %v6490_v25 }
 0xa02   :  { %6210 = vmatpush3.bf16.msra.mxu0 %v6480_v26  ;;  %v6491_v26 = vld [vmem:[#allocation17 + $0x8] sm:$0xff]  }
 0xa03   :  { %6211 = vmatprep.subr.bf16.mxu0 %v6481_v28 }
 0xa06   :  { %6212 = vmatpush3.bf16.msra.mxu0 %v6481_v28  ;;  %v6492_v28 = vld [vmem:[#allocation17 + $0x10] sm:$0xff]  }
 0xa07   :  { %6237 = vmatprep.subr.bf16.mxu0 %v7021_v0 }
 0xa09   :  { %6214 = vmatmul.mubr.bf16.vlgmr.msra.gmra.mrb[28].mxu0 %v7682_v48 }
 0xa0a   :  { %6241 = vmatprep.mubr.msk.bf16.mxu0 %vm7022_vm0, %v7021_v0 }
 0xabc   :  { %v2471_v30 = vpop.f32.mrb[24].mxu0 }
 0xabd   :  { %v2472_v33 = vadd.f32 %v5631_v29, %v2471_v30  ;;  %v6175_v34 = vpop.f32.mrb[25].mxu0  ;;  %v6495_v30 = vld [vmem:[#allocation17 + $0x28] sm:$0xff]  }
 0xabe   :  { %v2474_v27 = vpop.f32.mrb[26].mxu0  ;;  %v6497_v34 = vld [vmem:[#allocation17 + $0x38] sm:$0xff]  }
 0xabf   :  { %v2475_v35 = vadd.f32 %v5631_v29, %v2474_v27  ;;  %v6176_v32 = vpop.f32.mrb[27].mxu0  ;;  %v2478_v36 = vadd.f32 %v2472_v33, %v7393_v18  ;;  %v6494_v29 = vld [vmem:[#allocation17 + $0x20] sm:$0xff]   ;;  %v6496_v33 = vld [vmem:[#allocation17 + $0x30] sm:$0xff]  }
 0xac1   :  { %2482 = vadd.xlane.f32.xlu1 %v2478_v36  ;;  %v2479_v45 = vadd.f32 %v2475_v35, %v7395_v19 }
 0xac3   :  { %2484 = vadd.xlane.f32.xlu0 %v2479_v45 }
 0xadc   :  { %v6215_v41 = vpop.f32.mrb[28].mxu0 }
 0xadd   :  { %v2743_v44 = vpop.f32.mrb[29].mxu0 }
 0xade   :  { %v6216_v54 = vpop.f32.mrb[30].mxu0 }
 0xadf   :  { %v7694_v55 = vpack.c.bf16 %v6216_v54, %v6215_v41  ;;  %v2746_v61 = vpop.f32.mrb[31].mxu0 }
 0xae0   :  { %v2863_v58 = vpack.c.bf16 %v2746_v61, %v2743_v44 }
 0xb4e   :  { %v2483_v18 = vpop.xlane.xlu1 %2482 }
 0xb4f   :  { %v2487_v19 = vmul.f32 0.0078125, %v2483_v18 }
 0xb50   :  { %v2485_v51 = vpop.xlane.xlu0 %2484 }
 0xb51   :  { %v2489_v56 = vsub.f32 %v2478_v36, %v2487_v19  ;;  %v2488_v38 = vmul.f32 0.0078125, %v2485_v51 }
 0xb53   :  { %v2490_v60 = vsub.f32 %v2479_v45, %v2488_v38  ;;  %v2491_v62 = vmul.f32 %v2489_v56, %v2489_v56 }
 0xb55   :  { %2493 = vadd.xlane.f32.xlu0 %v2491_v62  ;;  %v2492_v63 = vmul.f32 %v2490_v60, %v2490_v60 }
 0xb57   :  { %2495 = vadd.xlane.f32.xlu1 %v2492_v63 }
 0xb68   :  { %2868 = vrot.lane.b32.xlu1 %v2863_v58, %s7006_s28 }
 0xb6b   :  { %2865 = vrot.lane.b32.xlu0 %v2863_v58, %s7024_s23 }
 0xb6c   :  { %2871 = vrot.lane.b32.xlu1 %v2863_v58, %s7023_s14 }
 0xb8f   :  { %2885 = vxpose.xlu1.c.b16.start.end [1/1] (short) (narrow) %v2863_v58, 32 }
 0xbe2   :  { %v2494_v1 = vpop.xlane.xlu0 %2493 }
 0xbe3   :  { %v2497_v2 = vmul.f32 0.0078125, %v2494_v1 }
 0xbe4   :  { %v2496_v3 = vpop.xlane.xlu1 %2495 }
 0xbe5   :  { %v2499_v4 = vadd.f32 1e-05, %v2497_v2  ;;  %v2498_v5 = vmul.f32 0.0078125, %v2496_v3 }
 0xbe6   :  { %v2866_v53 = vpop.permute.xlu0 %2865 }
 0xbe7   :  { %6618 = vrsqrt.f32 %v2499_v4  ;;  %v2500_v6 = vadd.f32 1e-05, %v2498_v5  ;;  %2901 = vxpose.xlu0.c.b16.start.end [1/1] (short) (narrow) %v2866_v53, 32 }
 0xbe8   :  { %v2869_v20 = vpop.permute.xlu1 %2868 }
 0xbe9   :  { %6620 = vrsqrt.f32 %v2500_v6 }
 0xbec   :  { %v2872_v21 = vpop.permute.xlu1 %2871 }
 0xbf1   :  { %v6619_v7 = vpop.eup %6618 }
 0xbf2   :  { %v2503_v9 = vmul.f32 %v6619_v7, %v2489_v56 }
 0xbf3   :  { %v6621_v10 = vpop.eup %6620 }
 0xbf4   :  { %v2504_v11 = vmul.f32 %v6621_v10, %v2490_v60  ;;  %v2511_v12 = vmul.f32 %v5640_v8, %v2503_v9 }
 0xbf5   :  { %v2893_v23 = vpop.trf.xlu1 }
 0xbf6   :  { %v2512_v15 = vmul.f32 %v5640_v8, %v2504_v11  ;;  %v7705_v17 = vadd.f32 %v5641_v14, %v2511_v12  ;;  %6238 = vmatpush3.bf16.msra.mxu0 %v2893_v23 }
 0xbf7   :  { %6239 = vmatprep.subr.bf16.mxu0 %v7021_v0 }
 0xbf8   :  { %v7707_v43 = vadd.f32 %v5641_v14, %v2512_v15 }
 0xbf9   :  { %v2894_v24 = vpop.trf.xlu1 }
 0xbfa   :  { %v2569_v52 = vpack.c.bf16 %v7707_v43, %v7705_v17  ;;  %6240 = vmatpush3.bf16.msra.mxu0 %v2894_v24 }
 0xbfb   :  { %6253 = vmatprep.subr.bf16.mxu0 %v7021_v0 }
 0xbfc   :  { %6194 = vmatmul.mubr.bf16.vlgmr.msra.gmra.mrb[52].mxu1 %v2569_v52 }
 0xbfd   :  { %6233 = vmatprep.mubr.bf16.mxu1 %v7673_v22  ;;  %6218 = vmatpush3.bf16.msra.mxu1 %v6490_v25  ;;  %v6493_v22 = vld [vmem:[#allocation17 + $0x18] sm:$0xff]  }
 0xbfe   :  { %6219 = vmatprep.subr.bf16.mxu1 %v6491_v26 }
 0xc01   :  { %6220 = vmatpush3.bf16.msra.mxu1 %v6491_v26 }
 0xc02   :  { %6221 = vmatprep.subr.bf16.mxu1 %v6492_v28 }
 0xc05   :  { %6222 = vmatpush3.bf16.msra.mxu1 %v6492_v28 }
 0xc06   :  { %6223 = vmatprep.subr.bf16.mxu1 %v6493_v22 }
 0xc09   :  { %6224 = vmatpush3.bf16.msra.mxu1 %v6493_v22 }
 0xc0a   :  { %6225 = vmatprep.subr.bf16.mxu1 %v6494_v29 }
 0xc0d   :  { %6226 = vmatpush3.bf16.msra.mxu1 %v6494_v29 }
 0xc0e   :  { %6227 = vmatprep.subr.bf16.mxu1 %v6495_v30 }
 0xc11   :  { %6228 = vmatpush3.bf16.msra.mxu1 %v6495_v30 }
 0xc12   :  { %6229 = vmatprep.subr.bf16.mxu1 %v6496_v33 }
 0xc15   :  { %6230 = vmatpush3.bf16.msra.mxu1 %v6496_v33 }
 0xc16   :  { %6231 = vmatprep.subr.bf16.mxu1 %v6497_v34 }
 0xc19   :  { %6232 = vmatpush3.bf16.msra.mxu1 %v6497_v34 }
 0xc1a   :  { %6245 = vmatprep.subr.bf16.mxu1 %v7021_v0 }
 0xc1c   :  { %6234 = vmatmul.mubr.bf16.vlgmr.msra.gmra.mrb[56].mxu1 %v7682_v48 }
 0xc1d   :  { %6249 = vmatprep.mubr.msk.bf16.mxu1 %vm7022_vm0, %v7021_v0 }
 0xc4d   :  { %v2909_v27 = vpop.trf.xlu0 }
 0xc4e   :  { %6246 = vmatpush3.bf16.msra.mxu1 %v2909_v27 }
 0xc4f   :  { %6247 = vmatprep.subr.bf16.mxu1 %v7021_v0 }
 0xc51   :  { %v2910_v35 = vpop.trf.xlu0 }
 0xc52   :  { %6248 = vmatpush3.bf16.msra.mxu1 %v2910_v35 }
 0xc53   :  { %6261 = vmatprep.subr.bf16.mxu1 %v7021_v0 }
 0xccf   :  { %v2652_v32 = vpop.f32.mrb[52].mxu1 }
 0xcd0   :  { %v2855_v36 = vpack.c.bf16 %v2652_v32, %v2652_v32  ;;  %v6195_v45 = vpop.f32.mrb[53].mxu1 }
 0xcd1   :  { %v7720_v46 = vpop.f32.mrb[54].mxu1 }
 0xcd2   :  { %v6196_v47 = vpop.f32.mrb[55].mxu1  ;;  %2859 = vrot.lane.b32.xlu1 %v2855_v36, %s7006_s28  ;;  %6242 = vmatmul.mubr.msk.bf16.vlgmr.msra.gmra.mrb[32].mxu0 %vm669_vm1, %v2855_v36  ;;  %v7753_v53 = vpack.c.bf16 %v7720_v46, %v7720_v46 }
 0xcd3   :  { %2857 = vrot.lane.b32.xlu0 %v2855_v36, %s7024_s23  ;;  %6257 = vmatprep.mubr.msk.bf16.mxu0 %vm7022_vm0, %v7021_v0 }
 0xcd7   :  { %2861 = vrot.lane.b32.xlu0 %v2855_v36, %s7023_s14 }
 0xcef   :  { %v6235_v38 = vpop.f32.mrb[56].mxu1 }
 0xcf0   :  { %v2840_v60 = vpop.f32.mrb[57].mxu1 }
 0xcf1   :  { %v6236_v62 = vpop.f32.mrb[58].mxu1 }
 0xcf2   :  { %v7735_v63 = vpack.c.bf16 %v6236_v62, %v6235_v38  ;;  %v2843_v40 = vpop.f32.mrb[59].mxu1 }
 0xcf3   :  { %v7737_v37 = vpack.c.bf16 %v2843_v40, %v2840_v60 }
 0xcf5   :  { %2917 = vxpose.xlu0.c.b16.start.end [1/1] (short) (narrow) %v2869_v20, 32  ;;  %2933 = vxpose.xlu1.c.b16.start.end [1/1] (short) (narrow) %v2872_v21, 32 }
 0xd44   :  { %v2860_v49 = vpop.permute.xlu1 %2859 }
 0xd45   :  { %v2858_v48 = vpop.permute.xlu0 %2857 }
 0xd46   :  { %6250 = vmatmul.mubr.msk.bf16.vlgmr.msra.gmra.mrb[60].mxu1 %vm669_vm1, %v2858_v48 }
 0xd47   :  { %6265 = vmatprep.mubr.msk.bf16.mxu1 %vm7022_vm0, %v7021_v0 }
 0xd49   :  { %v2862_v50 = vpop.permute.xlu0 %2861 }
 0xd5b   :  { %v2925_v18 = vpop.trf.xlu0  ;;  %v2941_v19 = vpop.trf.xlu1 }
 0xd5c   :  { %6254 = vmatpush3.bf16.msra.mxu0 %v2925_v18  ;;  %6262 = vmatpush3.bf16.msra.mxu1 %v2941_v19 }
 0xd5d   :  { %6255 = vmatprep.subr.bf16.mxu0 %v7021_v0  ;;  %6263 = vmatprep.subr.bf16.mxu1 %v7021_v0 }
 0xd5f   :  { %v2926_v51 = vpop.trf.xlu0  ;;  %v2942_v56 = vpop.trf.xlu1 }
 0xd60   :  { %6256 = vmatpush3.bf16.msra.mxu0 %v2926_v51  ;;  %6264 = vmatpush3.bf16.msra.mxu1 %v2942_v56 }
 0xd63   :  { %6258 = vmatmul.mubr.msk.bf16.vlgmr.msra.gmra.mrb[36].mxu0 %vm669_vm1, %v2860_v49  ;;  %6266 = vmatmul.mubr.msk.bf16.vlgmr.msra.gmra.mrb[64].mxu1 %vm669_vm1, %v2862_v50 }
 0xda5   :  { %v2986_v39 = vpop.f32.mrb[32].mxu0 }
 0xda6   :  { %v3121_v57 = vmul.f32 0.17677669, %v2986_v39  ;;  %v6243_v42 = vpop.f32.mrb[33].mxu0 }
 0xda7   :  { %v2989_v59 = vpop.f32.mrb[34].mxu0 }
 0xda8   :  { %v6244_v41 = vpop.f32.mrb[35].mxu0  ;;  %v3126_v44 = vsel %vm3125_vm5, %v3121_v57, -inf }
 0xda9   :  { %3127 = vmax.xlane.f32.xlu0 %v3126_v44 }
 0xe19   :  { %v3029_v54 = vpop.f32.mrb[60].mxu1 }
 0xe1a   :  { %v3122_v61 = vmul.f32 0.17677669, %v3029_v54  ;;  %v6251_v58 = vpop.f32.mrb[61].mxu1 }
 0xe1b   :  { %v3032_v1 = vpop.f32.mrb[62].mxu1 }
 0xe1c   :  { %v6252_v2 = vpop.f32.mrb[63].mxu1  ;;  %v3129_v3 = vsel %vm3125_vm5, %v3122_v61, -inf }
 0xe1d   :  { %3130 = vmax.xlane.f32.xlu1 %v3129_v3 }
 0xe36   :  { %v3072_v4 = vpop.f32.mrb[36].mxu0  ;;  %v3115_v5 = vpop.f32.mrb[64].mxu1 }
 0xe37   :  { %v3123_v6 = vmul.f32 0.17677669, %v3072_v4  ;;  %v6259_v7 = vpop.f32.mrb[37].mxu0  ;;  %v3124_v8 = vmul.f32 0.17677669, %v3115_v5  ;;  %v6267_v10 = vpop.f32.mrb[65].mxu1 }
 0xe38   :  { %v3075_v9 = vpop.f32.mrb[38].mxu0  ;;  %v3118_v12 = vpop.f32.mrb[66].mxu1 }
 0xe39   :  { %v6260_v11 = vpop.f32.mrb[39].mxu0  ;;  %v3132_v14 = vsel %vm3125_vm5, %v3123_v6, -inf  ;;  %v3135_v15 = vsel %vm3125_vm5, %v3124_v8, -inf  ;;  %v6268_v52 = vpop.f32.mrb[67].mxu1 }
 0xe3a   :  { %3133 = vmax.xlane.f32.xlu0 %v3132_v14  ;;  %3136 = vmax.xlane.f32.xlu1 %v3135_v15  ;;  %v3128_v20 = vpop.xlane.xlu0 %3127 }
 0xe3b   :  { %v3138_v22 = vsub.f32 %v3121_v57, %v3128_v20 }
 0xe3d   :  { %v3142_v30 = vmul.f32 1.442695, %v3138_v22 }
 0xe50   :  { %2876 = vrot.lane.b32.xlu0 %v7737_v37, %s7024_s23 }
 0xe54   :  { %2882 = vrot.lane.b32.xlu0 %v7737_v37, %s7023_s14 }
 0xe58   :  { %3759 = vrot.lane.b32.xlu0 %v7694_v55, %s7024_s23 }
 0xe5c   :  { %3765 = vrot.lane.b32.xlu0 %v7694_v55, %s7023_s14 }
 0xe60   :  { %3753 = vrot.lane.b32.xlu0 %v7753_v53, %s7006_s28 }
 0xeaa   :  { %v3131_v29 = vpop.xlane.xlu1 %3130 }
 0xeab   :  { %v3139_v33 = vsub.f32 %v3122_v61, %v3131_v29 }
 0xead   :  { %v3144_v27 = vmul.f32 1.442695, %v3139_v33 }
 0xec7   :  { %v3134_v21 = vpop.xlane.xlu0 %3133  ;;  %v3137_v34 = vpop.xlane.xlu1 %3136 }
 0xec8   :  { %v3140_v23 = vsub.f32 %v3123_v6, %v3134_v21  ;;  %v3141_v35 = vsub.f32 %v3124_v8, %v3137_v34 }
 0xeca   :  { %v3146_v24 = vmul.f32 1.442695, %v3140_v23  ;;  %v3148_v32 = vmul.f32 1.442695, %v3141_v35 }
 0xecb   :  { %v2877_v25 = vpop.permute.xlu0 %2876 }
 0xecc   :  { %6622 = vpow2.f32 %v3146_v24  ;;  %3190 = vxpose.xlu1.c.b16.start.end [1/1] (short) (narrow) %v2877_v25, 32 }
 0xecd   :  { %6624 = vpow2.f32 %v3142_v30 }
 0xece   :  { %6626 = vpow2.f32 %v3144_v27 }
 0xecf   :  { %6628 = vpow2.f32 %v3148_v32  ;;  %v2883_v18 = vpop.permute.xlu0 %2882 }
 0xed3   :  { %v3760_v38 = vpop.permute.xlu0 %3759 }
 0xed4   :  { %2879 = vrot.lane.b32.xlu1 %v7737_v37, %s7006_s28 }
 0xed6   :  { %v6623_v26 = vpop.eup %6622 }
 0xed7   :  { %v3156_v28 = vsel %vm3125_vm5, %v6623_v26, 0.0  ;;  %v6625_v36 = vpop.eup %6624  ;;  %v3766_v60 = vpop.permute.xlu0 %3765 }
 0xed8   :  { %3157 = vadd.xlane.f32.xlu0 %v3156_v28  ;;  %3762 = vrot.lane.b32.xlu1 %v7694_v55, %s7006_s28  ;;  %v3150_v45 = vsel %vm3125_vm5, %v6625_v36, 0.0  ;;  %v6627_v46 = vpop.eup %6626 }
 0xed9   :  { %v3153_v47 = vsel %vm3125_vm5, %v6627_v46, 0.0  ;;  %v6629_v48 = vpop.eup %6628 }
 0xeda   :  { %v3159_v49 = vsel %vm3125_vm5, %v6629_v48, 0.0 }
 0xedb   :  { %v7772_v62 = vpop.permute.xlu0 %3753 }
 0xedc   :  { %3751 = vrot.lane.b32.xlu1 %v7753_v53, %s7024_s23 }
 0xf00   :  { %3151 = vadd.xlane.f32.xlu1 %v3150_v45 }
 0xf04   :  { %3154 = vadd.xlane.f32.xlu1 %v3153_v47 }
 0xf05   :  { %3174 = vxpose.xlu0.c.b16.start.end [1/1] (short) (narrow) %v7737_v37, 32 }
 0xf08   :  { %3160 = vadd.xlane.f32.xlu1 %v3159_v49 }
 0xf19   :  { %3755 = vrot.lane.b32.xlu1 %v7753_v53, %s7023_s14 }
 0xf32   :  { %v3198_v50 = vpop.trf.xlu1 }
 0xf33   :  { %6277 = vmatprep.mubr.msk.bf16.mxu1 %vm3125_vm5, %v3198_v50 }
 0xf36   :  { %v3199_v19 = vpop.trf.xlu1 }
 0xf3c   :  { %3222 = vxpose.xlu1.c.b16.start.end [1/1] (short) (narrow) %v2883_v18, 32 }
 0xf46   :  { %v2880_v51 = vpop.permute.xlu1 %2879 }
 0xf47   :  { %3206 = vxpose.xlu0.c.b16.start.end [1/1] (short) (narrow) %v2880_v51, 32 }
 0xf4a   :  { %v3763_v56 = vpop.permute.xlu1 %3762 }
 0xf4b   :  { %3811 = vxpose.xlu1.c.b16.start.end [1/1] (short) (narrow) %v3763_v56, 32 }
 0xf4c   :  { %3779 = vxpose.xlu0.c.b16.start.end [1/1] (short) (narrow) %v7694_v55, 32 }
 0xf4e   :  { %v7775_v39 = vpop.permute.xlu1 %3751 }
 0xf51   :  { %3795 = vxpose.xlu0.c.b16.start.end [1/1] (short) (narrow) %v3760_v38, 32 }
 0xf56   :  { %3827 = vxpose.xlu0.c.b16.start.end [1/1] (short) (narrow) %v3766_v60, 32 }
 0xf65   :  { %v3158_v40 = vpop.xlane.xlu0 %3157 }
 0xf66   :  { %6630 = vrcp.f32 %v3158_v40 }
 0xf6b   :  { %v3182_v37 = vpop.trf.xlu0 }
 0xf6c   :  { %6271 = vmatprep.mubr.msk.bf16.mxu0 %vm3125_vm5, %v3182_v37 }
 0xf6f   :  { %v3183_v8 = vpop.trf.xlu0 }
 0xf70   :  { %v6631_v41 = vpop.eup %6630 }
 0xf71   :  { %v3168_v54 = vmul.f32 %v6631_v41, %v6623_v26 }
 0xf73   :  { %v3172_v2 = vpack.c.bf16 %v3168_v54, %v3168_v54 }
 0xf75   :  { %v3361_v11 = vsel %vm3125_vm5, %v3172_v2, 0 }
 0xf8d   :  { %v3152_v57 = vpop.xlane.xlu1 %3151 }
 0xf8e   :  { %6632 = vrcp.f32 %v3152_v57 }
 0xf91   :  { %v3155_v42 = vpop.xlane.xlu1 %3154 }
 0xf92   :  { %6634 = vrcp.f32 %v3155_v42 }
 0xf95   :  { %v3161_v59 = vpop.xlane.xlu1 %3160 }
 0xf96   :  { %6636 = vrcp.f32 %v3161_v59 }
 0xf98   :  { %v6633_v55 = vpop.eup %6632 }
 0xf99   :  { %v3166_v44 = vmul.f32 %v6633_v55, %v6625_v36  ;;  %v3756_v10 = vpop.permute.xlu1 %3755 }
 0xf9b   :  { %v3170_v61 = vpack.c.bf16 %v3166_v44, %v3166_v44 }
 0xf9c   :  { %v6635_v58 = vpop.eup %6634 }
 0xf9d   :  { %6377 = vmatprep.subr.msk.bf16.mxu0 %vm3125_vm5, %v3170_v61  ;;  %v3245_v1 = vsel %vm3125_vm5, %v3170_v61, 0  ;;  %v3167_v3 = vmul.f32 %v6635_v58, %v6627_v46 }
 0xf9e   :  { %6270 = vmatpush3.bf16.xpose.msra.mxu0 %v3245_v1 }
 0xf9f   :  { %6379 = vmatprep.subr.msk.bf16.mxu0 %vm3125_vm5, %v3172_v2  ;;  %v3171_v4 = vpack.c.bf16 %v3167_v3, %v3167_v3 }
 0xfa0   :  { %v6637_v5 = vpop.eup %6636 }
 0xfa1   :  { %6378 = vmatprep.subr.msk.bf16.mxu1 %vm3125_vm5, %v3171_v4  ;;  %v3303_v6 = vsel %vm3125_vm5, %v3171_v4, 0  ;;  %v3169_v7 = vmul.f32 %v6637_v5, %v6629_v48 }
 0xfa2   :  { %6276 = vmatpush3.bf16.xpose.msra.mxu1 %v3303_v6  ;;  %v3230_v12 = vpop.trf.xlu1 }
 0xfa3   :  { %v3173_v9 = vpack.c.bf16 %v3169_v7, %v3169_v7 }
 0xfa5   :  { %6380 = vmatprep.subr.msk.bf16.mxu1 %vm3125_vm5, %v3173_v9  ;;  %6272 = vmatmul.mubr.msk.bf16.vlgmr.msra.gmra.mrb[40].mxu0 %vm3125_vm5, %v3183_v8  ;;  %v3419_v14 = vsel %vm3125_vm5, %v3173_v9, 0 }
 0xfa6   :  { %6282 = vmatpush3.bf16.xpose.msra.mxu0 %v3361_v11  ;;  %v3231_v52 = vpop.trf.xlu1 }
 0xfa7   :  { %6293 = vmatprep.subr.bf16.mxu0 %v7021_v0 }
 0xfa9   :  { %6278 = vmatmul.mubr.msk.bf16.vlgmr.msra.gmra.mrb[68].mxu1 %vm3125_vm5, %v3199_v19 }
 0xfaa   :  { %6288 = vmatpush3.bf16.xpose.msra.mxu1 %v3419_v14  ;;  %6289 = vmatprep.mubr.msk.bf16.mxu1 %vm3125_vm5, %v3230_v12 }
 0xfab   :  { %6301 = vmatprep.subr.bf16.mxu1 %v7021_v0 }
 0xfad   :  { %v3214_v15 = vpop.trf.xlu0 }
 0xfae   :  { %6283 = vmatprep.mubr.msk.bf16.mxu0 %vm3125_vm5, %v3214_v15 }
 0xfb1   :  { %v3215_v20 = vpop.trf.xlu0  ;;  %6290 = vmatmul.mubr.msk.bf16.vlgmr.msra.gmra.mrb[72].mxu1 %vm3125_vm5, %v3231_v52  ;;  %v3819_v24 = vpop.trf.xlu1 }
 0xfb2   :  { %6284 = vmatmul.mubr.msk.bf16.vlgmr.msra.gmra.mrb[44].mxu0 %vm3125_vm5, %v3215_v20  ;;  %6305 = vmatprep.mubr.msk.bf16.mxu1 %vm7022_vm0, %v7021_v0 }
 0xfb3   :  { %6297 = vmatprep.mubr.msk.bf16.mxu0 %vm7022_vm0, %v7021_v0 }
 0xfb5   :  { %v3787_v21 = vpop.trf.xlu0  ;;  %v3820_v26 = vpop.trf.xlu1 }
 0xfb6   :  { %6294 = vmatpush3.bf16.msra.mxu0 %v3787_v21 }
 0xfb7   :  { %6295 = vmatprep.subr.bf16.mxu0 %v7021_v0 }
 0xfb9   :  { %v3788_v23 = vpop.trf.xlu0 }
 0xfba   :  { %6296 = vmatpush3.bf16.msra.mxu0 %v3788_v23 }
 0xfbb   :  { %6309 = vmatprep.subr.bf16.mxu0 %v7021_v0 }
 0xfbd   :  { %6298 = vmatmul.mubr.msk.bf16.vlgmr.msra.gmra.mrb[48].mxu0 %vm669_vm1, %v7753_v53  ;;  %v3803_v25 = vpop.trf.xlu0 }
 0xfbe   :  { %6302 = vmatpush3.bf16.msra.mxu1 %v3803_v25  ;;  %6310 = vmatpush3.bf16.msra.mxu0 %v3819_v24 }
 0xfbf   :  { %6303 = vmatprep.subr.bf16.mxu1 %v7021_v0  ;;  %6311 = vmatprep.subr.bf16.mxu0 %v7021_v0 }
 0xfc0   :  { %6313 = vmatprep.mubr.msk.bf16.mxu0 %vm7022_vm0, %v7021_v0 }
 0xfc1   :  { %v3804_v28 = vpop.trf.xlu0 }
 0xfc2   :  { %6304 = vmatpush3.bf16.msra.mxu1 %v3804_v28  ;;  %6312 = vmatpush3.bf16.msra.mxu0 %v3820_v26 }
 0xfc3   :  { %6317 = vmatprep.subr.bf16.mxu1 %v7021_v0 }
 0xfc5   :  { %6306 = vmatmul.mubr.msk.bf16.vlgmr.msra.gmra.mrb[76].mxu1 %vm669_vm1, %v7775_v39  ;;  %6314 = vmatmul.mubr.msk.bf16.vlgmr.msra.gmra.mrb[52].mxu0 %vm669_vm1, %v7772_v62  ;;  %v3835_v53 = vpop.trf.xlu0 }
 0xfc6   :  { %6318 = vmatpush3.bf16.msra.mxu1 %v3835_v53  ;;  %6321 = vmatprep.mubr.msk.bf16.mxu1 %vm7022_vm0, %v7021_v0 }
 0xfc7   :  { %6319 = vmatprep.subr.bf16.mxu1 %v7021_v0 }
 0xfc9   :  { %v3836_v22 = vpop.trf.xlu0 }
 0xfca   :  { %6320 = vmatpush3.bf16.msra.mxu1 %v3836_v22 }
 0xfcd   :  { %6322 = vmatmul.mubr.msk.bf16.vlgmr.msra.gmra.mrb[80].mxu1 %vm669_vm1, %v3756_v10 }
0x1078   :  { %v7814_v29 = vpop.f32.mrb[40].mxu0 }
0x1079   :  { %v7816_v30 = vpop.f32.mrb[41].mxu0 }
0x107a   :  { %v7818_v33 = vpop.f32.mrb[42].mxu0 }
0x107b   :  { %v7820_v34 = vpop.f32.mrb[43].mxu0 }
0x107c   :  { %v7822_v27 = vpop.f32.mrb[68].mxu1 }
0x107d   :  { %v7824_v35 = vpop.f32.mrb[69].mxu1 }
0x107e   :  { %v7826_v32 = vpop.f32.mrb[70].mxu1 }
0x107f   :  { %v7828_v36 = vpop.f32.mrb[71].mxu1 }
0x1084   :  { %v7830_v45 = vpop.f32.mrb[72].mxu1 }
0x1085   :  { %v7832_v46 = vpop.f32.mrb[44].mxu0  ;;  %v7834_v47 = vpop.f32.mrb[73].mxu1 }
0x1086   :  { %v7836_v48 = vpop.f32.mrb[45].mxu0  ;;  %v7838_v49 = vpop.f32.mrb[74].mxu1 }
0x1087   :  { %v7840_v50 = vpop.f32.mrb[46].mxu0  ;;  %v7842_v18 = vpop.f32.mrb[75].mxu1 }
0x1088   :  { %v7844_v19 = vpop.f32.mrb[47].mxu0 }
0x1090   :  { %v3880_v51 = vpop.f32.mrb[48].mxu0 }
0x1091   :  { %v4015_v56 = vmul.f32 0.17677669, %v3880_v51  ;;  %v6299_v38 = vpop.f32.mrb[49].mxu0 }
0x1092   :  { %v3883_v60 = vpop.f32.mrb[50].mxu0 }
0x1093   :  { %v6300_v62 = vpop.f32.mrb[51].mxu0  ;;  %v4019_v40 = vsel %vm3125_vm5, %v4015_v56, -inf }
0x1094   :  { %4020 = vmax.xlane.f32.xlu1 %v4019_v40 }
0x1098   :  { %v3923_v37 = vpop.f32.mrb[76].mxu1  ;;  %v3966_v39 = vpop.f32.mrb[52].mxu0 }
0x1099   :  { %v4016_v57 = vmul.f32 0.17677669, %v3923_v37  ;;  %v4017_v42 = vmul.f32 0.17677669, %v3966_v39  ;;  %v6307_v59 = vpop.f32.mrb[77].mxu1  ;;  %v6315_v41 = vpop.f32.mrb[53].mxu0 }
0x109a   :  { %v3926_v55 = vpop.f32.mrb[78].mxu1  ;;  %v3969_v44 = vpop.f32.mrb[54].mxu0 }
0x109b   :  { %v6308_v54 = vpop.f32.mrb[79].mxu1  ;;  %v6316_v61 = vpop.f32.mrb[55].mxu0  ;;  %v4025_v58 = vsel %vm3125_vm5, %v4017_v42, -inf  ;;  %v4022_v1 = vsel %vm3125_vm5, %v4016_v57, -inf }
0x109c   :  { %4026 = vmax.xlane.f32.xlu1 %v4025_v58  ;;  %4023 = vmax.xlane.f32.xlu0 %v4022_v1 }
0x10a0   :  { %v4009_v2 = vpop.f32.mrb[80].mxu1 }
0x10a1   :  { %v4018_v3 = vmul.f32 0.17677669, %v4009_v2  ;;  %v6323_v4 = vpop.f32.mrb[81].mxu1 }
0x10a2   :  { %v4012_v5 = vpop.f32.mrb[82].mxu1 }
0x10a3   :  { %v6324_v6 = vpop.f32.mrb[83].mxu1  ;;  %v4028_v7 = vsel %vm3125_vm5, %v4018_v3, -inf }
0x10a4   :  { %4029 = vmax.xlane.f32.xlu1 %v4028_v7 }
0x10b2   :  { %3770 = vrot.lane.b32.xlu0 %v7735_v63, %s7024_s23 }
0x10b6   :  { %3776 = vrot.lane.b32.xlu0 %v7735_v63, %s7023_s14 }
0x1121   :  { %v4021_v8 = vpop.xlane.xlu1 %4020 }
0x1122   :  { %v4031_v9 = vsub.f32 %v4015_v56, %v4021_v8 }
0x1124   :  { %v4035_v10 = vmul.f32 1.442695, %v4031_v9 }
0x1126   :  { %6638 = vpow2.f32 %v4035_v10 }
0x1129   :  { %v4027_v11 = vpop.xlane.xlu1 %4026  ;;  %v4024_v12 = vpop.xlane.xlu0 %4023 }
0x112a   :  { %v4033_v14 = vsub.f32 %v4017_v42, %v4027_v11  ;;  %v4032_v15 = vsub.f32 %v4016_v57, %v4024_v12 }
0x112c   :  { %v4039_v52 = vmul.f32 1.442695, %v4033_v14  ;;  %v4037_v20 = vmul.f32 1.442695, %v4032_v15 }
0x112d   :  { %v3771_v60 = vpop.permute.xlu0 %3770 }
0x112e   :  { %6640 = vpow2.f32 %v4039_v52 }
0x112f   :  { %6642 = vpow2.f32 %v4037_v20 }
0x1130   :  { %v6639_v21 = vpop.eup %6638 }
0x1131   :  { %v4043_v23 = vsel %vm3125_vm5, %v6639_v21, 0.0  ;;  %v4030_v53 = vpop.xlane.xlu1 %4029 }
0x1132   :  { %4044 = vadd.xlane.f32.xlu1 %v4043_v23  ;;  %v4034_v22 = vsub.f32 %v4018_v3, %v4030_v53 }
0x1134   :  { %v4041_v51 = vmul.f32 1.442695, %v4034_v22 }
0x1136   :  { %6644 = vpow2.f32 %v4041_v51 }
0x1138   :  { %v6641_v24 = vpop.eup %6640 }
0x1139   :  { %v6643_v25 = vpop.eup %6642  ;;  %v4049_v26 = vsel %vm3125_vm5, %v6641_v24, 0.0 }
0x113a   :  { %4050 = vadd.xlane.f32.xlu0 %v4049_v26  ;;  %v4046_v28 = vsel %vm3125_vm5, %v6643_v25, 0.0 }
0x113b   :  { %4047 = vadd.xlane.f32.xlu1 %v4046_v28 }
0x1140   :  { %v6645_v56 = vpop.eup %6644 }
0x1141   :  { %v4052_v38 = vsel %vm3125_vm5, %v6645_v56, 0.0 }
0x114c   :  { %3773 = vrot.lane.b32.xlu1 %v7735_v63, %s7006_s28 }
0x1167   :  { %4067 = vxpose.xlu0.c.b16.start.end [1/1] (short) (narrow) %v7735_v63, 32  ;;  %v3777_v63 = vpop.permute.xlu0 %3776 }
0x1170   :  { %4053 = vadd.xlane.f32.xlu1 %v4052_v38 }
0x119d   :  { %4083 = vxpose.xlu1.c.b16.start.end [1/1] (short) (narrow) %v3771_v60, 32 }
0x11ab   :  { %3470 = vxpose.xlu1.b32.start [1/4] (short) (narrow) %v7816_v30, 8 }
0x11af   :  { %3471 = vxpose.xlu1.b32.cont [2/4] (short) (narrow) %v7820_v34, 8 }
0x11b3   :  { %3472 = vxpose.xlu1.b32.cont [3/4] (short) (narrow) %v7814_v29, 8 }
0x11b7   :  { %3473 = vxpose.xlu1.b32.end [4/4] (short) (narrow) %v7818_v33, 8 }
0x11bb   :  { %3566 = vxpose.xlu1.b32.start [1/4] (short) (narrow) %v7834_v47, 8 }
0x11bf   :  { %3567 = vxpose.xlu1.b32.cont [2/4] (short) (narrow) %v7842_v18, 8  ;;  %v4045_v62 = vpop.xlane.xlu1 %4044 }
0x11c0   :  { %6646 = vrcp.f32 %v4045_v62 }
0x11c3   :  { %3568 = vxpose.xlu1.b32.cont [3/4] (short) (narrow) %v7830_v45, 8 }
0x11c7   :  { %3569 = vxpose.xlu1.b32.end [4/4] (short) (narrow) %v7838_v49, 8  ;;  %v4051_v40 = vpop.xlane.xlu0 %4050 }
0x11c8   :  { %v4048_v37 = vpop.xlane.xlu1 %4047  ;;  %6648 = vrcp.f32 %v4051_v40 }
0x11c9   :  { %6650 = vrcp.f32 %v4048_v37 }
0x11ca   :  { %v6647_v30 = vpop.eup %6646 }
0x11cb   :  { %v4059_v34 = vmul.f32 %v6647_v30, %v6639_v21 }
0x11cc   :  { %v3774_v29 = vpop.permute.xlu1 %3773 }
0x11cd   :  { %4099 = vxpose.xlu0.c.b16.start.end [1/1] (short) (narrow) %v3774_v29, 32  ;;  %v4063_v33 = vpack.c.bf16 %v4059_v34, %v4059_v34  ;;  %v4075_v39 = vpop.trf.xlu0 }
0x11ce   :  { %6327 = vmatprep.mubr.msk.bf16.mxu0 %vm3125_vm5, %v4075_v39 }
0x11cf   :  { %6381 = vmatprep.subr.msk.bf16.mxu0 %vm3125_vm5, %v4063_v33  ;;  %v4138_v47 = vsel %vm3125_vm5, %v4063_v33, 0 }
0x11d0   :  { %6326 = vmatpush3.bf16.xpose.msra.mxu0 %v4138_v47 }
0x11d1   :  { %v4076_v42 = vpop.trf.xlu0 }
0x11d2   :  { %v6649_v45 = vpop.eup %6648  ;;  %4115 = vxpose.xlu0.c.b16.start.end [1/1] (short) (narrow) %v3777_v63, 32 }
0x11d3   :  { %v6651_v49 = vpop.eup %6650  ;;  %v4061_v18 = vmul.f32 %v6649_v45, %v6641_v24 }
0x11d4   :  { %v4060_v57 = vmul.f32 %v6651_v49, %v6643_v25 }
0x11d5   :  { %v4065_v59 = vpack.c.bf16 %v4061_v18, %v4061_v18 }
0x11d6   :  { %v4064_v41 = vpack.c.bf16 %v4060_v57, %v4060_v57 }
0x11d7   :  { %6383 = vmatprep.subr.msk.bf16.mxu0 %vm3125_vm5, %v4065_v59  ;;  %6328 = vmatmul.mubr.msk.bf16.vlgmr.msra.gmra.mrb[56].mxu0 %vm3125_vm5, %v4076_v42  ;;  %v4254_v55 = vsel %vm3125_vm5, %v4065_v59, 0 }
0x11d8   :  { %6382 = vmatprep.subr.msk.bf16.mxu1 %vm3125_vm5, %v4064_v41  ;;  %v4196_v44 = vsel %vm3125_vm5, %v4064_v41, 0  ;;  %6338 = vmatpush3.bf16.xpose.msra.mxu0 %v4254_v55 }
0x11d9   :  { %6332 = vmatpush3.bf16.xpose.msra.mxu1 %v4196_v44  ;;  %6349 = vmatprep.subr.bf16.mxu0 %v7021_v0 }
0x11da   :  { %3502 = vxpose.xlu0.b32.start [1/4] (short) (narrow) %v7824_v35, 8 }
0x11de   :  { %3503 = vxpose.xlu0.b32.cont [2/4] (short) (narrow) %v7828_v36, 8 }
0x11e2   :  { %3504 = vxpose.xlu0.b32.cont [3/4] (short) (narrow) %v7822_v27, 8 }
0x11e6   :  { %3505 = vxpose.xlu0.b32.end [4/4] (short) (narrow) %v7826_v32, 8 }
0x11ea   :  { %3534 = vxpose.xlu0.b32.start [1/4] (short) (narrow) %v7836_v48, 8 }
0x11ee   :  { %3535 = vxpose.xlu0.b32.cont [2/4] (short) (narrow) %v7844_v19, 8 }
0x11f2   :  { %3536 = vxpose.xlu0.b32.cont [3/4] (short) (narrow) %v7832_v46, 8 }
0x11f6   :  { %3537 = vxpose.xlu0.b32.end [4/4] (short) (narrow) %v7840_v50, 8 }
0x11fd   :  { %v4054_v54 = vpop.xlane.xlu1 %4053 }
0x11fe   :  { %6652 = vrcp.f32 %v4054_v54 }
0x1203   :  { %v4091_v61 = vpop.trf.xlu1 }
0x1204   :  { %6333 = vmatprep.mubr.msk.bf16.mxu1 %vm3125_vm5, %v4091_v61 }
0x1207   :  { %v4092_v35 = vpop.trf.xlu1 }
0x1208   :  { %v6653_v58 = vpop.eup %6652  ;;  %6334 = vmatmul.mubr.msk.bf16.vlgmr.msra.gmra.mrb[84].mxu1 %vm3125_vm5, %v4092_v35  ;;  %v6498_v35 = vld [vmem:[#allocation19] sm:$0xff]  }
0x1209   :  { %v4062_v27 = vmul.f32 %v6653_v58, %v6645_v56  ;;  %v6499_v58 = vld [vmem:[#allocation19 + $0x8] sm:$0xff]  }
0x120b   :  { %v4066_v36 = vpack.c.bf16 %v4062_v27, %v4062_v27  ;;  %v6500_v27 = vld [vmem:[#allocation19 + $0x10] sm:$0xff]  }
0x120d   :  { %6384 = vmatprep.subr.msk.bf16.mxu1 %vm3125_vm5, %v4066_v36  ;;  %v4312_v32 = vsel %vm3125_vm5, %v4066_v36, 0  ;;  %v6501_v36 = vld [vmem:[#allocation19 + $0x18] sm:$0xff]  }
0x120e   :  { %6344 = vmatpush3.bf16.xpose.msra.mxu1 %v4312_v32  ;;  %v6502_v32 = vld [vmem:[#allocation19 + $0x20] sm:$0xff]  }
0x122b   :  { %v3486_v9 = vpop.trf.xlu1 }
0x1233   :  { %v4107_v48 = vpop.trf.xlu0 }
0x1234   :  { %6339 = vmatprep.mubr.msk.bf16.mxu0 %vm3125_vm5, %v4107_v48  ;;  %v6503_v48 = vld [vmem:[#allocation19 + $0x28] sm:$0xff]  }
0x1237   :  { %v4108_v46 = vpop.trf.xlu0 }
0x1238   :  { %6340 = vmatmul.mubr.msk.bf16.vlgmr.msra.gmra.mrb[60].mxu0 %vm3125_vm5, %v4108_v46 }
0x1239   :  { %6365 = vmatprep.mubr.msk.bf16.mxu0 %vm7022_vm0, %v7021_v0  ;;  %6350 = vmatpush3.bf16.msra.mxu0 %v6498_v35 }
0x123a   :  { %6351 = vmatprep.subr.bf16.mxu0 %v7021_v0 }
0x123b   :  { %v4123_v50 = vpop.trf.xlu0  ;;  %v3582_v11 = vpop.trf.xlu1 }
0x123c   :  { %6345 = vmatprep.mubr.msk.bf16.mxu1 %vm3125_vm5, %v4123_v50 }
0x123d   :  { %6352 = vmatpush3.bf16.msra.mxu0 %v6499_v58 }
0x123e   :  { %6353 = vmatprep.subr.bf16.mxu0 %v7021_v0 }
0x123f   :  { %v4124_v19 = vpop.trf.xlu0 }
0x1240   :  { %6346 = vmatmul.mubr.msk.bf16.vlgmr.msra.gmra.mrb[88].mxu1 %vm3125_vm5, %v4124_v19 }
0x1241   :  { %6354 = vmatpush3.bf16.msra.mxu0 %v6500_v27 }
0x1242   :  { %6355 = vmatprep.subr.bf16.mxu0 %v7021_v0 }
0x1245   :  { %6356 = vmatpush3.bf16.msra.mxu0 %v6501_v36 }
0x1246   :  { %6357 = vmatprep.subr.bf16.mxu0 %v7021_v0 }
0x1249   :  { %6358 = vmatpush3.bf16.msra.mxu0 %v6502_v32 }
0x124a   :  { %6359 = vmatprep.subr.bf16.mxu0 %v7021_v0 }
0x124d   :  { %6360 = vmatpush3.bf16.msra.mxu0 %v6503_v48 }
0x124e   :  { %6361 = vmatprep.subr.bf16.mxu0 %v7021_v0 }
0x125a   :  { %v3518_v10 = vpop.trf.xlu0 }
0x125b   :  { %v3614_v14 = vcombine.low %v3518_v10, %v3582_v11  ;;  %v3615_v15 = vcombine.high %v3518_v10, %v3582_v11 }
0x125d   :  { %v3622_v21 = vrot.slane %v3614_v14, %v7597_v16  ;;  %v3629_v23 = vrot.slane %v3615_v15, %v7597_v16 }
0x126a   :  { %v3550_v12 = vpop.trf.xlu0 }
0x126b   :  { %v3598_v52 = vcombine.low %v3486_v9, %v3550_v12  ;;  %v3599_v20 = vcombine.high %v3486_v9, %v3550_v12 }
0x126d   :  { %v3606_v24 = vrot.slane %v3598_v52, %v7597_v16  ;;  %v3613_v25 = vrot.slane %v3599_v20, %v7597_v16 }
0x126f   :  { %v3630_v26 = vcombine.low %v3606_v24, %v3622_v21  ;;  %v3631_v28 = vcombine.high %v3606_v24, %v3622_v21  ;;  %v3646_v53 = vcombine.low %v3613_v25, %v3629_v23  ;;  %v3647_v22 = vcombine.high %v3613_v25, %v3629_v23  ;;  %v6504_v25 = vld [vmem:[#allocation19 + $0x30] sm:$0xff]  }
0x1270   :  { %6362 = vmatpush3.bf16.msra.mxu0 %v6504_v25 }
0x1271   :  { %v3638_v51 = vrot.slane %v3630_v26, %v7604_v31  ;;  %v3645_v56 = vrot.slane %v3631_v28, %v7604_v31  ;;  %v3654_v38 = vrot.slane %v3646_v53, %v7604_v31  ;;  %v3661_v60 = vrot.slane %v3647_v22, %v7604_v31  ;;  %6363 = vmatprep.subr.bf16.mxu0 %v7021_v0 }
0x1273   :  { %v3666_v30 = vcombine.low %v3638_v51, %v3645_v56  ;;  %v5678_v34 = vcombine.high %v3638_v51, %v3645_v56  ;;  %v3682_v29 = vcombine.low %v3654_v38, %v3661_v60  ;;  %v5679_v33 = vcombine.high %v3654_v38, %v3661_v60 }
0x1275   :  { %v7905_v39 = vrot.slane %v3666_v30, %v7597_v16  ;;  %v7908_v47 = vrot.slane %v5678_v34, %v7597_v16  ;;  %v7911_v45 = vrot.slane %v3682_v29, %v7597_v16  ;;  %v7914_v49 = vrot.slane %v5679_v33, %v7597_v16 }
0x1277   :  { %v3698_v41 = vcombine.low %v7905_v39, %v7908_v47  ;;  %v3714_v55 = vcombine.low %v7911_v45, %v7914_v49  ;;  %v3699_v23 = vcombine.high %v7905_v39, %v7908_v47  ;;  %v3715_v24 = vcombine.high %v7911_v45, %v7914_v49 }
0x1279   :  { %v7921_v44 = vrot.slane %v3698_v41, %v7604_v31  ;;  %v7924_v54 = vrot.slane %v3714_v55, %v7604_v31 }
0x127b   :  { %v3730_v61 = vcombine.low %v7921_v44, %v7924_v54  ;;  %v3731_v49 = vcombine.high %v7921_v44, %v7924_v54 }
0x12aa   :  { %v6329_v1 = vpop.f32.mrb[56].mxu0 }
0x12ab   :  { %v4174_v2 = vpop.f32.mrb[57].mxu0 }
0x12ac   :  { %4363 = vxpose.xlu0.b32.start [1/4] (short) (narrow) %v4174_v2, 8  ;;  %v6330_v3 = vpop.f32.mrb[58].mxu0 }
0x12ad   :  { %v4177_v4 = vpop.f32.mrb[59].mxu0 }
0x12b0   :  { %4364 = vxpose.xlu0.b32.cont [2/4] (short) (narrow) %v4177_v4, 8 }
0x12b4   :  { %4365 = vxpose.xlu0.b32.cont [3/4] (short) (narrow) %v6329_v1, 8 }
0x12b8   :  { %4366 = vxpose.xlu0.b32.end [4/4] (short) (narrow) %v6330_v3, 8 }
0x12db   :  { %v6335_v5 = vpop.f32.mrb[84].mxu1 }
0x12dc   :  { %v4232_v6 = vpop.f32.mrb[85].mxu1 }
0x12dd   :  { %4395 = vxpose.xlu1.b32.start [1/4] (short) (narrow) %v4232_v6, 8  ;;  %v6336_v7 = vpop.f32.mrb[86].mxu1 }
0x12de   :  { %v4235_v8 = vpop.f32.mrb[87].mxu1 }
0x12e1   :  { %4396 = vxpose.xlu1.b32.cont [2/4] (short) (narrow) %v4235_v8, 8 }
0x12e5   :  { %4397 = vxpose.xlu1.b32.cont [3/4] (short) (narrow) %v6335_v5, 8 }
0x12e9   :  { %4398 = vxpose.xlu1.b32.end [4/4] (short) (narrow) %v6336_v7, 8 }
0x130b   :  { %v6341_v62 = vpop.f32.mrb[60].mxu0 }
0x130c   :  { %v4290_v63 = vpop.f32.mrb[61].mxu0 }
0x130d   :  { %4427 = vxpose.xlu0.b32.start [1/4] (short) (narrow) %v4290_v63, 8  ;;  %v6342_v40 = vpop.f32.mrb[62].mxu0  ;;  %v3729_v63 = vrot.slane %v3715_v24, %v7604_v31 }
0x130e   :  { %v4293_v37 = vpop.f32.mrb[63].mxu0 }
0x1311   :  { %4428 = vxpose.xlu0.b32.cont [2/4] (short) (narrow) %v4293_v37, 8 }
0x1313   :  { %v6347_v18 = vpop.f32.mrb[88].mxu1 }
0x1314   :  { %v4348_v57 = vpop.f32.mrb[89].mxu1 }
0x1315   :  { %4429 = vxpose.xlu0.b32.cont [3/4] (short) (narrow) %v6341_v62, 8  ;;  %4459 = vxpose.xlu1.b32.start [1/4] (short) (narrow) %v4348_v57, 8  ;;  %v6348_v42 = vpop.f32.mrb[90].mxu1  ;;  %v3713_v62 = vrot.slane %v3699_v23, %v7604_v31 }
0x1316   :  { %v4351_v59 = vpop.f32.mrb[91].mxu1 }
0x1317   :  { %v3732_v45 = vcombine.low %v3713_v62, %v3729_v63  ;;  %v3733_v55 = vcombine.high %v3713_v62, %v3729_v63  ;;  %v6526_v62 = vld [vmem:[#allocation20 + $0x64] ss:$16 sps:$4 sm:$0xff]   ;;  %v6529_v63 = vld [vmem:[#allocation20 + $0x6c] ss:$16 sps:$4 sm:$0xff]  }
0x1319   :  { %4430 = vxpose.xlu0.b32.end [4/4] (short) (narrow) %v6342_v40, 8  ;;  %4460 = vxpose.xlu1.b32.cont [2/4] (short) (narrow) %v4351_v59, 8  ;;  %v6505_v40 = vld [vmem:[#allocation19 + $0x38] sm:$0xff]  }
0x131a   :  { %6364 = vmatpush3.bf16.msra.mxu0 %v6505_v40  ;;  %v6524_v40 = vld [vmem:[#allocation20 + $0x60] ss:$16 sps:$4 sm:$0xff]  }
0x131d   :  { %4461 = vxpose.xlu1.b32.cont [3/4] (short) (narrow) %v6347_v18, 8 }
0x1321   :  { %4462 = vxpose.xlu1.b32.end [4/4] (short) (narrow) %v6348_v42, 8 }
0x132c   :  { %v4379_v46 = vpop.trf.xlu0 }
0x135d   :  { %v4411_v50 = vpop.trf.xlu1 }
0x138d   :  { %v4443_v19 = vpop.trf.xlu0 }
0x138e   :  { %v4491_v1 = vcombine.low %v4379_v46, %v4443_v19  ;;  %v4492_v2 = vcombine.high %v4379_v46, %v4443_v19 }
0x1390   :  { %v4499_v6 = vrot.slane %v4491_v1, %v7597_v16  ;;  %v4506_v7 = vrot.slane %v4492_v2, %v7597_v16 }
0x1395   :  { %v4475_v3 = vpop.trf.xlu1 }
0x1396   :  { %v4507_v4 = vcombine.low %v4411_v50, %v4475_v3  ;;  %v4508_v5 = vcombine.high %v4411_v50, %v4475_v3 }
0x1398   :  { %v4515_v8 = vrot.slane %v4507_v4, %v7597_v16  ;;  %v4522_v9 = vrot.slane %v4508_v5, %v7597_v16 }
0x139a   :  { %v4523_v10 = vcombine.low %v4499_v6, %v4515_v8  ;;  %v4524_v11 = vcombine.high %v4499_v6, %v4515_v8  ;;  %v4539_v12 = vcombine.low %v4506_v7, %v4522_v9  ;;  %v4540_v14 = vcombine.high %v4506_v7, %v4522_v9 }
0x139c   :  { %v4531_v15 = vrot.slane %v4523_v10, %v7604_v31  ;;  %v4538_v52 = vrot.slane %v4524_v11, %v7604_v31  ;;  %v4547_v20 = vrot.slane %v4539_v12, %v7604_v31  ;;  %v4554_v21 = vrot.slane %v4540_v14, %v7604_v31  ;;  %v6506_v11 = vld [vmem:[#allocation20] ss:$16 sps:$4 sm:$0xff]   ;;  %v6508_v12 = vld [vmem:[#allocation20 + $0x4] ss:$16 sps:$4 sm:$0xff]   ;;  %v6509_v14 = vld [vmem:[#allocation20 + $0x8] ss:$16 sps:$4 sm:$0xff]  }
0x139d   :  { %5005 = vmatprep.subr.bf16.mxu1 %v6508_v12  ;;  %v6560_v12 = vld [vmem:[#allocation22 + $0x8] sm:$0xff]  }
0x139e   :  { %v4559_v26 = vcombine.low %v4531_v15, %v4538_v52  ;;  %v5692_v28 = vcombine.high %v4531_v15, %v4538_v52  ;;  %v4575_v53 = vcombine.low %v4547_v20, %v4554_v21  ;;  %v5693_v22 = vcombine.high %v4547_v20, %v4554_v21  ;;  %v6511_v15 = vld [vmem:[#allocation20 + $0xc] ss:$16 sps:$4 sm:$0xff]   ;;  %v6514_v52 = vld [vmem:[#allocation20 + $0x24] ss:$16 sps:$4 sm:$0xff]   ;;  %5006 = vmatpush1.bf16.msra.mxu1 %v6506_v11  ;;  %v6512_v21 = vld [vmem:[#allocation20 + $0x20] ss:$16 sps:$4 sm:$0xff]  }
0x139f   :  { %v6517_v20 = vld [vmem:[#allocation20 + $0x2c] ss:$16 sps:$4 sm:$0xff]   ;;  %5048 = vmatprep.subr.bf16.mxu0 %v6511_v15  ;;  %5007 = vmatprep.subr.bf16.mxu1 %v6514_v52  ;;  %v6562_v15 = vld [vmem:[#allocation22 + $0x50] sm:$0xff]  }
0x13a0   :  { %v4566_v51 = vrot.slane %v4559_v26, %v7597_v16  ;;  %v4574_v56 = vrot.slane %v5692_v28, %v7597_v16  ;;  %v4582_v38 = vrot.slane %v4575_v53, %v7597_v16  ;;  %v4590_v60 = vrot.slane %v5693_v22, %v7597_v16  ;;  %v6559_v11 = vld [vmem:[#allocation22 + $0xc8] sm:$0xff]   ;;  %v6563_v52 = vld [vmem:[#allocation22 + $0xd0] sm:$0xff]  }
0x13a2   :  { %v4592_v37 = vcombine.high %v4566_v51, %v4574_v56  ;;  %v4608_v30 = vcombine.high %v4582_v38, %v4590_v60  ;;  %v4591_v34 = vcombine.low %v4566_v51, %v4574_v56  ;;  %v4607_v29 = vcombine.low %v4582_v38, %v4590_v60  ;;  %5008 = vmatpush1.bf16.msra.mxu1 %v6512_v21  ;;  %v6520_v51 = vld [vmem:[#allocation20 + $0x44] ss:$16 sps:$4 sm:$0xff]   ;;  %v6523_v56 = vld [vmem:[#allocation20 + $0x4c] ss:$16 sps:$4 sm:$0xff]   ;;  %v6518_v38 = vld [vmem:[#allocation20 + $0x40] ss:$16 sps:$4 sm:$0xff]  }
0x13a3   :  { %v6521_v60 = vld [vmem:[#allocation20 + $0x48] ss:$16 sps:$4 sm:$0xff]   ;;  %5009 = vmatprep.subr.bf16.mxu1 %v6520_v51  ;;  %v6565_v21 = vld [vmem:[#allocation22 + $0x90] sm:$0xff]  }
0x13a4   :  { %v4606_v33 = vrot.slane %v4592_v37, %v7604_v31  ;;  %v4622_v39 = vrot.slane %v4608_v30, %v7604_v31  ;;  %v4599_v47 = vrot.slane %v4591_v34, %v7604_v31  ;;  %v4615_v16 = vrot.slane %v4607_v29, %v7604_v31  ;;  %v6527_v37 = vld [vmem:[#allocation20 + $0x68] ss:$16 sps:$4 sm:$0xff]   ;;  %v6532_v30 = vld [vmem:[#allocation20 + $0x84] ss:$16 sps:$4 sm:$0xff]   ;;  %v6535_v34 = vld [vmem:[#allocation20 + $0x8c] ss:$16 sps:$4 sm:$0xff]  }
0x13a5   :  { %v6530_v29 = vld [vmem:[#allocation20 + $0x80] ss:$16 sps:$4 sm:$0xff]   ;;  %v6575_v51 = vld [vmem:[#allocation22 + $0xe8] sm:$0xff]  }
0x13a6   :  { %v4625_v0 = vcombine.low %v4606_v33, %v4622_v39  ;;  %v4624_v18 = vcombine.high %v4599_v47, %v4615_v16  ;;  %v4623_v57 = vcombine.low %v4599_v47, %v4615_v16  ;;  %v4626_v41 = vcombine.high %v4606_v33, %v4622_v39  ;;  %5010 = vmatpush1.bf16.msra.mxu1 %v6518_v38  ;;  %v6533_v33 = vld [vmem:[#allocation20 + $0x88] ss:$16 sps:$4 sm:$0xff]   ;;  %v6538_v39 = vld [vmem:[#allocation20 + $0xa4] ss:$16 sps:$4 sm:$0xff]   ;;  %v6541_v47 = vld [vmem:[#allocation20 + $0xac] ss:$16 sps:$4 sm:$0xff]  }
0x13a7   :  { %5011 = vmatprep.subr.bf16.mxu1 %v6526_v62  ;;  %v6536_v16 = vld [vmem:[#allocation20 + $0xa0] ss:$16 sps:$4 sm:$0xff]   ;;  %v6577_v38 = vld [vmem:[#allocation22 + $0xa8] sm:$0xff]  }
0x13a8   :  { %v6432_v42 = vpack.i.bf16 %v4625_v0, %v3732_v45  ;;  %v6427_v59 = vpack.i.bf16 %v4624_v18, %v3731_v49  ;;  %v6437_v35 = vpack.i.bf16 %v4626_v41, %v3733_v55  ;;  %v6539_v45 = vld [vmem:[#allocation20 + $0xa8] ss:$16 sps:$4 sm:$0xff]   ;;  %v6544_v0 = vld [vmem:[#allocation20 + $0xc4] ss:$16 sps:$4 sm:$0xff]   ;;  %v6547_v49 = vld [vmem:[#allocation20 + $0xcc] ss:$16 sps:$4 sm:$0xff]  }
0x13a9   :  { %v6542_v18 = vld [vmem:[#allocation20 + $0xc0] ss:$16 sps:$4 sm:$0xff]   ;;  %v6551_v41 = vld [vmem:[#allocation20 + $0xe8] ss:$16 sps:$4 sm:$0xff]   ;;  %v6553_v55 = vld [vmem:[#allocation20 + $0xec] ss:$16 sps:$4 sm:$0xff]  }
0x13aa   :  { %6433 = vrot.lane.b32.xlu1 %v6432_v42, %s7006_s28  ;;  %6428 = vrot.lane.b32.xlu0 %v6427_v59, %s7023_s14  ;;  %v6548_v42 = vld [vmem:[#allocation20 + $0xe0] ss:$16 sps:$4 sm:$0xff]   ;;  %v6550_v59 = vld [vmem:[#allocation20 + $0xe4] ss:$16 sps:$4 sm:$0xff]  }
0x13ab   :  { %5012 = vmatpush1.bf16.msra.mxu1 %v6524_v40  ;;  %v6579_v62 = vld [vmem:[#allocation22 + $0xf0] sm:$0xff]  }
0x13ac   :  { %5013 = vmatprep.subr.bf16.mxu1 %v6532_v30  ;;  %v6581_v40 = vld [vmem:[#allocation22 + $0xb0] sm:$0xff]   ;;  %v6583_v30 = vld [vmem:[#allocation22 + $0xf8] sm:$0xff]  }
0x13ae   :  { %6438 = vrot.lane.b32.xlu1 %v6437_v35, %s7024_s23  ;;  %v7027_v35 = vmov 0  }
0x13af   :  { %5014 = vmatpush1.bf16.msra.mxu1 %v6530_v29  ;;  %5037 = vmatprep.mubr.bf16.mxu1 %v7027_v35  ;;  %v6585_v29 = vld [vmem:[#allocation22 + $0xb8] sm:$0xff]  }
0x13b0   :  { %5015 = vmatprep.subr.bf16.mxu1 %v6538_v39  ;;  %v4835_v39 = vsub.s32 2, %v7594_v13 }
0x13b3   :  { %5016 = vmatpush1.bf16.msra.mxu1 %v6536_v16  ;;  %v4831_v16 = vsub.s32 1, %v7594_v13 }
0x13b4   :  { %5017 = vmatprep.subr.bf16.mxu1 %v6544_v0 }
0x13b7   :  { %5018 = vmatpush1.bf16.msra.mxu1 %v6542_v18 }
0x13b8   :  { %5019 = vmatprep.subr.bf16.mxu1 %v6550_v59 }
0x13bb   :  { %5020 = vmatpush1.bf16.msra.mxu1 %v6548_v42 }
0x141c   :  { %v6434_v58 = vpop.permute.xlu1 %6433  ;;  %v6429_v31 = vpop.permute.xlu0 %6428 }
0x141d   :  { %v6431_v27 = vunpack.i.h.bf16 %v6429_v31  ;;  %v6430_v36 = vunpack.i.l.bf16 %v6429_v31  ;;  %v6436_v32 = vunpack.i.h.bf16 %v6434_v58  ;;  %v6435_v48 = vunpack.i.l.bf16 %v6434_v58 }
0x141f   :  { %v3746_v46 = vsel %vm669_vm1, %v3730_v61, %v6430_v36  ;;  %v4639_v50 = vsel %vm669_vm1, %v4623_v57, %v6431_v27  ;;  %v6545_v57 = vld [vmem:[#allocation20 + $0xc8] ss:$16 sps:$4 sm:$0xff]  }
0x1420   :  { %v6439_v19 = vpop.permute.xlu1 %6438  ;;  %v3747_v3 = vsel %vm1468_vm3, %v3746_v46, %v6435_v48  ;;  %v4640_v4 = vsel %vm1468_vm3, %v4639_v50, %v6436_v32  ;;  %v5702_v50 = vld [vmem:[%s8088_s18] ss:$0 sm:$0xff] }
0x1421   :  { %v6441_v1 = vunpack.i.h.bf16 %v6439_v19  ;;  %v6440_v2 = vunpack.i.l.bf16 %v6439_v19 }
0x1423   :  { %v3748_v5 = vsel %vm1470_vm4, %v3747_v3, %v6440_v2  ;;  %v4641_v6 = vsel %vm1470_vm4, %v4640_v4, %v6441_v1  ;;  %v5703_v4 = vld [vmem:[%s8089_s19] ss:$0 sm:$0xff] }
0x1424   :  { %v4642_v7 = vpack.c.bf16 %v4641_v6, %v3748_v5 }
0x1426   :  { %6366 = vmatmul.mubr.bf16.vlgmr.msra.gmra.mrb[64].mxu0 %v4642_v7 }
0x1427   :  { %5049 = vmatpush1.bf16.msra.mxu0 %v6509_v14  ;;  %5080 = vmatprep.mubr.bf16.mxu0 %v7027_v35  ;;  %v6561_v14 = vld [vmem:[#allocation22 + $0x88] sm:$0xff]  }
0x1428   :  { %5050 = vmatprep.subr.bf16.mxu0 %v6517_v20  ;;  %v6564_v20 = vld [vmem:[#allocation22 + $0x10] sm:$0xff]  }
0x14f9   :  { %v4741_v8 = vpop.f32.mrb[64].mxu0 }
0x14fa   :  { %v4748_v44 = vadd.f32 %v4741_v8, %v7705_v17  ;;  %v6367_v54 = vpop.f32.mrb[65].mxu0  ;;  %v6515_v17 = vld [vmem:[#allocation20 + $0x28] ss:$16 sps:$4 sm:$0xff]  }
0x14fb   :  { %v4744_v61 = vpop.f32.mrb[66].mxu0  ;;  %5051 = vmatpush1.bf16.msra.mxu0 %v6515_v17  ;;  %v6555_v54 = vld [vmem:[#allocation22 + $0xc0] sm:$0xff]   ;;  %v6566_v17 = vld [vmem:[#allocation22 + $0x58] sm:$0xff]  }
0x14fc   :  { %v4749_v9 = vadd.f32 %v4744_v61, %v7707_v43  ;;  %4752 = vadd.xlane.f32.xlu1 %v4748_v44  ;;  %v6368_v10 = vpop.f32.mrb[67].mxu0  ;;  %5052 = vmatprep.subr.bf16.mxu0 %v6523_v56  ;;  %v6556_v61 = vld [vmem:[#allocation22] sm:$0xff]   ;;  %v6576_v56 = vld [vmem:[#allocation22 + $0x28] sm:$0xff]  }
0x14fd   :  { %v6558_v10 = vld [vmem:[#allocation22 + $0x48] sm:$0xff]  }
0x14fe   :  { %4754 = vadd.xlane.f32.xlu0 %v4749_v9 }
0x14ff   :  { %5053 = vmatpush1.bf16.msra.mxu0 %v6521_v60  ;;  %v6578_v60 = vld [vmem:[#allocation22 + $0x70] sm:$0xff]  }
0x1500   :  { %5054 = vmatprep.subr.bf16.mxu0 %v6529_v63  ;;  %v6580_v63 = vld [vmem:[#allocation22 + $0x30] sm:$0xff]  }
0x1503   :  { %5055 = vmatpush1.bf16.msra.mxu0 %v6527_v37  ;;  %v6582_v37 = vld [vmem:[#allocation22 + $0x78] sm:$0xff]  }
0x1504   :  { %5056 = vmatprep.subr.bf16.mxu0 %v6535_v34  ;;  %v6584_v34 = vld [vmem:[#allocation22 + $0x38] sm:$0xff]  }
0x1507   :  { %5057 = vmatpush1.bf16.msra.mxu0 %v6533_v33  ;;  %v4827_v33 = vsub.s32 0, %v7594_v13 }
0x1508   :  { %5058 = vmatprep.subr.bf16.mxu0 %v6541_v47  ;;  %v4823_v47 = vld [vmem:[%s8083_s13] sm:$0xf] }
0x1509   :  { %v4828_v0 = vrot.slane %v4823_v47, %v4827_v33  ;;  %v4832_v18 = vrot.slane %v4823_v47, %v4831_v16 }
0x150b   :  { %5059 = vmatpush1.bf16.msra.mxu0 %v6539_v45  ;;  %v4839_v45 = vsub.s32 3, %v7594_v13 }
0x150c   :  { %5060 = vmatprep.subr.bf16.mxu0 %v6547_v49  ;;  %v4836_v49 = vrot.slane %v4823_v47, %v4835_v39 }
0x150f   :  { %5061 = vmatpush1.bf16.msra.mxu0 %v6545_v57  ;;  %v4840_v57 = vrot.slane %v4823_v47, %v4839_v45 }
0x1510   :  { %5062 = vmatprep.subr.bf16.mxu0 %v6553_v55 }
0x1513   :  { %5063 = vmatpush1.bf16.msra.mxu0 %v6551_v41 }
0x1514   :  { %5963 = vmatprep.subr.bf16.mxu0 %v6555_v54 }
0x1589   :  { %v4753_v43 = vpop.xlane.xlu1 %4752 }
0x158a   :  { %v4756_v23 = vmul.f32 0.0078125, %v4753_v43  ;;  %v6567_v43 = vld [vmem:[#allocation22 + $0xd8] sm:$0xff]  }
0x158b   :  { %v4755_v24 = vpop.xlane.xlu0 %4754 }
0x158c   :  { %v7973_v25 = vsub.f32 %v4748_v44, %v4756_v23  ;;  %v4757_v26 = vmul.f32 0.0078125, %v4755_v24  ;;  %v6554_v44 = vld [vmem:[#allocation22 + $0x40] sm:$0xff]   ;;  %v6568_v23 = vld [vmem:[#allocation22 + $0x18] sm:$0xff]  }
0x158d   :  { %5941 = vmatprep.subr.bf16.mxu1 %v6554_v44  ;;  %v6569_v24 = vld [vmem:[#allocation22 + $0x98] sm:$0xff]  }
0x158e   :  { %v7975_v28 = vsub.f32 %v4749_v9, %v4757_v26  ;;  %v4760_v53 = vmul.f32 %v7973_v25, %v7973_v25  ;;  %v6557_v9 = vld [vmem:[#allocation22 + $0x80] sm:$0xff]  }
0x158f   :  { %v6571_v26 = vld [vmem:[#allocation22 + $0xe0] sm:$0xff]  }
0x1590   :  { %4762 = vadd.xlane.f32.xlu0 %v4760_v53  ;;  %v4761_v22 = vmul.f32 %v7975_v28, %v7975_v28  ;;  %v6573_v53 = vld [vmem:[#allocation22 + $0xa0] sm:$0xff]  }
0x1592   :  { %4764 = vadd.xlane.f32.xlu1 %v4761_v22  ;;  %v6574_v22 = vld [vmem:[#allocation22 + $0x68] sm:$0xff]  }
0x161d   :  { %v4763_v58 = vpop.xlane.xlu0 %4762 }
0x161e   :  { %v4766_v31 = vmul.f32 0.0078125, %v4763_v58 }
0x161f   :  { %v4765_v27 = vpop.xlane.xlu1 %4764 }
0x1620   :  { %v4768_v36 = vadd.f32 1e-05, %v4766_v31  ;;  %v4767_v32 = vmul.f32 0.0078125, %v4765_v27 }
0x1622   :  { %6654 = vrsqrt.f32 %v4768_v36  ;;  %v4769_v48 = vadd.f32 1e-05, %v4767_v32 }
0x1624   :  { %6656 = vrsqrt.f32 %v4769_v48 }
0x162c   :  { %v6655_v46 = vpop.eup %6654 }
0x162d   :  { %v4772_v19 = vmul.f32 %v6655_v46, %v7973_v25  ;;  %v6570_v25 = vld [vmem:[#allocation22 + $0x60] sm:$0xff]  }
0x162e   :  { %v6657_v1 = vpop.eup %6656 }
0x162f   :  { %v4773_v2 = vmul.f32 %v6657_v1, %v7975_v28  ;;  %v4780_v3 = vmul.f32 %v5702_v50, %v4772_v19  ;;  %v6572_v28 = vld [vmem:[#allocation22 + $0x20] sm:$0xff]  }
0x1631   :  { %v4781_v5 = vmul.f32 %v5702_v50, %v4773_v2  ;;  %v7989_v6 = vadd.f32 %v5703_v4, %v4780_v3 }
0x1633   :  { %v7991_v7 = vadd.f32 %v5703_v4, %v4781_v5 }
0x1635   :  { %v4790_v8 = vpack.c.bf16 %v7991_v7, %v7989_v6 }
0x1637   :  { %5038 = vmatmul.mubr.bf16.vlgmr.msra.gmra.mrb[92].mxu1 %v4790_v8  ;;  %5081 = vmatmul.mubr.bf16.vlgmr.msra.gmra.mrb[68].mxu0 %v4790_v8 }
0x1638   :  { %5942 = vmatpush3.bf16.msra.mxu1 %v6556_v61  ;;  %5964 = vmatpush3.bf16.msra.mxu0 %v6557_v9 }
0x1639   :  { %5943 = vmatprep.subr.bf16.mxu1 %v6558_v10  ;;  %5965 = vmatprep.subr.bf16.mxu0 %v6559_v11 }
0x163c   :  { %5944 = vmatpush3.bf16.msra.mxu1 %v6560_v12  ;;  %5966 = vmatpush3.bf16.msra.mxu0 %v6561_v14 }
0x163d   :  { %5945 = vmatprep.subr.bf16.mxu1 %v6562_v15  ;;  %5967 = vmatprep.subr.bf16.mxu0 %v6563_v52 }
0x1640   :  { %5946 = vmatpush3.bf16.msra.mxu1 %v6564_v20  ;;  %5968 = vmatpush3.bf16.msra.mxu0 %v6565_v21 }
0x1641   :  { %5947 = vmatprep.subr.bf16.mxu1 %v6566_v17  ;;  %5969 = vmatprep.subr.bf16.mxu0 %v6567_v43 }
0x1644   :  { %5948 = vmatpush3.bf16.msra.mxu1 %v6568_v23  ;;  %5970 = vmatpush3.bf16.msra.mxu0 %v6569_v24 }
0x1645   :  { %5949 = vmatprep.subr.bf16.mxu1 %v6570_v25  ;;  %5971 = vmatprep.subr.bf16.mxu0 %v6571_v26 }
0x1648   :  { %5950 = vmatpush3.bf16.msra.mxu1 %v6572_v28  ;;  %5972 = vmatpush3.bf16.msra.mxu0 %v6573_v53 }
0x1649   :  { %5951 = vmatprep.subr.bf16.mxu1 %v6574_v22  ;;  %5973 = vmatprep.subr.bf16.mxu0 %v6575_v51 }
0x164c   :  { %5952 = vmatpush3.bf16.msra.mxu1 %v6576_v56  ;;  %5974 = vmatpush3.bf16.msra.mxu0 %v6577_v38 }
0x164d   :  { %5953 = vmatprep.subr.bf16.mxu1 %v6578_v60  ;;  %5975 = vmatprep.subr.bf16.mxu0 %v6579_v62 }
0x1650   :  { %5954 = vmatpush3.bf16.msra.mxu1 %v6580_v63  ;;  %5976 = vmatpush3.bf16.msra.mxu0 %v6581_v40 }
0x1651   :  { %5955 = vmatprep.subr.bf16.mxu1 %v6582_v37  ;;  %5977 = vmatprep.subr.bf16.mxu0 %v6583_v30 }
0x1654   :  { %5956 = vmatpush3.bf16.msra.mxu1 %v6584_v34  ;;  %5978 = vmatpush3.bf16.msra.mxu0 %v6585_v29 }
0x170a   :  { %v5039_v42 = vpop.f32.mrb[92].mxu1  ;;  %v5082_v59 = vpop.f32.mrb[68].mxu0 }
0x170b   :  { %v8002_v41 = vadd.f32 %v5039_v42, %v4828_v0  ;;  %v8004_v55 = vadd.f32 %v5082_v59, %v4836_v49  ;;  %v5041_v35 = vpop.f32.mrb[93].mxu1  ;;  %v5084_v58 = vpop.f32.mrb[69].mxu0 }
0x170c   :  { %v8006_v31 = vadd.f32 %v5041_v35, %v4832_v18  ;;  %v8008_v27 = vadd.f32 %v5084_v58, %v4840_v57  ;;  %v5043_v36 = vpop.f32.mrb[94].mxu1  ;;  %v5086_v32 = vpop.f32.mrb[70].mxu0 }
0x170d   :  { %v5099_v13 = vmul.f32 0.044715, %v8002_v41  ;;  %v5101_v48 = vmul.f32 0.044715, %v8004_v55  ;;  %v5044_v46 = vadd.f32 %v5043_v36, %v4828_v0  ;;  %v5087_v50 = vadd.f32 %v5086_v32, %v4836_v49  ;;  %v5045_v19 = vpop.f32.mrb[95].mxu1  ;;  %v5088_v1 = vpop.f32.mrb[71].mxu0 }
0x170e   :  { %v5100_v2 = vmul.f32 0.044715, %v8006_v31  ;;  %v5102_v3 = vmul.f32 0.044715, %v8008_v27  ;;  %v8014_v4 = vadd.f32 %v5045_v19, %v4832_v18  ;;  %v8016_v5 = vadd.f32 %v5088_v1, %v4840_v57 }
0x170f   :  { %v5107_v8 = vmul.f32 %v5099_v13, %v8002_v41  ;;  %v5109_v44 = vmul.f32 %v5101_v48, %v8004_v55  ;;  %v5103_v54 = vmul.f32 0.044715, %v5044_v46  ;;  %v5105_v61 = vmul.f32 0.044715, %v5087_v50 }
0x1710   :  { %v5108_v9 = vmul.f32 %v5100_v2, %v8006_v31  ;;  %v5110_v10 = vmul.f32 %v5102_v3, %v8008_v27  ;;  %v5104_v11 = vmul.f32 0.044715, %v8014_v4  ;;  %v5106_v12 = vmul.f32 0.044715, %v8016_v5 }
0x1711   :  { %v5115_v14 = vmul.f32 %v5107_v8, %v8002_v41  ;;  %v5117_v15 = vmul.f32 %v5109_v44, %v8004_v55  ;;  %v5111_v52 = vmul.f32 %v5103_v54, %v5044_v46  ;;  %v5113_v20 = vmul.f32 %v5105_v61, %v5087_v50 }
0x1712   :  { %v5116_v21 = vmul.f32 %v5108_v9, %v8006_v31  ;;  %v5118_v17 = vmul.f32 %v5110_v10, %v8008_v27  ;;  %v5112_v43 = vmul.f32 %v5104_v11, %v8014_v4  ;;  %v5114_v23 = vmul.f32 %v5106_v12, %v8016_v5 }
0x1713   :  { %v5123_v24 = vadd.f32 %v5115_v14, %v8002_v41  ;;  %v5125_v25 = vadd.f32 %v5117_v15, %v8004_v55  ;;  %v5119_v26 = vmul.f32 %v5111_v52, %v5044_v46  ;;  %v5121_v28 = vmul.f32 %v5113_v20, %v5087_v50 }
0x1714   :  { %v5120_v53 = vmul.f32 %v5112_v43, %v8014_v4  ;;  %v5122_v22 = vmul.f32 %v5114_v23, %v8016_v5  ;;  %v5124_v62 = vadd.f32 %v5116_v21, %v8006_v31  ;;  %v5126_v30 = vadd.f32 %v5118_v17, %v8008_v27 }
0x1715   :  { %v5131_v51 = vmul.f32 0.7978846, %v5123_v24  ;;  %v5133_v56 = vmul.f32 0.7978846, %v5125_v25  ;;  %v5127_v38 = vadd.f32 %v5119_v26, %v5044_v46  ;;  %v5129_v60 = vadd.f32 %v5121_v28, %v5087_v50 }
0x1716   :  { %v5128_v63 = vadd.f32 %v5120_v53, %v8014_v4  ;;  %v5132_v34 = vmul.f32 0.7978846, %v5124_v62  ;;  %v5130_v33 = vadd.f32 %v5122_v22, %v8016_v5  ;;  %v5134_v39 = vmul.f32 0.7978846, %v5126_v30 }
0x1717   :  { %6658 = vtanh.f32 %v5131_v51  ;;  %v5135_v40 = vmul.f32 0.7978846, %v5127_v38  ;;  %v5137_v37 = vmul.f32 0.7978846, %v5129_v60  ;;  %v5091_v42 = vmul.f32 0.5, %v8002_v41 }
0x1718   :  { %6660 = vtanh.f32 %v5133_v56  ;;  %v5136_v29 = vmul.f32 0.7978846, %v5128_v63  ;;  %v5138_v47 = vmul.f32 0.7978846, %v5130_v33  ;;  %v5095_v59 = vmul.f32 0.5, %v5044_v46 }
0x1719   :  { %6662 = vtanh.f32 %v5135_v40  ;;  %v5093_v36 = vmul.f32 0.5, %v8004_v55  ;;  %v5097_v32 = vmul.f32 0.5, %v5087_v50  ;;  %v5092_v19 = vmul.f32 0.5, %v8006_v31 }
0x171a   :  { %6664 = vtanh.f32 %v5137_v37  ;;  %v5096_v44 = vmul.f32 0.5, %v8014_v4  ;;  %v5094_v46 = vmul.f32 0.5, %v8008_v27  ;;  %v5098_v10 = vmul.f32 0.5, %v8016_v5  ;;  %v5736_v27 = vld [vmem:[%s8085_s15] ss:$0 sm:$0xff] }
0x171b   :  { %6666 = vtanh.f32 %v5132_v34 }
0x171c   :  { %6668 = vtanh.f32 %v5136_v29 }
0x171d   :  { %6670 = vtanh.f32 %v5134_v39 }
0x171e   :  { %6672 = vtanh.f32 %v5138_v47 }
0x1721   :  { %v6659_v16 = vpop.eup %6658 }
0x1722   :  { %v6661_v45 = vpop.eup %6660  ;;  %v5147_v0 = vadd.f32 1.0, %v6659_v16 }
0x1723   :  { %v6663_v49 = vpop.eup %6662  ;;  %v5149_v18 = vadd.f32 1.0, %v6661_v45 }
0x1724   :  { %v6665_v57 = vpop.eup %6664  ;;  %v5151_v35 = vadd.f32 1.0, %v6663_v49  ;;  %v5155_v2 = vmul.f32 %v5147_v0, %v5091_v42  ;;  %v5769_v42 = vld [vmem:[%s8124_s26] ss:$0 sm:$0xff] }
0x1725   :  { %v6667_v58 = vpop.eup %6666  ;;  %v5153_v13 = vadd.f32 1.0, %v6665_v57  ;;  %v5157_v61 = vmul.f32 %v5149_v18, %v5093_v36 }
0x1726   :  { %v6669_v48 = vpop.eup %6668  ;;  %v5148_v1 = vadd.f32 1.0, %v6667_v58  ;;  %v5159_v3 = vmul.f32 %v5151_v35, %v5095_v59  ;;  %v5770_v58 = vld [vmem:[%s8125_s10] ss:$0 sm:$0xff] }
0x1727   :  { %v6671_v8 = vpop.eup %6670  ;;  %v5152_v54 = vadd.f32 1.0, %v6669_v48  ;;  %v5161_v9 = vmul.f32 %v5153_v13, %v5097_v32 }
0x1728   :  { %v6673_v41 = vpop.eup %6672  ;;  %v5150_v55 = vadd.f32 1.0, %v6671_v8  ;;  %v5163_v50 = vpack.c.bf16 %v5159_v3, %v5155_v2  ;;  %v5156_v11 = vmul.f32 %v5148_v1, %v5092_v19 }
0x1729   :  { %v5160_v12 = vmul.f32 %v5152_v54, %v5096_v44  ;;  %v5154_v14 = vadd.f32 1.0, %v6673_v41  ;;  %v5165_v31 = vpack.c.bf16 %v5161_v9, %v5157_v61 }
0x172a   :  { %v5158_v52 = vmul.f32 %v5150_v55, %v5094_v46 }
0x172b   :  { %v5164_v15 = vpack.c.bf16 %v5160_v12, %v5156_v11  ;;  %v5162_v20 = vmul.f32 %v5154_v14, %v5098_v10 }
0x172d   :  { %5462 = vmatprep.mubr.bf16.mxu1 %v5164_v15  ;;  %v5166_v21 = vpack.c.bf16 %v5162_v20, %v5158_v52 }
0x172e   :  { %5463 = vmatmul.mubr.bf16.vlgmr.msra.gmra.mrb[96].mxu1 %v5163_v50 }
0x172f   :  { %5503 = vmatprep.mubr.bf16.mxu0 %v5166_v21 }
0x1730   :  { %5504 = vmatmul.mubr.bf16.vlgmr.msra.gmra.mrb[72].mxu0 %v5165_v31 }
0x1801   :  { %v5957_v4 = vpop.f32.mrb[96].mxu1 }
0x1802   :  { %v5958_v5 = vpop.f32.mrb[97].mxu1 }
0x1803   :  { %v5979_v17 = vpop.f32.mrb[72].mxu0  ;;  %v5959_v43 = vadd.f32 %v5958_v5, %v5957_v4  ;;  %v5960_v23 = vpop.f32.mrb[98].mxu1 }
0x1804   :  { %v5980_v24 = vpop.f32.mrb[73].mxu0  ;;  %v5961_v25 = vpop.f32.mrb[99].mxu1 }
0x1805   :  { %v5465_v26 = vadd.f32 %v5959_v43, %v5736_v27  ;;  %v5981_v28 = vadd.f32 %v5980_v24, %v5979_v17  ;;  %v5982_v53 = vpop.f32.mrb[74].mxu0  ;;  %v5962_v22 = vadd.f32 %v5961_v25, %v5960_v23 }
0x1806   :  { %v5983_v51 = vpop.f32.mrb[75].mxu0 }
0x1807   :  { %v5506_v56 = vadd.f32 %v5981_v28, %v5465_v26  ;;  %v5468_v38 = vadd.f32 %v5962_v22, %v5736_v27  ;;  %v5984_v60 = vadd.f32 %v5983_v51, %v5982_v53 }
0x1809   :  { %v5509_v62 = vadd.f32 %v5984_v60, %v5468_v38  ;;  %v5512_v63 = vadd.f32 %v5506_v56, %v7989_v6 }
0x180b   :  { %5516 = vadd.xlane.f32.xlu0 %v5512_v63  ;;  %v5513_v40 = vadd.f32 %v5509_v62, %v7991_v7 }
0x180d   :  { %5518 = vadd.xlane.f32.xlu1 %v5513_v40 }
0x1898   :  { %v5517_v37 = vpop.xlane.xlu0 %5516 }
0x1899   :  { %v5520_v30 = vmul.f32 0.0078125, %v5517_v37 }
0x189a   :  { %v5519_v34 = vpop.xlane.xlu1 %5518 }
0x189b   :  { %v5522_v29 = vsub.f32 %v5512_v63, %v5520_v30  ;;  %v5521_v33 = vmul.f32 0.0078125, %v5519_v34 }
0x189d   :  { %v5523_v39 = vsub.f32 %v5513_v40, %v5521_v33  ;;  %v5524_v47 = vmul.f32 %v5522_v29, %v5522_v29 }
0x189f   :  { %5526 = vadd.xlane.f32.xlu0 %v5524_v47  ;;  %v5525_v16 = vmul.f32 %v5523_v39, %v5523_v39 }
0x18a1   :  { %5528 = vadd.xlane.f32.xlu1 %v5525_v16 }
0x192c   :  { %v5527_v45 = vpop.xlane.xlu0 %5526 }
0x192d   :  { %v5530_v0 = vmul.f32 0.0078125, %v5527_v45 }
0x192e   :  { %v5529_v49 = vpop.xlane.xlu1 %5528 }
0x192f   :  { %v5532_v18 = vadd.f32 1e-05, %v5530_v0  ;;  %v5531_v57 = vmul.f32 0.0078125, %v5529_v49 }
0x1931   :  { %6674 = vrsqrt.f32 %v5532_v18  ;;  %v5533_v6 = vadd.f32 1e-05, %v5531_v57 }
0x1933   :  { %6676 = vrsqrt.f32 %v5533_v6 }
0x193b   :  { %v6675_v7 = vpop.eup %6674 }
0x193c   :  { %v5536_v59 = vmul.f32 %v6675_v7, %v5522_v29 }
0x193d   :  { %v6677_v35 = vpop.eup %6676 }
0x193e   :  { %v5537_v36 = vmul.f32 %v6677_v35, %v5523_v39  ;;  %v5544_v32 = vmul.f32 %v5769_v42, %v5536_v59 }
0x1940   :  { %v5545_v13 = vmul.f32 %v5769_v42, %v5537_v36  ;;  %v5552_v48 = vadd.f32 %v5770_v58, %v5544_v32 }
0x1942   :  { %v5553_v19 = vadd.f32 %v5770_v58, %v5545_v13  ;;  %5554 = vst [vmem:[#allocation23] sm:$0xff] %v5552_v48 }
0x1944   :  { %5555 = vst [vmem:[#allocation23 + $0x8] sm:$0xff] %v5553_v19 }
0x1945   :  { %6975 = shalt.err (!%p6972_p10)
}
0x1946   :  { %s8126_s11 = sld [smem:[#allocation41_spill]] }
0x194c   :  { %s6976_s29 = scalar_lea.hbm %s8126_s11, 256 }
0x194d   :  { %p6977_p11 = scmp.ne.s32.totalorder %s8126_s11, %s6976_s29  ;;  %p6980_p12 = scmp.lt.u32.totalorder %s6976_s29, %s8126_s11 }
0x194f   :  { %p6982_p13 = pnand %p6980_p12, %p6977_p11 }
0x1951   :  { %6985 = shalt.err (!%p6982_p13)
}
0x1952   :  { %5567 = dma.vmem_to_hbm [thread:$0]  %s5562_s5, 256, %s8126_s11, [#allocation4], %s8120_s27, %s8120_s27, %s8119_s1  }
0x1953   :  { %7000 = dma.done.wait [#allocation4], 256  }
0x1954   :  { %7001 = vsyncadd [#allocation4], 4294967040 }
0x1955   :  { %5571 = vsyncpa [#allocation3], 1 }
0x1956   :  { %5572 = vsyncpa [#allocation6], 1 }
0x1957   :  { %5573 = vsyncpa [#allocation9], 1 }
0x1958   :  { %5574 = vsyncpa [#allocation12], 1 }
0x1959   :  { %5575 = vsyncpa [#allocation15], 1 }
0x195a   :  { %5576 = vsyncpa [#allocation18], 1 }
0x195b   :  { %5577 = vsyncpa [#allocation21], 1 }
0x195c   :  { %5578 = vsyncpa [#allocation4], 1 }

</bundles_post_ra>
